<compile_context>
chip_gen: v7x
topology: tpu7x:2x2x1
jax: 0.10.0
libtpu: 0.0.40
codegen_flags: <defaults>
</compile_context>

<pallas_src>
import functools

import jax
import jax.numpy as jnp
import numpy as np
from jax.experimental import pallas as pl
from jax.experimental.pallas import tpu as pltpu

BN_EPS = 1e-5


# ----------------------------- Pallas kernel --------------------------------

def _residual_block_kernel(*refs, hout, wout, h, w, cin, cout, stride,
                           has_proj):
    """Fused ResidualBlock forward for one batch element (channel-major)."""
    if has_proj:
        (xp_ref, w1_ref, b1_ref, w2_ref, b2_ref, ws_ref, bs_ref,
         o_ref, yp_ref) = refs
    else:
        (xp_ref, w1_ref, b1_ref, w2_ref, b2_ref, o_ref, yp_ref) = refs
        ws_ref = bs_ref = None

    hw = hout * wout
    xp = xp_ref[0]                                  # (cin, H+2, W+2)

    # ---- conv1: 3x3 (stride) via im2col -> single K=9*cin matmul ----------
    taps = []
    for ky in range(3):
        for kx in range(3):
            t = xp[:, ky:ky + (hout - 1) * stride + 1:stride,
                     kx:kx + (wout - 1) * stride + 1:stride]   # (cin,hout,wout)
            taps.append(t.reshape(cin, hw))
    patches = jnp.concatenate(taps, axis=0)         # (9*cin, hout*wout)
    y = jnp.dot(w1_ref[...], patches,               # (cout, hout*wout)
                preferred_element_type=jnp.float32)
    y = y + b1_ref[...]                             # folded-BN bias
    y = y * jax.nn.sigmoid(y)                       # SiLU
    # TODO(synk): Dropout2d(p=0.1) is identity in eval mode; training-mode
    # channel dropout / batch-stat BN are not implemented.

    # ---- keep the padded intermediate in VMEM scratch (no HBM round-trip) -
    yp_ref[...] = jnp.zeros_like(yp_ref)            # halo = 0
    yp_ref[:, 1:hout + 1, 1:wout + 1] = y.reshape(cout, hout, wout)
    yp = yp_ref[...]                                # (cout, hout+2, wout+2)

    # ---- conv2: 3x3 stride-1 via im2col -> single K=9*cout matmul ---------
    taps2 = []
    for ky in range(3):
        for kx in range(3):
            taps2.append(yp[:, ky:ky + hout, kx:kx + wout].reshape(cout, hw))
    p2 = jnp.concatenate(taps2, axis=0)             # (9*cout, hout*wout)
    main = jnp.dot(w2_ref[...], p2, preferred_element_type=jnp.float32)
    main = main + b2_ref[...]

    # ---- shortcut (reuses the already-resident padded input, sliced once) -
    xs = xp[:, 1:1 + h:stride, 1:1 + w:stride].reshape(cin, hw)
    if has_proj:
        short = jnp.dot(ws_ref[...], xs, preferred_element_type=jnp.float32)
        short = short + bs_ref[...]
    else:
        short = xs                                  # identity (cin == cout)

    out = main + short
    out = out * jax.nn.sigmoid(out)                 # final SiLU
    o_ref[0] = out                                  # (cout, hout*wout), lane-dense


# ------------------------------- Wrapper -------------------------------------

def _pack_operands(params, cin, cout, has_proj):
    """Fold BN scale into weights and reshape to channel-major matmul form."""
    w1m = (params["w1"] * params["sc1"]).reshape(9 * cin, cout).T   # (cout,9cin)
    b1 = params["b1"][:, None]                                      # (cout,1)
    w2m = (params["w2"] * params["sc2"]).reshape(9 * cout, cout).T  # (cout,9cout)
    b2 = params["b2"][:, None]
    if has_proj:
        wsm = (params["ws"] * params["scs"]).T                      # (cout,cin)
        bs = params["bs"][:, None]
    else:
        wsm = bs = None
    return w1m, b1, w2m, b2, wsm, bs


@functools.partial(jax.jit, static_argnames=("stride",))
def residual_block(x_nchw, params, stride=1):
    x = x_nchw.astype(jnp.float32)                  # NCHW (already channel-major)
    n, cin, h, w = x.shape
    cout = params["w1"].shape[-1]
    hout = (h - 1) // stride + 1
    wout = (w - 1) // stride + 1
    has_proj = (stride != 1) or (cin != cout)

    w1m, b1, w2m, b2, wsm, bs = _pack_operands(params, cin, cout, has_proj)

    xp = jnp.pad(x, ((0, 0), (0, 0), (1, 1), (1, 1)))
    hp, wp = h + 2, w + 2

    kern = functools.partial(_residual_block_kernel, hout=hout, wout=wout,
                             h=h, w=w, cin=cin, cout=cout, stride=stride,
                             has_proj=has_proj)

    in_specs = [
        pl.BlockSpec((1, cin, hp, wp), lambda i: (i, 0, 0, 0)),
        pl.BlockSpec((cout, 9 * cin), lambda i: (0, 0)),
        pl.BlockSpec((cout, 1), lambda i: (0, 0)),
        pl.BlockSpec((cout, 9 * cout), lambda i: (0, 0)),
        pl.BlockSpec((cout, 1), lambda i: (0, 0)),
    ]
    args = [xp, w1m, b1, w2m, b2]
    if has_proj:
        in_specs += [pl.BlockSpec((cout, cin), lambda i: (0, 0)),
                     pl.BlockSpec((cout, 1), lambda i: (0, 0))]
        args += [wsm, bs]

    out = pl.pallas_call(
        kern,
        out_shape=jax.ShapeDtypeStruct((n, cout, hout * wout), jnp.float32),
        grid=(n,),
        in_specs=in_specs,
        out_specs=pl.BlockSpec((1, cout, hout * wout), lambda i: (i, 0, 0)),
        scratch_shapes=[pltpu.VMEM((cout, hout + 2, wout + 2), jnp.float32)],
        compiler_params=pltpu.CompilerParams(
            dimension_semantics=("parallel",)),
    )(*args)

    return out.reshape(n, cout, hout, wout)          # NCHW already; free reshape


# --------------------------- Parameter init ---------------------------------

def init_params(key, cin, cout, stride):
    """Matches nn.init.kaiming_normal_(nonlinearity='relu'), zero conv biases,
    fresh BatchNorm stats (gamma=1, beta=0, mean=0, var=1) folded to
    per-channel (scale, bias)."""
    k1, k2, k3 = jax.random.split(key, 3)

    def kaiming(k, shape, fan_in):
        std = float(np.sqrt(2.0 / fan_in))
        return std * jax.random.normal(k, shape, jnp.float32)

    w1 = kaiming(k1, (3, 3, cin, cout), cin * 9)     # HWIO
    w2 = kaiming(k2, (3, 3, cout, cout), cout * 9)

    sc = jnp.full((cout,), 1.0 / np.sqrt(1.0 + BN_EPS), jnp.float32)
    b = jnp.zeros((cout,), jnp.float32)

    p = dict(w1=w1, sc1=sc, b1=b, w2=w2, sc2=sc, b2=b)
    if (stride != 1) or (cin != cout):
        p.update(ws=kaiming(k3, (cin, cout), cin), scs=sc, bs=b)
    return p


# --------------------------- Pure-JAX reference ------------------------------

def residual_block_ref(x_nchw, params, stride=1):
    x = jnp.transpose(x_nchw, (0, 2, 3, 1)).astype(jnp.float32)
    dn = ("NHWC", "HWIO", "NHWC")
    cin = x.shape[-1]
    cout = params["w1"].shape[-1]

    y = jax.lax.conv_general_dilated(x, params["w1"], (stride, stride),
                                     ((1, 1), (1, 1)), dimension_numbers=dn)
    y = y * params["sc1"] + params["b1"]
    y = y * jax.nn.sigmoid(y)
    y = jax.lax.conv_general_dilated(y, params["w2"], (1, 1),
                                     ((1, 1), (1, 1)), dimension_numbers=dn)
    y = y * params["sc2"] + params["b2"]

    if stride != 1 or cin != cout:
        s = jax.lax.conv_general_dilated(x, params["ws"][None, None],
                                         (stride, stride), ((0, 0), (0, 0)),
                                         dimension_numbers=dn)
        s = s * params["scs"] + params["bs"]
    else:
        s = x
    o = y + s
    o = o * jax.nn.sigmoid(o)
    return jnp.transpose(o, (0, 3, 1, 2))


# --------------------------------- Main --------------------------------------

if __name__ == "__main__":
    key = jax.random.PRNGKey(0)

    # Config A: projection shortcut (Cin != Cout).
    # Config B: identity shortcut (Cin == Cout, stride 1) - exercises the
    #           path that skips the projection weight DMAs.
    for (c_in, c_out, stride) in [(8, 16, 1), (16, 16, 1)]:
        kx, kp, key = jax.random.split(key, 3)
        N, H, W = 2, 16, 16
        x = jax.random.normal(kx, (N, c_in, H, W), jnp.float32)   # NCHW
        params = init_params(kp, c_in, c_out, stride)

        out = jax.block_until_ready(residual_block(x, params, stride=stride))
        ref = jax.block_until_ready(residual_block_ref(x, params, stride=stride))
        np.testing.assert_allclose(np.asarray(out), np.asarray(ref),
                                   rtol=1e-4, atol=1e-4)
        assert out.shape == (N, c_out, H // stride, W // stride)

    print("KERNEL_OK")
</pallas_src>

<mosaic_0001>
module attributes {stable_mosaic.version = 11 : i64} {
  func.func @_residual_block_kernel(%arg0: i32, %arg1: memref<1x8x18x18xf32, #tpu.memory_space<vmem>>, %arg2: memref<16x72xf32, #tpu.memory_space<vmem>>, %arg3: memref<16x1xf32, #tpu.memory_space<vmem>>, %arg4: memref<16x144xf32, #tpu.memory_space<vmem>>, %arg5: memref<16x1xf32, #tpu.memory_space<vmem>>, %arg6: memref<16x8xf32, #tpu.memory_space<vmem>>, %arg7: memref<16x1xf32, #tpu.memory_space<vmem>>, %arg8: memref<1x16x256xf32, #tpu.memory_space<vmem>>, %arg9: memref<16x18x18xf32, #tpu.memory_space<vmem>>) attributes {dimension_semantics = [#tpu.dimension_semantics<parallel>], iteration_bounds = array<i64: 2>, scalar_prefetch = 0 : i64, scratch_operands = 1 : i64, tpu.core_type = #tpu.core_type<tc>, window_params = [{transform_indices = @transform_0, window_bounds = array<i64: 1, 8, 18, 18>}, {pipeline_mode = #tpu.pipeline_mode<synchronous>, transform_indices = @transform_1, window_bounds = array<i64: 16, 72>}, {pipeline_mode = #tpu.pipeline_mode<synchronous>, transform_indices = @transform_2, window_bounds = array<i64: 16, 1>}, {pipeline_mode = #tpu.pipeline_mode<synchronous>, transform_indices = @transform_3, window_bounds = array<i64: 16, 144>}, {pipeline_mode = #tpu.pipeline_mode<synchronous>, transform_indices = @transform_4, window_bounds = array<i64: 16, 1>}, {pipeline_mode = #tpu.pipeline_mode<synchronous>, transform_indices = @transform_5, window_bounds = array<i64: 16, 8>}, {pipeline_mode = #tpu.pipeline_mode<synchronous>, transform_indices = @transform_6, window_bounds = array<i64: 16, 1>}, {transform_indices = @transform_7, window_bounds = array<i64: 1, 16, 256>}]} {
    %c0 = arith.constant 0 : index
    %c0_0 = arith.constant 0 : index
    %c0_1 = arith.constant 0 : index
    %c0_2 = arith.constant 0 : index
    %0 = vector.load %arg1[%c0, %c0_0, %c0_1, %c0_2] : memref<1x8x18x18xf32, #tpu.memory_space<vmem>>, vector<1x8x18x18xf32>
    %1 = vector.shape_cast %0 : vector<1x8x18x18xf32> to vector<8x18x18xf32>
    %2 = vector.extract_strided_slice %1 {offsets = [0, 0, 0], sizes = [8, 16, 16], strides = [1, 1, 1]} : vector<8x18x18xf32> to vector<8x16x16xf32>
    %3 = vector.shape_cast %2 : vector<8x16x16xf32> to vector<8x256xf32>
    %4 = vector.extract_strided_slice %1 {offsets = [0, 0, 1], sizes = [8, 16, 16], strides = [1, 1, 1]} : vector<8x18x18xf32> to vector<8x16x16xf32>
    %5 = vector.shape_cast %4 : vector<8x16x16xf32> to vector<8x256xf32>
    %6 = vector.extract_strided_slice %1 {offsets = [0, 0, 2], sizes = [8, 16, 16], strides = [1, 1, 1]} : vector<8x18x18xf32> to vector<8x16x16xf32>
    %7 = vector.shape_cast %6 : vector<8x16x16xf32> to vector<8x256xf32>
    %8 = vector.extract_strided_slice %1 {offsets = [0, 1, 0], sizes = [8, 16, 16], strides = [1, 1, 1]} : vector<8x18x18xf32> to vector<8x16x16xf32>
    %9 = vector.shape_cast %8 : vector<8x16x16xf32> to vector<8x256xf32>
    %10 = vector.extract_strided_slice %1 {offsets = [0, 1, 1], sizes = [8, 16, 16], strides = [1, 1, 1]} : vector<8x18x18xf32> to vector<8x16x16xf32>
    %11 = vector.shape_cast %10 : vector<8x16x16xf32> to vector<8x256xf32>
    %12 = vector.extract_strided_slice %1 {offsets = [0, 1, 2], sizes = [8, 16, 16], strides = [1, 1, 1]} : vector<8x18x18xf32> to vector<8x16x16xf32>
    %13 = vector.shape_cast %12 : vector<8x16x16xf32> to vector<8x256xf32>
    %14 = vector.extract_strided_slice %1 {offsets = [0, 2, 0], sizes = [8, 16, 16], strides = [1, 1, 1]} : vector<8x18x18xf32> to vector<8x16x16xf32>
    %15 = vector.shape_cast %14 : vector<8x16x16xf32> to vector<8x256xf32>
    %16 = vector.extract_strided_slice %1 {offsets = [0, 2, 1], sizes = [8, 16, 16], strides = [1, 1, 1]} : vector<8x18x18xf32> to vector<8x16x16xf32>
    %17 = vector.shape_cast %16 : vector<8x16x16xf32> to vector<8x256xf32>
    %18 = vector.extract_strided_slice %1 {offsets = [0, 2, 2], sizes = [8, 16, 16], strides = [1, 1, 1]} : vector<8x18x18xf32> to vector<8x16x16xf32>
    %19 = vector.shape_cast %18 : vector<8x16x16xf32> to vector<8x256xf32>
    %20 = tpu.concatenate %3, %5, %7, %9, %11, %13, %15, %17, %19 in 0 : vector<8x256xf32>, vector<8x256xf32>, vector<8x256xf32>, vector<8x256xf32>, vector<8x256xf32>, vector<8x256xf32>, vector<8x256xf32>, vector<8x256xf32>, vector<8x256xf32> -> vector<72x256xf32>
    %c0_3 = arith.constant 0 : index
    %c0_4 = arith.constant 0 : index
    %21 = vector.load %arg2[%c0_3, %c0_4] : memref<16x72xf32, #tpu.memory_space<vmem>>, vector<16x72xf32>
    %cst = arith.constant dense<0.000000e+00> : vector<16x256xf32>
    %22 = tpu.matmul %21, %20, %cst {dimension_numbers = #tpu.dot_dimension_numbers<[1], [0], [0], [1], [0, 0, 1, 1], [], []>} : vector<16x72xf32>, vector<72x256xf32>, vector<16x256xf32> -> vector<16x256xf32>
    %c0_5 = arith.constant 0 : index
    %c0_6 = arith.constant 0 : index
    %23 = vector.load %arg3[%c0_5, %c0_6] : memref<16x1xf32, #tpu.memory_space<vmem>>, vector<16x1xf32>
    %24 = vector.broadcast %23 : vector<16x1xf32> to vector<16x256xf32>
    %25 = arith.addf %22, %24 : vector<16x256xf32>
    %26 = arith.negf %25 : vector<16x256xf32>
    %27 = math.exp %26 : vector<16x256xf32>
    %cst_7 = arith.constant 1.000000e+00 : f32
    %28 = vector.broadcast %cst_7 : f32 to vector<16x256xf32>
    %29 = arith.addf %28, %27 : vector<16x256xf32>
    %30 = arith.divf %28, %29 : vector<16x256xf32>
    %31 = arith.mulf %25, %30 : vector<16x256xf32>
    %cst_8 = arith.constant 0.000000e+00 : f32
    %32 = vector.broadcast %cst_8 : f32 to vector<16x18x18xf32>
    %c0_9 = arith.constant 0 : index
    %c0_10 = arith.constant 0 : index
    %c0_11 = arith.constant 0 : index
    %33 = vector.load %arg9[%c0_9, %c0_10, %c0_11] : memref<16x18x18xf32, #tpu.memory_space<vmem>>, vector<16x18x18xf32>
    tpu.vector_store %arg9[%c0_9, %c0_10, %c0_11], %32 {strides = array<i32>} : memref<16x18x18xf32, #tpu.memory_space<vmem>>, vector<16x18x18xf32>,
    %34 = vector.shape_cast %31 : vector<16x256xf32> to vector<16x16x16xf32>
    %c0_12 = arith.constant 0 : index
    %c1 = arith.constant 1 : index
    %c1_13 = arith.constant 1 : index
    %35 = vector.load %arg9[%c0_12, %c1, %c1_13] : memref<16x18x18xf32, #tpu.memory_space<vmem>>, vector<16x16x16xf32>
    tpu.vector_store %arg9[%c0_12, %c1, %c1_13], %34 {strides = array<i32>} : memref<16x18x18xf32, #tpu.memory_space<vmem>>, vector<16x16x16xf32>,
    %c0_14 = arith.constant 0 : index
    %c0_15 = arith.constant 0 : index
    %c0_16 = arith.constant 0 : index
    %36 = vector.load %arg9[%c0_14, %c0_15, %c0_16] : memref<16x18x18xf32, #tpu.memory_space<vmem>>, vector<16x18x18xf32>
    %37 = vector.extract_strided_slice %36 {offsets = [0, 0, 0], sizes = [16, 16, 16], strides = [1, 1, 1]} : vector<16x18x18xf32> to vector<16x16x16xf32>
    %38 = vector.shape_cast %37 : vector<16x16x16xf32> to vector<16x256xf32>
    %39 = vector.extract_strided_slice %36 {offsets = [0, 0, 1], sizes = [16, 16, 16], strides = [1, 1, 1]} : vector<16x18x18xf32> to vector<16x16x16xf32>
    %40 = vector.shape_cast %39 : vector<16x16x16xf32> to vector<16x256xf32>
    %41 = vector.extract_strided_slice %36 {offsets = [0, 0, 2], sizes = [16, 16, 16], strides = [1, 1, 1]} : vector<16x18x18xf32> to vector<16x16x16xf32>
    %42 = vector.shape_cast %41 : vector<16x16x16xf32> to vector<16x256xf32>
    %43 = vector.extract_strided_slice %36 {offsets = [0, 1, 0], sizes = [16, 16, 16], strides = [1, 1, 1]} : vector<16x18x18xf32> to vector<16x16x16xf32>
    %44 = vector.shape_cast %43 : vector<16x16x16xf32> to vector<16x256xf32>
    %45 = vector.extract_strided_slice %36 {offsets = [0, 1, 1], sizes = [16, 16, 16], strides = [1, 1, 1]} : vector<16x18x18xf32> to vector<16x16x16xf32>
    %46 = vector.shape_cast %45 : vector<16x16x16xf32> to vector<16x256xf32>
    %47 = vector.extract_strided_slice %36 {offsets = [0, 1, 2], sizes = [16, 16, 16], strides = [1, 1, 1]} : vector<16x18x18xf32> to vector<16x16x16xf32>
    %48 = vector.shape_cast %47 : vector<16x16x16xf32> to vector<16x256xf32>
    %49 = vector.extract_strided_slice %36 {offsets = [0, 2, 0], sizes = [16, 16, 16], strides = [1, 1, 1]} : vector<16x18x18xf32> to vector<16x16x16xf32>
    %50 = vector.shape_cast %49 : vector<16x16x16xf32> to vector<16x256xf32>
    %51 = vector.extract_strided_slice %36 {offsets = [0, 2, 1], sizes = [16, 16, 16], strides = [1, 1, 1]} : vector<16x18x18xf32> to vector<16x16x16xf32>
    %52 = vector.shape_cast %51 : vector<16x16x16xf32> to vector<16x256xf32>
    %53 = vector.extract_strided_slice %36 {offsets = [0, 2, 2], sizes = [16, 16, 16], strides = [1, 1, 1]} : vector<16x18x18xf32> to vector<16x16x16xf32>
    %54 = vector.shape_cast %53 : vector<16x16x16xf32> to vector<16x256xf32>
    %55 = tpu.concatenate %38, %40, %42, %44, %46, %48, %50, %52, %54 in 0 : vector<16x256xf32>, vector<16x256xf32>, vector<16x256xf32>, vector<16x256xf32>, vector<16x256xf32>, vector<16x256xf32>, vector<16x256xf32>, vector<16x256xf32>, vector<16x256xf32> -> vector<144x256xf32>
    %c0_17 = arith.constant 0 : index
    %c0_18 = arith.constant 0 : index
    %56 = vector.load %arg4[%c0_17, %c0_18] : memref<16x144xf32, #tpu.memory_space<vmem>>, vector<16x144xf32>
    %cst_19 = arith.constant dense<0.000000e+00> : vector<16x256xf32>
    %57 = tpu.matmul %56, %55, %cst_19 {dimension_numbers = #tpu.dot_dimension_numbers<[1], [0], [0], [1], [0, 0, 1, 1], [], []>} : vector<16x144xf32>, vector<144x256xf32>, vector<16x256xf32> -> vector<16x256xf32>
    %c0_20 = arith.constant 0 : index
    %c0_21 = arith.constant 0 : index
    %58 = vector.load %arg5[%c0_20, %c0_21] : memref<16x1xf32, #tpu.memory_space<vmem>>, vector<16x1xf32>
    %59 = vector.broadcast %58 : vector<16x1xf32> to vector<16x256xf32>
    %60 = arith.addf %57, %59 : vector<16x256xf32>
    %61 = vector.extract_strided_slice %1 {offsets = [0, 1, 1], sizes = [8, 16, 16], strides = [1, 1, 1]} : vector<8x18x18xf32> to vector<8x16x16xf32>
    %62 = vector.shape_cast %61 : vector<8x16x16xf32> to vector<8x256xf32>
    %c0_22 = arith.constant 0 : index
    %c0_23 = arith.constant 0 : index
    %63 = vector.load %arg6[%c0_22, %c0_23] : memref<16x8xf32, #tpu.memory_space<vmem>>, vector<16x8xf32>
    %cst_24 = arith.constant dense<0.000000e+00> : vector<16x256xf32>
    %64 = tpu.matmul %63, %62, %cst_24 {dimension_numbers = #tpu.dot_dimension_numbers<[1], [0], [0], [1], [0, 0, 1, 1], [], []>} : vector<16x8xf32>, vector<8x256xf32>, vector<16x256xf32> -> vector<16x256xf32>
    %c0_25 = arith.constant 0 : index
    %c0_26 = arith.constant 0 : index
    %65 = vector.load %arg7[%c0_25, %c0_26] : memref<16x1xf32, #tpu.memory_space<vmem>>, vector<16x1xf32>
    %66 = vector.broadcast %65 : vector<16x1xf32> to vector<16x256xf32>
    %67 = arith.addf %64, %66 : vector<16x256xf32>
    %68 = arith.addf %60, %67 : vector<16x256xf32>
    %69 = arith.negf %68 : vector<16x256xf32>
    %70 = math.exp %69 : vector<16x256xf32>
    %cst_27 = arith.constant 1.000000e+00 : f32
    %71 = vector.broadcast %cst_27 : f32 to vector<16x256xf32>
    %72 = arith.addf %71, %70 : vector<16x256xf32>
    %73 = arith.divf %71, %72 : vector<16x256xf32>
    %74 = arith.mulf %68, %73 : vector<16x256xf32>
    %c0_28 = arith.constant 0 : index
    %c0_29 = arith.constant 0 : index
    %c0_30 = arith.constant 0 : index
    %75 = vector.load %arg8[%c0_28, %c0_29, %c0_30] : memref<1x16x256xf32, #tpu.memory_space<vmem>>, vector<1x16x256xf32>
    %76 = vector.shape_cast %75 : vector<1x16x256xf32> to vector<16x256xf32>
    %77 = vector.shape_cast %74 : vector<16x256xf32> to vector<1x16x256xf32>
    tpu.vector_store %arg8[%c0_28, %c0_29, %c0_30], %77 {strides = array<i32>} : memref<1x16x256xf32, #tpu.memory_space<vmem>>, vector<1x16x256xf32>,
    return
  }
  func.func @transform_0(%arg0: i32) -> (i32, i32, i32, i32) {
    %c0_i32 = arith.constant 0 : i32
    %c0_i32_0 = arith.constant 0 : i32
    %c0_i32_1 = arith.constant 0 : i32
    %c0_i32_2 = arith.constant 0 : i32
    return %arg0, %c0_i32, %c0_i32_0, %c0_i32_1 : i32, i32, i32, i32
  }
  func.func @transform_1(%arg0: i32) -> (i32, i32) {
    %c0_i32 = arith.constant 0 : i32
    %c0_i32_0 = arith.constant 0 : i32
    %c0_i32_1 = arith.constant 0 : i32
    return %c0_i32, %c0_i32_0 : i32, i32
  }
  func.func @transform_2(%arg0: i32) -> (i32, i32) {
    %c0_i32 = arith.constant 0 : i32
    %c0_i32_0 = arith.constant 0 : i32
    %c0_i32_1 = arith.constant 0 : i32
    return %c0_i32, %c0_i32_0 : i32, i32
  }
  func.func @transform_3(%arg0: i32) -> (i32, i32) {
    %c0_i32 = arith.constant 0 : i32
    %c0_i32_0 = arith.constant 0 : i32
    %c0_i32_1 = arith.constant 0 : i32
    return %c0_i32, %c0_i32_0 : i32, i32
  }
  func.func @transform_4(%arg0: i32) -> (i32, i32) {
    %c0_i32 = arith.constant 0 : i32
    %c0_i32_0 = arith.constant 0 : i32
    %c0_i32_1 = arith.constant 0 : i32
    return %c0_i32, %c0_i32_0 : i32, i32
  }
  func.func @transform_5(%arg0: i32) -> (i32, i32) {
    %c0_i32 = arith.constant 0 : i32
    %c0_i32_0 = arith.constant 0 : i32
    %c0_i32_1 = arith.constant 0 : i32
    return %c0_i32, %c0_i32_0 : i32, i32
  }
  func.func @transform_6(%arg0: i32) -> (i32, i32) {
    %c0_i32 = arith.constant 0 : i32
    %c0_i32_0 = arith.constant 0 : i32
    %c0_i32_1 = arith.constant 0 : i32
    return %c0_i32, %c0_i32_0 : i32, i32
  }
  func.func @transform_7(%arg0: i32) -> (i32, i32, i32) {
    %c0_i32 = arith.constant 0 : i32
    %c0_i32_0 = arith.constant 0 : i32
    %c0_i32_1 = arith.constant 0 : i32
    return %arg0, %c0_i32, %c0_i32_0 : i32, i32, i32
  }
}

</mosaic_0001>

<bundles_post_ra>
// kernel: residual_block.1
= control target key start
LH: loop header
LB: loop body
LE: loop exit
PB: predicated region body
PF: predicated region fallthrough
CT: control target
= control target key end

     0   :  { %s13278_s24 = smov 0   ;;  %s20522_s0 = inlined_call_operand.vmem [shape: f32[2,8,18,18], index: 0, kind: input, shape index: {}]   ;;  %s20523_s1 = inlined_call_operand.vmem [shape: f32[16,72], index: 1, kind: input, shape index: {}]   ;;  %s20524_s2 = inlined_call_operand.vmem [shape: f32[16,1], index: 2, kind: input, shape index: {}]   ;;  %s20525_s3 = inlined_call_operand.vmem [shape: f32[16,144], index: 3, kind: input, shape index: {}]   ;;  %s20526_s4 = inlined_call_operand.vmem [shape: f32[16,1], index: 4, kind: input, shape index: {}]   ;;  %s20527_s5 = inlined_call_operand.vmem [shape: f32[16,8], index: 5, kind: input, shape index: {}]   ;;  %s20528_s6 = inlined_call_operand.vmem [shape: f32[16,1], index: 6, kind: input, shape index: {}]   ;;  %s20529_s7 = inlined_call_operand.vmem [shape: f32[2,16,256], index: 7, kind: output, shape index: {}]  }
   0x1 LB: > { %s12123_s25 = sadd.s32 4294967295, %s13222_s24   ;;  %p12127_p0 = scmp.ge.s32.totalorder %s13222_s24, 1  ;;  %s13222_s24 = sphi %s13278_s24, %s17_s24  }
   0x2   : > { %p237_p1 = scmp.lt.s32.totalorder %s13222_s24, 3 }
   0x4   : > { %p238_p2 = pnand %p12127_p0, %p237_p1 }
   0x6   : > { %241 = sbr.rel (%p238_p2) target bundleno = 2686 (0xa7e), region = 48 }
   0xd   : > { %p269_p3 = scmp.lt.s32.totalorder %s12123_s25, 1  ;;  %v308_v0 = vlaneseq  ;;  %v13224_v1 = vmov 1983009808   ;;  %v13225_v3 = vmov 1934713408   ;;  %s13226_s30 = smov 127  }
   0xe   : > { %v306_v2 = vunpack.c.l.s4 %v13224_v1  ;;  %v370_v4 = vunpack.c.l.s4 %v13225_v3  ;;  %s13227_s8 = smov 48   ;;  %s13228_s9 = smov 16   ;;  %vm1456_vm0 = vcmask 1046528   ;;  %vm631_vm1 = vcmask 130048  }
   0xf   : > { %s22446_s25 = smov (!%p269_p3, %s12123_s25), 1  ;;  %v309_v6 = vshrl.u32 %v308_v0, 7  ;;  %s13229_s10 = smov 32   ;;  %vm633_vm2 = vcmask 261120   ;;  %vm635_vm3 = vcmask 392192   ;;  %vm637_vm4 = vcmask 523264  }
  0x10   : > { %v307_v5 = vunpack.c.0.s8 %v306_v2  ;;  %s12212_s26 = smul.u32 192, %s22446_s25  ;;  %v371_v7 = vunpack.c.0.s8 %v370_v4  ;;  %s13230_s11 = smov 64   ;;  %vm639_vm5 = vcmask 654336   ;;  %vm641_vm6 = vcmask 785408  }
  0x11   : > { %s13231_s12 = smov 80   ;;  %s13232_s13 = smov 96   ;;  %vm643_vm7 = vcmask 916480   ;;  %vm2635_vm8 = vcmask 1045504   ;;  %vm3828_vm9 = vcmask 588800   ;;  %vm3940_vm10 = vcmask 146432  }
  0x12   : > { %s13292_s29 = scalar_lea.vmem %s20522_s0, %s12212_s26  ;;  %v13303_v11 = vsub.s32 %v307_v5, %v309_v6  ;;  %v13326_v18 = vsub.s32 %v371_v7, %v309_v6  ;;  %s13233_s14 = smov 112   ;;  %vm3943_vm11 = vcmask 140288   ;;  %vm4750_vm12 = vcmask 138248  }
  0x13   : > { %v13295_v8 = vld [vmem:[%s13292_s29] sm:$0xff]  ;;  %v13298_v9 = vld [vmem:[%s13292_s29 + $0x8] sm:$0xff]  ;;  %v13301_v10 = vld [vmem:[%s13292_s29 + $0x18] sm:$0xff]  ;;  %s13234_s15 = smov 126   ;;  %s13237_s26 = smov 1   ;;  %vm11948_vm13 = vcmask 64512  }
  0x14   : > { %21169 = vst [vmem:[#allocation3_spill] sm:$0xff] %v13303_v11  ;;  %668 = vrot.lane.b32.xlu1 %v13295_v8, %s13226_s30  ;;  %670 = vrot.lane.b32.xlu0 %v13298_v9, %s13226_s30  ;;  %v13310_v12 = vld [vmem:[%s13292_s29 + $0x20] sm:$0xff]  ;;  %v13313_v13 = vld [vmem:[%s13292_s29 + $0x30] sm:$0xff] }
  0x15   : > { %v13316_v14 = vld [vmem:[%s13292_s29 + $0x38] sm:$0xff]  ;;  %v13319_v15 = vld [vmem:[%s13292_s29 + $0x48] sm:$0xff]  ;;  %v13322_v16 = vld [vmem:[%s13292_s29 + $0x50] sm:$0xff]  ;;  %v303_v17 = vcombine.low %v13295_v8, %v13313_v13  ;;  %v304_v19 = vcombine.high %v13295_v8, %v13313_v13 }
  0x16   : > { %v13331_v20 = vld [vmem:[%s13292_s29 + $0x60] sm:$0xff]  ;;  %v13334_v21 = vld [vmem:[%s13292_s29 + $0x68] sm:$0xff]  ;;  %v13337_v22 = vld [vmem:[%s13292_s29 + $0x78] sm:$0xff]  ;;  %v319_v23 = vcombine.low %v13301_v10, %v13319_v15  ;;  %v439_v24 = vcombine.low %v13298_v9, %v13316_v14  ;;  %v455_v25 = vcombine.low %v13310_v12, %v13322_v16  ;;  %v320_v26 = vcombine.high %v13301_v10, %v13319_v15 }
  0x17   : > { %v13348_v27 = vld [vmem:[%s13292_s29 + $0x80] sm:$0xff]  ;;  %v13351_v28 = vld [vmem:[%s13292_s29 + $0x90] sm:$0xff]  ;;  %v13354_v29 = vld [vmem:[%s13292_s29 + $0x98] sm:$0xff]  ;;  %v311_v30 = vrot.slane %v303_v17, %v13303_v11  ;;  %v13358_v31 = vrot.slane %v304_v19, %v13303_v11  ;;  %v440_v32 = vcombine.high %v13298_v9, %v13316_v14  ;;  %v456_v33 = vcombine.high %v13310_v12, %v13322_v16 }
  0x18   : > { %672 = vrot.lane.b32.xlu1 %v13301_v10, %s13226_s30  ;;  %v13367_v34 = vld [vmem:[%s13292_s29 + $0xa8] sm:$0xff]  ;;  %v13370_v35 = vld [vmem:[%s13292_s29 + $0xb0] sm:$0xff]  ;;  %v327_v36 = vrot.slane %v319_v23, %v13303_v11  ;;  %v335_v37 = vcombine.low %v13331_v20, %v13351_v28  ;;  %v447_v38 = vrot.slane %v439_v24, %v13303_v11  ;;  %v463_v39 = vrot.slane %v455_v25, %v13303_v11 }
  0x19   : > { %v351_v40 = vcombine.low %v13337_v22, %v13367_v34  ;;  %v471_v41 = vcombine.low %v13334_v21, %v13354_v29  ;;  %v487_v42 = vcombine.low %v13348_v27, %v13370_v35  ;;  %v334_v43 = vrot.slane %v320_v26, %v13303_v11 }
  0x1a   : > { %v343_v44 = vrot.slane %v335_v37, %v13303_v11  ;;  %v368_v45 = vcombine.high %v311_v30, %v327_v36  ;;  %v504_v46 = vcombine.high %v447_v38, %v463_v39  ;;  %v367_v47 = vcombine.low %v311_v30, %v327_v36 }
  0x1b   : > { %v359_v48 = vrot.slane %v351_v40, %v13303_v11  ;;  %v479_v49 = vrot.slane %v471_v41, %v13303_v11  ;;  %v495_v50 = vrot.slane %v487_v42, %v13303_v11  ;;  %v503_v51 = vcombine.low %v447_v38, %v463_v39 }
  0x1c   : > { %v382_v52 = vrot.slane %v368_v45, %v13326_v18  ;;  %v518_v53 = vrot.slane %v504_v46, %v13326_v18  ;;  %v13391_v54 = vrot.slane %v367_v47, %v13326_v18  ;;  %v336_v55 = vcombine.high %v13331_v20, %v13351_v28 }
  0x1d   : > { %v400_v56 = vcombine.high %v343_v44, %v359_v48  ;;  %v536_v57 = vcombine.high %v479_v49, %v495_v50  ;;  %v399_v58 = vcombine.low %v343_v44, %v359_v48  ;;  %v13396_v59 = vrot.slane %v503_v51, %v13326_v18 }
  0x1e   : > { %v535_v60 = vcombine.low %v479_v49, %v495_v50  ;;  %v350_v61 = vrot.slane %v336_v55, %v13303_v11  ;;  %v352_v62 = vcombine.high %v13337_v22, %v13367_v34  ;;  %v383_v63 = vcombine.low %v13358_v31, %v334_v43 }
  0x1f   : > { %v414_v0 = vrot.slane %v400_v56, %v13326_v18  ;;  %v550_v1 = vrot.slane %v536_v57, %v13326_v18  ;;  %v13405_v2 = vrot.slane %v399_v58, %v13326_v18  ;;  %v454_v3 = vrot.slane %v440_v32, %v13303_v11  ;;  %v281_v57 = vld [vmem:[%s13292_s29 + $0x10] sm:$0x3]  ;;  %v284_v58 = vld [vmem:[%s13292_s29 + $0x28] sm:$0x3] }
  0x20   : > { %v13409_v4 = vrot.slane %v535_v60, %v13326_v18  ;;  %v366_v5 = vrot.slane %v352_v62, %v13303_v11  ;;  %v13413_v6 = vrot.slane %v383_v63, %v13326_v18  ;;  %v470_v7 = vrot.slane %v456_v33, %v13303_v11 }
  0x21   : > { %v434_v17 = vcombine.high %v382_v52, %v414_v0  ;;  %v570_v19 = vcombine.high %v518_v53, %v550_v1  ;;  %v432_v23 = vcombine.high %v13391_v54, %v13405_v2  ;;  %v472_v32 = vcombine.high %v13334_v21, %v13354_v29 }
  0x22   : > { %v568_v26 = vcombine.high %v13396_v59, %v13409_v4  ;;  %v415_v30 = vcombine.low %v350_v61, %v366_v5  ;;  %v488_v33 = vcombine.high %v13348_v27, %v13370_v35  ;;  %v519_v37 = vcombine.low %v454_v3, %v470_v7 }
  0x23   : > { %v12245_v36 = vpack.i.bf16 %v570_v19, %v434_v17  ;;  %v433_v38 = vcombine.low %v382_v52, %v414_v0  ;;  %v486_v41 = vrot.slane %v472_v32, %v13303_v11  ;;  %v569_v42 = vcombine.low %v518_v53, %v550_v1 }
  0x24   : > { %v12235_v39 = vpack.i.bf16 %v568_v26, %v432_v23  ;;  %v423_v40 = vrot.slane %v415_v30, %v13326_v18  ;;  %v1457_v44 = vrot.slane %v13295_v8, 1  ;;  %v502_v45 = vrot.slane %v488_v33, %v13303_v11  ;;  %v287_v26 = vld [vmem:[%s13292_s29 + $0x40] sm:$0x3]  ;;  %v290_v30 = vld [vmem:[%s13292_s29 + $0x58] sm:$0x3] }
  0x25   : > { %12246 = vrot.lane.b32.xlu1 %v12245_v36, %s13227_s8  ;;  %v384_v46 = vcombine.high %v13358_v31, %v334_v43  ;;  %v416_v47 = vcombine.high %v350_v61, %v366_v5  ;;  %v1458_v48 = vrot.slane %v13298_v9, 1  ;;  %v527_v49 = vrot.slane %v519_v37, %v13326_v18 }
  0x26   : > { %12236 = vrot.lane.b32.xlu0 %v12235_v39, %s13228_s9  ;;  %v12240_v50 = vpack.i.bf16 %v569_v42, %v433_v38  ;;  %v520_v51 = vcombine.high %v454_v3, %v470_v7  ;;  %v551_v52 = vcombine.low %v486_v41, %v502_v45  ;;  %v552_v56 = vcombine.high %v486_v41, %v502_v45  ;;  %v293_v42 = vld [vmem:[%s13292_s29 + $0x70] sm:$0x3] }
  0x27   : > { %v398_v53 = vrot.slane %v384_v46, %v13326_v18  ;;  %v430_v55 = vrot.slane %v416_v47, %v13326_v18  ;;  %v1462_v31 = vrot.slane %v13301_v10, 1  ;;  %v435_v43 = vcombine.low %v13413_v6, %v423_v40 }
  0x28   : > { %v534_v60 = vrot.slane %v520_v51, %v13326_v18  ;;  %v436_v61 = vcombine.high %v13413_v6, %v423_v40  ;;  %v559_v62 = vrot.slane %v551_v52, %v13326_v18  ;;  %v566_v0 = vrot.slane %v552_v56, %v13326_v18 }
  0x29   : > { %v437_v63 = vcombine.low %v398_v53, %v430_v55  ;;  %v438_v1 = vcombine.high %v398_v53, %v430_v55  ;;  %v1460_v3 = vrot.slane %v281_v57, 1  ;;  %v1463_v5 = vrot.slane %v13310_v12, 1  ;;  %v299_v53 = vld [vmem:[%s13292_s29 + $0xa0] sm:$0x3] }
  0x2a   : > { %12241 = vrot.lane.b32.xlu0 %v12240_v50, %s13229_s10  ;;  %v1465_v7 = vrot.slane %v284_v58, 1  ;;  %v571_v17 = vcombine.low %v527_v49, %v559_v62  ;;  %v573_v19 = vcombine.low %v534_v60, %v566_v0  ;;  %v572_v23 = vcombine.high %v527_v49, %v559_v62 }
  0x2b   : > { %v574_v6 = vcombine.high %v534_v60, %v566_v0  ;;  %v13452_v32 = vsel %vm1456_vm0, %v1457_v44, %v1458_v48  ;;  %v13455_v36 = vsel %vm1456_vm0, %v1458_v48, %v1460_v3  ;;  %v13458_v33 = vsel %vm1456_vm0, %v1462_v31, %v1463_v5  ;;  %v296_v48 = vld [vmem:[%s13292_s29 + $0x88] sm:$0x3]  ;;  %v302_v31 = vld [vmem:[%s13292_s29 + $0xb8] sm:$0x3] }
  0x2c   : > { %21170 = vst [vmem:[#allocation4_spill] sm:$0xff] %v13452_v32  ;;  %21171 = vst [vmem:[#allocation5_spill] sm:$0xff] %v13455_v36  ;;  %v13461_v37 = vsel %vm1456_vm0, %v1463_v5, %v1465_v7  ;;  %v12250_v38 = vpack.i.bf16 %v571_v17, %v435_v43  ;;  %v12260_v39 = vpack.i.bf16 %v573_v19, %v437_v63  ;;  %v1467_v45 = vrot.slane %v13313_v13, 1 }
  0x2d   : > { %21172 = vst [vmem:[#allocation6_spill] sm:$0xff] %v13458_v33  ;;  %21173 = vst [vmem:[#allocation7_spill] sm:$0xff] %v13461_v37  ;;  %v12255_v40 = vpack.i.bf16 %v572_v23, %v436_v61  ;;  %v12265_v41 = vpack.i.bf16 %v574_v6, %v438_v1  ;;  %v1468_v44 = vrot.slane %v13316_v14, 1  ;;  %v1470_v46 = vrot.slane %v287_v26, 1 }
  0x2e   : > { %v1472_v47 = vrot.slane %v13319_v15, 1  ;;  %12251 = vrot.lane.b32.xlu1 %v12250_v38, %s13230_s11  ;;  %v1473_v49 = vrot.slane %v13322_v16, 1  ;;  %v1475_v50 = vrot.slane %v290_v30, 1  ;;  %v1477_v51 = vrot.slane %v13331_v20, 1 }
  0x2f   : > { %12256 = vrot.lane.b32.xlu0 %v12255_v40, %s13231_s12  ;;  %v1478_v52 = vrot.slane %v13334_v21, 1  ;;  %v13475_v55 = vsel %vm1456_vm0, %v1467_v45, %v1468_v44  ;;  %v13478_v56 = vsel %vm1456_vm0, %v1468_v44, %v1470_v46  ;;  %v1480_v57 = vrot.slane %v293_v42, 1 }
  0x30   : > { %21174 = vst [vmem:[#allocation8_spill] sm:$0xff] %v13475_v55  ;;  %21175 = vst [vmem:[#allocation9_spill] sm:$0xff] %v13478_v56  ;;  %v1482_v58 = vrot.slane %v13337_v22, 1  ;;  %v13483_v43 = vsel %vm1456_vm0, %v1472_v47, %v1473_v49  ;;  %v13486_v60 = vsel %vm1456_vm0, %v1473_v49, %v1475_v50  ;;  %v1483_v62 = vrot.slane %v13348_v27, 1 }
  0x31   : > { %21176 = vst [vmem:[#allocation10_spill] sm:$0xff] %v13483_v43  ;;  %21177 = vst [vmem:[#allocation11_spill] sm:$0xff] %v13486_v60  ;;  %v13489_v61 = vsel %vm1456_vm0, %v1477_v51, %v1478_v52  ;;  %v13493_v63 = vsel %vm1456_vm0, %v1478_v52, %v1480_v57  ;;  %v1485_v0 = vrot.slane %v296_v48, 1  ;;  %v1487_v1 = vrot.slane %v13351_v28, 1 }
  0x32   : > { %v1488_v3 = vrot.slane %v13354_v29, 1  ;;  %12261 = vrot.lane.b32.xlu1 %v12260_v39, %s13232_s13  ;;  %v13500_v5 = vsel %vm1456_vm0, %v1482_v58, %v1483_v62  ;;  %v1490_v7 = vrot.slane %v299_v53, 1  ;;  %v1492_v17 = vrot.slane %v13367_v34, 1 }
  0x33   : > { %12266 = vrot.lane.b32.xlu0 %v12265_v41, %s13233_s14  ;;  %v1493_v19 = vrot.slane %v13370_v35, 1  ;;  %v13505_v23 = vsel %vm1456_vm0, %v1483_v62, %v1485_v0  ;;  %v1495_v26 = vrot.slane %v302_v31, 1  ;;  %v1513_v30 = vcombine.low %v13452_v32, %v13475_v55 }
  0x34   : > { %v13508_v6 = vsel %vm1456_vm0, %v1487_v1, %v1488_v3  ;;  %v13513_v38 = vsel %vm1456_vm0, %v1488_v3, %v1490_v7  ;;  %v1529_v40 = vcombine.low %v13458_v33, %v13483_v43  ;;  %v1649_v46 = vcombine.low %v13455_v36, %v13478_v56 }
  0x35   : > { %v13516_v39 = vsel %vm1456_vm0, %v1492_v17, %v1493_v19  ;;  %v1545_v41 = vcombine.low %v13489_v61, %v13508_v6  ;;  %v13523_v42 = vsel %vm1456_vm0, %v1493_v19, %v1495_v26  ;;  %v13526_v45 = vrot.slane %v1513_v30, %v13303_v11 }
  0x36   : > { %v1561_v44 = vcombine.low %v13500_v5, %v13516_v39  ;;  %676 = vrot.lane.b32.xlu1 %v13313_v13, %s13226_s30  ;;  %v13537_v47 = vrot.slane %v1529_v40, %v13303_v11  ;;  %v1665_v49 = vcombine.low %v13461_v37, %v13486_v60  ;;  %v1657_v51 = vrot.slane %v1649_v46, %v13303_v11 }
  0x37   : > { %674 = vrot.lane.b32.xlu0 %v13310_v12, %s13226_s30  ;;  %v13540_v48 = vrot.slane %v1545_v41, %v13303_v11  ;;  %v1681_v52 = vcombine.low %v13493_v63, %v13513_v38  ;;  %v1697_v53 = vcombine.low %v13505_v23, %v13523_v42  ;;  %v1698_v41 = vcombine.high %v13505_v23, %v13523_v42 }
  0x38   : > { %v1569_v50 = vrot.slane %v1561_v44, %v13303_v11  ;;  %v1577_v57 = vcombine.low %v13526_v45, %v13537_v47  ;;  %v1673_v58 = vrot.slane %v1665_v49, %v13303_v11  ;;  %v1578_v44 = vcombine.high %v13526_v45, %v13537_v47 }
  0x39   : > { %v1689_v62 = vrot.slane %v1681_v52, %v13303_v11  ;;  %v1705_v0 = vrot.slane %v1697_v53, %v13303_v11 }
  0x3a   : > { %v1609_v31 = vcombine.low %v13540_v48, %v1569_v50  ;;  %680 = vrot.lane.b32.xlu1 %v13319_v15, %s13226_s30  ;;  %v1713_v1 = vcombine.low %v1657_v51, %v1673_v58  ;;  %v13561_v3 = vrot.slane %v1577_v57, %v13326_v18  ;;  %v1610_v46 = vcombine.high %v13540_v48, %v1569_v50 }
  0x3b   : > { %678 = vrot.lane.b32.xlu0 %v13316_v14, %s13226_s30  ;;  %v1745_v17 = vcombine.low %v1689_v62, %v1705_v0  ;;  %v1714_v49 = vcombine.high %v1657_v51, %v1673_v58  ;;  %v1746_v52 = vcombine.high %v1689_v62, %v1705_v0  ;;  %v1712_v48 = vrot.slane %v1698_v41, %v13303_v11 }
  0x3c   : > { %v13564_v7 = vrot.slane %v1609_v31, %v13326_v18  ;;  %v13567_v19 = vrot.slane %v1713_v1, %v13326_v18  ;;  %v1592_v50 = vrot.slane %v1578_v44, %v13326_v18  ;;  %v1624_v51 = vrot.slane %v1610_v46, %v13326_v18 }
  0x3d   : > { %v13570_v26 = vrot.slane %v1745_v17, %v13326_v18  ;;  %v1728_v58 = vrot.slane %v1714_v49, %v13326_v18  ;;  %v1760_v62 = vrot.slane %v1746_v52, %v13326_v18 }
  0x3e   : > { %21178 = vst [vmem:[#allocation12_spill] sm:$0xff] %v13564_v7  ;;  %684 = vrot.lane.b32.xlu1 %v13331_v20, %s13226_s30 }
  0x3f   : > { %682 = vrot.lane.b32.xlu0 %v13322_v16, %s13226_s30 }
  0x42   : > { %688 = vrot.lane.b32.xlu1 %v13337_v22, %s13226_s30 }
  0x43   : > { %686 = vrot.lane.b32.xlu0 %v13334_v21, %s13226_s30 }
  0x46   : > { %692 = vrot.lane.b32.xlu1 %v13351_v28, %s13226_s30 }
  0x47   : > { %690 = vrot.lane.b32.xlu0 %v13348_v27, %s13226_s30 }
  0x4a   : > { %696 = vrot.lane.b32.xlu1 %v13367_v34, %s13226_s30 }
  0x4b   : > { %694 = vrot.lane.b32.xlu0 %v13354_v29, %s13226_s30 }
  0x4e   : > { %1060 = vrot.lane.b32.xlu1 %v13298_v9, %s13234_s15  ;;  %v1514_v9 = vcombine.high %v13452_v32, %v13475_v55 }
  0x4f   : > { %698 = vrot.lane.b32.xlu0 %v13370_v35, %s13226_s30 }
  0x52   : > { %1064 = vrot.lane.b32.xlu1 %v13310_v12, %s13234_s15  ;;  %v1530_v12 = vcombine.high %v13458_v33, %v13483_v43 }
  0x53   : > { %1058 = vrot.lane.b32.xlu0 %v13295_v8, %s13234_s15  ;;  %v1546_v8 = vcombine.high %v13489_v61, %v13508_v6 }
  0x55   : > { %v1560_v53 = vrot.slane %v1546_v8, %v13303_v11  ;;  %v1643_v8 = vcombine.low %v1592_v50, %v1624_v51 }
  0x56   : > { %1068 = vrot.lane.b32.xlu1 %v13316_v14, %s13234_s15  ;;  %v1562_v14 = vcombine.high %v13500_v5, %v13516_v39 }
  0x57   : > { %1062 = vrot.lane.b32.xlu0 %v13301_v10, %s13234_s15  ;;  %v1650_v10 = vcombine.high %v13455_v36, %v13478_v56 }
  0x58   : > { %v1576_v57 = vrot.slane %v1562_v14, %v13303_v11  ;;  %v1780_v14 = vcombine.high %v1728_v58, %v1760_v62 }
  0x59   : > { %v1664_v31 = vrot.slane %v1650_v10, %v13303_v11  ;;  %v1779_v10 = vcombine.low %v1728_v58, %v1760_v62 }
  0x5a   : > { %1072 = vrot.lane.b32.xlu1 %v13322_v16, %s13234_s15  ;;  %v1682_v16 = vcombine.high %v13493_v63, %v13513_v38  ;;  %v1625_v1 = vcombine.low %v1560_v53, %v1576_v57  ;;  %v1626_v44 = vcombine.high %v1560_v53, %v1576_v57 }
  0x5b   : > { %1066 = vrot.lane.b32.xlu0 %v13313_v13, %s13234_s15  ;;  %v1666_v13 = vcombine.high %v13461_v37, %v13486_v60 }
  0x5c   : > { %v1696_v47 = vrot.slane %v1682_v16, %v13303_v11  ;;  %v1633_v41 = vrot.slane %v1625_v1, %v13326_v18  ;;  %v1640_v53 = vrot.slane %v1626_v44, %v13326_v18 }
  0x5d   : > { %v1680_v45 = vrot.slane %v1666_v13, %v13303_v11 }
  0x5e   : > { %1076 = vrot.lane.b32.xlu1 %v13334_v21, %s13234_s15  ;;  %v1528_v21 = vrot.slane %v1514_v9, %v13303_v11  ;;  %v1761_v9 = vcombine.low %v1696_v47, %v1712_v48 }
  0x5f   : > { %1070 = vrot.lane.b32.xlu0 %v13319_v15, %s13234_s15  ;;  %v1544_v15 = vrot.slane %v1530_v12, %v13303_v11  ;;  %v1729_v17 = vcombine.low %v1664_v31, %v1680_v45  ;;  %v1644_v12 = vcombine.high %v1592_v50, %v1624_v51  ;;  %v1730_v46 = vcombine.high %v1664_v31, %v1680_v45 }
  0x60   : > { %v1769_v52 = vrot.slane %v1761_v9, %v13326_v18  ;;  %v12275_v51 = vpack.i.bf16 %v1779_v10, %v1643_v8 }
  0x61   : > { %v1593_v0 = vcombine.low %v1528_v21, %v1544_v15  ;;  %v1594_v16 = vcombine.high %v1528_v21, %v1544_v15  ;;  %v1737_v49 = vrot.slane %v1729_v17, %v13326_v18  ;;  %v12280_v50 = vpack.i.bf16 %v1780_v14, %v1644_v12 }
  0x62   : > { %1080 = vrot.lane.b32.xlu1 %v13348_v27, %s13234_s15  ;;  %v1642_v27 = vcombine.high %v13561_v3, %v13564_v7  ;;  %v1744_v57 = vrot.slane %v1730_v46, %v13326_v18 }
  0x63   : > { %1074 = vrot.lane.b32.xlu0 %v13331_v20, %s13234_s15  ;;  %v1778_v20 = vcombine.high %v13567_v19, %v13570_v26  ;;  %v1601_v13 = vrot.slane %v1593_v0, %v13326_v18  ;;  %v1608_v21 = vrot.slane %v1594_v16, %v13326_v18  ;;  %v1781_v45 = vcombine.low %v1737_v49, %v1769_v52 }
  0x65   : > { %v1646_v15 = vcombine.high %v1601_v13, %v1633_v41  ;;  %v1647_v58 = vcombine.low %v1608_v21, %v1640_v53 }
  0x66   : > { %1084 = vrot.lane.b32.xlu1 %v13354_v29, %s13234_s15  ;;  %v1762_v29 = vcombine.high %v1696_v47, %v1712_v48  ;;  %v1648_v47 = vcombine.high %v1608_v21, %v1640_v53 }
  0x67   : > { %1078 = vrot.lane.b32.xlu0 %v13337_v22, %s13234_s15  ;;  %v12270_v22 = vpack.i.bf16 %v1778_v20, %v1642_v27 }
  0x68   : > { %v1776_v31 = vrot.slane %v1762_v29, %v13326_v18 }
  0x6a   : > { %1088 = vrot.lane.b32.xlu1 %v13370_v35, %s13234_s15  ;;  %v1645_v35 = vcombine.low %v1601_v13, %v1633_v41  ;;  %v1784_v48 = vcombine.high %v1744_v57, %v1776_v31  ;;  %v1783_v27 = vcombine.low %v1744_v57, %v1776_v31 }
  0x6b   : > { %1082 = vrot.lane.b32.xlu0 %v13351_v28, %s13234_s15  ;;  %v1782_v28 = vcombine.high %v1737_v49, %v1769_v52 }
  0x6c   : > { %v12285_v0 = vpack.i.bf16 %v1781_v45, %v1645_v35  ;;  %v12295_v1 = vpack.i.bf16 %v1783_v27, %v1647_v58 }
  0x6d   : > { %v12290_v62 = vpack.i.bf16 %v1782_v28, %v1646_v15 }
  0x6e   : > { %12271 = vrot.lane.b32.xlu1 %v12270_v22, %s13228_s9 }
  0x6f   : > { %1086 = vrot.lane.b32.xlu0 %v13367_v34, %s13234_s15  ;;  %v12300_v34 = vpack.i.bf16 %v1784_v48, %v1648_v47 }
  0x72   : > { %12281 = vrot.lane.b32.xlu1 %v12280_v50, %s13227_s8 }
  0x73   : > { %12276 = vrot.lane.b32.xlu0 %v12275_v51, %s13229_s10 }
  0x76   : > { %12291 = vrot.lane.b32.xlu1 %v12290_v62, %s13231_s12 }
  0x77   : > { %12286 = vrot.lane.b32.xlu0 %v12285_v0, %s13230_s11 }
  0x7a   : > { %12301 = vrot.lane.b32.xlu1 %v12300_v34, %s13233_s14 }
  0x7b   : > { %12296 = vrot.lane.b32.xlu0 %v12295_v1, %s13232_s13 }
  0x7e   : > { %1857 = vrot.lane.b32.xlu1 %v13455_v36, %s13226_s30 }
  0x7f   : > { %1855 = vrot.lane.b32.xlu0 %v13452_v32, %s13226_s30 }
  0x82   : > { %1861 = vrot.lane.b32.xlu1 %v13461_v37, %s13226_s30 }
  0x83   : > { %1859 = vrot.lane.b32.xlu0 %v13458_v33, %s13226_s30 }
  0x86   : > { %1865 = vrot.lane.b32.xlu1 %v13478_v56, %s13226_s30  ;;  %v669_v20 = vpop.permute.xlu1 %668  ;;  %v671_v17 = vpop.permute.xlu0 %670 }
  0x87   : > { %1863 = vrot.lane.b32.xlu0 %v13475_v55, %s13226_s30 }
  0x8a   : > { %1869 = vrot.lane.b32.xlu1 %v13486_v60, %s13226_s30  ;;  %v673_v9 = vpop.permute.xlu1 %672 }
  0x8b   : > { %1867 = vrot.lane.b32.xlu0 %v13483_v43, %s13226_s30 }
  0x97   : > { %v13694_v8 = vpop.permute.xlu1 %12246 }
  0x98   : > { %v13692_v12 = vpop.permute.xlu0 %12236 }
  0x9c   : > { %v13696_v14 = vpop.permute.xlu0 %12241 }
  0xa0   : > { %v13698_v10 = vpop.permute.xlu1 %12251 }
  0xa1   : > { %v13700_v13 = vpop.permute.xlu0 %12256 }
  0xa4   : > { %v13702_v16 = vpop.permute.xlu1 %12261 }
  0xa5   : > { %v13704_v41 = vpop.permute.xlu0 %12266 }
  0xa8   : > { %v677_v44 = vpop.permute.xlu1 %676 }
  0xa9   : > { %v675_v46 = vpop.permute.xlu0 %674  ;;  %v716_v15 = vcombine.low %v669_v20, %v677_v44  ;;  %v717_v31 = vcombine.high %v669_v20, %v677_v44 }
  0xab   : > { %v724_v48 = vrot.slane %v716_v15, %v13303_v11  ;;  %v13709_v40 = vrot.slane %v717_v31, %v13303_v11 }
  0xac   : > { %v681_v29 = vpop.permute.xlu1 %680 }
  0xad   : > { %v679_v22 = vpop.permute.xlu0 %678  ;;  %v732_v21 = vcombine.low %v673_v9, %v681_v29  ;;  %v733_v28 = vcombine.high %v673_v9, %v681_v29 }
  0xae   : > { %v852_v58 = vcombine.low %v671_v17, %v679_v22  ;;  %v853_v62 = vcombine.high %v671_v17, %v679_v22 }
  0xaf   : > { %v740_v35 = vrot.slane %v732_v21, %v13303_v11  ;;  %v13712_v24 = vrot.slane %v733_v28, %v13303_v11 }
  0xb0   : > { %v685_v49 = vpop.permute.xlu1 %684  ;;  %v860_v17 = vrot.slane %v852_v58, %v13303_v11 }
  0xb1   : > { %v683_v52 = vpop.permute.xlu0 %682  ;;  %v780_v20 = vcombine.low %v724_v48, %v740_v35 }
  0xb2   : > { %v868_v45 = vcombine.low %v675_v46, %v683_v52  ;;  %v869_v34 = vcombine.high %v675_v46, %v683_v52  ;;  %v867_v46 = vrot.slane %v853_v62, %v13303_v11 }
  0xb4   : > { %v689_v50 = vpop.permute.xlu1 %688  ;;  %v876_v9 = vrot.slane %v868_v45, %v13303_v11  ;;  %v883_v31 = vrot.slane %v869_v34, %v13303_v11 }
  0xb5   : > { %v687_v51 = vpop.permute.xlu0 %686 }
  0xb6   : > { %v916_v58 = vcombine.low %v860_v17, %v876_v9  ;;  %v917_v25 = vcombine.high %v860_v17, %v876_v9  ;;  %v932_v34 = vcombine.low %v867_v46, %v883_v31 }
  0xb8   : > { %v693_v53 = vpop.permute.xlu1 %692 }
  0xb9   : > { %v691_v57 = vpop.permute.xlu0 %690  ;;  %v748_v47 = vcombine.low %v685_v49, %v693_v53  ;;  %v749_v44 = vcombine.high %v685_v49, %v693_v53  ;;  %v781_v49 = vcombine.high %v724_v48, %v740_v35 }
  0xbb   : > { %v756_v29 = vrot.slane %v748_v47, %v13303_v11  ;;  %v763_v62 = vrot.slane %v749_v44, %v13303_v11  ;;  %v13751_v44 = vrot.slane %v916_v58, %v13326_v18 }
  0xbc   : > { %v697_v0 = vpop.permute.xlu1 %696 }
  0xbd   : > { %v695_v27 = vpop.permute.xlu0 %694  ;;  %v764_v1 = vcombine.low %v689_v50, %v697_v0  ;;  %v765_v30 = vcombine.high %v689_v50, %v697_v0 }
  0xbe   : > { %v884_v52 = vcombine.low %v687_v51, %v695_v27  ;;  %v885_v50 = vcombine.high %v687_v51, %v695_v27 }
  0xbf   : > { %v772_v21 = vrot.slane %v764_v1, %v13303_v11  ;;  %v779_v28 = vrot.slane %v765_v30, %v13303_v11  ;;  %v13724_v1 = vrot.slane %v780_v20, %v13326_v18 }
  0xc0   : > { %v13719_v22 = vpop.permute.xlu1 %1060  ;;  %v892_v51 = vrot.slane %v884_v52, %v13303_v11  ;;  %v899_v27 = vrot.slane %v885_v50, %v13303_v11  ;;  %v933_v50 = vcombine.high %v867_v46, %v883_v31 }
  0xc1   : > { %v699_v15 = vpop.permute.xlu0 %698  ;;  %v812_v0 = vcombine.low %v756_v29, %v772_v21  ;;  %v813_v45 = vcombine.high %v756_v29, %v772_v21  ;;  %v828_v20 = vcombine.low %v763_v62, %v779_v28  ;;  %v796_v29 = vcombine.low %v13709_v40, %v13712_v24 }
  0xc2   : > { %v900_v53 = vcombine.low %v691_v57, %v699_v15  ;;  %v901_v47 = vcombine.high %v691_v57, %v699_v15  ;;  %v829_v46 = vcombine.high %v763_v62, %v779_v28  ;;  %v947_v37 = vrot.slane %v933_v50, %v13326_v18 }
  0xc3   : > { %v13728_v43 = vrot.slane %v812_v0, %v13326_v18  ;;  %v827_v9 = vrot.slane %v813_v45, %v13326_v18  ;;  %v795_v0 = vrot.slane %v781_v49, %v13326_v18  ;;  %v836_v49 = vrot.slane %v828_v20, %v13326_v18 }
  0xc4   : > { %v13732_v30 = vpop.permute.xlu1 %1064  ;;  %v908_v35 = vrot.slane %v900_v53, %v13303_v11  ;;  %v915_v57 = vrot.slane %v901_v47, %v13303_v11  ;;  %v931_v53 = vrot.slane %v917_v25, %v13326_v18  ;;  %v940_v25 = vrot.slane %v932_v34, %v13326_v18 }
  0xc5   : > { %v13736_v48 = vpop.permute.xlu0 %1058  ;;  %v846_v31 = vcombine.low %v795_v0, %v827_v9  ;;  %v804_v28 = vrot.slane %v796_v29, %v13326_v18  ;;  %v847_v32 = vcombine.high %v795_v0, %v827_v9 }
  0xc6   : > { %v948_v21 = vcombine.low %v892_v51, %v908_v35  ;;  %v949_v17 = vcombine.high %v892_v51, %v908_v35  ;;  %v964_v52 = vcombine.low %v899_v27, %v915_v57  ;;  %v965_v15 = vcombine.high %v899_v27, %v915_v57 }
  0xc7   : > { %v845_v35 = vcombine.high %v13724_v1, %v13728_v43  ;;  %v848_v58 = vcombine.low %v804_v28, %v836_v49 }
  0xc8   : > { %v13745_v47 = vpop.permute.xlu1 %1068  ;;  %v963_v45 = vrot.slane %v949_v17, %v13326_v18  ;;  %v13754_v55 = vrot.slane %v948_v21, %v13326_v18  ;;  %v972_v51 = vrot.slane %v964_v52, %v13326_v18  ;;  %v797_v21 = vcombine.high %v13709_v40, %v13712_v24 }
  0xc9   : > { %v13747_v60 = vpop.permute.xlu0 %1062  ;;  %v979_v62 = vrot.slane %v965_v15, %v13326_v18  ;;  %v843_v24 = vrot.slane %v829_v46, %v13326_v18 }
  0xca   : > { %v982_v27 = vcombine.low %v931_v53, %v963_v45  ;;  %v981_v57 = vcombine.high %v13751_v44, %v13754_v55  ;;  %v984_v56 = vcombine.low %v940_v25, %v972_v51  ;;  %v983_v33 = vcombine.high %v931_v53, %v963_v45 }
  0xcb   : > { %v811_v7 = vrot.slane %v797_v21, %v13326_v18  ;;  %v849_v53 = vcombine.high %v804_v28, %v836_v49  ;;  %v987_v0 = vcombine.high %v947_v37, %v979_v62  ;;  %v1243_v49 = vcombine.high %v13719_v22, %v13745_v47 }
  0xcc   : > { %v1073_v20 = vpop.permute.xlu1 %1072  ;;  %v12310_v34 = vpack.i.bf16 %v982_v27, %v846_v31  ;;  %v12305_v52 = vpack.i.bf16 %v981_v57, %v845_v35  ;;  %v12320_v36 = vpack.i.bf16 %v984_v56, %v848_v58  ;;  %v12315_v15 = vpack.i.bf16 %v983_v33, %v847_v32 }
  0xcd   : > { %v1067_v17 = vpop.permute.xlu0 %1066  ;;  %v986_v31 = vcombine.low %v947_v37, %v979_v62  ;;  %v985_v27 = vcombine.high %v940_v25, %v972_v51  ;;  %v850_v50 = vcombine.low %v811_v7, %v843_v24  ;;  %v1258_v46 = vcombine.low %v13732_v30, %v1073_v20 }
  0xce   : > { %12311 = vrot.lane.b32.xlu0 %v12310_v34, %s13229_s10  ;;  %12306 = vrot.lane.b32.xlu1 %v12305_v52, %s13228_s9  ;;  %v851_v32 = vcombine.high %v811_v7, %v843_v24  ;;  %v1242_v33 = vcombine.low %v13719_v22, %v13745_v47  ;;  %v1259_v25 = vcombine.high %v13732_v30, %v1073_v20 }
  0xcf   : > { %v12330_v57 = vpack.i.bf16 %v986_v31, %v850_v50  ;;  %v12325_v9 = vpack.i.bf16 %v985_v27, %v849_v53  ;;  %v1266_v37 = vrot.slane %v1258_v46, %v13303_v11  ;;  %v1106_v28 = vcombine.low %v13736_v48, %v1067_v17 }
  0xd0   : > { %v1077_v40 = vpop.permute.xlu1 %1076  ;;  %v12335_v51 = vpack.i.bf16 %v987_v0, %v851_v32  ;;  %v1250_v7 = vrot.slane %v1242_v33, %v13303_v11  ;;  %v1107_v62 = vcombine.high %v13736_v48, %v1067_v17  ;;  %v13792_v30 = vrot.slane %v1243_v49, %v13303_v11 }
  0xd1   : > { %v1071_v29 = vpop.permute.xlu0 %1070  ;;  %v13795_v20 = vrot.slane %v1259_v25, %v13303_v11  ;;  %v1114_v17 = vrot.slane %v1106_v28, %v13303_v11 }
  0xd2   : > { %12321 = vrot.lane.b32.xlu0 %v12320_v36, %s13230_s11  ;;  %12316 = vrot.lane.b32.xlu1 %v12315_v15, %s13227_s8  ;;  %v1122_v58 = vcombine.low %v13747_v60, %v1071_v29  ;;  %v1123_v24 = vcombine.high %v13747_v60, %v1071_v29  ;;  %v1306_v15 = vcombine.low %v1250_v7, %v1266_v37 }
  0xd3   : > { %v1121_v60 = vrot.slane %v1107_v62, %v13303_v11  ;;  %v1307_v32 = vcombine.high %v1250_v7, %v1266_v37 }
  0xd4   : > { %v1081_v45 = vpop.permute.xlu1 %1080  ;;  %v1130_v31 = vrot.slane %v1122_v58, %v13303_v11 }
  0xd5   : > { %v1075_v35 = vpop.permute.xlu0 %1074 }
  0xd6   : > { %12331 = vrot.lane.b32.xlu0 %v12330_v57, %s13232_s13  ;;  %12326 = vrot.lane.b32.xlu1 %v12325_v9, %s13231_s12  ;;  %v1137_v57 = vrot.slane %v1123_v24, %v13303_v11  ;;  %v1171_v49 = vcombine.high %v1114_v17, %v1130_v31 }
  0xd8   : > { %v1085_v36 = vpop.permute.xlu1 %1084  ;;  %v1186_v7 = vcombine.low %v1121_v60, %v1137_v57 }
  0xd9   : > { %v1079_v56 = vpop.permute.xlu0 %1078  ;;  %v1274_v21 = vcombine.low %v1077_v40, %v1085_v36  ;;  %v1275_v27 = vcombine.high %v1077_v40, %v1085_v36  ;;  %v13805_v36 = vrot.slane %v1306_v15, %v13326_v18  ;;  %v1187_v15 = vcombine.high %v1121_v60, %v1137_v57 }
  0xda   : > { %12336 = vrot.lane.b32.xlu1 %v12335_v51, %s13233_s14  ;;  %v1170_v51 = vcombine.low %v1114_v17, %v1130_v31 }
  0xdb   : > { %v1282_v50 = vrot.slane %v1274_v21, %v13303_v11  ;;  %v1289_v25 = vrot.slane %v1275_v27, %v13303_v11  ;;  %v1185_v27 = vrot.slane %v1171_v49, %v13326_v18 }
  0xdc   : > { %v1089_v34 = vpop.permute.xlu1 %1088  ;;  %v13824_v17 = vrot.slane %v1170_v51, %v13326_v18  ;;  %v1323_v51 = vcombine.high %v13792_v30, %v13795_v20 }
  0xdd   : > { %v1083_v52 = vpop.permute.xlu0 %1082  ;;  %v1290_v22 = vcombine.low %v1081_v45, %v1089_v34  ;;  %v1291_v47 = vcombine.high %v1081_v45, %v1089_v34 }
  0xde   : > { %v1138_v29 = vcombine.low %v1075_v35, %v1083_v52  ;;  %v1139_v53 = vcombine.high %v1075_v35, %v1083_v52  ;;  %v1322_v52 = vcombine.low %v13792_v30, %v13795_v20  ;;  %v1337_v30 = vrot.slane %v1323_v51, %v13326_v18 }
  0xdf   : > { %v1298_v48 = vrot.slane %v1290_v22, %v13303_v11  ;;  %v1305_v9 = vrot.slane %v1291_v47, %v13303_v11 }
  0xe0   : > { %v1146_v35 = vrot.slane %v1138_v29, %v13303_v11  ;;  %v1153_v21 = vrot.slane %v1139_v53, %v13303_v11 }
  0xe1   : > { %v1087_v45 = vpop.permute.xlu0 %1086  ;;  %v1338_v0 = vcombine.low %v1282_v50, %v1298_v48  ;;  %v1339_v46 = vcombine.high %v1282_v50, %v1298_v48  ;;  %v1321_v50 = vrot.slane %v1307_v32, %v13326_v18 }
  0xe2   : > { %v1154_v33 = vcombine.low %v1079_v56, %v1087_v45  ;;  %v1155_v40 = vcombine.high %v1079_v56, %v1087_v45  ;;  %v1354_v56 = vcombine.low %v1289_v25, %v1305_v9  ;;  %v1355_v45 = vcombine.high %v1289_v25, %v1305_v9 }
  0xe3   : > { %v13809_v58 = vrot.slane %v1338_v0, %v13326_v18  ;;  %v1353_v62 = vrot.slane %v1339_v46, %v13326_v18  ;;  %v1194_v46 = vrot.slane %v1186_v7, %v13326_v18  ;;  %v1330_v9 = vrot.slane %v1322_v52, %v13326_v18 }
  0xe4   : > { %v1162_v28 = vrot.slane %v1154_v33, %v13303_v11  ;;  %v1169_v37 = vrot.slane %v1155_v40, %v13303_v11  ;;  %v1362_v60 = vrot.slane %v1354_v56, %v13326_v18 }
  0xe5   : > { %v1370_v34 = vcombine.low %v13805_v36, %v13809_v58  ;;  %v1372_v0 = vcombine.low %v1321_v50, %v1353_v62  ;;  %v1371_v33 = vcombine.high %v13805_v36, %v13809_v58  ;;  %v1373_v56 = vcombine.high %v1321_v50, %v1353_v62 }
  0xe6   : > { %v1202_v24 = vcombine.low %v1146_v35, %v1162_v28  ;;  %v1203_v22 = vcombine.high %v1146_v35, %v1162_v28  ;;  %v1218_v47 = vcombine.low %v1153_v21, %v1169_v37  ;;  %v1219_v31 = vcombine.high %v1153_v21, %v1169_v37 }
  0xe7   : > { %v1201_v37 = vrot.slane %v1187_v15, %v13326_v18  ;;  %v1374_v7 = vcombine.low %v1330_v9, %v1362_v60  ;;  %v1375_v15 = vcombine.high %v1330_v9, %v1362_v60 }
  0xe8   : > { %v1217_v48 = vrot.slane %v1203_v22, %v13326_v18  ;;  %v13827_v29 = vrot.slane %v1202_v24, %v13326_v18  ;;  %v1226_v53 = vrot.slane %v1218_v47, %v13326_v18  ;;  %v1233_v49 = vrot.slane %v1219_v31, %v13326_v18 }
  0xe9   : > { %v1369_v24 = vrot.slane %v1355_v45, %v13326_v18 }
  0xea   : > { %v1236_v57 = vcombine.low %v1185_v27, %v1217_v48  ;;  %v1235_v32 = vcombine.high %v13824_v17, %v13827_v29  ;;  %v1234_v40 = vcombine.low %v13824_v17, %v13827_v29  ;;  %v1238_v21 = vcombine.low %v1194_v46, %v1226_v53 }
  0xeb   : > { %v1237_v28 = vcombine.high %v1185_v27, %v1217_v48  ;;  %v1240_v22 = vcombine.low %v1201_v37, %v1233_v49  ;;  %v1239_v47 = vcombine.high %v1194_v46, %v1226_v53  ;;  %v1376_v31 = vcombine.low %v1337_v30, %v1369_v24  ;;  %v13868_v53 = vpop.permute.xlu1 %12271  ;;  %v13872_v46 = vpop.permute.xlu0 %12276 }
  0xec   : > { %v12345_v25 = vpack.i.bf16 %v1372_v0, %v1236_v57  ;;  %v12340_v35 = vpack.i.bf16 %v1371_v33, %v1235_v32  ;;  %v12355_v20 = vpack.i.bf16 %v1374_v7, %v1238_v21  ;;  %v1241_v0 = vcombine.high %v1201_v37, %v1233_v49 }
  0xed   : > { %v12350_v52 = vpack.i.bf16 %v1373_v56, %v1237_v28  ;;  %v12365_v27 = vpack.i.bf16 %v1376_v31, %v1240_v22  ;;  %v12360_v48 = vpack.i.bf16 %v1375_v15, %v1239_v47  ;;  %v1377_v62 = vcombine.high %v1337_v30, %v1369_v24 }
  0xee   : > { %12346 = vrot.lane.b32.xlu1 %v12345_v25, %s13229_s10  ;;  %12341 = vrot.lane.b32.xlu0 %v12340_v35, %s13228_s9  ;;  %v12239_v7 = vunpack.i.h.bf16 %v13692_v12  ;;  %v12238_v56 = vunpack.i.l.bf16 %v13692_v12  ;;  %v12244_v24 = vunpack.i.h.bf16 %v13696_v14  ;;  %v12243_v30 = vunpack.i.l.bf16 %v13696_v14 }
  0xef   : > { %v12370_v50 = vpack.i.bf16 %v1377_v62, %v1241_v0  ;;  %v13870_v45 = vpop.permute.xlu1 %12281  ;;  %v13876_v57 = vpop.permute.xlu0 %12286  ;;  %v21179_v22 = vcombine.low %v13396_v59, %v13409_v4  ;;  %v21180_v31 = vcombine.low %v13391_v54, %v13405_v2  ;;  %v12253_v59 = vunpack.i.l.bf16 %v13698_v10 }
  0xf1   : > { %v645_v47 = vsel %vm631_vm1, %v21179_v22, %v12239_v7  ;;  %v632_v12 = vsel %vm631_vm1, %v21180_v31, %v12238_v56  ;;  %v21181_v7 = vcombine.low %v13724_v1, %v13728_v43 }
  0xf2   : > { %12356 = vrot.lane.b32.xlu1 %v12355_v20, %s13230_s11  ;;  %12351 = vrot.lane.b32.xlu0 %v12350_v52, %s13227_s8  ;;  %v12249_v20 = vunpack.i.h.bf16 %v13694_v8  ;;  %v12248_v52 = vunpack.i.l.bf16 %v13694_v8  ;;  %v634_v15 = vsel %vm633_vm2, %v632_v12, %v12243_v30  ;;  %v646_v14 = vsel %vm633_vm2, %v645_v47, %v12244_v24 }
  0xf3   : > { %v13874_v60 = vpop.permute.xlu1 %12291  ;;  %v13880_v33 = vpop.permute.xlu0 %12296  ;;  %v12254_v8 = vunpack.i.h.bf16 %v13698_v10  ;;  %v21182_v24 = vcombine.low %v13751_v44, %v13754_v55  ;;  %v12259_v10 = vunpack.i.h.bf16 %v13700_v13 }
  0xf4   : > { %v636_v4 = vsel %vm635_vm3, %v634_v15, %v12248_v52  ;;  %v647_v2 = vsel %vm635_vm3, %v646_v14, %v12249_v20  ;;  %v12258_v52 = vunpack.i.l.bf16 %v13700_v13 }
  0xf5   : > { %v648_v20 = vsel %vm637_vm4, %v647_v2, %v12254_v8  ;;  %v638_v43 = vsel %vm637_vm4, %v636_v4, %v12253_v59  ;;  %v12264_v8 = vunpack.i.h.bf16 %v13702_v16  ;;  %v12263_v59 = vunpack.i.l.bf16 %v13702_v16 }
  0xf6   : > { %12366 = vrot.lane.b32.xlu1 %v12365_v27, %s13232_s13  ;;  %12361 = vrot.lane.b32.xlu0 %v12360_v48, %s13231_s12  ;;  %v649_v13 = vsel %vm639_vm5, %v648_v20, %v12259_v10 }
  0xf7   : > { %v13878_v32 = vpop.permute.xlu1 %12301  ;;  %v13884_v9 = vpop.permute.xlu0 %1855 }
  0xfa   : > { %1873 = vrot.lane.b32.xlu1 %v13493_v63, %s13226_s30  ;;  %12371 = vrot.lane.b32.xlu0 %v12370_v50, %s13233_s14 }
  0xfb   : > { %v13882_v51 = vpop.permute.xlu1 %1857  ;;  %v13888_v25 = vpop.permute.xlu0 %1859 }
  0xfe   : > { %1877 = vrot.lane.b32.xlu1 %v13505_v23, %s13226_s30  ;;  %1871 = vrot.lane.b32.xlu0 %v13489_v61, %s13226_s30 }
  0xff   : > { %v13886_v49 = vpop.permute.xlu1 %1861  ;;  %v13892_v21 = vpop.permute.xlu0 %1863 }
 0x102   : > { %1881 = vrot.lane.b32.xlu1 %v13513_v38, %s13226_s30  ;;  %1875 = vrot.lane.b32.xlu0 %v13500_v5, %s13226_s30 }
 0x103   : > { %v13890_v35 = vpop.permute.xlu1 %1865  ;;  %v13896_v37 = vpop.permute.xlu0 %1867 }
 0x106   : > { %1885 = vrot.lane.b32.xlu1 %v13523_v42, %s13226_s30  ;;  %1879 = vrot.lane.b32.xlu0 %v13508_v6, %s13226_s30 }
 0x107   : > { %v13894_v28 = vpop.permute.xlu1 %1869 }
 0x10a   : > { %1883 = vrot.lane.b32.xlu0 %v13516_v39, %s13226_s30 }
 0x140   : > { %v12307_v27 = vpop.permute.xlu1 %12306  ;;  %v12312_v48 = vpop.permute.xlu0 %12311 }
 0x141   : > { %v12309_v0 = vunpack.i.h.bf16 %v12307_v27  ;;  %v12308_v62 = vunpack.i.l.bf16 %v12307_v27  ;;  %v12314_v50 = vunpack.i.h.bf16 %v12312_v48  ;;  %v12313_v54 = vunpack.i.l.bf16 %v12312_v48 }
 0x143   : > { %v1044_v56 = vsel %vm631_vm1, %v21181_v7, %v12308_v62  ;;  %v1051_v30 = vsel %vm631_vm1, %v21182_v24, %v12309_v0  ;;  %v640_v62 = vsel %vm639_vm5, %v638_v43, %v12258_v52  ;;  %v12269_v24 = vunpack.i.h.bf16 %v13704_v41 }
 0x144   : > { %v12317_v22 = vpop.permute.xlu1 %12316  ;;  %v12322_v47 = vpop.permute.xlu0 %12321  ;;  %v1052_v1 = vsel %vm633_vm2, %v1051_v30, %v12314_v50  ;;  %v1045_v15 = vsel %vm633_vm2, %v1044_v56, %v12313_v54  ;;  %v12268_v30 = vunpack.i.l.bf16 %v13704_v41  ;;  %v642_v20 = vsel %vm641_vm6, %v640_v62, %v12263_v59  ;;  %v21184_v59 = vld [vmem:[#allocation12_spill] sm:$0xff] }
 0x145   : > { %v12319_v31 = vunpack.i.h.bf16 %v12317_v22  ;;  %v12318_v12 = vunpack.i.l.bf16 %v12317_v22  ;;  %v12324_v55 = vunpack.i.h.bf16 %v12322_v47  ;;  %v12323_v44 = vunpack.i.l.bf16 %v12322_v47 }
 0x146   : > { %v21183_v62 = vcombine.low %v13567_v19, %v13570_v26  ;;  %v12288_v19 = vunpack.i.l.bf16 %v13876_v57 }
 0x147   : > { %v1046_v14 = vsel %vm635_vm3, %v1045_v15, %v12318_v12  ;;  %v1053_v27 = vsel %vm635_vm3, %v1052_v1, %v12319_v31  ;;  %v650_v31 = vsel %vm641_vm6, %v649_v13, %v12264_v8  ;;  %v644_v15 = vsel %vm643_vm7, %v642_v20, %v12268_v30 }
 0x148   : > { %v12332_v48 = vpop.permute.xlu0 %12331  ;;  %v12327_v0 = vpop.permute.xlu1 %12326  ;;  %v1047_v54 = vsel %vm637_vm4, %v1046_v14, %v12323_v44  ;;  %v1054_v56 = vsel %vm637_vm4, %v1053_v27, %v12324_v55  ;;  %v651_v1 = vsel %vm643_vm7, %v650_v31, %v12269_v24  ;;  %v12274_v27 = vunpack.i.h.bf16 %v13868_v53 }
 0x149   : > { %v12329_v4 = vunpack.i.h.bf16 %v12327_v0  ;;  %v12328_v50 = vunpack.i.l.bf16 %v12327_v0  ;;  %v12334_v2 = vunpack.i.h.bf16 %v12332_v48  ;;  %v12333_v7 = vunpack.i.l.bf16 %v12332_v48 }
 0x14a   : > { %v12273_v48 = vunpack.i.l.bf16 %v13868_v53  ;;  %v12279_v0 = vunpack.i.h.bf16 %v13872_v46  ;;  %v12278_v13 = vunpack.i.l.bf16 %v13872_v46  ;;  %v1848_v8 = vsel %vm631_vm1, %v21183_v62, %v12274_v27 }
 0x14b   : > { %v1055_v22 = vsel %vm639_vm5, %v1054_v56, %v12329_v4  ;;  %v1048_v47 = vsel %vm639_vm5, %v1047_v54, %v12328_v50  ;;  %v21185_v4 = vcombine.low %v13561_v3, %v21184_v59  ;;  %v12284_v54 = vunpack.i.h.bf16 %v13870_v45 }
 0x14c   : > { %v12337_v10 = vpop.permute.xlu1 %12336  ;;  %v1056_v12 = vsel %vm641_vm6, %v1055_v22, %v12334_v2  ;;  %v1049_v43 = vsel %vm641_vm6, %v1048_v47, %v12333_v7  ;;  %v12283_v2 = vunpack.i.l.bf16 %v13870_v45  ;;  %v1849_v53 = vsel %vm633_vm2, %v1848_v8, %v12279_v0 }
 0x14d   : > { %v12339_v52 = vunpack.i.h.bf16 %v12337_v10  ;;  %v12338_v16 = vunpack.i.l.bf16 %v12337_v10  ;;  %v1841_v50 = vsel %vm631_vm1, %v21185_v4, %v12273_v48  ;;  %v12289_v24 = vunpack.i.h.bf16 %v13876_v57 }
 0x14e   : > { %v1842_v7 = vsel %vm633_vm2, %v1841_v50, %v12278_v13  ;;  %v1850_v22 = vsel %vm635_vm3, %v1849_v53, %v12284_v54  ;;  %v12294_v57 = vunpack.i.h.bf16 %v13874_v60  ;;  %v12304_v4 = vunpack.i.h.bf16 %v13878_v32 }
 0x14f   : > { %v1057_v41 = vsel %vm643_vm7, %v1056_v12, %v12339_v52  ;;  %v1050_v55 = vsel %vm643_vm7, %v1049_v43, %v12338_v16  ;;  %v1843_v3 = vsel %vm635_vm3, %v1842_v7, %v12283_v2  ;;  %v12293_v16 = vunpack.i.l.bf16 %v13874_v60 }
 0x150   : > { %v12148_v44 = vpack.c.bf16 %v1057_v41, %v651_v1  ;;  %v12150_v14 = vpack.c.bf16 %v1050_v55, %v644_v15  ;;  %v1844_v20 = vsel %vm637_vm4, %v1843_v3, %v12288_v19  ;;  %v1851_v43 = vsel %vm637_vm4, %v1850_v22, %v12289_v24 }
 0x151   : > { %v12299_v60 = vunpack.i.h.bf16 %v13880_v33  ;;  %v12298_v15 = vunpack.i.l.bf16 %v13880_v33  ;;  %v1852_v48 = vsel %vm639_vm5, %v1851_v43, %v12294_v57  ;;  %v1845_v0 = vsel %vm639_vm5, %v1844_v20, %v12293_v16 }
 0x152   : > { %12149 = vmatprep.subr.bf16.mxu0 %v12148_v44  ;;  %v12303_v50 = vunpack.i.l.bf16 %v13878_v32  ;;  %v1903_v43 = vcombine.low %v13884_v9, %v13892_v21 }
 0x153   : > { %12151 = vmatpush1.bf16.msra.mxu0 %v12150_v14  ;;  %v1853_v7 = vsel %vm641_vm6, %v1852_v48, %v12299_v60 }
 0x154   : > { %v1854_v32 = vsel %vm643_vm7, %v1853_v7, %v12304_v4  ;;  %v1911_v60 = vrot.slane %v1903_v43, %v13303_v11 }
 0x160   : > { %v12347_v56 = vpop.permute.xlu1 %12346  ;;  %v12342_v46 = vpop.permute.xlu0 %12341 }
 0x161   : > { %v12344_v26 = vunpack.i.h.bf16 %v12342_v46  ;;  %v12343_v30 = vunpack.i.l.bf16 %v12342_v46  ;;  %v12349_v47 = vunpack.i.h.bf16 %v12347_v56  ;;  %v12348_v10 = vunpack.i.l.bf16 %v12347_v56 }
 0x162   : > { %v1846_v56 = vsel %vm641_vm6, %v1845_v0, %v12298_v15  ;;  %v1920_v15 = vcombine.high %v13888_v25, %v13896_v37 }
 0x163   : > { %v1441_v45 = vsel %vm631_vm1, %v1370_v34, %v12344_v26  ;;  %v1434_v52 = vsel %vm631_vm1, %v1234_v40, %v12343_v30  ;;  %v1847_v22 = vsel %vm643_vm7, %v1846_v56, %v12303_v50 }
 0x164   : > { %v12357_v31 = vpop.permute.xlu1 %12356  ;;  %v12352_v12 = vpop.permute.xlu0 %12351  ;;  %v1435_v34 = vsel %vm633_vm2, %v1434_v52, %v12348_v10  ;;  %v1442_v17 = vsel %vm633_vm2, %v1441_v45, %v12349_v47 }
 0x165   : > { %v12354_v1 = vunpack.i.h.bf16 %v12352_v12  ;;  %v12353_v41 = vunpack.i.l.bf16 %v12352_v12  ;;  %v12359_v36 = vunpack.i.h.bf16 %v12357_v31  ;;  %v12358_v58 = vunpack.i.l.bf16 %v12357_v31 }
 0x166   : > { %v2039_v31 = vcombine.low %v13882_v51, %v13890_v35  ;;  %v2055_v12 = vcombine.low %v13886_v49, %v13894_v28 }
 0x167   : > { %v1436_v29 = vsel %vm635_vm3, %v1435_v34, %v12353_v41  ;;  %v1443_v40 = vsel %vm635_vm3, %v1442_v17, %v12354_v1  ;;  %v1919_v1 = vcombine.low %v13888_v25, %v13896_v37 }
 0x168   : > { %v12367_v55 = vpop.permute.xlu1 %12366  ;;  %v12362_v44 = vpop.permute.xlu0 %12361  ;;  %v1437_v8 = vsel %vm637_vm4, %v1436_v29, %v12358_v58  ;;  %v1444_v59 = vsel %vm637_vm4, %v1443_v40, %v12359_v36  ;;  %v14023_v58 = vrot.slane %v2039_v31, %v13303_v11  ;;  %v14026_v34 = vrot.slane %v2055_v12, %v13303_v11 }
 0x169   : > { %v12364_v14 = vunpack.i.h.bf16 %v12362_v44  ;;  %v12363_v27 = vunpack.i.l.bf16 %v12362_v44  ;;  %v12369_v13 = vunpack.i.h.bf16 %v12367_v55  ;;  %v12368_v62 = vunpack.i.l.bf16 %v12367_v55 }
 0x16a   : > { %v1904_v40 = vcombine.high %v13884_v9, %v13892_v21  ;;  %v1927_v55 = vrot.slane %v1919_v1, %v13303_v11  ;;  %v2103_v0 = vcombine.low %v14023_v58, %v14026_v34 }
 0x16b   : > { %v1438_v33 = vsel %vm639_vm5, %v1437_v8, %v12363_v27  ;;  %v1445_v54 = vsel %vm639_vm5, %v1444_v59, %v12364_v14  ;;  %v1934_v8 = vrot.slane %v1920_v15, %v13303_v11 }
 0x16c   : > { %v13998_v2 = vpop.permute.xlu1 %1873  ;;  %v12372_v53 = vpop.permute.xlu0 %12371  ;;  %v1446_v19 = vsel %vm641_vm6, %v1445_v54, %v12369_v13  ;;  %v1439_v26 = vsel %vm641_vm6, %v1438_v33, %v12368_v62  ;;  %v1918_v62 = vrot.slane %v1904_v40, %v13303_v11  ;;  %v1967_v59 = vcombine.low %v1911_v60, %v1927_v55 }
 0x16d   : > { %v12374_v46 = vunpack.i.h.bf16 %v12372_v53  ;;  %v12373_v24 = vunpack.i.l.bf16 %v12372_v53  ;;  %v1968_v25 = vcombine.high %v1911_v60, %v1927_v55  ;;  %v14052_v53 = vrot.slane %v2103_v0, %v13326_v18 }
 0x16e   : > { %v1984_v31 = vcombine.high %v1918_v62, %v1934_v8  ;;  %v2040_v40 = vcombine.high %v13882_v51, %v13890_v35  ;;  %v2056_v60 = vcombine.high %v13886_v49, %v13894_v28  ;;  %v2104_v49 = vcombine.high %v14023_v58, %v14026_v34 }
 0x16f   : > { %v1447_v30 = vsel %vm643_vm7, %v1446_v19, %v12374_v46  ;;  %v1440_v3 = vsel %vm643_vm7, %v1439_v26, %v12373_v24  ;;  %v1983_v24 = vcombine.low %v1918_v62, %v1934_v8  ;;  %v1982_v26 = vrot.slane %v1968_v25, %v13326_v18 }
 0x170   : > { %v14008_v47 = vpop.permute.xlu1 %1877  ;;  %v1872_v10 = vpop.permute.xlu0 %1871  ;;  %v12152_v45 = vpack.c.bf16 %v1854_v32, %v1447_v30  ;;  %v12154_v52 = vpack.c.bf16 %v1847_v22, %v1440_v3  ;;  %v14059_v32 = vrot.slane %v1967_v59, %v13326_v18  ;;  %v1998_v15 = vrot.slane %v1984_v31, %v13326_v18 }
 0x171   : > { %v1991_v12 = vrot.slane %v1983_v24, %v13326_v18  ;;  %v2070_v51 = vrot.slane %v2056_v60, %v13303_v11  ;;  %v21192_v24 = vld [vmem:[#allocation8_spill] sm:$0xff]  ;;  %v13175_v60 = vld [vmem:[%s13292_s29 + $0x18] sm:$0xff] }
 0x172   : > { %12153 = vmatprep.subr.bf16.mxu0 %v12152_v45 }
 0x173   : > { %12155 = vmatpush1.bf16.msra.mxu0 %v12154_v52 }
 0x174   : > { %v14010_v57 = vpop.permute.xlu1 %1881  ;;  %v1876_v16 = vpop.permute.xlu0 %1875 }
 0x175   : > { %v2071_v20 = vcombine.low %v13998_v2, %v14010_v57 }
 0x177   : > { %v14029_v17 = vrot.slane %v2071_v20, %v13303_v11  ;;  %v2072_v20 = vcombine.high %v13998_v2, %v14010_v57 }
 0x178   : > { %v1886_v41 = vpop.permute.xlu1 %1885  ;;  %v1880_v36 = vpop.permute.xlu0 %1879 }
 0x179   : > { %v2087_v29 = vcombine.low %v14008_v47, %v1886_v41  ;;  %v1935_v14 = vcombine.low %v1872_v10, %v1880_v36  ;;  %v1936_v27 = vcombine.high %v1872_v10, %v1880_v36  ;;  %v2088_v43 = vcombine.high %v14008_v47, %v1886_v41 }
 0x17a   : > { %v2086_v2 = vrot.slane %v2072_v20, %v13303_v11 }
 0x17b   : > { %v2095_v44 = vrot.slane %v2087_v29, %v13303_v11  ;;  %v1943_v4 = vrot.slane %v1935_v14, %v13303_v11  ;;  %v1950_v50 = vrot.slane %v1936_v27, %v13303_v11  ;;  %v2102_v47 = vrot.slane %v2088_v43, %v13303_v11 }
 0x17c   : > { %v1884_v48 = vpop.permute.xlu0 %1883  ;;  %v2054_v14 = vrot.slane %v2040_v40, %v13303_v11 }
 0x17d   : > { %v2135_v13 = vcombine.low %v14029_v17, %v2095_v44  ;;  %v1951_v9 = vcombine.low %v1876_v16, %v1884_v48  ;;  %v1952_v21 = vcombine.high %v1876_v16, %v1884_v48  ;;  %v2136_v57 = vcombine.high %v14029_v17, %v2095_v44 }
 0x17e   : > { %v2151_v35 = vcombine.low %v2086_v2, %v2102_v47  ;;  %v2119_v44 = vcombine.low %v2054_v14, %v2070_v51  ;;  %v2118_v48 = vrot.slane %v2104_v49, %v13326_v18  ;;  %v2152_v0 = vcombine.high %v2086_v2, %v2102_v47 }
 0x17f   : > { %v14045_v37 = vrot.slane %v2135_v13, %v13326_v18  ;;  %v1959_v33 = vrot.slane %v1951_v9, %v13303_v11  ;;  %v1966_v54 = vrot.slane %v1952_v21, %v13303_v11  ;;  %v2150_v17 = vrot.slane %v2136_v57, %v13326_v18  ;;  %v13176_v57 = vld [vmem:[%s13292_s29 + $0x20] sm:$0xff] }
 0x180   : > { %v2159_v13 = vrot.slane %v2151_v35, %v13326_v18  ;;  %v2120_v62 = vcombine.high %v2054_v14, %v2070_v51  ;;  %v2127_v9 = vrot.slane %v2119_v44, %v13326_v18  ;;  %v2166_v59 = vrot.slane %v2152_v0, %v13326_v18  ;;  %v13178_v51 = vld [vmem:[%s13292_s29 + $0x38] sm:$0xff]  ;;  %v13179_v35 = vld [vmem:[%s13292_s29 + $0x48] sm:$0xff]  ;;  %v13181_v44 = vld [vmem:[%s13292_s29 + $0x60] sm:$0xff] }
 0x181   : > { %21186 = vst [vmem:[#allocation12_spill] sm:$0xff] %v14045_v37  ;;  %v1999_v7 = vcombine.low %v1943_v4, %v1959_v33  ;;  %v2000_v56 = vcombine.high %v1943_v4, %v1959_v33  ;;  %v2015_v46 = vcombine.low %v1950_v50, %v1966_v54  ;;  %v2016_v22 = vcombine.high %v1950_v50, %v1966_v54  ;;  %v21187_v33 = vld [vmem:[#allocation5_spill] sm:$0xff]  ;;  %v21188_v54 = vld [vmem:[#allocation4_spill] sm:$0xff] }
 0x182   : > { %v2168_v28 = vcombine.high %v14052_v53, %v14045_v37  ;;  %v2170_v58 = vcombine.high %v2118_v48, %v2150_v17  ;;  %v2169_v34 = vcombine.low %v2118_v48, %v2150_v17  ;;  %v2172_v21 = vcombine.high %v2127_v9, %v2159_v13  ;;  %v13182_v0 = vld [vmem:[%s13292_s29 + $0x68] sm:$0xff] }
 0x183   : > { %v2014_v30 = vrot.slane %v2000_v56, %v13326_v18  ;;  %v14062_v3 = vrot.slane %v1999_v7, %v13326_v18  ;;  %v2023_v52 = vrot.slane %v2015_v46, %v13326_v18  ;;  %v2030_v29 = vrot.slane %v2016_v22, %v13326_v18  ;;  %v21189_v7 = vld [vmem:[#allocation7_spill] sm:$0xff]  ;;  %v21190_v56 = vld [vmem:[#allocation6_spill] sm:$0xff]  ;;  %v21191_v46 = vld [vmem:[#allocation9_spill] sm:$0xff] }
 0x184   : > { %v2171_v8 = vcombine.low %v2127_v9, %v2159_v13  ;;  %v2134_v25 = vrot.slane %v2120_v62, %v13326_v18  ;;  %v13172_v22 = vld [vmem:[%s13292_s29] sm:$0xff]  ;;  %v2647_v49 = vrot.slane %v13178_v51, 2  ;;  %v2656_v48 = vrot.slane %v13181_v44, 2 }
 0x185   : > { %v2033_v10 = vcombine.low %v1982_v26, %v2014_v30  ;;  %v2032_v45 = vcombine.high %v14059_v32, %v14062_v3  ;;  %v2035_v1 = vcombine.low %v1991_v12, %v2023_v52  ;;  %v2034_v36 = vcombine.high %v1982_v26, %v2014_v30  ;;  %v21193_v26 = vld [vmem:[#allocation11_spill] sm:$0xff]  ;;  %v21194_v30 = vld [vmem:[#allocation10_spill] sm:$0xff] }
 0x186   : > { %v2037_v41 = vcombine.low %v1998_v15, %v2030_v29  ;;  %v2036_v55 = vcombine.high %v1991_v12, %v2023_v52  ;;  %v2038_v27 = vcombine.high %v1998_v15, %v2030_v29  ;;  %v2174_v4 = vcombine.high %v2134_v25, %v2166_v59  ;;  %v13184_v62 = vld [vmem:[%s13292_s29 + $0x80] sm:$0xff] }
 0x187   : > { %2180 = vrot.lane.b32.xlu1 %v2033_v10, %s13229_s10  ;;  %2176 = vrot.lane.b32.xlu0 %v2032_v45, %s13228_s9  ;;  %v2173_v50 = vcombine.low %v2134_v25, %v2166_v59  ;;  %v2636_v10 = vrot.slane %v13172_v22, 2  ;;  %v13173_v45 = vld [vmem:[%s13292_s29 + $0x8] sm:$0xff]  ;;  %v2641_v15 = vrot.slane %v13175_v60, 2  ;;  %v2662_v9 = vrot.slane %v13184_v62, 2  ;;  %v13186_v59 = vld [vmem:[%s13292_s29 + $0x98] sm:$0xff] }
 0x188   : > { %v2637_v52 = vrot.slane %v13173_v45, 2  ;;  %v2667_v25 = vrot.slane %v13186_v59, 2  ;;  %v13192_v45 = vld [vmem:[%s13292_s29 + $0x70] sm:$0x3]  ;;  %v13194_v60 = vld [vmem:[%s13292_s29 + $0xa0] sm:$0x3] }
 0x18b   : > { %2188 = vrot.lane.b32.xlu1 %v2035_v1, %s13230_s11  ;;  %2184 = vrot.lane.b32.xlu0 %v2034_v36, %s13227_s8 }
 0x18f   : > { %2196 = vrot.lane.b32.xlu1 %v2037_v41, %s13232_s13  ;;  %2192 = vrot.lane.b32.xlu0 %v2036_v55, %s13231_s12  ;;  %v2642_v41 = vrot.slane %v13176_v57, 2  ;;  %v13177_v55 = vld [vmem:[%s13292_s29 + $0x30] sm:$0xff]  ;;  %v2669_v57 = vrot.slane %v13194_v60, 2 }
 0x190   : > { %v2646_v14 = vrot.slane %v13177_v55, 2  ;;  %v13195_v55 = vld [vmem:[%s13292_s29 + $0xb8] sm:$0x3] }
 0x191   : > { %v2674_v51 = vrot.slane %v13195_v55, 2 }
 0x193   : > { %2204 = vrot.lane.b32.xlu1 %v2168_v28, %s13228_s9  ;;  %2200 = vrot.lane.b32.xlu0 %v2038_v27, %s13233_s14  ;;  %v2651_v28 = vrot.slane %v13179_v35, 2  ;;  %v13180_v27 = vld [vmem:[%s13292_s29 + $0x50] sm:$0xff]  ;;  %v14203_v35 = vsel %vm2635_vm8, %v2641_v15, %v2642_v41 }
 0x194   : > { %v2652_v17 = vrot.slane %v13180_v27, 2  ;;  %v14206_v27 = vsel %vm2635_vm8, %v2646_v14, %v2647_v49 }
 0x196   : > { %v14209_v44 = vsel %vm2635_vm8, %v2651_v28, %v2652_v17 }
 0x197   : > { %2212 = vrot.lane.b32.xlu1 %v2170_v58, %s13227_s8  ;;  %2208 = vrot.lane.b32.xlu0 %v2169_v34, %s13229_s10  ;;  %v2657_v58 = vrot.slane %v13182_v0, 2  ;;  %v13183_v34 = vld [vmem:[%s13292_s29 + $0x78] sm:$0xff] }
 0x198   : > { %v2661_v13 = vrot.slane %v13183_v34, 2 }
 0x199   : > { %v14212_v0 = vsel %vm2635_vm8, %v2656_v48, %v2657_v58 }
 0x19a   : > { %v14215_v34 = vsel %vm2635_vm8, %v2661_v13, %v2662_v9 }
 0x19b   : > { %2220 = vrot.lane.b32.xlu1 %v2172_v21, %s13231_s12  ;;  %2216 = vrot.lane.b32.xlu0 %v2171_v8, %s13230_s11  ;;  %v13185_v21 = vld [vmem:[%s13292_s29 + $0x90] sm:$0xff] }
 0x19c   : > { %v2666_v8 = vrot.slane %v13185_v21, 2 }
 0x19e   : > { %v14218_v62 = vsel %vm2635_vm8, %v2666_v8, %v2667_v25 }
 0x19f   : > { %2228 = vrot.lane.b32.xlu1 %v2174_v4, %s13233_s14  ;;  %2224 = vrot.lane.b32.xlu0 %v2173_v50, %s13232_s13  ;;  %v13187_v4 = vld [vmem:[%s13292_s29 + $0xa8] sm:$0xff] }
 0x1a0   : > { %v2671_v50 = vrot.slane %v13187_v4, 2 }
 0x1a3   : > { %2247 = vrot.lane.b32.xlu1 %v21187_v33, %s13234_s15  ;;  %2245 = vrot.lane.b32.xlu0 %v21188_v54, %s13234_s15  ;;  %v13188_v33 = vld [vmem:[%s13292_s29 + $0xb0] sm:$0xff] }
 0x1a4   : > { %v2672_v54 = vrot.slane %v13188_v33, 2 }
 0x1a6   : > { %v14221_v21 = vsel %vm2635_vm8, %v2671_v50, %v2672_v54  ;;  %v2708_v50 = vcombine.low %v14203_v35, %v14209_v44 }
 0x1a7   : > { %2251 = vrot.lane.b32.xlu1 %v21189_v7, %s13234_s15  ;;  %2249 = vrot.lane.b32.xlu0 %v21190_v56, %s13234_s15  ;;  %v13189_v7 = vld [vmem:[%s13292_s29 + $0x28] sm:$0x3] }
 0x1a8   : > { %v2644_v56 = vrot.slane %v13189_v7, 2 }
 0x1aa   : > { %v14226_v14 = vsel %vm2635_vm8, %v2642_v41, %v2644_v56  ;;  %v14245_v41 = vsel %vm2635_vm8, %v2667_v25, %v2669_v57 }
 0x1ab   : > { %2255 = vrot.lane.b32.xlu1 %v21191_v46, %s13234_s15  ;;  %2253 = vrot.lane.b32.xlu0 %v21192_v24, %s13234_s15  ;;  %v13190_v46 = vld [vmem:[%s13292_s29 + $0x40] sm:$0x3] }
 0x1ac   : > { %v2649_v24 = vrot.slane %v13190_v46, 2  ;;  %v2716_v46 = vrot.slane %v2708_v50, %v13303_v11 }
 0x1ae   : > { %v14229_v28 = vsel %vm2635_vm8, %v2647_v49, %v2649_v24  ;;  %v14248_v49 = vsel %vm2635_vm8, %v2672_v54, %v2674_v51 }
 0x1af   : > { %2259 = vrot.lane.b32.xlu1 %v21193_v26, %s13234_s15  ;;  %2257 = vrot.lane.b32.xlu0 %v21194_v30, %s13234_s15  ;;  %v13191_v26 = vld [vmem:[%s13292_s29 + $0x58] sm:$0x3] }
 0x1b0   : > { %v2654_v30 = vrot.slane %v13191_v26, 2 }
 0x1b2   : > { %v14232_v48 = vsel %vm2635_vm8, %v2652_v17, %v2654_v30  ;;  %v2724_v17 = vcombine.low %v14212_v0, %v14218_v62 }
 0x1b3   : > { %2263 = vrot.lane.b32.xlu1 %v13493_v63, %s13234_s15  ;;  %2261 = vrot.lane.b32.xlu0 %v13489_v61, %s13234_s15  ;;  %v13174_v63 = vld [vmem:[%s13292_s29 + $0x10] sm:$0x3]  ;;  %v14144_v61 = vsel %vm2635_vm8, %v2636_v10, %v2637_v52  ;;  %v2844_v56 = vcombine.low %v14226_v14, %v14232_v48 }
 0x1b4   : > { %v2639_v31 = vrot.slane %v13174_v63, 2  ;;  %v13193_v63 = vld [vmem:[%s13292_s29 + $0x88] sm:$0x3]  ;;  %v2692_v4 = vcombine.low %v14144_v61, %v14206_v27  ;;  %v2732_v26 = vrot.slane %v2724_v17, %v13303_v11 }
 0x1b6   : > { %v2700_v25 = vrot.slane %v2692_v4, %v13303_v11 }
 0x1b7   : > { %2267 = vrot.lane.b32.xlu1 %v13505_v23, %s13234_s15  ;;  %2265 = vrot.lane.b32.xlu0 %v13500_v5, %s13234_s15  ;;  %v14147_v5 = vsel %vm2635_vm8, %v2637_v52, %v2639_v31  ;;  %v2659_v52 = vrot.slane %v13192_v45, 2  ;;  %v2664_v31 = vrot.slane %v13193_v63, 2 }
 0x1b8   : > { %v2828_v7 = vcombine.low %v14147_v5, %v14229_v28  ;;  %v2756_v60 = vcombine.low %v2700_v25, %v2716_v46  ;;  %v2757_v4 = vcombine.high %v2700_v25, %v2716_v46  ;;  %v2693_v46 = vcombine.high %v14144_v61, %v14206_v27 }
 0x1b9   : > { %v14235_v13 = vsel %vm2635_vm8, %v2657_v58, %v2659_v52  ;;  %v14238_v8 = vsel %vm2635_vm8, %v2662_v9, %v2664_v31  ;;  %v2740_v58 = vcombine.low %v14215_v34, %v14221_v21  ;;  %v2852_v31 = vrot.slane %v2844_v56, %v13303_v11 }
 0x1ba   : > { %v2860_v54 = vcombine.low %v14235_v13, %v14245_v41  ;;  %v2876_v24 = vcombine.low %v14238_v8, %v14248_v49  ;;  %v2836_v63 = vrot.slane %v2828_v7, %v13303_v11  ;;  %v14279_v16 = vrot.slane %v2756_v60, %v13326_v18 }
 0x1bb   : > { %2271 = vrot.lane.b32.xlu1 %v13513_v38, %s13234_s15  ;;  %2269 = vrot.lane.b32.xlu0 %v13508_v6, %s13234_s15  ;;  %v2748_v30 = vrot.slane %v2740_v58, %v13303_v11 }
 0x1bc   : > { %v14269_v57 = vrot.slane %v2860_v54, %v13303_v11  ;;  %v14272_v55 = vrot.slane %v2876_v24, %v13303_v11  ;;  %v2892_v58 = vcombine.low %v2836_v63, %v2852_v31  ;;  %21207 = vst [vmem:[#allocation17_spill] sm:$0xff] %v14279_v16  ;;  %v2893_v56 = vcombine.high %v2836_v63, %v2852_v31 }
 0x1bd   : > { %v2788_v51 = vcombine.low %v2732_v26, %v2748_v30  ;;  %v2789_v50 = vcombine.high %v2732_v26, %v2748_v30  ;;  %v14292_v30 = vrot.slane %v2757_v4, %v13326_v18 }
 0x1be   : > { %v2924_v7 = vcombine.low %v14269_v57, %v14272_v55  ;;  %v14300_v25 = vrot.slane %v2892_v58, %v13326_v18  ;;  %v14314_v58 = vrot.slane %v2893_v56, %v13326_v18 }
 0x1bf   : > { %2275 = vrot.lane.b32.xlu1 %v13523_v42, %s13234_s15  ;;  %2273 = vrot.lane.b32.xlu0 %v13516_v39, %s13234_s15  ;;  %v14295_v60 = vrot.slane %v2789_v50, %v13326_v18  ;;  %v2725_v50 = vcombine.high %v14212_v0, %v14218_v62 }
 0x1f9   : > { %v14149_v23 = vpop.permute.xlu1 %2180  ;;  %v14151_v6 = vpop.permute.xlu0 %2176 }
 0x1fa   : > { %21195 = vst [vmem:[#allocation5_spill] sm:$0xff] %v14149_v23 }
 0x1fd   : > { %v14153_v38 = vpop.permute.xlu1 %2188  ;;  %v14155_v42 = vpop.permute.xlu0 %2184 }
 0x1fe   : > { %21196 = vst [vmem:[#allocation4_spill] sm:$0xff] %v14153_v38  ;;  %21197 = vst [vmem:[#allocation7_spill] sm:$0xff] %v14155_v42 }
 0x201   : > { %v14157_v12 = vpop.permute.xlu1 %2196  ;;  %v14159_v39 = vpop.permute.xlu0 %2192 }
 0x202   : > { %21198 = vst [vmem:[#allocation6_spill] sm:$0xff] %v14157_v12  ;;  %21199 = vst [vmem:[#allocation9_spill] sm:$0xff] %v14159_v39  ;;  %v14307_v12 = vrot.slane %v2924_v7, %v13326_v18 }
 0x205   : > { %v14161_v20 = vpop.permute.xlu1 %2204  ;;  %v14163_v43 = vpop.permute.xlu0 %2200 }
 0x206   : > { %21200 = vst [vmem:[#allocation8_spill] sm:$0xff] %v14163_v43 }
 0x209   : > { %v14165_v1 = vpop.permute.xlu1 %2212  ;;  %v14167_v36 = vpop.permute.xlu0 %2208 }
 0x20a   : > { %21201 = vst [vmem:[#allocation11_spill] sm:$0xff] %v14165_v1  ;;  %21202 = vst [vmem:[#allocation10_spill] sm:$0xff] %v14167_v36 }
 0x20d   : > { %v14169_v29 = vpop.permute.xlu1 %2220  ;;  %v14171_v40 = vpop.permute.xlu0 %2216 }
 0x20e   : > { %21203 = vst [vmem:[#allocation13_spill] sm:$0xff] %v14169_v29  ;;  %21204 = vst [vmem:[#allocation14_spill] sm:$0xff] %v14171_v40  ;;  %v14341_v29 = vrot.slane %v2725_v50, %v13303_v11 }
 0x211   : > { %v14174_v2 = vpop.permute.xlu1 %2228  ;;  %v14176_v47 = vpop.permute.xlu0 %2224 }
 0x212   : > { %21205 = vst [vmem:[#allocation15_spill] sm:$0xff] %v14174_v2  ;;  %21206 = vst [vmem:[#allocation16_spill] sm:$0xff] %v14176_v47  ;;  %v14284_v2 = vrot.slane %v2788_v51, %v13326_v18  ;;  %v14317_v47 = vrot.slane %v2693_v46, %v13303_v11 }
 0x215   : > { %v14194_v22 = vpop.permute.xlu1 %2247  ;;  %v14196_v10 = vpop.permute.xlu0 %2245 }
 0x219   : > { %v2252_v15 = vpop.permute.xlu1 %2251  ;;  %v14223_v59 = vpop.permute.xlu0 %2249 }
 0x21d   : > { %v2256_v9 = vpop.permute.xlu1 %2255  ;;  %v2254_v33 = vpop.permute.xlu0 %2253 }
 0x21e   : > { %v2429_v63 = vcombine.low %v14194_v22, %v2256_v9  ;;  %v2293_v4 = vcombine.low %v14196_v10, %v2254_v33 }
 0x220   : > { %v2301_v7 = vrot.slane %v2293_v4, %v13303_v11 }
 0x221   : > { %v2260_v45 = vpop.permute.xlu1 %2259  ;;  %v2258_v52 = vpop.permute.xlu0 %2257 }
 0x222   : > { %v2445_v54 = vcombine.low %v2252_v15, %v2260_v45  ;;  %v2446_v24 = vcombine.high %v2252_v15, %v2260_v45  ;;  %v2309_v26 = vcombine.low %v14223_v59, %v2258_v52  ;;  %v2310_v31 = vcombine.high %v14223_v59, %v2258_v52 }
 0x223   : > { %v2709_v15 = vcombine.high %v14203_v35, %v14209_v44  ;;  %v2430_v45 = vcombine.high %v14194_v22, %v2256_v9  ;;  %v2294_v59 = vcombine.high %v14196_v10, %v2254_v33  ;;  %v2437_v10 = vrot.slane %v2429_v63, %v13303_v11 }
 0x224   : > { %v2453_v52 = vrot.slane %v2445_v54, %v13303_v11  ;;  %v14320_v22 = vrot.slane %v2446_v24, %v13303_v11  ;;  %v2317_v9 = vrot.slane %v2309_v26, %v13303_v11  ;;  %v14329_v33 = vrot.slane %v2310_v31, %v13303_v11 }
 0x225   : > { %v14274_v19 = vpop.permute.xlu1 %2263  ;;  %v14276_v17 = vpop.permute.xlu0 %2261  ;;  %v14332_v46 = vrot.slane %v2709_v15, %v13303_v11  ;;  %v14337_v26 = vrot.slane %v2430_v45, %v13303_v11  ;;  %v14346_v31 = vrot.slane %v2294_v59, %v13303_v11 }
 0x226   : > { %v2493_v39 = vcombine.low %v2437_v10, %v2453_v52  ;;  %v2494_v24 = vcombine.high %v2437_v10, %v2453_v52  ;;  %v2357_v50 = vcombine.low %v2301_v7, %v2317_v9  ;;  %v2358_v40 = vcombine.high %v2301_v7, %v2317_v9 }
 0x227   : > { %v2509_v45 = vcombine.low %v14337_v26, %v14320_v22  ;;  %v2510_v4 = vcombine.high %v14337_v26, %v14320_v22  ;;  %v2373_v63 = vcombine.low %v14346_v31, %v14329_v33  ;;  %v2374_v22 = vcombine.high %v14346_v31, %v14329_v33 }
 0x228   : > { %v14376_v33 = vrot.slane %v2357_v50, %v13326_v18 }
 0x229   : > { %v2268_v51 = vpop.permute.xlu1 %2267  ;;  %v2266_v43 = vpop.permute.xlu0 %2265 }
 0x22a   : > { %21209 = vst [vmem:[#allocation19_spill] sm:$0xff] %v14376_v33 }
 0x22d   : > { %v2272_v56 = vpop.permute.xlu1 %2271  ;;  %v2270_v54 = vpop.permute.xlu0 %2269 }
 0x22e   : > { %v2461_v15 = vcombine.low %v14274_v19, %v2272_v56  ;;  %v2462_v38 = vcombine.high %v14274_v19, %v2272_v56  ;;  %v2325_v59 = vcombine.low %v14276_v17, %v2270_v54  ;;  %v2326_v1 = vcombine.high %v14276_v17, %v2270_v54 }
 0x22f   : > { %v14359_v56 = vrot.slane %v2493_v39, %v13326_v18  ;;  %v14371_v39 = vrot.slane %v2509_v45, %v13326_v18 }
 0x230   : > { %v2469_v9 = vrot.slane %v2461_v15, %v13303_v11  ;;  %v2476_v7 = vrot.slane %v2462_v38, %v13303_v11 }
 0x231   : > { %v2276_v42 = vpop.permute.xlu1 %2275  ;;  %v2274_v36 = vpop.permute.xlu0 %2273  ;;  %21208 = vst [vmem:[#allocation18_spill] sm:$0xff] %v14359_v56 }
 0x232   : > { %v2477_v23 = vcombine.low %v2268_v51, %v2276_v42  ;;  %v2478_v19 = vcombine.high %v2268_v51, %v2276_v42  ;;  %v2341_v52 = vcombine.low %v2266_v43, %v2274_v36  ;;  %v2342_v10 = vcombine.high %v2266_v43, %v2274_v36 }
 0x233   : > { %v2508_v43 = vrot.slane %v2494_v24, %v13326_v18  ;;  %v2333_v36 = vrot.slane %v2325_v59, %v13303_v11  ;;  %v2340_v51 = vrot.slane %v2326_v1, %v13303_v11  ;;  %v2372_v1 = vrot.slane %v2358_v40, %v13326_v18 }
 0x234   : > { %v2485_v26 = vrot.slane %v2477_v23, %v13303_v11  ;;  %v2492_v17 = vrot.slane %v2478_v19, %v13303_v11  ;;  %v2349_v54 = vrot.slane %v2341_v52, %v13303_v11  ;;  %v2356_v42 = vrot.slane %v2342_v10, %v13303_v11 }
 0x236   : > { %v2525_v38 = vcombine.low %v2469_v9, %v2485_v26  ;;  %v2526_v23 = vcombine.high %v2469_v9, %v2485_v26  ;;  %v2541_v31 = vcombine.low %v2476_v7, %v2492_v17  ;;  %v2542_v15 = vcombine.high %v2476_v7, %v2492_v17 }
 0x237   : > { %v2389_v19 = vcombine.low %v2333_v36, %v2349_v54  ;;  %v2390_v52 = vcombine.high %v2333_v36, %v2349_v54  ;;  %v2405_v37 = vcombine.low %v2340_v51, %v2356_v42  ;;  %v2406_v59 = vcombine.high %v2340_v51, %v2356_v42 }
 0x238   : > { %v14379_v10 = vrot.slane %v2525_v38, %v13326_v18  ;;  %v2540_v24 = vrot.slane %v2526_v23, %v13326_v18  ;;  %v2549_v45 = vrot.slane %v2541_v31, %v13326_v18  ;;  %v2381_v26 = vrot.slane %v2373_v63, %v13326_v18 }
 0x239   : > { %v14385_v50 = vrot.slane %v2389_v19, %v13326_v18  ;;  %v2404_v9 = vrot.slane %v2390_v52, %v13326_v18  ;;  %v2413_v7 = vrot.slane %v2405_v37, %v13326_v18  ;;  %v2877_v38 = vcombine.high %v14238_v8, %v14248_v49 }
 0x23a   : > { %21210 = vst [vmem:[#allocation20_spill] sm:$0xff] %v14379_v10  ;;  %v2559_v54 = vcombine.low %v2508_v43, %v2540_v24  ;;  %v2558_v36 = vcombine.high %v14359_v56, %v14379_v10  ;;  %v2556_v37 = vrot.slane %v2542_v15, %v13326_v18  ;;  %v2420_v63 = vrot.slane %v2406_v59, %v13326_v18 }
 0x23b   : > { %21211 = vst [vmem:[#allocation21_spill] sm:$0xff] %v14385_v50  ;;  %v2423_v40 = vcombine.low %v2372_v1, %v2404_v9  ;;  %v2422_v51 = vcombine.high %v14376_v33, %v14385_v50  ;;  %v2425_v23 = vcombine.low %v2381_v26, %v2413_v7  ;;  %v2561_v31 = vcombine.low %v14371_v39, %v2549_v45 }
 0x23c   : > { %v2424_v17 = vcombine.high %v2372_v1, %v2404_v9  ;;  %v2560_v10 = vcombine.high %v2508_v43, %v2540_v24  ;;  %v2524_v42 = vrot.slane %v2510_v4, %v13326_v18  ;;  %v2388_v56 = vrot.slane %v2374_v22, %v13326_v18 }
 0x23d   : > { %v12380_v19 = vpack.i.bf16 %v2559_v54, %v2423_v40  ;;  %v12375_v52 = vpack.i.bf16 %v2558_v36, %v2422_v51  ;;  %v21212_v50 = vcombine.high %v14215_v34, %v14221_v21  ;;  %v21213_v15 = vcombine.high %v14147_v5, %v14229_v28 }
 0x23e   : > { %v21214_v4 = vcombine.high %v14226_v14, %v14232_v48  ;;  %v21215_v22 = vcombine.high %v14235_v13, %v14245_v41  ;;  %v2891_v1 = vrot.slane %v2877_v38, %v13303_v11  ;;  %v2563_v9 = vcombine.low %v2524_v42, %v2556_v37 }
 0x23f   : > { %v2755_v33 = vrot.slane %v21212_v50, %v13303_v11  ;;  %v2843_v59 = vrot.slane %v21213_v15, %v13303_v11  ;;  %12381 = vrot.lane.b32.xlu1 %v12380_v19, %s13229_s10  ;;  %12376 = vrot.lane.b32.xlu0 %v12375_v52, %s13228_s9  ;;  %v2427_v50 = vcombine.low %v2388_v56, %v2420_v63 }
 0x240   : > { %v2859_v43 = vrot.slane %v21214_v4, %v13303_v11  ;;  %v2875_v24 = vrot.slane %v21215_v22, %v13303_v11  ;;  %v2821_v54 = vcombine.high %v14279_v16, %v14284_v2  ;;  %v21216_v36 = vcombine.high %v14269_v57, %v14272_v55 }
 0x241   : > { %v12390_v51 = vpack.i.bf16 %v2561_v31, %v2425_v23  ;;  %v12385_v19 = vpack.i.bf16 %v2560_v10, %v2424_v17  ;;  %v2426_v52 = vcombine.high %v2381_v26, %v2413_v7  ;;  %v2562_v15 = vcombine.high %v14371_v39, %v2549_v45 }
 0x242   : > { %v2939_v40 = vrot.slane %v21216_v36, %v13326_v18  ;;  %v2823_v4 = vcombine.high %v14292_v30, %v14295_v60  ;;  %v2822_v38 = vcombine.low %v14292_v30, %v14295_v60  ;;  %v2772_v22 = vcombine.low %v14317_v47, %v14332_v46 }
 0x243   : > { %v2804_v16 = vcombine.low %v14341_v29, %v2755_v33  ;;  %12391 = vrot.lane.b32.xlu1 %v12390_v51, %s13230_s11  ;;  %12386 = vrot.lane.b32.xlu0 %v12385_v19, %s13227_s8  ;;  %v2957_v57 = vcombine.high %v14300_v25, %v14307_v12  ;;  %v2908_v55 = vcombine.low %v2843_v59, %v2859_v43 }
 0x244   : > { %v2940_v39 = vcombine.low %v2875_v24, %v2891_v1  ;;  %v2959_v10 = vcombine.high %v14314_v58, %v2939_v40  ;;  %v2958_v45 = vcombine.low %v14314_v58, %v2939_v40  ;;  %v2773_v30 = vcombine.high %v14317_v47, %v14332_v46 }
 0x245   : > { %v2805_v60 = vcombine.high %v14341_v29, %v2755_v33  ;;  %v12400_v7 = vpack.i.bf16 %v2563_v9, %v2427_v50  ;;  %v12395_v26 = vpack.i.bf16 %v2562_v15, %v2426_v52  ;;  %v2428_v17 = vcombine.high %v2388_v56, %v2420_v63 }
 0x246   : > { %v2564_v23 = vcombine.high %v2524_v42, %v2556_v37  ;;  %v2780_v31 = vrot.slane %v2772_v22, %v13326_v18  ;;  %v2812_v36 = vrot.slane %v2804_v16, %v13326_v18  ;;  %v2909_v51 = vcombine.high %v2843_v59, %v2859_v43 }
 0x247   : > { %v2941_v19 = vcombine.high %v2875_v24, %v2891_v1  ;;  %12401 = vrot.lane.b32.xlu1 %v12400_v7, %s13232_s13  ;;  %12396 = vrot.lane.b32.xlu0 %v12395_v26, %s13231_s12  ;;  %v12410_v58 = vpack.i.bf16 %v2957_v57, %v2821_v54  ;;  %v2916_v40 = vrot.slane %v2908_v55, %v13326_v18  ;;  %v21218_v7 = vld [vmem:[#allocation12_spill] sm:$0xff] }
 0x248   : > { %v2948_v47 = vrot.slane %v2940_v39, %v13326_v18  ;;  %v12405_v29 = vpack.i.bf16 %v2564_v23, %v2428_v17  ;;  %v12420_v46 = vpack.i.bf16 %v2959_v10, %v2823_v4  ;;  %v12415_v33 = vpack.i.bf16 %v2958_v45, %v2822_v38  ;;  %v21220_v23 = vld [vmem:[#allocation18_spill] sm:$0xff] }
 0x249   : > { %v2787_v56 = vrot.slane %v2773_v30, %v13326_v18  ;;  %v2825_v42 = vcombine.high %v2780_v31, %v2812_v36  ;;  %v2819_v37 = vrot.slane %v2805_v60, %v13326_v18  ;;  %v2923_v16 = vrot.slane %v2909_v51, %v13326_v18 }
 0x24a   : > { %v2955_v63 = vrot.slane %v2941_v19, %v13326_v18  ;;  %v2961_v59 = vcombine.high %v2916_v40, %v2948_v47  ;;  %v2824_v43 = vcombine.low %v2780_v31, %v2812_v36  ;;  %v2960_v24 = vcombine.low %v2916_v40, %v2948_v47  ;;  %v21221_v31 = vld [vmem:[#allocation20_spill] sm:$0xff]  ;;  %v21223_v19 = vld [vmem:[#allocation19_spill] sm:$0xff]  ;;  %v21227_v47 = vld [vmem:[#allocation10_spill] sm:$0xff] }
 0x24b   : > { %12411 = vrot.lane.b32.xlu1 %v12410_v58, %s13228_s9  ;;  %12406 = vrot.lane.b32.xlu0 %v12405_v29, %s13233_s14  ;;  %v2827_v1 = vcombine.high %v2787_v56, %v2819_v37  ;;  %v2826_v9 = vcombine.low %v2787_v56, %v2819_v37  ;;  %v21217_v55 = vcombine.low %v14059_v32, %v14062_v3  ;;  %v21224_v58 = vld [vmem:[#allocation21_spill] sm:$0xff] }
 0x24c   : > { %v2963_v50 = vcombine.high %v2923_v16, %v2955_v63  ;;  %v12430_v54 = vpack.i.bf16 %v2961_v59, %v2825_v42  ;;  %v12425_v52 = vpack.i.bf16 %v2960_v24, %v2824_v43  ;;  %v2962_v15 = vcombine.low %v2923_v16, %v2955_v63  ;;  %v21229_v43 = vld [vmem:[#allocation11_spill] sm:$0xff] }
 0x24d   : > { %v2231_v39 = vsel %vm631_vm1, %v21217_v55, %v14151_v6  ;;  %v21219_v26 = vcombine.low %v14052_v53, %v21218_v7  ;;  %v21222_v36 = vcombine.low %v21220_v23, %v21221_v31  ;;  %v21225_v32 = vcombine.low %v21223_v19, %v21224_v58  ;;  %v21226_v6 = vld [vmem:[#allocation5_spill] sm:$0xff]  ;;  %v21234_v31 = vld [vmem:[#allocation16_spill] sm:$0xff] }
 0x24e   : > { %v12440_v4 = vpack.i.bf16 %v2963_v50, %v2827_v1  ;;  %v12435_v38 = vpack.i.bf16 %v2962_v15, %v2826_v9  ;;  %v2232_v40 = vsel %vm633_vm2, %v2231_v39, %v21226_v6  ;;  %v21230_v9 = vld [vmem:[#allocation14_spill] sm:$0xff]  ;;  %v21233_v7 = vld [vmem:[#allocation13_spill] sm:$0xff] }
 0x24f   : > { %12421 = vrot.lane.b32.xlu1 %v12420_v46, %s13227_s8  ;;  %12416 = vrot.lane.b32.xlu0 %v12415_v33, %s13229_s10  ;;  %v2238_v17 = vsel %vm631_vm1, %v21219_v26, %v14161_v20  ;;  %v21228_v33 = vld [vmem:[#allocation7_spill] sm:$0xff] }
 0x250   : > { %v2239_v29 = vsel %vm633_vm2, %v2238_v17, %v21227_v47  ;;  %v2233_v20 = vsel %vm635_vm3, %v2232_v40, %v21228_v33 }
 0x251   : > { %v2240_v24 = vsel %vm635_vm3, %v2239_v29, %v21229_v43  ;;  %v21236_v29 = vld [vmem:[#allocation8_spill] sm:$0xff] }
 0x253   : > { %12431 = vrot.lane.b32.xlu1 %v12430_v54, %s13231_s12  ;;  %12426 = vrot.lane.b32.xlu0 %v12425_v52, %s13230_s11  ;;  %v2241_v54 = vsel %vm637_vm4, %v2240_v24, %v21230_v9 }
 0x254   : > { %v2242_v26 = vsel %vm639_vm5, %v2241_v54, %v21233_v7 }
 0x257   : > { %12441 = vrot.lane.b32.xlu1 %v12440_v4, %s13233_s14  ;;  %12436 = vrot.lane.b32.xlu0 %v12435_v38, %s13232_s13  ;;  %v21231_v4 = vld [vmem:[#allocation4_spill] sm:$0xff] }
 0x258   : > { %v2234_v38 = vsel %vm637_vm4, %v2233_v20, %v21231_v4 }
 0x25b   : > { %3036 = vrot.lane.b32.xlu1 %v14147_v5, %s13226_s30  ;;  %3034 = vrot.lane.b32.xlu0 %v14144_v61, %s13226_s30 }
 0x25f   : > { %3040 = vrot.lane.b32.xlu1 %v14226_v14, %s13226_s30  ;;  %3038 = vrot.lane.b32.xlu0 %v14203_v35, %s13226_s30 }
 0x263   : > { %3044 = vrot.lane.b32.xlu1 %v14229_v28, %s13226_s30  ;;  %3042 = vrot.lane.b32.xlu0 %v14206_v27, %s13226_s30 }
 0x267   : > { %3048 = vrot.lane.b32.xlu1 %v14232_v48, %s13226_s30  ;;  %3046 = vrot.lane.b32.xlu0 %v14209_v44, %s13226_s30 }
 0x26b   : > { %3052 = vrot.lane.b32.xlu1 %v14235_v13, %s13226_s30  ;;  %3050 = vrot.lane.b32.xlu0 %v14212_v0, %s13226_s30 }
 0x26f   : > { %3056 = vrot.lane.b32.xlu1 %v14238_v8, %s13226_s30  ;;  %3054 = vrot.lane.b32.xlu0 %v14215_v34, %s13226_s30 }
 0x273   : > { %3060 = vrot.lane.b32.xlu1 %v14245_v41, %s13226_s30  ;;  %3058 = vrot.lane.b32.xlu0 %v14218_v62, %s13226_s30 }
 0x277   : > { %3064 = vrot.lane.b32.xlu1 %v14248_v49, %s13226_s30  ;;  %3062 = vrot.lane.b32.xlu0 %v14221_v21, %s13226_s30 }
 0x2b1   : > { %v12382_v22 = vpop.permute.xlu1 %12381  ;;  %v12377_v57 = vpop.permute.xlu0 %12376 }
 0x2b2   : > { %v12379_v10 = vunpack.i.h.bf16 %v12377_v57  ;;  %v12378_v45 = vunpack.i.l.bf16 %v12377_v57  ;;  %v12384_v30 = vunpack.i.h.bf16 %v12382_v22  ;;  %v12383_v60 = vunpack.i.l.bf16 %v12382_v22 }
 0x2b4   : > { %v2628_v51 = vsel %vm631_vm1, %v21222_v36, %v12379_v10  ;;  %v2621_v3 = vsel %vm631_vm1, %v21225_v32, %v12378_v45  ;;  %v2243_v36 = vsel %vm641_vm6, %v2242_v26, %v21234_v31 }
 0x2b5   : > { %v12392_v46 = vpop.permute.xlu1 %12391  ;;  %v12387_v53 = vpop.permute.xlu0 %12386  ;;  %v2622_v63 = vsel %vm633_vm2, %v2621_v3, %v12383_v60  ;;  %v2629_v59 = vsel %vm633_vm2, %v2628_v51, %v12384_v30  ;;  %v21232_v30 = vld [vmem:[#allocation9_spill] sm:$0xff]  ;;  %v21235_v3 = vld [vmem:[#allocation6_spill] sm:$0xff] }
 0x2b6   : > { %v12389_v56 = vunpack.i.h.bf16 %v12387_v53  ;;  %v12388_v42 = vunpack.i.l.bf16 %v12387_v53  ;;  %v12394_v37 = vunpack.i.h.bf16 %v12392_v46  ;;  %v12393_v16 = vunpack.i.l.bf16 %v12392_v46  ;;  %v21237_v53 = vld [vmem:[#allocation15_spill] sm:$0xff] }
 0x2b7   : > { %v2235_v60 = vsel %vm639_vm5, %v2234_v38, %v21232_v30  ;;  %v14553_v33 = vsel %vm643_vm7, %v2243_v36, %v21237_v53 }
 0x2b8   : > { %v2623_v1 = vsel %vm635_vm3, %v2622_v63, %v12388_v42  ;;  %v2630_v50 = vsel %vm635_vm3, %v2629_v59, %v12389_v56  ;;  %v2236_v6 = vsel %vm641_vm6, %v2235_v60, %v21235_v3 }
 0x2b9   : > { %v12402_v52 = vpop.permute.xlu1 %12401  ;;  %v12397_v15 = vpop.permute.xlu0 %12396  ;;  %v2624_v10 = vsel %vm637_vm4, %v2623_v1, %v12393_v16  ;;  %v2631_v45 = vsel %vm637_vm4, %v2630_v50, %v12394_v37  ;;  %v14549_v46 = vsel %vm643_vm7, %v2236_v6, %v21236_v29 }
 0x2ba   : > { %v12399_v22 = vunpack.i.h.bf16 %v12397_v15  ;;  %v12398_v57 = vunpack.i.l.bf16 %v12397_v15  ;;  %v12404_v55 = vunpack.i.h.bf16 %v12402_v52  ;;  %v12403_v39 = vunpack.i.l.bf16 %v12402_v52 }
 0x2bc   : > { %v2625_v17 = vsel %vm639_vm5, %v2624_v10, %v12398_v57  ;;  %v2632_v23 = vsel %vm639_vm5, %v2631_v45, %v12399_v22 }
 0x2bd   : > { %v14541_v51 = vpop.permute.xlu1 %12411  ;;  %v12407_v19 = vpop.permute.xlu0 %12406  ;;  %v2633_v40 = vsel %vm641_vm6, %v2632_v23, %v12404_v55  ;;  %v2626_v47 = vsel %vm641_vm6, %v2625_v17, %v12403_v39 }
 0x2be   : > { %v12409_v58 = vunpack.i.h.bf16 %v12407_v19  ;;  %v12408_v32 = vunpack.i.l.bf16 %v12407_v19 }
 0x2c0   : > { %v2634_v20 = vsel %vm643_vm7, %v2633_v40, %v12409_v58  ;;  %v2627_v56 = vsel %vm643_vm7, %v2626_v47, %v12408_v32 }
 0x2c1   : > { %v14557_v42 = vpop.permute.xlu1 %12421  ;;  %v14559_v37 = vpop.permute.xlu0 %12416  ;;  %v12156_v16 = vpack.c.bf16 %v2634_v20, %v14553_v33  ;;  %v12158_v63 = vpack.c.bf16 %v2627_v56, %v14549_v46 }
 0x2c3   : > { %12157 = vmatprep.subr.bf16.mxu0 %v12156_v16 }
 0x2c4   : > { %12159 = vmatpush1.bf16.msra.mxu0 %v12158_v63 }
 0x2c5   : > { %v14563_v59 = vpop.permute.xlu1 %12431  ;;  %v14565_v43 = vpop.permute.xlu0 %12426 }
 0x2c9   : > { %v14567_v24 = vpop.permute.xlu1 %12441  ;;  %v14569_v1 = vpop.permute.xlu0 %12436 }
 0x2cd   : > { %v3037_v50 = vpop.permute.xlu1 %3036  ;;  %v3035_v9 = vpop.permute.xlu0 %3034 }
 0x2d1   : > { %v3041_v54 = vpop.permute.xlu1 %3040  ;;  %v3039_v52 = vpop.permute.xlu0 %3038 }
 0x2d5   : > { %v3045_v15 = vpop.permute.xlu1 %3044  ;;  %v3043_v4 = vpop.permute.xlu0 %3042 }
 0x2d6   : > { %v3218_v30 = vcombine.low %v3037_v50, %v3045_v15  ;;  %v3219_v17 = vcombine.high %v3037_v50, %v3045_v15  ;;  %v3082_v23 = vcombine.low %v3035_v9, %v3043_v4  ;;  %v3083_v31 = vcombine.high %v3035_v9, %v3043_v4 }
 0x2d8   : > { %v3226_v32 = vrot.slane %v3218_v30, %v13303_v11  ;;  %v14581_v47 = vrot.slane %v3219_v17, %v13303_v11  ;;  %v3090_v29 = vrot.slane %v3082_v23, %v13303_v11  ;;  %v14585_v53 = vrot.slane %v3083_v31, %v13303_v11 }
 0x2d9   : > { %v3049_v38 = vpop.permute.xlu1 %3048  ;;  %v3047_v22 = vpop.permute.xlu0 %3046 }
 0x2da   : > { %v3234_v39 = vcombine.low %v3041_v54, %v3049_v38  ;;  %v3235_v10 = vcombine.high %v3041_v54, %v3049_v38  ;;  %v3098_v45 = vcombine.low %v3039_v52, %v3047_v22  ;;  %v3099_v60 = vcombine.high %v3039_v52, %v3047_v22 }
 0x2dc   : > { %v3242_v36 = vrot.slane %v3234_v39, %v13303_v11  ;;  %v14573_v19 = vrot.slane %v3235_v10, %v13303_v11  ;;  %v3106_v58 = vrot.slane %v3098_v45, %v13303_v11  ;;  %v14578_v3 = vrot.slane %v3099_v60, %v13303_v11 }
 0x2dd   : > { %v3053_v57 = vpop.permute.xlu1 %3052  ;;  %v3051_v55 = vpop.permute.xlu0 %3050 }
 0x2de   : > { %v3282_v20 = vcombine.low %v3226_v32, %v3242_v36  ;;  %v3283_v63 = vcombine.high %v3226_v32, %v3242_v36  ;;  %v3298_v50 = vcombine.low %v14581_v47, %v14573_v19  ;;  %v3299_v9 = vcombine.high %v14581_v47, %v14573_v19 }
 0x2df   : > { %v3146_v54 = vcombine.low %v3090_v29, %v3106_v58  ;;  %v3147_v52 = vcombine.high %v3090_v29, %v3106_v58  ;;  %v3162_v15 = vcombine.low %v14585_v53, %v14578_v3  ;;  %v3163_v17 = vcombine.high %v14585_v53, %v14578_v3 }
 0x2e0   : > { %v14594_v60 = vrot.slane %v3282_v20, %v13326_v18  ;;  %v3306_v58 = vrot.slane %v3298_v50, %v13326_v18 }
 0x2e1   : > { %v3057_v7 = vpop.permute.xlu1 %3056  ;;  %v3055_v26 = vpop.permute.xlu0 %3054 }
 0x2e5   : > { %v3061_v6 = vpop.permute.xlu1 %3060  ;;  %v3059_v40 = vpop.permute.xlu0 %3058 }
 0x2e6   : > { %v3250_v56 = vcombine.low %v3053_v57, %v3061_v6  ;;  %v3251_v16 = vcombine.high %v3053_v57, %v3061_v6  ;;  %v3114_v4 = vcombine.low %v3051_v55, %v3059_v40  ;;  %v3115_v38 = vcombine.high %v3051_v55, %v3059_v40 }
 0x2e7   : > { %v14609_v6 = vrot.slane %v3146_v54, %v13326_v18 }
 0x2e8   : > { %v3258_v23 = vrot.slane %v3250_v56, %v13303_v11  ;;  %v3265_v31 = vrot.slane %v3251_v16, %v13303_v11  ;;  %v3122_v32 = vrot.slane %v3114_v4, %v13303_v11  ;;  %v3129_v3 = vrot.slane %v3115_v38, %v13303_v11 }
 0x2e9   : > { %v3065_v22 = vpop.permute.xlu1 %3064  ;;  %v3063_v39 = vpop.permute.xlu0 %3062  ;;  %v3161_v38 = vrot.slane %v3147_v52, %v13326_v18 }
 0x2ea   : > { %v3266_v10 = vcombine.low %v3057_v7, %v3065_v22  ;;  %v3267_v45 = vcombine.high %v3057_v7, %v3065_v22  ;;  %v3130_v30 = vcombine.low %v3055_v26, %v3063_v39  ;;  %v3131_v57 = vcombine.high %v3055_v26, %v3063_v39 }
 0x2eb   : > { %v3297_v26 = vrot.slane %v3283_v63, %v13326_v18 }
 0x2ec   : > { %v3274_v36 = vrot.slane %v3266_v10, %v13303_v11  ;;  %v3281_v55 = vrot.slane %v3267_v45, %v13303_v11  ;;  %v3138_v19 = vrot.slane %v3130_v30, %v13303_v11  ;;  %v3145_v7 = vrot.slane %v3131_v57, %v13303_v11 }
 0x2ed   : > { %v3170_v45 = vrot.slane %v3162_v15, %v13326_v18 }
 0x2ee   : > { %v3314_v40 = vcombine.low %v3258_v23, %v3274_v36  ;;  %v3315_v47 = vcombine.high %v3258_v23, %v3274_v36  ;;  %v3330_v29 = vcombine.low %v3265_v31, %v3281_v55  ;;  %v3331_v53 = vcombine.high %v3265_v31, %v3281_v55 }
 0x2ef   : > { %v3178_v20 = vcombine.low %v3122_v32, %v3138_v19  ;;  %v3179_v56 = vcombine.high %v3122_v32, %v3138_v19  ;;  %v3194_v16 = vcombine.low %v3129_v3, %v3145_v7  ;;  %v3195_v4 = vcombine.high %v3129_v3, %v3145_v7 }
 0x2f0   : > { %v14612_v22 = vrot.slane %v3314_v40, %v13326_v18  ;;  %v3329_v63 = vrot.slane %v3315_v47, %v13326_v18  ;;  %v3338_v50 = vrot.slane %v3330_v29, %v13326_v18  ;;  %v3345_v55 = vrot.slane %v3331_v53, %v13326_v18 }
 0x2f1   : > { %v14618_v54 = vrot.slane %v3178_v20, %v13326_v18  ;;  %v3193_v39 = vrot.slane %v3179_v56, %v13326_v18  ;;  %v3202_v10 = vrot.slane %v3194_v16, %v13326_v18  ;;  %v3209_v19 = vrot.slane %v3195_v4, %v13326_v18 }
 0x2f2   : > { %v3348_v57 = vcombine.low %v3297_v26, %v3329_v63  ;;  %v3347_v23 = vcombine.high %v14594_v60, %v14612_v22  ;;  %v3350_v15 = vcombine.low %v3306_v58, %v3338_v50  ;;  %v3349_v47 = vcombine.high %v3297_v26, %v3329_v63 }
 0x2f3   : > { %v3212_v52 = vcombine.low %v3161_v38, %v3193_v39  ;;  %v3211_v36 = vcombine.high %v14609_v6, %v14618_v54  ;;  %v3214_v7 = vcombine.low %v3170_v45, %v3202_v10  ;;  %v3213_v40 = vcombine.high %v3161_v38, %v3193_v39 }
 0x2f4   : > { %v3313_v29 = vrot.slane %v3299_v9, %v13326_v18  ;;  %v3177_v20 = vrot.slane %v3163_v17, %v13326_v18  ;;  %v3215_v30 = vcombine.high %v3170_v45, %v3202_v10  ;;  %v3351_v4 = vcombine.high %v3306_v58, %v3338_v50 }
 0x2f5   : > { %v12450_v32 = vpack.i.bf16 %v3348_v57, %v3212_v52  ;;  %v12445_v3 = vpack.i.bf16 %v3347_v23, %v3211_v36  ;;  %v12460_v31 = vpack.i.bf16 %v3350_v15, %v3214_v7  ;;  %v12455_v53 = vpack.i.bf16 %v3349_v47, %v3213_v40 }
 0x2f6   : > { %v3216_v56 = vcombine.low %v3177_v20, %v3209_v19  ;;  %v3352_v16 = vcombine.low %v3313_v29, %v3345_v55  ;;  %v12465_v26 = vpack.i.bf16 %v3351_v4, %v3215_v30  ;;  %v3217_v63 = vcombine.high %v3177_v20, %v3209_v19 }
 0x2f7   : > { %12451 = vrot.lane.b32.xlu1 %v12450_v32, %s13229_s10  ;;  %12446 = vrot.lane.b32.xlu0 %v12445_v3, %s13228_s9  ;;  %v3353_v9 = vcombine.high %v3313_v29, %v3345_v55  ;;  %v21239_v58 = vcombine.low %v14594_v60, %v14612_v22  ;;  %v12434_v10 = vunpack.i.h.bf16 %v14563_v59  ;;  %v12433_v45 = vunpack.i.l.bf16 %v14563_v59 }
 0x2f8   : > { %v12470_v38 = vpack.i.bf16 %v3352_v16, %v3216_v56  ;;  %v12439_v7 = vunpack.i.h.bf16 %v14569_v1  ;;  %v12438_v15 = vunpack.i.l.bf16 %v14569_v1 }
 0x2f9   : > { %v12475_v17 = vpack.i.bf16 %v3353_v9, %v3217_v63 }
 0x2fb   : > { %12461 = vrot.lane.b32.xlu1 %v12460_v31, %s13230_s11  ;;  %12456 = vrot.lane.b32.xlu0 %v12455_v53, %s13227_s8 }
 0x2ff   : > { %12471 = vrot.lane.b32.xlu1 %v12470_v38, %s13232_s13  ;;  %12466 = vrot.lane.b32.xlu0 %v12465_v26, %s13231_s12  ;;  %v12444_v38 = vunpack.i.h.bf16 %v14567_v24  ;;  %v12443_v26 = vunpack.i.l.bf16 %v14567_v24 }
 0x303   : > { %3424 = vrot.lane.b32.xlu1 %v14144_v61, %s13234_s15  ;;  %12476 = vrot.lane.b32.xlu0 %v12475_v17, %s13233_s14  ;;  %v21238_v61 = vld [vmem:[#allocation17_spill] sm:$0xff] }
 0x307   : > { %3428 = vrot.lane.b32.xlu1 %v14203_v35, %s13234_s15  ;;  %3426 = vrot.lane.b32.xlu0 %v14147_v5, %s13234_s15  ;;  %v2820_v5 = vcombine.low %v21238_v61, %v14284_v2  ;;  %v2956_v35 = vcombine.low %v14300_v25, %v14307_v12 }
 0x30b   : > { %3432 = vrot.lane.b32.xlu1 %v14206_v27, %s13234_s15  ;;  %3430 = vrot.lane.b32.xlu0 %v14226_v14, %s13234_s15  ;;  %v12414_v27 = vunpack.i.h.bf16 %v14541_v51  ;;  %v12424_v14 = vunpack.i.h.bf16 %v14557_v42 }
 0x30f   : > { %3436 = vrot.lane.b32.xlu1 %v14209_v44, %s13234_s15  ;;  %3434 = vrot.lane.b32.xlu0 %v14229_v28, %s13234_s15  ;;  %v12413_v44 = vunpack.i.l.bf16 %v14541_v51  ;;  %v12423_v28 = vunpack.i.l.bf16 %v14557_v42  ;;  %v21240_v42 = vcombine.low %v14609_v6, %v14618_v54 }
 0x313   : > { %3440 = vrot.lane.b32.xlu1 %v14212_v0, %s13234_s15  ;;  %3438 = vrot.lane.b32.xlu0 %v14232_v48, %s13234_s15  ;;  %v12419_v0 = vunpack.i.h.bf16 %v14559_v37 }
 0x317   : > { %3444 = vrot.lane.b32.xlu1 %v14215_v34, %s13234_s15  ;;  %3442 = vrot.lane.b32.xlu0 %v14235_v13, %s13234_s15  ;;  %v12418_v34 = vunpack.i.l.bf16 %v14559_v37 }
 0x31b   : > { %3448 = vrot.lane.b32.xlu1 %v14218_v62, %s13234_s15  ;;  %3446 = vrot.lane.b32.xlu0 %v14238_v8, %s13234_s15  ;;  %v3027_v62 = vsel %vm631_vm1, %v2956_v35, %v12414_v27  ;;  %v12429_v8 = vunpack.i.h.bf16 %v14565_v43 }
 0x31c   : > { %v3028_v2 = vsel %vm633_vm2, %v3027_v62, %v12419_v0 }
 0x31d   : > { %v3029_v30 = vsel %vm635_vm3, %v3028_v2, %v12424_v14 }
 0x31e   : > { %v3030_v60 = vsel %vm637_vm4, %v3029_v30, %v12429_v8 }
 0x31f   : > { %3452 = vrot.lane.b32.xlu1 %v14221_v21, %s13234_s15  ;;  %3450 = vrot.lane.b32.xlu0 %v14245_v41, %s13234_s15  ;;  %v3020_v21 = vsel %vm631_vm1, %v2820_v5, %v12413_v44  ;;  %v12428_v41 = vunpack.i.l.bf16 %v14565_v43  ;;  %v3031_v29 = vsel %vm639_vm5, %v3030_v60, %v12434_v10 }
 0x320   : > { %v3021_v12 = vsel %vm633_vm2, %v3020_v21, %v12418_v34  ;;  %v3032_v61 = vsel %vm641_vm6, %v3031_v29, %v12439_v7 }
 0x321   : > { %v3022_v43 = vsel %vm635_vm3, %v3021_v12, %v12423_v28  ;;  %v3033_v34 = vsel %vm643_vm7, %v3032_v61, %v12444_v38 }
 0x322   : > { %v3023_v31 = vsel %vm637_vm4, %v3022_v43, %v12428_v41 }
 0x323   : > { %3454 = vrot.lane.b32.xlu0 %v14248_v49, %s13234_s15  ;;  %v3024_v20 = vsel %vm639_vm5, %v3023_v31, %v12433_v45 }
 0x324   : > { %v3025_v5 = vsel %vm641_vm6, %v3024_v20, %v12438_v15 }
 0x325   : > { %v3026_v62 = vsel %vm643_vm7, %v3025_v5, %v12443_v26 }
 0x369   : > { %v12452_v48 = vpop.permute.xlu1 %12451  ;;  %v12447_v13 = vpop.permute.xlu0 %12446 }
 0x36a   : > { %v12449_v49 = vunpack.i.h.bf16 %v12447_v13  ;;  %v12448_v25 = vunpack.i.l.bf16 %v12447_v13  ;;  %v12454_v51 = vunpack.i.h.bf16 %v12452_v48  ;;  %v12453_v37 = vunpack.i.l.bf16 %v12452_v48 }
 0x36c   : > { %v3417_v50 = vsel %vm631_vm1, %v21239_v58, %v12449_v49  ;;  %v3410_v39 = vsel %vm631_vm1, %v21240_v42, %v12448_v25 }
 0x36d   : > { %v12462_v57 = vpop.permute.xlu1 %12461  ;;  %v12457_v23 = vpop.permute.xlu0 %12456  ;;  %v3411_v54 = vsel %vm633_vm2, %v3410_v39, %v12453_v37  ;;  %v3418_v55 = vsel %vm633_vm2, %v3417_v50, %v12454_v51 }
 0x36e   : > { %v12459_v22 = vunpack.i.h.bf16 %v12457_v23  ;;  %v12458_v52 = vunpack.i.l.bf16 %v12457_v23  ;;  %v12464_v36 = vunpack.i.h.bf16 %v12462_v57  ;;  %v12463_v6 = vunpack.i.l.bf16 %v12462_v57 }
 0x370   : > { %v3412_v59 = vsel %vm635_vm3, %v3411_v54, %v12458_v52  ;;  %v3419_v19 = vsel %vm635_vm3, %v3418_v55, %v12459_v22 }
 0x371   : > { %v12472_v32 = vpop.permute.xlu1 %12471  ;;  %v12467_v3 = vpop.permute.xlu0 %12466  ;;  %v3413_v53 = vsel %vm637_vm4, %v3412_v59, %v12463_v6  ;;  %v3420_v4 = vsel %vm637_vm4, %v3419_v19, %v12464_v36 }
 0x372   : > { %v12469_v40 = vunpack.i.h.bf16 %v12467_v3  ;;  %v12468_v47 = vunpack.i.l.bf16 %v12467_v3  ;;  %v12474_v56 = vunpack.i.h.bf16 %v12472_v32  ;;  %v12473_v16 = vunpack.i.l.bf16 %v12472_v32 }
 0x374   : > { %v3414_v1 = vsel %vm639_vm5, %v3413_v53, %v12468_v47  ;;  %v3421_v63 = vsel %vm639_vm5, %v3420_v4, %v12469_v40 }
 0x375   : > { %v3425_v9 = vpop.permute.xlu1 %3424  ;;  %v12477_v17 = vpop.permute.xlu0 %12476  ;;  %v3422_v44 = vsel %vm641_vm6, %v3421_v63, %v12474_v56  ;;  %v3415_v0 = vsel %vm641_vm6, %v3414_v1, %v12473_v16 }
 0x376   : > { %v12479_v35 = vunpack.i.h.bf16 %v12477_v17  ;;  %v12478_v27 = vunpack.i.l.bf16 %v12477_v17 }
 0x378   : > { %v3423_v24 = vsel %vm643_vm7, %v3422_v44, %v12479_v35  ;;  %v3416_v21 = vsel %vm643_vm7, %v3415_v0, %v12478_v27 }
 0x379   : > { %v3429_v14 = vpop.permute.xlu1 %3428  ;;  %v14726_v28 = vpop.permute.xlu0 %3426  ;;  %v12160_v2 = vpack.c.bf16 %v3423_v24, %v3033_v34  ;;  %v12162_v12 = vpack.c.bf16 %v3416_v21, %v3026_v62 }
 0x37b   : > { %12161 = vmatprep.subr.bf16.mxu0 %v12160_v2 }
 0x37c   : > { %12163 = vmatpush1.bf16.msra.mxu0 %v12162_v12 }
 0x37d   : > { %v3433_v48 = vpop.permute.xlu1 %3432  ;;  %v14728_v13 = vpop.permute.xlu0 %3430 }
 0x37e   : > { %v3472_v50 = vcombine.low %v3425_v9, %v3433_v48  ;;  %v3473_v57 = vcombine.high %v3425_v9, %v3433_v48 }
 0x380   : > { %v3480_v23 = vrot.slane %v3472_v50, %v13303_v11  ;;  %v3487_v32 = vrot.slane %v3473_v57, %v13303_v11 }
 0x381   : > { %v3437_v8 = vpop.permute.xlu1 %3436  ;;  %v14730_v41 = vpop.permute.xlu0 %3434 }
 0x382   : > { %v3488_v58 = vcombine.low %v3429_v14, %v3437_v8  ;;  %v3489_v10 = vcombine.high %v3429_v14, %v3437_v8  ;;  %v3608_v3 = vcombine.low %v14726_v28, %v14730_v41 }
 0x384   : > { %v3496_v45 = vrot.slane %v3488_v58, %v13303_v11  ;;  %v3503_v36 = vrot.slane %v3489_v10, %v13303_v11  ;;  %v3616_v9 = vrot.slane %v3608_v3, %v13303_v11 }
 0x385   : > { %v3441_v49 = vpop.permute.xlu1 %3440  ;;  %v14732_v25 = vpop.permute.xlu0 %3438 }
 0x386   : > { %v3536_v6 = vcombine.low %v3480_v23, %v3496_v45  ;;  %v3537_v54 = vcombine.high %v3480_v23, %v3496_v45  ;;  %v3624_v55 = vcombine.low %v14728_v13, %v14732_v25  ;;  %v3552_v16 = vcombine.low %v3487_v32, %v3503_v36 }
 0x387   : > { %v3553_v24 = vcombine.high %v3487_v32, %v3503_v36 }
 0x388   : > { %v3632_v53 = vrot.slane %v3624_v55, %v13303_v11  ;;  %v14751_v38 = vrot.slane %v3536_v6, %v13326_v18  ;;  %v3551_v1 = vrot.slane %v3537_v54, %v13326_v18  ;;  %v3560_v62 = vrot.slane %v3552_v16, %v13326_v18 }
 0x389   : > { %v3445_v51 = vpop.permute.xlu1 %3444  ;;  %v14734_v37 = vpop.permute.xlu0 %3442  ;;  %v3567_v50 = vrot.slane %v3553_v24, %v13326_v18  ;;  %v20545_v55 = vmov 0.0  }
 0x38a   : > { %v3672_v0 = vcombine.low %v3616_v9, %v3632_v53  ;;  %3899 = vmatprep.mubr.f32.mxu0 %v20545_v55  ;;  %3941 = vst.msk [vmem:[#allocation2] sm:$0xff] %vm3940_vm10, %v20545_v55  ;;  %3942 = vst.msk [vmem:[#allocation2 + $0x8] sm:$0xff] %vm3940_vm10, %v20545_v55 }
 0x38b   : > { %3945 = vst.msk [vmem:[#allocation2 + $0x18] sm:$0xff] %vm3940_vm10, %v20545_v55  ;;  %3946 = vst.msk [vmem:[#allocation2 + $0x20] sm:$0xff] %vm3940_vm10, %v20545_v55 }
 0x38c   : > { %3948 = vst.msk [vmem:[#allocation2 + $0x30] sm:$0xff] %vm3940_vm10, %v20545_v55  ;;  %3949 = vst.msk [vmem:[#allocation2 + $0x38] sm:$0xff] %vm3940_vm10, %v20545_v55 }
 0x38d   : > { %v3449_v42 = vpop.permute.xlu1 %3448  ;;  %v3447_v39 = vpop.permute.xlu0 %3446  ;;  %3951 = vst.msk [vmem:[#allocation2 + $0x48] sm:$0xff] %vm3940_vm10, %v20545_v55  ;;  %3952 = vst.msk [vmem:[#allocation2 + $0x50] sm:$0xff] %vm3940_vm10, %v20545_v55 }
 0x38e   : > { %v3504_v43 = vcombine.low %v3441_v49, %v3449_v42  ;;  %v3505_v30 = vcombine.high %v3441_v49, %v3449_v42  ;;  %v14774_v49 = vrot.slane %v3672_v0, %v13326_v18  ;;  %v3609_v42 = vcombine.high %v14726_v28, %v14730_v41  ;;  %3954 = vst.msk [vmem:[#allocation2 + $0x60] sm:$0xff] %vm3940_vm10, %v20545_v55 }
 0x38f   : > { %3955 = vst.msk [vmem:[#allocation2 + $0x68] sm:$0xff] %vm3940_vm10, %v20545_v55  ;;  %3957 = vst.msk [vmem:[#allocation2 + $0x78] sm:$0xff] %vm3940_vm10, %v20545_v55 }
 0x390   : > { %v3512_v59 = vrot.slane %v3504_v43, %v13303_v11  ;;  %v3519_v19 = vrot.slane %v3505_v30, %v13303_v11  ;;  %v3623_v57 = vrot.slane %v3609_v42, %v13303_v11  ;;  %3958 = vst.msk [vmem:[#allocation2 + $0x80] sm:$0xff] %vm3940_vm10, %v20545_v55  ;;  %3960 = vst.msk [vmem:[#allocation2 + $0x90] sm:$0xff] %vm3940_vm10, %v20545_v55 }
 0x391   : > { %v3453_v31 = vpop.permute.xlu1 %3452  ;;  %v3451_v60 = vpop.permute.xlu0 %3450  ;;  %3961 = vst.msk [vmem:[#allocation2 + $0x98] sm:$0xff] %vm3940_vm10, %v20545_v55  ;;  %3963 = vst.msk [vmem:[#allocation2 + $0xa8] sm:$0xff] %vm3940_vm10, %v20545_v55 }
 0x392   : > { %v3520_v22 = vcombine.low %v3445_v51, %v3453_v31  ;;  %v3521_v52 = vcombine.high %v3445_v51, %v3453_v31  ;;  %v3640_v40 = vcombine.low %v14734_v37, %v3451_v60  ;;  %v3625_v51 = vcombine.high %v14728_v13, %v14732_v25  ;;  %3964 = vst.msk [vmem:[#allocation2 + $0xb0] sm:$0xff] %vm3940_vm10, %v20545_v55 }
 0x393   : > { %v3641_v58 = vcombine.high %v14734_v37, %v3451_v60  ;;  %v3673_v25 = vcombine.high %v3616_v9, %v3632_v53  ;;  %3966 = vst.msk [vmem:[#allocation2 + $0xc0] sm:$0xff] %vm3940_vm10, %v20545_v55  ;;  %3967 = vst.msk [vmem:[#allocation2 + $0xc8] sm:$0xff] %vm3940_vm10, %v20545_v55 }
 0x394   : > { %v3528_v7 = vrot.slane %v3520_v22, %v13303_v11  ;;  %v3535_v15 = vrot.slane %v3521_v52, %v13303_v11  ;;  %v3648_v17 = vrot.slane %v3640_v40, %v13303_v11  ;;  %v3639_v13 = vrot.slane %v3625_v51, %v13303_v11  ;;  %3969 = vst.msk [vmem:[#allocation2 + $0xd8] sm:$0xff] %vm3940_vm10, %v20545_v55 }
 0x395   : > { %v3455_v47 = vpop.permute.xlu0 %3454  ;;  %v3655_v37 = vrot.slane %v3641_v58, %v13303_v11  ;;  %v3687_v22 = vrot.slane %v3673_v25, %v13326_v18  ;;  %v13236_v40 = vmov 0   ;;  %3970 = vst.msk [vmem:[#allocation2 + $0xe0] sm:$0xff] %vm3940_vm10, %v20545_v55  ;;  %3972 = vst.msk [vmem:[#allocation2 + $0xf0] sm:$0xff] %vm3940_vm10, %v20545_v55 }
 0x396   : > { %v3568_v29 = vcombine.low %v3512_v59, %v3528_v7  ;;  %v3569_v20 = vcombine.high %v3512_v59, %v3528_v7  ;;  %v3584_v56 = vcombine.low %v3519_v19, %v3535_v15  ;;  %v3656_v4 = vcombine.low %v3447_v39, %v3455_v47  ;;  %12480 = vset.pattern.permute.xlu1 %v13236_v40 }
 0x397   : > { %v3585_v5 = vcombine.high %v3519_v19, %v3535_v15  ;;  %v3657_v21 = vcombine.high %v3447_v39, %v3455_v47  ;;  %v3688_v60 = vcombine.low %v3623_v57, %v3639_v13  ;;  %v3689_v59 = vcombine.high %v3623_v57, %v3639_v13  ;;  %12481 = vset.pattern.permute.xlu0 %v13236_v40 }
 0x398   : > { %v14754_v26 = vrot.slane %v3568_v29, %v13326_v18  ;;  %v3583_v63 = vrot.slane %v3569_v20, %v13326_v18  ;;  %v3664_v61 = vrot.slane %v3656_v4, %v13303_v11  ;;  %v3592_v44 = vrot.slane %v3584_v56, %v13326_v18  ;;  %v3816_v20 = vld [vmem:[%s20524_s2] sm:$0xff]  ;;  %v3817_v56 = vld [vmem:[%s20524_s2 + $0x8] sm:$0xff]  ;;  %3973 = vst.msk [vmem:[#allocation2 + $0xf8] sm:$0xff] %vm3940_vm10, %v20545_v55 }
 0x399   : > { %v3599_v48 = vrot.slane %v3585_v5, %v13326_v18  ;;  %v3671_v10 = vrot.slane %v3657_v21, %v13303_v11  ;;  %v3696_v19 = vrot.slane %v3688_v60, %v13326_v18  ;;  %v3703_v3 = vrot.slane %v3689_v59, %v13326_v18  ;;  %3975 = vst.msk [vmem:[#allocation2 + $0x108] sm:$0xff] %vm3940_vm10, %v20545_v55 }
 0x39a   : > { %v3601_v35 = vcombine.high %v14751_v38, %v14754_v26  ;;  %v3602_v27 = vcombine.low %v3551_v1, %v3583_v63  ;;  %v3704_v34 = vcombine.low %v3648_v17, %v3664_v61  ;;  %v3603_v2 = vcombine.high %v3551_v1, %v3583_v63  ;;  %3976 = vst.msk [vmem:[#allocation2 + $0x110] sm:$0xff] %vm3940_vm10, %v20545_v55 }
 0x39b   : > { %v3604_v12 = vcombine.low %v3560_v62, %v3592_v44  ;;  %v3600_v8 = vcombine.low %v14751_v38, %v14754_v26  ;;  %v3705_v45 = vcombine.high %v3648_v17, %v3664_v61  ;;  %v3605_v43 = vcombine.high %v3560_v62, %v3592_v44  ;;  %3978 = vst.msk [vmem:[#allocation2 + $0x120] sm:$0xff] %vm3940_vm10, %v20545_v55 }
 0x39c   : > { %3745 = vrot.lane.b32.xlu1 %v3601_v35, %s13228_s9  ;;  %3749 = vrot.lane.b32.xlu0 %v3602_v27, %s13229_s10  ;;  %v14768_v14 = vrot.slane %v3704_v34, %v13326_v18  ;;  %v3606_v30 = vcombine.low %v3567_v50, %v3599_v48  ;;  %v3720_v28 = vcombine.low %v3655_v37, %v3671_v10 }
 0x39d   : > { %v3607_v41 = vcombine.high %v3567_v50, %v3599_v48  ;;  %v3719_v31 = vrot.slane %v3705_v45, %v13326_v18  ;;  %v3721_v52 = vcombine.high %v3655_v37, %v3671_v10  ;;  %v3814_v50 = vld [vmem:[%s20523_s1] sm:$0xff]  ;;  %3979 = vst.msk [vmem:[#allocation2 + $0x128] sm:$0xff] %vm3940_vm10, %v20545_v55  ;;  %3981 = vst.msk [vmem:[#allocation2 + $0x138] sm:$0xff] %vm3940_vm10, %v20545_v55 }
 0x39e   : > { %v3736_v39 = vcombine.low %v14774_v49, %v14768_v14  ;;  %v3737_v23 = vcombine.high %v14774_v49, %v14768_v14  ;;  %v3728_v54 = vrot.slane %v3720_v28, %v13326_v18  ;;  %3982 = vst.msk [vmem:[#allocation2 + $0x140] sm:$0xff] %vm3940_vm10, %v20545_v55  ;;  %3984 = vst.msk [vmem:[#allocation2 + $0x150] sm:$0xff] %vm3940_vm10, %v20545_v55 }
 0x39f   : > { %v3738_v36 = vcombine.low %v3687_v22, %v3719_v31  ;;  %v3739_v6 = vcombine.high %v3687_v22, %v3719_v31  ;;  %v3735_v32 = vrot.slane %v3721_v52, %v13326_v18  ;;  %3985 = vst.msk [vmem:[#allocation2 + $0x158] sm:$0xff] %vm3940_vm10, %v20545_v55  ;;  %3987 = vst.msk [vmem:[#allocation2 + $0x168] sm:$0xff] %vm3940_vm10, %v20545_v55 }
 0x3a0   : > { %3753 = vrot.lane.b32.xlu1 %v3603_v2, %s13227_s8  ;;  %3757 = vrot.lane.b32.xlu0 %v3604_v12, %s13230_s11  ;;  %v3740_v7 = vcombine.low %v3696_v19, %v3728_v54  ;;  %v3741_v15 = vcombine.high %v3696_v19, %v3728_v54  ;;  %3988 = vst.msk [vmem:[#allocation2 + $0x170] sm:$0xff] %vm3940_vm10, %v20545_v55 }
 0x3a1   : > { %v3742_v47 = vcombine.low %v3703_v3, %v3735_v32  ;;  %v3743_v29 = vcombine.high %v3703_v3, %v3735_v32  ;;  %3944 = vst.msk [vmem:[#allocation2 + $0x10] sm:$0x3] %vm3943_vm11, %v20545_v55  ;;  %3947 = vst.msk [vmem:[#allocation2 + $0x28] sm:$0x3] %vm3943_vm11, %v20545_v55 }
 0x3a2   : > { %3950 = vst.msk [vmem:[#allocation2 + $0x40] sm:$0x3] %vm3943_vm11, %v20545_v55  ;;  %3953 = vst.msk [vmem:[#allocation2 + $0x58] sm:$0x3] %vm3943_vm11, %v20545_v55 }
 0x3a3   : > { %3956 = vst.msk [vmem:[#allocation2 + $0x70] sm:$0x3] %vm3943_vm11, %v20545_v55  ;;  %3959 = vst.msk [vmem:[#allocation2 + $0x88] sm:$0x3] %vm3943_vm11, %v20545_v55 }
 0x3a4   : > { %3761 = vrot.lane.b32.xlu1 %v3605_v43, %s13231_s12  ;;  %3765 = vrot.lane.b32.xlu0 %v3606_v30, %s13232_s13  ;;  %3962 = vst.msk [vmem:[#allocation2 + $0xa0] sm:$0x3] %vm3943_vm11, %v20545_v55  ;;  %3965 = vst.msk [vmem:[#allocation2 + $0xb8] sm:$0x3] %vm3943_vm11, %v20545_v55 }
 0x3a5   : > { %3968 = vst.msk [vmem:[#allocation2 + $0xd0] sm:$0x3] %vm3943_vm11, %v20545_v55  ;;  %3971 = vst.msk [vmem:[#allocation2 + $0xe8] sm:$0x3] %vm3943_vm11, %v20545_v55 }
 0x3a6   : > { %3974 = vst.msk [vmem:[#allocation2 + $0x100] sm:$0x3] %vm3943_vm11, %v20545_v55  ;;  %3977 = vst.msk [vmem:[#allocation2 + $0x118] sm:$0x3] %vm3943_vm11, %v20545_v55 }
 0x3a7   : > { %3980 = vst.msk [vmem:[#allocation2 + $0x130] sm:$0x3] %vm3943_vm11, %v20545_v55  ;;  %3983 = vst.msk [vmem:[#allocation2 + $0x148] sm:$0x3] %vm3943_vm11, %v20545_v55 }
 0x3a8   : > { %3769 = vrot.lane.b32.xlu1 %v3607_v41, %s13233_s14  ;;  %3773 = vrot.lane.b32.xlu0 %v3737_v23, %s13228_s9  ;;  %3986 = vst.msk [vmem:[#allocation2 + $0x160] sm:$0x3] %vm3943_vm11, %v20545_v55  ;;  %3989 = vst.msk [vmem:[#allocation2 + $0x178] sm:$0x3] %vm3943_vm11, %v20545_v55 }
 0x3ac   : > { %3777 = vrot.lane.b32.xlu1 %v3738_v36, %s13229_s10  ;;  %3781 = vrot.lane.b32.xlu0 %v3739_v6, %s13227_s8 }
 0x3b0   : > { %3785 = vrot.lane.b32.xlu1 %v3740_v7, %s13230_s11  ;;  %3789 = vrot.lane.b32.xlu0 %v3741_v15, %s13231_s12 }
 0x3b4   : > { %3793 = vrot.lane.b32.xlu1 %v3742_v47, %s13232_s13  ;;  %3797 = vrot.lane.b32.xlu0 %v3743_v29, %s13233_s14 }
 0x3b8   : > { %3820 = vperm.xlu1 %12480, %v3816_v20   ;;  %3825 = vperm.xlu0 %12481, %v3817_v56  }
 0x40e   : > { %v3746_v16 = vpop.permute.xlu1 %3745  ;;  %v3750_v53 = vpop.permute.xlu0 %3749 }
 0x40f   : > { %v3800_v5 = vsel %vm631_vm1, %v3600_v8, %v3746_v16 }
 0x410   : > { %v3801_v34 = vsel %vm633_vm2, %v3800_v5, %v3750_v53 }
 0x412   : > { %v3754_v4 = vpop.permute.xlu1 %3753  ;;  %v3758_v1 = vpop.permute.xlu0 %3757 }
 0x413   : > { %v3802_v24 = vsel %vm635_vm3, %v3801_v34, %v3754_v4 }
 0x414   : > { %v3803_v38 = vsel %vm637_vm4, %v3802_v24, %v3758_v1 }
 0x416   : > { %v3762_v63 = vpop.permute.xlu1 %3761  ;;  %v3766_v9 = vpop.permute.xlu0 %3765 }
 0x417   : > { %v3804_v26 = vsel %vm639_vm5, %v3803_v38, %v3762_v63 }
 0x418   : > { %v3805_v51 = vsel %vm641_vm6, %v3804_v26, %v3766_v9 }
 0x41a   : > { %v3770_v17 = vpop.permute.xlu1 %3769  ;;  %v3774_v61 = vpop.permute.xlu0 %3773 }
 0x41b   : > { %v3807_v35 = vsel %vm631_vm1, %v3736_v39, %v3774_v61  ;;  %v3806_v42 = vsel %vm643_vm7, %v3805_v51, %v3770_v17  ;;  %v3815_v39 = vld [vmem:[%s20523_s1 + $0x8] sm:$0xff] }
 0x41e   : > { %v3778_v27 = vpop.permute.xlu1 %3777  ;;  %v3782_v44 = vpop.permute.xlu0 %3781 }
 0x41f   : > { %v3808_v0 = vsel %vm633_vm2, %v3807_v35, %v3778_v27 }
 0x420   : > { %v3809_v62 = vsel %vm635_vm3, %v3808_v0, %v3782_v44 }
 0x422   : > { %v3786_v21 = vpop.permute.xlu1 %3785  ;;  %v3790_v14 = vpop.permute.xlu0 %3789 }
 0x423   : > { %v3810_v2 = vsel %vm637_vm4, %v3809_v62, %v3786_v21 }
 0x424   : > { %v3811_v12 = vsel %vm639_vm5, %v3810_v2, %v3790_v14 }
 0x426   : > { %v3794_v48 = vpop.permute.xlu1 %3793  ;;  %v3798_v8 = vpop.permute.xlu0 %3797 }
 0x427   : > { %v3812_v49 = vsel %vm641_vm6, %v3811_v12, %v3794_v48 }
 0x428   : > { %v3813_v58 = vsel %vm643_vm7, %v3812_v49, %v3798_v8 }
 0x429   : > { %3851 = vmatprep.subr.mxu0 %v3813_v58 }
 0x42a   : > { %3852 = vmatpush1.msra.mxu0 %v3806_v42 }
 0x42b   : > { %12131 = vmatmul.mubr.msk.f32.vlgmr.msra.gmra.mrb[0].mxu0 %vm3828_vm9, %v3814_v50  ;;  %11955 = vmatprep.subr.mxu0 %v14553_v33 }
 0x42c   : > { %11956 = vmatpush1.msra.mxu0 %v14549_v46  ;;  %3905 = vmatprep.mubr.f32.mxu0 %v20545_v55 }
 0x42f   : > { %12132 = vmatmul.mubr.msk.f32.gmra.mrb[2].mxu0 %vm3828_vm9, %v3815_v39 }
 0x430   : > { %12019 = vmatprep.mubr.f32.mxu0 %v20545_v55 }
 0x437   : > { %v3821_v10 = vpop.permute.xlu1 %3820  ;;  %v3826_v13 = vpop.permute.xlu0 %3825 }
 0x4fe   : > { %v3901_v45 = vpop.f32.mrb[0].mxu0 }
 0x4ff   : > { %v3902_v43 = vadd.f32 %v3901_v45, %v3821_v10  ;;  %v3903_v30 = vpop.f32.mrb[1].mxu0 }
 0x500   : > { %v3904_v41 = vadd.f32 %v3903_v30, %v3821_v10 }
 0x501   : > { %v12133_v25 = vmul.f32 -1.442695, %v3902_v43 }
 0x502   : > { %v3907_v37 = vpop.f32.mrb[2].mxu0  ;;  %v12134_v60 = vmul.f32 -1.442695, %v3904_v41 }
 0x503   : > { %13140 = vpow2.f32 %v12133_v25  ;;  %v3908_v33 = vadd.f32 %v3907_v37, %v3826_v13  ;;  %v3909_v57 = vpop.f32.mrb[3].mxu0 }
 0x504   : > { %v3910_v52 = vadd.f32 %v3909_v57, %v3826_v13 }
 0x505   : > { %v12135_v46 = vmul.f32 -1.442695, %v3908_v33 }
 0x506   : > { %v12136_v36 = vmul.f32 -1.442695, %v3910_v52 }
 0x507   : > { %13142 = vpow2.f32 %v12135_v46 }
 0x50d   : > { %v13141_v28 = vpop.eup %13140 }
 0x50e   : > { %v3924_v23 = vadd.f32 1.0, %v13141_v28 }
 0x510   : > { %13144 = vrcp.f32 %v3924_v23 }
 0x511   : > { %v13143_v31 = vpop.eup %13142 }
 0x512   : > { %v3926_v22 = vadd.f32 1.0, %v13143_v31 }
 0x514   : > { %13146 = vrcp.f32 %v3926_v22 }
 0x515   : > { %13148 = vpow2.f32 %v12134_v60 }
 0x516   : > { %13150 = vpow2.f32 %v12136_v36 }
 0x51a   : > { %v13145_v6 = vpop.eup %13144 }
 0x51b   : > { %v14842_v54 = vmul.f32 %v13145_v6, %v3902_v43 }
 0x51d   : > { %3998 = vrot.lane.b32.xlu0 %v14842_v54, %s13232_s13  ;;  %3992 = vrot.lane.b32.xlu1 %v14842_v54, %s13233_s14 }
 0x51e   : > { %v13147_v59 = vpop.eup %13146 }
 0x51f   : > { %v13149_v19 = vpop.eup %13148  ;;  %v14848_v7 = vmul.f32 %v13147_v59, %v3908_v33 }
 0x520   : > { %v3925_v15 = vadd.f32 1.0, %v13149_v19  ;;  %v13151_v32 = vpop.eup %13150 }
 0x521   : > { %4004 = vrot.lane.b32.xlu0 %v14842_v54, %s13231_s12  ;;  %3994 = vrot.lane.b32.xlu1 %v14848_v7, %s13233_s14  ;;  %v3927_v3 = vadd.f32 1.0, %v13151_v32 }
 0x522   : > { %13152 = vrcp.f32 %v3925_v15 }
 0x523   : > { %13154 = vrcp.f32 %v3927_v3 }
 0x525   : > { %4010 = vrot.lane.b32.xlu0 %v14842_v54, %s13230_s11  ;;  %4000 = vrot.lane.b32.xlu1 %v14848_v7, %s13232_s13 }
 0x529   : > { %4016 = vrot.lane.b32.xlu0 %v14842_v54, %s13227_s8  ;;  %4006 = vrot.lane.b32.xlu1 %v14848_v7, %s13231_s12 }
 0x52c   : > { %v13153_v40 = vpop.eup %13152 }
 0x52d   : > { %4022 = vrot.lane.b32.xlu0 %v14842_v54, %s13229_s10  ;;  %4012 = vrot.lane.b32.xlu1 %v14848_v7, %s13230_s11  ;;  %v14870_v47 = vmul.f32 %v13153_v40, %v3904_v41  ;;  %v13155_v29 = vpop.eup %13154 }
 0x52e   : > { %v14876_v20 = vmul.f32 %v13155_v29, %v3910_v52 }
 0x531   : > { %4028 = vrot.lane.b32.xlu0 %v14842_v54, %s13228_s9  ;;  %4018 = vrot.lane.b32.xlu1 %v14848_v7, %s13227_s8 }
 0x535   : > { %4036 = vrot.lane.b32.xlu0 %v14870_v47, %s13233_s14  ;;  %4024 = vrot.lane.b32.xlu1 %v14848_v7, %s13229_s10 }
 0x539   : > { %4042 = vrot.lane.b32.xlu0 %v14870_v47, %s13232_s13  ;;  %4030 = vrot.lane.b32.xlu1 %v14848_v7, %s13228_s9 }
 0x53d   : > { %4048 = vrot.lane.b32.xlu0 %v14870_v47, %s13231_s12  ;;  %4038 = vrot.lane.b32.xlu1 %v14876_v20, %s13233_s14 }
 0x541   : > { %4054 = vrot.lane.b32.xlu0 %v14870_v47, %s13230_s11  ;;  %4044 = vrot.lane.b32.xlu1 %v14876_v20, %s13232_s13 }
 0x545   : > { %4060 = vrot.lane.b32.xlu0 %v14870_v47, %s13227_s8  ;;  %4050 = vrot.lane.b32.xlu1 %v14876_v20, %s13231_s12 }
 0x549   : > { %4066 = vrot.lane.b32.xlu0 %v14870_v47, %s13229_s10  ;;  %4056 = vrot.lane.b32.xlu1 %v14876_v20, %s13230_s11 }
 0x54d   : > { %4072 = vrot.lane.b32.xlu0 %v14870_v47, %s13228_s9  ;;  %4062 = vrot.lane.b32.xlu1 %v14876_v20, %s13227_s8 }
 0x551   : > { %4068 = vrot.lane.b32.xlu1 %v14876_v20, %s13229_s10 }
 0x555   : > { %4074 = vrot.lane.b32.xlu1 %v14876_v20, %s13228_s9 }
 0x58f   : > { %v3999_v56 = vpop.permute.xlu0 %3998  ;;  %v3993_v16 = vpop.permute.xlu1 %3992 }
 0x590   : > { %v4078_v27 = vcombine.low %v14842_v54, %v3999_v56  ;;  %v4079_v13 = vcombine.high %v14842_v54, %v3999_v56 }
 0x592   : > { %v4086_v21 = vrot.slane %v4078_v27, %v13303_v11  ;;  %v4093_v31 = vrot.slane %v4079_v13, %v13303_v11 }
 0x593   : > { %v4005_v53 = vpop.permute.xlu0 %4004  ;;  %v14970_v4 = vpop.permute.xlu1 %3994 }
 0x594   : > { %v4094_v61 = vcombine.low %v3993_v16, %v4005_v53  ;;  %v4095_v10 = vcombine.high %v3993_v16, %v4005_v53 }
 0x596   : > { %v4102_v0 = vrot.slane %v4094_v61, %v13303_v11  ;;  %v4109_v46 = vrot.slane %v4095_v10, %v13303_v11 }
 0x597   : > { %v4011_v1 = vpop.permute.xlu0 %4010  ;;  %v14972_v63 = vpop.permute.xlu1 %4000 }
 0x598   : > { %v4142_v38 = vcombine.low %v4086_v21, %v4102_v0  ;;  %v4143_v45 = vcombine.high %v4086_v21, %v4102_v0  ;;  %v4158_v52 = vcombine.low %v4093_v31, %v4109_v46  ;;  %v4159_v61 = vcombine.high %v4093_v31, %v4109_v46 }
 0x59a   : > { %v4150_v58 = vrot.slane %v4142_v38, %v13326_v18  ;;  %v4157_v23 = vrot.slane %v4143_v45, %v13326_v18  ;;  %v4166_v32 = vrot.slane %v4158_v52, %v13326_v18 }
 0x59b   : > { %v4017_v9 = vpop.permute.xlu0 %4016  ;;  %v14974_v17 = vpop.permute.xlu1 %4006 }
 0x59f   : > { %v4023_v5 = vpop.permute.xlu0 %4022  ;;  %v14976_v35 = vpop.permute.xlu1 %4012 }
 0x5a0   : > { %v4110_v44 = vcombine.low %v4011_v1, %v4023_v5  ;;  %v4111_v43 = vcombine.high %v4011_v1, %v4023_v5  ;;  %v4366_v5 = vcombine.low %v14970_v4, %v14974_v17 }
 0x5a2   : > { %v4118_v14 = vrot.slane %v4110_v44, %v13303_v11  ;;  %v4125_v28 = vrot.slane %v4111_v43, %v13303_v11  ;;  %v4350_v44 = vcombine.low %v14848_v7, %v14972_v63 }
 0x5a3   : > { %v4029_v34 = vpop.permute.xlu0 %4028  ;;  %v14980_v24 = vpop.permute.xlu1 %4018 }
 0x5a4   : > { %v4126_v62 = vcombine.low %v4017_v9, %v4029_v34  ;;  %v4127_v50 = vcombine.high %v4017_v9, %v4029_v34  ;;  %v4358_v10 = vrot.slane %v4350_v44, %v13303_v11 }
 0x5a6   : > { %v4134_v2 = vrot.slane %v4126_v62, %v13303_v11  ;;  %v4141_v25 = vrot.slane %v4127_v50, %v13303_v11 }
 0x5a7   : > { %v14985_v26 = vpop.permute.xlu0 %4036  ;;  %v14987_v12 = vpop.permute.xlu1 %4024 }
 0x5a8   : > { %v4174_v48 = vcombine.low %v4118_v14, %v4134_v2  ;;  %v4175_v42 = vcombine.high %v4118_v14, %v4134_v2  ;;  %v4190_v60 = vcombine.low %v4125_v28, %v4141_v25  ;;  %v4191_v40 = vcombine.high %v4125_v28, %v4141_v25 }
 0x5a9   : > { %v4382_v29 = vcombine.low %v14976_v35, %v14987_v12 }
 0x5aa   : > { %v4182_v8 = vrot.slane %v4174_v48, %v13326_v18  ;;  %v4189_v57 = vrot.slane %v4175_v42, %v13326_v18  ;;  %v4198_v59 = vrot.slane %v4190_v60, %v13326_v18  ;;  %v4205_v2 = vrot.slane %v4191_v40, %v13326_v18 }
 0x5ab   : > { %v14990_v49 = vpop.permute.xlu0 %4042  ;;  %v14992_v51 = vpop.permute.xlu1 %4030  ;;  %v4390_v62 = vrot.slane %v4382_v29, %v13303_v11  ;;  %v4173_v42 = vrot.slane %v4159_v61, %v13326_v18 }
 0x5ac   : > { %v4206_v39 = vcombine.low %v4150_v58, %v4182_v8  ;;  %v4207_v33 = vcombine.high %v4150_v58, %v4182_v8  ;;  %v4208_v22 = vcombine.low %v4157_v23, %v4189_v57  ;;  %v4209_v54 = vcombine.high %v4157_v23, %v4189_v57 }
 0x5ad   : > { %v4214_v3 = vcombine.low %v14870_v47, %v14990_v49  ;;  %v4398_v56 = vcombine.low %v14980_v24, %v14992_v51  ;;  %v4210_v53 = vcombine.low %v4166_v32, %v4198_v59  ;;  %v4211_v14 = vcombine.high %v4166_v32, %v4198_v59 }
 0x5ae   : > { %4654 = vrot.lane.b32.xlu0 %v4206_v39, %s13237_s26  ;;  %v4374_v58 = vrot.slane %v4366_v5, %v13303_v11  ;;  %v4212_v43 = vcombine.low %v4173_v42, %v4205_v2  ;;  %v4213_v31 = vcombine.high %v4173_v42, %v4205_v2  ;;  %v4215_v59 = vcombine.high %v14870_v47, %v14990_v49 }
 0x5af   : > { %v14996_v30 = vpop.permute.xlu0 %4048  ;;  %v15000_v37 = vpop.permute.xlu1 %4038  ;;  %v4222_v0 = vrot.slane %v4214_v3, %v13303_v11  ;;  %v4406_v21 = vrot.slane %v4398_v56, %v13303_v11  ;;  %v4367_v49 = vcombine.high %v14970_v4, %v14974_v17 }
 0x5b0   : > { %v4230_v19 = vcombine.low %v14985_v26, %v14996_v30  ;;  %v4415_v56 = vcombine.high %v4358_v10, %v4374_v58 }
 0x5b1   : > { %v4446_v45 = vcombine.low %v4390_v62, %v4406_v21  ;;  %v4381_v17 = vrot.slane %v4367_v49, %v13303_v11 }
 0x5b2   : > { %4658 = vrot.lane.b32.xlu0 %v4207_v33, %s13237_s26  ;;  %v15031_v1 = vrot.slane %v4230_v19, %v13303_v11  ;;  %v4414_v33 = vcombine.low %v4358_v10, %v4374_v58 }
 0x5b3   : > { %v15006_v41 = vpop.permute.xlu0 %4054  ;;  %v15010_v36 = vpop.permute.xlu1 %4044  ;;  %v4454_v60 = vrot.slane %v4446_v45, %v13326_v18 }
 0x5b4   : > { %v4278_v38 = vcombine.low %v4222_v0, %v15031_v1  ;;  %v4279_v52 = vcombine.high %v4222_v0, %v15031_v1  ;;  %v4486_v45 = vcombine.low %v14876_v20, %v15010_v36 }
 0x5b6   : > { %4662 = vrot.lane.b32.xlu0 %v4208_v22, %s13237_s26  ;;  %v4286_v13 = vrot.slane %v4278_v38, %v13326_v18  ;;  %v4231_v22 = vcombine.high %v14985_v26, %v14996_v30  ;;  %v4383_v26 = vcombine.high %v14976_v35, %v14987_v12  ;;  %v4399_v30 = vcombine.high %v14980_v24, %v14992_v51 }
 0x5b7   : > { %v15013_v6 = vpop.permute.xlu0 %4060  ;;  %v15028_v16 = vpop.permute.xlu1 %4050  ;;  %v4293_v47 = vrot.slane %v4279_v52, %v13326_v18  ;;  %v4351_v35 = vcombine.high %v14848_v7, %v14972_v63  ;;  %v4229_v24 = vrot.slane %v4215_v59, %v13303_v11  ;;  %v4429_v7 = vrot.slane %v4415_v56, %v13326_v18 }
 0x5b8   : > { %v4245_v40 = vrot.slane %v4231_v22, %v13303_v11  ;;  %v4397_v1 = vrot.slane %v4383_v26, %v13303_v11  ;;  %v4502_v10 = vcombine.low %v15000_v37, %v15028_v16  ;;  %v4494_v52 = vrot.slane %v4486_v45, %v13303_v11 }
 0x5b9   : > { %v4365_v44 = vrot.slane %v4351_v35, %v13303_v11  ;;  %v4503_v35 = vcombine.high %v15000_v37, %v15028_v16 }
 0x5ba   : > { %4666 = vrot.lane.b32.xlu0 %v4209_v54, %s13237_s26  ;;  %v4294_v4 = vcombine.low %v4229_v24, %v4245_v40 }
 0x5bb   : > { %v15019_v15 = vpop.permute.xlu0 %4066  ;;  %v15081_v50 = vpop.permute.xlu1 %4056  ;;  %v4431_v22 = vcombine.high %v4365_v44, %v4381_v17 }
 0x5bc   : > { %v4246_v9 = vcombine.low %v15006_v41, %v15019_v15  ;;  %v4247_v54 = vcombine.high %v15006_v41, %v15019_v15  ;;  %v4447_v41 = vcombine.high %v4390_v62, %v4406_v21  ;;  %v4302_v21 = vrot.slane %v4294_v4, %v13326_v18 }
 0x5be   : > { %4670 = vrot.lane.b32.xlu0 %v4210_v53, %s13237_s26  ;;  %v4254_v48 = vrot.slane %v4246_v9, %v13303_v11  ;;  %v4261_v29 = vrot.slane %v4247_v54, %v13303_v11  ;;  %v4413_v9 = vrot.slane %v4399_v30, %v13303_v11  ;;  %v4461_v5 = vrot.slane %v4447_v41, %v13326_v18 }
 0x5bf   : > { %v4073_v27 = vpop.permute.xlu0 %4072  ;;  %v15090_v23 = vpop.permute.xlu1 %4062 }
 0x5c0   : > { %v4262_v34 = vcombine.low %v15013_v6, %v4073_v27  ;;  %v4263_v57 = vcombine.high %v15013_v6, %v4073_v27  ;;  %v4422_v6 = vrot.slane %v4414_v33, %v13326_v18  ;;  %v4462_v0 = vcombine.low %v4397_v1, %v4413_v9 }
 0x5c1   : > { %v4480_v62 = vcombine.low %v4429_v7, %v4461_v5  ;;  %v4481_v58 = vcombine.high %v4429_v7, %v4461_v5 }
 0x5c2   : > { %v4270_v8 = vrot.slane %v4262_v34, %v13303_v11  ;;  %4674 = vrot.lane.b32.xlu0 %v4211_v14, %s13237_s26  ;;  %v4277_v19 = vrot.slane %v4263_v57, %v13303_v11  ;;  %v4478_v15 = vcombine.low %v4422_v6, %v4454_v60  ;;  %v4479_v61 = vcombine.high %v4422_v6, %v4454_v60 }
 0x5c3   : > { %v15115_v53 = vpop.permute.xlu1 %4068  ;;  %v4430_v14 = vcombine.low %v4365_v44, %v4381_v17  ;;  %v4470_v42 = vrot.slane %v4462_v0, %v13326_v18 }
 0x5c4   : > { %v4310_v39 = vcombine.low %v4254_v48, %v4270_v8  ;;  %v4311_v46 = vcombine.high %v4254_v48, %v4270_v8  ;;  %v4326_v12 = vcombine.low %v4261_v29, %v4277_v19  ;;  %v4327_v2 = vcombine.high %v4261_v29, %v4277_v19 }
 0x5c5   : > { %v4518_v38 = vcombine.low %v15081_v50, %v15115_v53 }
 0x5c6   : > { %v4318_v25 = vrot.slane %v4310_v39, %v13326_v18  ;;  %4678 = vrot.lane.b32.xlu0 %v4212_v43, %s13237_s26  ;;  %v4325_v3 = vrot.slane %v4311_v46, %v13326_v18  ;;  %v4334_v27 = vrot.slane %v4326_v12, %v13326_v18  ;;  %v4295_v39 = vcombine.high %v4229_v24, %v4245_v40 }
 0x5c7   : > { %v4075_v34 = vpop.permute.xlu1 %4074  ;;  %v4438_v43 = vrot.slane %v4430_v14, %v13326_v18  ;;  %v4341_v57 = vrot.slane %v4327_v2, %v13326_v18  ;;  %v4463_v46 = vcombine.high %v4397_v1, %v4413_v9  ;;  %v4519_v40 = vcombine.high %v15081_v50, %v15115_v53 }
 0x5c8   : > { %v4342_v28 = vcombine.low %v4286_v13, %v4318_v25  ;;  %v4343_v32 = vcombine.high %v4286_v13, %v4318_v25  ;;  %v4344_v51 = vcombine.low %v4293_v47, %v4325_v3  ;;  %v4345_v63 = vcombine.high %v4293_v47, %v4325_v3 }
 0x5c9   : > { %v4534_v48 = vcombine.low %v15090_v23, %v4075_v34  ;;  %v4346_v8 = vcombine.low %v4302_v21, %v4334_v27  ;;  %v4526_v13 = vrot.slane %v4518_v38, %v13303_v11  ;;  %v4347_v33 = vcombine.high %v4302_v21, %v4334_v27 }
 0x5ca   : > { %4656 = vrot.lane.b32.xlu1 %v4342_v28, %s13237_s26  ;;  %4682 = vrot.lane.b32.xlu0 %v4213_v31, %s13237_s26  ;;  %v4482_v28 = vcombine.low %v4438_v43, %v4470_v42  ;;  %v4510_v31 = vrot.slane %v4502_v10, %v13303_v11  ;;  %v4309_v60 = vrot.slane %v4295_v39, %v13326_v18 }
 0x5cb   : > { %v4542_v25 = vrot.slane %v4534_v48, %v13303_v11  ;;  %v4483_v59 = vcombine.high %v4438_v43, %v4470_v42  ;;  %v4477_v19 = vrot.slane %v4463_v46, %v13326_v18  ;;  %v4445_v3 = vrot.slane %v4431_v22, %v13326_v18 }
 0x5cc   : > { %v4348_v6 = vcombine.low %v4309_v60, %v4341_v57  ;;  %v4349_v26 = vcombine.high %v4309_v60, %v4341_v57  ;;  %v4535_v29 = vcombine.high %v15090_v23, %v4075_v34  ;;  %v4551_v24 = vcombine.high %v4494_v52, %v4510_v31 }
 0x5cd   : > { %v4582_v54 = vcombine.low %v4526_v13, %v4542_v25  ;;  %v4484_v41 = vcombine.low %v4445_v3, %v4477_v19  ;;  %v4583_v47 = vcombine.high %v4526_v13, %v4542_v25  ;;  %v4485_v56 = vcombine.high %v4445_v3, %v4477_v19 }
 0x5ce   : > { %4660 = vrot.lane.b32.xlu1 %v4343_v32, %s13237_s26  ;;  %4686 = vrot.lane.b32.xlu0 %v4478_v15, %s13237_s26  ;;  %v4550_v32 = vcombine.low %v4494_v52, %v4510_v31  ;;  %v4487_v12 = vcombine.high %v14876_v20, %v15010_v36  ;;  %v4549_v50 = vrot.slane %v4535_v29, %v13303_v11 }
 0x5cf   : > { %v4590_v30 = vrot.slane %v4582_v54, %v13326_v18  ;;  %v4597_v23 = vrot.slane %v4583_v47, %v13326_v18  ;;  %v4517_v1 = vrot.slane %v4503_v35, %v13303_v11  ;;  %v4565_v37 = vrot.slane %v4551_v24, %v13326_v18 }
 0x5d0   : > { %v4558_v15 = vrot.slane %v4550_v32, %v13326_v18  ;;  %v4501_v16 = vrot.slane %v4487_v12, %v13303_v11 }
 0x5d1   : > { %v4617_v36 = vcombine.high %v4565_v37, %v4597_v23 }
 0x5d2   : > { %4664 = vrot.lane.b32.xlu1 %v4344_v51, %s13237_s26  ;;  %4690 = vrot.lane.b32.xlu0 %v4479_v61, %s13237_s26  ;;  %v4614_v49 = vcombine.low %v4558_v15, %v4590_v30  ;;  %v4533_v51 = vrot.slane %v4519_v40, %v13303_v11  ;;  %v4615_v53 = vcombine.high %v4558_v15, %v4590_v30 }
 0x5d3   : > { %v4616_v61 = vcombine.low %v4565_v37, %v4597_v23  ;;  %v4566_v20 = vcombine.low %v4501_v16, %v4517_v1 }
 0x5d4   : > { %v4598_v9 = vcombine.low %v4533_v51, %v4549_v50  ;;  %v4599_v17 = vcombine.high %v4533_v51, %v4549_v50 }
 0x5d5   : > { %v4574_v4 = vrot.slane %v4566_v20, %v13326_v18 }
 0x5d6   : > { %4668 = vrot.lane.b32.xlu1 %v4345_v63, %s13237_s26  ;;  %4694 = vrot.lane.b32.xlu0 %v4480_v62, %s13237_s26  ;;  %v4606_v5 = vrot.slane %v4598_v9, %v13326_v18  ;;  %v4567_v63 = vcombine.high %v4501_v16, %v4517_v1  ;;  %v4613_v44 = vrot.slane %v4599_v17, %v13326_v18 }
 0x5d8   : > { %v4618_v7 = vcombine.low %v4574_v4, %v4606_v5  ;;  %v4619_v27 = vcombine.high %v4574_v4, %v4606_v5  ;;  %v4581_v0 = vrot.slane %v4567_v63, %v13326_v18 }
 0x5da   : > { %4672 = vrot.lane.b32.xlu1 %v4346_v8, %s13237_s26  ;;  %4698 = vrot.lane.b32.xlu0 %v4481_v58, %s13237_s26  ;;  %v4620_v34 = vcombine.low %v4581_v0, %v4613_v44  ;;  %v4621_v62 = vcombine.high %v4581_v0, %v4613_v44 }
 0x5de   : > { %4676 = vrot.lane.b32.xlu1 %v4347_v33, %s13237_s26  ;;  %4702 = vrot.lane.b32.xlu0 %v4482_v28, %s13237_s26 }
 0x5e2   : > { %4680 = vrot.lane.b32.xlu1 %v4348_v6, %s13237_s26  ;;  %4706 = vrot.lane.b32.xlu0 %v4483_v59, %s13237_s26 }
 0x5e6   : > { %4684 = vrot.lane.b32.xlu1 %v4349_v26, %s13237_s26  ;;  %4710 = vrot.lane.b32.xlu0 %v4484_v41, %s13237_s26 }
 0x5ea   : > { %4688 = vrot.lane.b32.xlu1 %v4614_v49, %s13237_s26  ;;  %4714 = vrot.lane.b32.xlu0 %v4485_v56, %s13237_s26 }
 0x5ee   : > { %4692 = vrot.lane.b32.xlu1 %v4615_v53, %s13237_s26 }
 0x5f2   : > { %4696 = vrot.lane.b32.xlu1 %v4616_v61, %s13237_s26 }
 0x5f6   : > { %4700 = vrot.lane.b32.xlu1 %v4617_v36, %s13237_s26 }
 0x5fa   : > { %4704 = vrot.lane.b32.xlu1 %v4618_v7, %s13237_s26 }
 0x5fe   : > { %4708 = vrot.lane.b32.xlu1 %v4619_v27, %s13237_s26 }
 0x602   : > { %4712 = vrot.lane.b32.xlu1 %v4620_v34, %s13237_s26 }
 0x606   : > { %4716 = vrot.lane.b32.xlu1 %v4621_v62, %s13237_s26  ;;  %s12147_s26 = sshll.u32 %s22446_s25, 5 }
 0x607   : > { %s278_s29 = scalar_lea.vmem %s20529_s7, %s12147_s26 }
 0x620   : > { %v4655_v21 = vpop.permute.xlu0 %4654 }
 0x621   : > { %4751 = vst.msk [vmem:[#allocation2 + $0x1] sm:$0xff] %vm4750_vm12, %v4655_v21 }
 0x624   : > { %v4659_v14 = vpop.permute.xlu0 %4658 }
 0x625   : > { %4753 = vst.msk [vmem:[#allocation2 + $0x19] sm:$0xff] %vm4750_vm12, %v4659_v14 }
 0x628   : > { %v4663_v2 = vpop.permute.xlu0 %4662  ;;  %v15188_v38 = vld [vmem:[#allocation2] sm:$0xff] }
 0x629   : > { %4755 = vst.msk [vmem:[#allocation2 + $0x31] sm:$0xff] %vm4750_vm12, %v4663_v2  ;;  %5547 = vrot.lane.b32.xlu0 %v15188_v38, %s13226_s30  ;;  %v9479_v12 = vrot.slane %v15188_v38, 2 }
 0x62c   : > { %v4667_v48 = vpop.permute.xlu0 %4666  ;;  %v15193_v8 = vld [vmem:[#allocation2 + $0x18] sm:$0xff] }
 0x62d   : > { %21241 = vst [vmem:[#allocation12_spill] sm:$0xff] %v15193_v8  ;;  %4757 = vst.msk [vmem:[#allocation2 + $0x49] sm:$0xff] %vm4750_vm12, %v4667_v48  ;;  %5551 = vrot.lane.b32.xlu0 %v15193_v8, %s13226_s30 }
 0x630   : > { %v4671_v58 = vpop.permute.xlu0 %4670  ;;  %v15198_v42 = vld [vmem:[#allocation2 + $0x30] sm:$0xff] }
 0x631   : > { %4759 = vst.msk [vmem:[#allocation2 + $0x61] sm:$0xff] %vm4750_vm12, %v4671_v58  ;;  %5555 = vrot.lane.b32.xlu0 %v15198_v42, %s13226_s30  ;;  %v4831_v39 = vcombine.low %v15188_v38, %v15198_v42  ;;  %v4832_v10 = vcombine.high %v15188_v38, %v15198_v42 }
 0x633   : > { %v15217_v33 = vrot.slane %v4831_v39, %v13303_v11  ;;  %v15223_v46 = vrot.slane %v4832_v10, %v13303_v11 }
 0x634   : > { %v4675_v45 = vpop.permute.xlu0 %4674  ;;  %v15207_v43 = vld [vmem:[#allocation2 + $0x48] sm:$0xff] }
 0x635   : > { %4761 = vst.msk [vmem:[#allocation2 + $0x79] sm:$0xff] %vm4750_vm12, %v4675_v45  ;;  %5559 = vrot.lane.b32.xlu0 %v15207_v43, %s13226_s30  ;;  %v4847_v13 = vcombine.low %v15193_v8, %v15207_v43  ;;  %v4848_v25 = vcombine.high %v15193_v8, %v15207_v43  ;;  %21242 = vst [vmem:[#allocation18_spill] sm:$0xff] %v15217_v33 }
 0x637   : > { %v15220_v57 = vrot.slane %v4847_v13, %v13303_v11  ;;  %v15226_v28 = vrot.slane %v4848_v25, %v13303_v11 }
 0x638   : > { %v4679_v31 = vpop.permute.xlu0 %4678  ;;  %v15228_v60 = vld [vmem:[#allocation2 + $0x60] sm:$0xff] }
 0x639   : > { %21243 = vst [vmem:[#allocation20_spill] sm:$0xff] %v15220_v57  ;;  %4763 = vst.msk [vmem:[#allocation2 + $0x91] sm:$0xff] %vm4750_vm12, %v4679_v31  ;;  %5563 = vrot.lane.b32.xlu0 %v15228_v60, %s13226_s30  ;;  %v4896_v52 = vcombine.high %v15217_v33, %v15220_v57  ;;  %v4911_v54 = vcombine.low %v15223_v46, %v15226_v28  ;;  %v4912_v6 = vcombine.high %v15223_v46, %v15226_v28 }
 0x63b   : > { %v15303_v27 = vrot.slane %v4896_v52, %v13326_v18  ;;  %v15309_v0 = vrot.slane %v4911_v54, %v13326_v18  ;;  %v15318_v21 = vrot.slane %v4912_v6, %v13326_v18 }
 0x63c   : > { %v4657_v59 = vpop.permute.xlu1 %4656  ;;  %v4683_v19 = vpop.permute.xlu0 %4682  ;;  %v15242_v32 = vld [vmem:[#allocation2 + $0x78] sm:$0xff] }
 0x63d   : > { %4752 = vst.msk [vmem:[#allocation2 + $0x9] sm:$0xff] %vm4750_vm12, %v4657_v59  ;;  %4765 = vst.msk [vmem:[#allocation2 + $0xa9] sm:$0xff] %vm4750_vm12, %v4683_v19  ;;  %5567 = vrot.lane.b32.xlu0 %v15242_v32, %s13226_s30 }
 0x63e   : > { %21249 = vst [vmem:[#allocation11_spill] sm:$0xff] %v15303_v27  ;;  %21251 = vst [vmem:[#allocation4_spill] sm:$0xff] %v15309_v0 }
 0x63f   : > { %21253 = vst [vmem:[#allocation13_spill] sm:$0xff] %v15318_v21 }
 0x640   : > { %v4661_v3 = vpop.permute.xlu1 %4660  ;;  %v4687_v26 = vpop.permute.xlu0 %4686  ;;  %v15248_v30 = vld [vmem:[#allocation2 + $0x90] sm:$0xff] }
 0x641   : > { %4754 = vst.msk [vmem:[#allocation2 + $0x21] sm:$0xff] %vm4750_vm12, %v4661_v3  ;;  %4767 = vst.msk [vmem:[#allocation2 + $0xc1] sm:$0xff] %vm4750_vm12, %v4687_v26  ;;  %5571 = vrot.lane.b32.xlu0 %v15248_v30, %s13226_s30  ;;  %v4863_v41 = vcombine.low %v15228_v60, %v15248_v30  ;;  %v4864_v15 = vcombine.high %v15228_v60, %v15248_v30 }
 0x643   : > { %v15285_v16 = vrot.slane %v4863_v41, %v13303_v11  ;;  %v4878_v61 = vrot.slane %v4864_v15, %v13303_v11 }
 0x644   : > { %v4665_v40 = vpop.permute.xlu1 %4664  ;;  %v15257_v29 = vld [vmem:[#allocation2 + $0x8] sm:$0xff]  ;;  %v15259_v47 = vld [vmem:[#allocation2 + $0x10] sm:$0x3]  ;;  %v4691_v49 = vpop.permute.xlu0 %4690 }
 0x645   : > { %4756 = vst.msk [vmem:[#allocation2 + $0x39] sm:$0xff] %vm4750_vm12, %v4665_v40  ;;  %v15262_v56 = vld [vmem:[#allocation2 + $0xa8] sm:$0xff]  ;;  %5549 = vrot.lane.b32.xlu1 %v15257_v29, %s13226_s30  ;;  %v9480_v35 = vrot.slane %v15257_v29, 2  ;;  %v9482_v24 = vrot.slane %v15259_v47, 2  ;;  %4769 = vst.msk [vmem:[#allocation2 + $0xd9] sm:$0xff] %vm4750_vm12, %v4691_v49 }
 0x646   : > { %5575 = vrot.lane.b32.xlu0 %v15262_v56, %s13226_s30  ;;  %v4879_v51 = vcombine.low %v15242_v32, %v15262_v56  ;;  %v4880_v50 = vcombine.high %v15242_v32, %v15262_v56  ;;  %21247 = vst [vmem:[#allocation10_spill] sm:$0xff] %v15285_v16 }
 0x647   : > { %v15277_v53 = vsel %vm2635_vm8, %v9480_v35, %v9482_v24  ;;  %v15280_v23 = vsel %vm2635_vm8, %v9479_v12, %v9480_v35 }
 0x648   : > { %21244 = vst [vmem:[#allocation19_spill] sm:$0xff] %v15277_v53  ;;  %21245 = vst [vmem:[#allocation21_spill] sm:$0xff] %v15280_v23  ;;  %v4669_v1 = vpop.permute.xlu1 %4668  ;;  %v15282_v37 = vld [vmem:[#allocation2 + $0x20] sm:$0xff]  ;;  %v15288_v9 = vrot.slane %v4879_v51, %v13303_v11  ;;  %v4894_v20 = vrot.slane %v4880_v50, %v13303_v11  ;;  %v4695_v36 = vpop.permute.xlu0 %4694 }
 0x649   : > { %21246 = vst [vmem:[#allocation5_spill] sm:$0xff] %v15282_v37  ;;  %4758 = vst.msk [vmem:[#allocation2 + $0x51] sm:$0xff] %vm4750_vm12, %v4669_v1  ;;  %5553 = vrot.lane.b32.xlu1 %v15282_v37, %s13226_s30  ;;  %v15389_v12 = vld [vmem:[#allocation2 + $0xc0] sm:$0xff] }
 0x64a   : > { %21248 = vst [vmem:[#allocation7_spill] sm:$0xff] %v15288_v9  ;;  %4771 = vst.msk [vmem:[#allocation2 + $0xf1] sm:$0xff] %vm4750_vm12, %v4695_v36  ;;  %6327 = vrot.lane.b32.xlu0 %v15188_v38, %s13234_s15  ;;  %v4928_v5 = vcombine.high %v15285_v16, %v15288_v9  ;;  %v4943_v4 = vcombine.low %v4878_v61, %v4894_v20  ;;  %v4944_v17 = vcombine.high %v4878_v61, %v4894_v20 }
 0x64b   : > { %21258 = vst [vmem:[#allocation17_spill] sm:$0xff] %v15389_v12 }
 0x64c   : > { %v4673_v7 = vpop.permute.xlu1 %4672  ;;  %v15300_v63 = vld [vmem:[#allocation2 + $0x38] sm:$0xff]  ;;  %v15306_v44 = vrot.slane %v4928_v5, %v13326_v18  ;;  %v15312_v34 = vrot.slane %v4943_v4, %v13326_v18  ;;  %v4699_v62 = vpop.permute.xlu0 %4698  ;;  %v15321_v14 = vrot.slane %v4944_v17, %v13326_v18 }
 0x64d   : > { %4760 = vst.msk [vmem:[#allocation2 + $0x69] sm:$0xff] %vm4750_vm12, %v4673_v7  ;;  %5557 = vrot.lane.b32.xlu1 %v15300_v63, %s13226_s30  ;;  %4773 = vst.msk [vmem:[#allocation2 + $0x109] sm:$0xff] %vm4750_vm12, %v4699_v62  ;;  %v5103_v52 = vcombine.low %v15257_v29, %v15300_v63  ;;  %v15396_v50 = vld [vmem:[#allocation2 + $0xd8] sm:$0xff]  ;;  %v5104_v4 = vcombine.high %v15257_v29, %v15300_v63 }
 0x64e   : > { %21250 = vst [vmem:[#allocation14_spill] sm:$0xff] %v15306_v44  ;;  %21252 = vst [vmem:[#allocation9_spill] sm:$0xff] %v15312_v34  ;;  %6331 = vrot.lane.b32.xlu0 %v15193_v8, %s13234_s15 }
 0x64f   : > { %21254 = vst [vmem:[#allocation16_spill] sm:$0xff] %v15321_v14  ;;  %v15363_v3 = vrot.slane %v5103_v52, %v13303_v11  ;;  %21259 = vst [vmem:[#allocation22_spill] sm:$0xff] %v15396_v50  ;;  %v15428_v62 = vrot.slane %v5104_v4, %v13303_v11 }
 0x650   : > { %v4677_v39 = vpop.permute.xlu1 %4676  ;;  %v15332_v10 = vld [vmem:[#allocation2 + $0x50] sm:$0xff]  ;;  %v4703_v45 = vpop.permute.xlu0 %4702 }
 0x651   : > { %4762 = vst.msk [vmem:[#allocation2 + $0x81] sm:$0xff] %vm4750_vm12, %v4677_v39  ;;  %5561 = vrot.lane.b32.xlu1 %v15332_v10, %s13226_s30  ;;  %4775 = vst.msk [vmem:[#allocation2 + $0x121] sm:$0xff] %vm4750_vm12, %v4703_v45  ;;  %v5119_v54 = vcombine.low %v15282_v37, %v15332_v10  ;;  %v15403_v61 = vld [vmem:[#allocation2 + $0xf0] sm:$0xff]  ;;  %v5120_v17 = vcombine.high %v15282_v37, %v15332_v10  ;;  %v7139_v4 = vrot.slane %v15332_v10, 1 }
 0x652   : > { %6335 = vrot.lane.b32.xlu0 %v15198_v42, %s13234_s15  ;;  %21260 = vst [vmem:[#allocation23_spill] sm:$0xff] %v15403_v61  ;;  %21263 = vst [vmem:[#allocation26_spill] sm:$0xff] %v15428_v62 }
 0x653   : > { %v15366_v26 = vrot.slane %v5119_v54, %v13303_v11  ;;  %v15431_v39 = vrot.slane %v5120_v17, %v13303_v11  ;;  %v15447_v54 = vld [vmem:[#allocation2 + $0x28] sm:$0x3] }
 0x654   : > { %v4681_v13 = vpop.permute.xlu1 %4680  ;;  %v15340_v25 = vld [vmem:[#allocation2 + $0x68] sm:$0xff]  ;;  %v4707_v46 = vpop.permute.xlu0 %4706  ;;  %21267 = vst [vmem:[#allocation30_spill] sm:$0xff] %v15447_v54 }
 0x655   : > { %4764 = vst.msk [vmem:[#allocation2 + $0x99] sm:$0xff] %vm4750_vm12, %v4681_v13  ;;  %5565 = vrot.lane.b32.xlu1 %v15340_v25, %s13226_s30  ;;  %4777 = vst.msk [vmem:[#allocation2 + $0x139] sm:$0xff] %vm4750_vm12, %v4707_v46  ;;  %v15410_v36 = vld [vmem:[#allocation2 + $0x108] sm:$0xff]  ;;  %v7124_v46 = vrot.slane %v15257_v29, 1 }
 0x656   : > { %6339 = vrot.lane.b32.xlu0 %v15207_v43, %s13234_s15  ;;  %21256 = vst [vmem:[#allocation8_spill] sm:$0xff] %v15366_v26  ;;  %21261 = vst [vmem:[#allocation24_spill] sm:$0xff] %v15410_v36 }
 0x657   : > { %21264 = vst [vmem:[#allocation27_spill] sm:$0xff] %v15431_v39 }
 0x658   : > { %v4685_v28 = vpop.permute.xlu1 %4684  ;;  %v15348_v31 = vld [vmem:[#allocation2 + $0x80] sm:$0xff]  ;;  %v4711_v6 = vpop.permute.xlu0 %4710 }
 0x659   : > { %21255 = vst [vmem:[#allocation6_spill] sm:$0xff] %v15348_v31  ;;  %4766 = vst.msk [vmem:[#allocation2 + $0xb1] sm:$0xff] %vm4750_vm12, %v4685_v28  ;;  %5569 = vrot.lane.b32.xlu1 %v15348_v31, %s13226_s30  ;;  %v15421_v7 = vld [vmem:[#allocation2 + $0x120] sm:$0xff]  ;;  %v7126_v28 = vrot.slane %v15259_v47, 1 }
 0x65a   : > { %4779 = vst.msk [vmem:[#allocation2 + $0x151] sm:$0xff] %vm4750_vm12, %v4711_v6  ;;  %6343 = vrot.lane.b32.xlu0 %v15228_v60, %s13234_s15  ;;  %21262 = vst [vmem:[#allocation25_spill] sm:$0xff] %v15421_v7 }
 0x65b   : > { %v15454_v6 = vsel %vm1456_vm0, %v7124_v46, %v7126_v28  ;;  %v4797_v28 = vld [vmem:[#allocation2 + $0x70] sm:$0x3] }
 0x65c   : > { %v4689_v59 = vpop.permute.xlu1 %4688  ;;  %v15360_v19 = vld [vmem:[#allocation2 + $0x98] sm:$0xff]  ;;  %v4715_v41 = vpop.permute.xlu0 %4714  ;;  %v7146_v55 = vrot.slane %v4797_v28, 1  ;;  %v20548_v28 = vrot.slane %v15348_v31, 1 }
 0x65d   : > { %4768 = vst.msk [vmem:[#allocation2 + $0xc9] sm:$0xff] %vm4750_vm12, %v4689_v59  ;;  %5573 = vrot.lane.b32.xlu1 %v15360_v19, %s13226_s30  ;;  %4781 = vst.msk [vmem:[#allocation2 + $0x169] sm:$0xff] %vm4750_vm12, %v4715_v41  ;;  %v15433_v45 = vld [vmem:[#allocation2 + $0x138] sm:$0xff]  ;;  %v7129_v59 = vrot.slane %v15282_v37, 1  ;;  %v7131_v41 = vrot.slane %v15447_v54, 1  ;;  %v21294_v39 = vrot.slane %v15360_v19, 1  ;;  %v5135_v34 = vcombine.low %v15340_v25, %v15360_v19 }
 0x65e   : > { %6347 = vrot.lane.b32.xlu0 %v15242_v32, %s13234_s15  ;;  %21265 = vst [vmem:[#allocation28_spill] sm:$0xff] %v15433_v45 }
 0x660   : > { %v4693_v40 = vpop.permute.xlu1 %4692  ;;  %v15376_v49 = vld [vmem:[#allocation2 + $0xb0] sm:$0xff]  ;;  %v4806_v48 = vld [vmem:[#allocation2 + $0xb8] sm:$0x3] }
 0x661   : > { %21257 = vst [vmem:[#allocation15_spill] sm:$0xff] %v15376_v49  ;;  %4770 = vst.msk [vmem:[#allocation2 + $0xe1] sm:$0xff] %vm4750_vm12, %v4693_v40  ;;  %5577 = vrot.lane.b32.xlu1 %v15376_v49, %s13226_s30  ;;  %v15443_v52 = vld [vmem:[#allocation2 + $0x150] sm:$0xff]  ;;  %v4791_v40 = vld [vmem:[#allocation2 + $0x40] sm:$0x3]  ;;  %v20547_v2 = vrot.slane %v15376_v49, 1 }
 0x662   : > { %6351 = vrot.lane.b32.xlu0 %v15248_v30, %s13234_s15  ;;  %21266 = vst [vmem:[#allocation29_spill] sm:$0xff] %v15443_v52  ;;  %v7161_v15 = vrot.slane %v4806_v48, 1 }
 0x664   : > { %v4697_v35 = vpop.permute.xlu1 %4696  ;;  %v15458_v47 = vld [vmem:[#allocation2 + $0x168] sm:$0xff]  ;;  %v15538_v58 = vsel %vm1456_vm0, %v20547_v2, %v7161_v15  ;;  %v7128_v2 = vrot.slane %v15193_v8, 1 }
 0x665   : > { %4772 = vst.msk [vmem:[#allocation2 + $0xf9] sm:$0xff] %vm4750_vm12, %v4697_v35  ;;  %6329 = vrot.lane.b32.xlu1 %v15257_v29, %s13234_s15  ;;  %21268 = vst [vmem:[#allocation31_spill] sm:$0xff] %v15458_v47  ;;  %v15465_v35 = vsel %vm1456_vm0, %v7129_v59, %v7131_v41 }
 0x666   : > { %6355 = vrot.lane.b32.xlu0 %v15262_v56, %s13234_s15  ;;  %21273 = vst [vmem:[#allocation36_spill] sm:$0xff] %v15538_v58 }
 0x668   : > { %v4701_v24 = vpop.permute.xlu1 %4700 }
 0x669   : > { %4774 = vst.msk [vmem:[#allocation2 + $0x111] sm:$0xff] %vm4750_vm12, %v4701_v24  ;;  %6333 = vrot.lane.b32.xlu1 %v15282_v37, %s13234_s15  ;;  %v7134_v24 = vrot.slane %v15300_v63, 1 }
 0x66a   : > { %5579 = vrot.lane.b32.xlu0 %v15389_v12, %s13226_s30 }
 0x66c   : > { %v4705_v51 = vpop.permute.xlu1 %4704  ;;  %v15674_v14 = vld [vmem:[#allocation2 + $0x100] sm:$0x3] }
 0x66d   : > { %4776 = vst.msk [vmem:[#allocation2 + $0x129] sm:$0xff] %vm4750_vm12, %v4705_v51  ;;  %6337 = vrot.lane.b32.xlu1 %v15300_v63, %s13234_s15  ;;  %v7136_v51 = vrot.slane %v4791_v40, 1  ;;  %v20549_v40 = vrot.slane %v15340_v25, 1  ;;  %21296 = vst [vmem:[#allocation56_spill] sm:$0xff] %v15674_v14 }
 0x66e   : > { %5583 = vrot.lane.b32.xlu0 %v15396_v50, %s13226_s30 }
 0x670   : > { %v4709_v1 = vpop.permute.xlu1 %4708  ;;  %v15694_v0 = vld [vmem:[#allocation2 + $0x118] sm:$0x3] }
 0x671   : > { %4778 = vst.msk [vmem:[#allocation2 + $0x141] sm:$0xff] %vm4750_vm12, %v4709_v1  ;;  %6341 = vrot.lane.b32.xlu1 %v15332_v10, %s13234_s15  ;;  %v4794_v1 = vld [vmem:[#allocation2 + $0x58] sm:$0x3]  ;;  %v4800_v10 = vld [vmem:[#allocation2 + $0x88] sm:$0x3]  ;;  %21300 = vst [vmem:[#allocation59_spill] sm:$0xff] %v15694_v0 }
 0x672   : > { %5587 = vrot.lane.b32.xlu0 %v15403_v61, %s13226_s30  ;;  %v7141_v17 = vrot.slane %v4794_v1, 1 }
 0x674   : > { %v4713_v20 = vpop.permute.xlu1 %4712  ;;  %v15483_v41 = vsel %vm1456_vm0, %v7139_v4, %v7141_v17  ;;  %v15497_v17 = vsel %vm1456_vm0, %v20549_v40, %v7146_v55  ;;  %v20546_v55 = vrot.slane %v15360_v19, 1  ;;  %v15566_v40 = vsel %vm1456_vm0, %v7128_v2, %v7129_v59 }
 0x675   : > { %4780 = vst.msk [vmem:[#allocation2 + $0x159] sm:$0xff] %vm4750_vm12, %v4713_v20  ;;  %6345 = vrot.lane.b32.xlu1 %v15340_v25, %s13234_s15  ;;  %v7151_v20 = vrot.slane %v4800_v10, 1  ;;  %v7138_v59 = vrot.slane %v15207_v43, 1 }
 0x676   : > { %5591 = vrot.lane.b32.xlu0 %v15410_v36, %s13226_s30 }
 0x677   : > { %v15511_v1 = vsel %vm1456_vm0, %v20548_v28, %v7151_v20  ;;  %v15590_v53 = vsel %vm1456_vm0, %v7138_v59, %v7139_v4 }
 0x678   : > { %v4717_v5 = vpop.permute.xlu1 %4716  ;;  %21270 = vst [vmem:[#allocation33_spill] sm:$0xff] %v15511_v1 }
 0x679   : > { %4782 = vst.msk [vmem:[#allocation2 + $0x171] sm:$0xff] %vm4750_vm12, %v4717_v5  ;;  %6349 = vrot.lane.b32.xlu1 %v15348_v31, %s13234_s15  ;;  %v15475_v5 = vsel %vm1456_vm0, %v7134_v24, %v7136_v51  ;;  %v15502_v51 = vld [vmem:[#allocation2 + $0xa0] sm:$0x3] }
 0x67a   : > { %5595 = vrot.lane.b32.xlu0 %v15421_v7, %s13226_s30  ;;  %21269 = vst [vmem:[#allocation32_spill] sm:$0xff] %v15502_v51  ;;  %v7156_v10 = vrot.slane %v15502_v51, 1 }
 0x67c   : > { %v15526_v20 = vsel %vm1456_vm0, %v20546_v55, %v7156_v10  ;;  %v7123_v10 = vrot.slane %v15188_v38, 1  ;;  %v7133_v38 = vrot.slane %v15198_v42, 1  ;;  %v15703_v27 = vld [vmem:[#allocation2 + $0x160] sm:$0x3] }
 0x67d   : > { %6353 = vrot.lane.b32.xlu1 %v15360_v19, %s13234_s15  ;;  %21302 = vst [vmem:[#allocation61_spill] sm:$0xff] %v15703_v27  ;;  %v7196_v57 = vrot.slane %v15703_v27, 1 }
 0x67e   : > { %5599 = vrot.lane.b32.xlu0 %v15433_v45, %s13226_s30  ;;  %v15556_v15 = vsel %vm1456_vm0, %v7123_v10, %v7124_v46  ;;  %v15576_v46 = vsel %vm1456_vm0, %v7133_v38, %v7134_v24 }
 0x67f   : > { %21276 = vst [vmem:[#allocation39_spill] sm:$0xff] %v15556_v15 }
 0x680   : > { %v15676_v21 = vld [vmem:[#allocation2 + $0x178] sm:$0x3] }
 0x681   : > { %6357 = vrot.lane.b32.xlu1 %v15376_v49, %s13234_s15  ;;  %21297 = vst [vmem:[#allocation57_spill] sm:$0xff] %v15676_v21  ;;  %v7201_v8 = vrot.slane %v15676_v21, 1 }
 0x682   : > { %5603 = vrot.lane.b32.xlu0 %v15443_v52, %s13226_s30 }
 0x685   : > { %7921 = vrot.lane.b32.xlu1 %v15454_v6, %s13226_s30 }
 0x686   : > { %5607 = vrot.lane.b32.xlu0 %v15458_v47, %s13226_s30 }
 0x689   : > { %7925 = vrot.lane.b32.xlu1 %v15465_v35, %s13226_s30 }
 0x68a   : > { %6359 = vrot.lane.b32.xlu0 %v15389_v12, %s13234_s15 }
 0x68d   : > { %7929 = vrot.lane.b32.xlu1 %v15475_v5, %s13226_s30 }
 0x68e   : > { %6363 = vrot.lane.b32.xlu0 %v15396_v50, %s13234_s15 }
 0x691   : > { %7933 = vrot.lane.b32.xlu1 %v15483_v41, %s13226_s30 }
 0x692   : > { %6367 = vrot.lane.b32.xlu0 %v15403_v61, %s13234_s15  ;;  %v7181_v61 = vrot.slane %v15694_v0, 1 }
 0x695   : > { %7937 = vrot.lane.b32.xlu1 %v15497_v17, %s13226_s30 }
 0x696   : > { %6371 = vrot.lane.b32.xlu0 %v15410_v36, %s13234_s15  ;;  %v15726_v36 = vld [vmem:[#allocation2 + $0x130] sm:$0x3] }
 0x697   : > { %21306 = vst [vmem:[#allocation65_spill] sm:$0xff] %v15726_v36 }
 0x699   : > { %7941 = vrot.lane.b32.xlu1 %v15511_v1, %s13226_s30 }
 0x69a   : > { %6375 = vrot.lane.b32.xlu0 %v15421_v7, %s13234_s15  ;;  %v15715_v7 = vld [vmem:[#allocation2 + $0x128] sm:$0xff] }
 0x69b   : > { %v15521_v13 = vpop.permute.xlu0 %5547 }
 0x69c   : > { %21271 = vst [vmem:[#allocation34_spill] sm:$0xff] %v15521_v13 }
 0x69d   : > { %7945 = vrot.lane.b32.xlu1 %v15526_v20, %s13226_s30 }
 0x69e   : > { %6379 = vrot.lane.b32.xlu0 %v15433_v45, %s13234_s15  ;;  %v15713_v45 = vld [vmem:[#allocation2 + $0xe0] sm:$0xff] }
 0x69f   : > { %v15533_v22 = vpop.permute.xlu0 %5551 }
 0x6a0   : > { %21272 = vst [vmem:[#allocation35_spill] sm:$0xff] %v15533_v22 }
 0x6a1   : > { %7949 = vrot.lane.b32.xlu1 %v15538_v58, %s13226_s30 }
 0x6a2   : > { %6383 = vrot.lane.b32.xlu0 %v15443_v52, %s13234_s15 }
 0x6a3   : > { %v15544_v48 = vpop.permute.xlu0 %5555 }
 0x6a4   : > { %21274 = vst [vmem:[#allocation37_spill] sm:$0xff] %v15544_v48  ;;  %v5643_v23 = vcombine.low %v15521_v13, %v15544_v48  ;;  %v21284_v48 = vrot.slane %v15340_v25, 1 }
 0x6a5   : > { %8701 = vrot.lane.b32.xlu1 %v15454_v6, %s13234_s15 }
 0x6a6   : > { %6387 = vrot.lane.b32.xlu0 %v15458_v47, %s13234_s15  ;;  %v15607_v4 = vrot.slane %v5643_v23, %v13303_v11 }
 0x6a7   : > { %v15551_v55 = vpop.permute.xlu0 %5559 }
 0x6a8   : > { %21275 = vst [vmem:[#allocation38_spill] sm:$0xff] %v15551_v55  ;;  %v5659_v2 = vcombine.low %v15533_v22, %v15551_v55  ;;  %v7143_v22 = vrot.slane %v15228_v60, 1  ;;  %21283 = vst [vmem:[#allocation46_spill] sm:$0xff] %v15607_v4  ;;  %v21289_v55 = vrot.slane %v15348_v31, 1 }
 0x6a9   : > { %8705 = vrot.lane.b32.xlu1 %v15465_v35, %s13234_s15 }
 0x6aa   : > { %7919 = vrot.lane.b32.xlu0 %v15556_v15, %s13226_s30  ;;  %v15597_v24 = vrot.slane %v5659_v2, %v13303_v11  ;;  %v15614_v2 = vsel %vm1456_vm0, %v7143_v22, %v21284_v48  ;;  %v7148_v22 = vrot.slane %v15242_v32, 1 }
 0x6ab   : > { %v15563_v28 = vpop.permute.xlu0 %5563 }
 0x6ac   : > { %21277 = vst [vmem:[#allocation40_spill] sm:$0xff] %v15563_v28  ;;  %21280 = vst [vmem:[#allocation43_spill] sm:$0xff] %v15597_v24  ;;  %v15638_v51 = vsel %vm1456_vm0, %v7148_v22, %v21289_v55  ;;  %v7158_v55 = vrot.slane %v15262_v56, 1  ;;  %v15656_v22 = vld [vmem:[#allocation2 + $0xc8] sm:$0xff]  ;;  %v15672_v56 = vld [vmem:[#allocation2 + $0x110] sm:$0xff] }
 0x6ad   : > { %8709 = vrot.lane.b32.xlu1 %v15475_v5, %s13234_s15  ;;  %21295 = vst [vmem:[#allocation55_spill] sm:$0xff] %v15672_v56 }
 0x6ae   : > { %7923 = vrot.lane.b32.xlu0 %v15566_v40, %s13226_s30 }
 0x6af   : > { %v15573_v29 = vpop.permute.xlu0 %5567 }
 0x6b0   : > { %21278 = vst [vmem:[#allocation41_spill] sm:$0xff] %v15573_v29 }
 0x6b1   : > { %8713 = vrot.lane.b32.xlu1 %v15483_v41, %s13234_s15 }
 0x6b2   : > { %7927 = vrot.lane.b32.xlu0 %v15576_v46, %s13226_s30 }
 0x6b3   : > { %v15585_v10 = vpop.permute.xlu0 %5571 }
 0x6b4   : > { %21279 = vst [vmem:[#allocation42_spill] sm:$0xff] %v15585_v10  ;;  %v5675_v43 = vcombine.low %v15563_v28, %v15585_v10  ;;  %v5707_v28 = vcombine.low %v15607_v4, %v15597_v24  ;;  %v15658_v4 = vld [vmem:[#allocation2 + $0xf8] sm:$0xff]  ;;  %v15660_v24 = vld [vmem:[#allocation2 + $0x170] sm:$0xff] }
 0x6b5   : > { %8717 = vrot.lane.b32.xlu1 %v15497_v17, %s13234_s15  ;;  %v5239_v37 = vcombine.low %v15656_v22, %v15658_v4  ;;  %v21311_v16 = vrot.slane %v15660_v24, 1 }
 0x6b6   : > { %7931 = vrot.lane.b32.xlu0 %v15590_v53, %s13226_s30  ;;  %v15623_v23 = vrot.slane %v5675_v43, %v13303_v11  ;;  %v15645_v43 = vrot.slane %v5707_v28, %v13326_v18 }
 0x6b7   : > { %v15601_v38 = vpop.permute.xlu1 %5549  ;;  %v15760_v50 = vsel %vm1456_vm0, %v21311_v16, %v7201_v8  ;;  %v21316_v8 = vrot.slane %v15658_v4, 1 }
 0x6b8   : > { %21281 = vst [vmem:[#allocation44_spill] sm:$0xff] %v15601_v38  ;;  %v15604_v13 = vpop.permute.xlu0 %5575  ;;  %21285 = vst [vmem:[#allocation47_spill] sm:$0xff] %v15623_v23 }
 0x6b9   : > { %21282 = vst [vmem:[#allocation45_spill] sm:$0xff] %v15604_v13  ;;  %v5691_v59 = vcombine.low %v15573_v29, %v15604_v13  ;;  %8721 = vrot.lane.b32.xlu1 %v15511_v1, %s13234_s15  ;;  %21290 = vst [vmem:[#allocation51_spill] sm:$0xff] %v15645_v43  ;;  %v15690_v43 = vld [vmem:[#allocation2 + $0x140] sm:$0xff] }
 0x6ba   : > { %7935 = vrot.lane.b32.xlu0 %v15614_v2, %s13226_s30  ;;  %21299 = vst [vmem:[#allocation58_spill] sm:$0xff] %v15690_v43  ;;  %v5287_v52 = vcombine.low %v15690_v43, %v15660_v24  ;;  %21312 = vst [vmem:[#allocation70_spill] sm:$0xff] %v15760_v50 }
 0x6bb   : > { %v15626_v10 = vrot.slane %v5691_v59, %v13303_v11  ;;  %v15628_v29 = vpop.permute.xlu1 %5553 }
 0x6bc   : > { %21287 = vst [vmem:[#allocation49_spill] sm:$0xff] %v15628_v29  ;;  %v15631_v48 = vpop.permute.xlu0 %6327  ;;  %v15750_v21 = vrot.slane %v5287_v52, %v13303_v11  ;;  %v15766_v52 = vrot.slane %v5135_v34, %v13303_v11 }
 0x6bd   : > { %21286 = vst [vmem:[#allocation48_spill] sm:$0xff] %v15626_v10  ;;  %21288 = vst [vmem:[#allocation50_spill] sm:$0xff] %v15631_v48  ;;  %v5739_v13 = vcombine.low %v15623_v23, %v15626_v10  ;;  %8725 = vrot.lane.b32.xlu1 %v15526_v20, %s13234_s15  ;;  %v7153_v23 = vrot.slane %v15248_v30, 1 }
 0x6be   : > { %7939 = vrot.lane.b32.xlu0 %v15638_v51, %s13226_s30  ;;  %21309 = vst [vmem:[#allocation68_spill] sm:$0xff] %v15750_v21  ;;  %21313 = vst [vmem:[#allocation71_spill] sm:$0xff] %v15766_v52 }
 0x6bf   : > { %v15648_v32 = vrot.slane %v5739_v13, %v13326_v18  ;;  %v15650_v59 = vpop.permute.xlu1 %5557  ;;  %v15668_v62 = vsel %vm1456_vm0, %v7153_v23, %v21294_v39  ;;  %v21298_v39 = vrot.slane %v15376_v49, 1  ;;  %v7555_v13 = vcombine.low %v15511_v1, %v15538_v58 }
 0x6c0   : > { %21292 = vst [vmem:[#allocation53_spill] sm:$0xff] %v15650_v59  ;;  %v15653_v10 = vpop.permute.xlu0 %6331  ;;  %v5255_v1 = vcombine.low %v15713_v45, %v15672_v56 }
 0x6c1   : > { %21291 = vst [vmem:[#allocation52_spill] sm:$0xff] %v15648_v32  ;;  %21293 = vst [vmem:[#allocation54_spill] sm:$0xff] %v15653_v10  ;;  %8729 = vrot.lane.b32.xlu1 %v15538_v58, %s13234_s15  ;;  %v15688_v23 = vsel %vm1456_vm0, %v7158_v55, %v21298_v39  ;;  %v15692_v32 = vld [vmem:[#allocation2 + $0x158] sm:$0xff]  ;;  %v15705_v55 = vld [vmem:[#allocation2 + $0x148] sm:$0x3]  ;;  %v5151_v39 = vcombine.low %v15348_v31, %v15376_v49  ;;  %v7176_v58 = vrot.slane %v15674_v14, 1 }
 0x6c2   : > { %7943 = vrot.lane.b32.xlu0 %v15668_v62, %s13226_s30  ;;  %21303 = vst [vmem:[#allocation62_spill] sm:$0xff] %v15705_v55  ;;  %v15724_v49 = vld [vmem:[#allocation2 + $0xe8] sm:$0x3]  ;;  %v5271_v44 = vcombine.low %v15715_v7, %v15692_v32  ;;  %v15737_v31 = vld [vmem:[#allocation2 + $0xd0] sm:$0x3]  ;;  %v7191_v33 = vrot.slane %v15705_v55, 1  ;;  %v15769_v9 = vrot.slane %v5255_v1, %v13303_v11 }
 0x6c3   : > { %v15700_v28 = vpop.permute.xlu1 %5561  ;;  %21305 = vst [vmem:[#allocation64_spill] sm:$0xff] %v15724_v49  ;;  %21307 = vst [vmem:[#allocation66_spill] sm:$0xff] %v15737_v31  ;;  %v15745_v54 = vrot.slane %v5151_v39, %v13303_v11  ;;  %v7171_v27 = vrot.slane %v15724_v49, 1  ;;  %v7186_v55 = vrot.slane %v15726_v36, 1  ;;  %v7166_v39 = vrot.slane %v15737_v31, 1 }
 0x6c4   : > { %21301 = vst [vmem:[#allocation60_spill] sm:$0xff] %v15700_v28  ;;  %v15711_v47 = vpop.permute.xlu0 %6335  ;;  %21314 = vst [vmem:[#allocation72_spill] sm:$0xff] %v15769_v9  ;;  %v15772_v12 = vrot.slane %v5271_v44, %v13303_v11  ;;  %v15779_v16 = vsel %vm1456_vm0, %v21316_v8, %v7176_v58  ;;  %v21317_v49 = vrot.slane %v15672_v56, 1  ;;  %v21319_v34 = vrot.slane %v15692_v32, 1 }
 0x6c5   : > { %21304 = vst [vmem:[#allocation63_spill] sm:$0xff] %v15711_v47  ;;  %5581 = vrot.lane.b32.xlu1 %v15656_v22, %s13226_s30  ;;  %v21321_v44 = vrot.slane %v15690_v43, 1  ;;  %v15801_v8 = vrot.slane %v5239_v37, %v13303_v11  ;;  %v21329_v37 = vrot.slane %v15715_v7, 1 }
 0x6c6   : > { %7947 = vrot.lane.b32.xlu0 %v15688_v23, %s13226_s30  ;;  %21315 = vst [vmem:[#allocation73_spill] sm:$0xff] %v15772_v12  ;;  %v15784_v31 = vsel %vm1456_vm0, %v21317_v49, %v7181_v61  ;;  %v15789_v1 = vsel %vm1456_vm0, %v21319_v34, %v7196_v57  ;;  %v5199_v49 = vcombine.low %v15766_v52, %v15745_v54 }
 0x6c7   : > { %v15741_v0 = vpop.permute.xlu1 %5565  ;;  %21318 = vst [vmem:[#allocation74_spill] sm:$0xff] %v15784_v31  ;;  %21320 = vst [vmem:[#allocation75_spill] sm:$0xff] %v15789_v1  ;;  %v15794_v36 = vsel %vm1456_vm0, %v21321_v44, %v7191_v33  ;;  %v5335_v57 = vcombine.low %v15772_v12, %v15750_v21  ;;  %v7523_v61 = vcombine.low %v15465_v35, %v15483_v41  ;;  %v21327_v44 = vrot.slane %v15713_v45, 1 }
 0x6c8   : > { %21308 = vst [vmem:[#allocation67_spill] sm:$0xff] %v15741_v0  ;;  %v15752_v14 = vpop.permute.xlu0 %6339  ;;  %21322 = vst [vmem:[#allocation76_spill] sm:$0xff] %v15794_v36  ;;  %v7691_v58 = vcombine.low %v15794_v36, %v15760_v50  ;;  %v15810_v33 = vrot.slane %v7555_v13, %v13303_v11  ;;  %v15822_v50 = vsel %vm1456_vm0, %v21329_v37, %v7186_v55  ;;  %v21331_v12 = vrot.slane %v15656_v22, 1 }
 0x6c9   : > { %21310 = vst [vmem:[#allocation69_spill] sm:$0xff] %v15752_v14  ;;  %5585 = vrot.lane.b32.xlu1 %v15713_v45, %s13226_s30  ;;  %21324 = vst [vmem:[#allocation78_spill] sm:$0xff] %v15801_v8  ;;  %v15817_v36 = vsel %vm1456_vm0, %v21327_v44, %v7171_v27  ;;  %v7675_v27 = vcombine.low %v15822_v50, %v15789_v1  ;;  %v5303_v44 = vcombine.low %v15801_v8, %v15769_v9 }
 0x6ca   : > { %8699 = vrot.lane.b32.xlu0 %v15556_v15, %s13234_s15  ;;  %21325 = vst [vmem:[#allocation79_spill] sm:$0xff] %v15810_v33  ;;  %21328 = vst [vmem:[#allocation81_spill] sm:$0xff] %v15817_v36  ;;  %v15829_v13 = vsel %vm1456_vm0, %v21331_v12, %v7166_v39  ;;  %v7659_v21 = vcombine.low %v15817_v36, %v15784_v31  ;;  %v21332_v55 = vcombine.low %v15454_v6, %v15475_v5 }
 0x6cb   : > { %v15796_v15 = vpop.permute.xlu1 %5569  ;;  %21330 = vst [vmem:[#allocation82_spill] sm:$0xff] %v15822_v50  ;;  %v21334_v12 = vcombine.low %v15497_v17, %v15526_v20  ;;  %v5931_v31 = vcombine.low %v15628_v29, %v15700_v28  ;;  %v7643_v50 = vcombine.low %v15829_v13, %v15779_v16  ;;  %v5915_v1 = vcombine.low %v15601_v38, %v15650_v59 }
 0x6cc   : > { %21323 = vst [vmem:[#allocation77_spill] sm:$0xff] %v15796_v15  ;;  %v15812_v34 = vpop.permute.xlu0 %6343  ;;  %v15841_v37 = vrot.slane %v21332_v55, %v13303_v11  ;;  %v15860_v8 = vrot.slane %v7691_v58, %v13303_v11  ;;  %v15866_v9 = vrot.slane %v5335_v57, %v13326_v18  ;;  %v15869_v29 = vrot.slane %v7523_v61, %v13303_v11 }
 0x6cd   : > { %21326 = vst [vmem:[#allocation80_spill] sm:$0xff] %v15812_v34  ;;  %5589 = vrot.lane.b32.xlu1 %v15658_v4, %s13226_s30  ;;  %v15847_v39 = vrot.slane %v21334_v12, %v13303_v11  ;;  %v15863_v12 = vrot.slane %v5199_v49, %v13326_v18  ;;  %v15880_v58 = vrot.slane %v7659_v21, %v13303_v11 }
 0x6ce   : > { %21333 = vst [vmem:[#allocation83_spill] sm:$0xff] %v15841_v37  ;;  %8703 = vrot.lane.b32.xlu0 %v15566_v40, %s13234_s15  ;;  %21337 = vst [vmem:[#allocation86_spill] sm:$0xff] %v15860_v8  ;;  %v15883_v49 = vrot.slane %v7675_v27, %v13303_v11  ;;  %v21344_v57 = vcombine.low %v15363_v3, %v15366_v26  ;;  %v15892_v52 = vrot.slane %v5303_v44, %v13326_v18 }
 0x6cf   : > { %21335 = vst [vmem:[#allocation84_spill] sm:$0xff] %v15847_v39  ;;  %v15857_v55 = vpop.permute.xlu1 %5573  ;;  %21338 = vst [vmem:[#allocation87_spill] sm:$0xff] %v15863_v12  ;;  %v7603_v28 = vcombine.low %v15847_v39, %v15810_v33  ;;  %v15895_v59 = vrot.slane %v5931_v31, %v13303_v11  ;;  %v6439_v38 = vcombine.low %v15653_v10, %v15752_v14  ;;  %v21353_v26 = vrot.slane %v15198_v42, 2  ;;  %v21462_v33 = vld [vmem:[#allocation71_spill] sm:$0xff] }
 0x6d0   : > { %21336 = vst [vmem:[#allocation85_spill] sm:$0xff] %v15857_v55  ;;  %21339 = vst [vmem:[#allocation88_spill] sm:$0xff] %v15866_v9  ;;  %v15873_v36 = vpop.permute.xlu0 %6347  ;;  %v15889_v61 = vrot.slane %v21344_v57, %v13326_v18  ;;  %v5947_v21 = vcombine.low %v15741_v0, %v15857_v55  ;;  %v15904_v27 = vrot.slane %v7643_v50, %v13303_v11  ;;  %v21355_v10 = vrot.slane %v15340_v25, 2 }
 0x6d1   : > { %21340 = vst [vmem:[#allocation89_spill] sm:$0xff] %v15869_v29  ;;  %21341 = vst [vmem:[#allocation90_spill] sm:$0xff] %v15873_v36  ;;  %5593 = vrot.lane.b32.xlu1 %v15672_v56, %s13226_s30  ;;  %v15907_v57 = vrot.slane %v5915_v1, %v13303_v11  ;;  %v7739_v31 = vcombine.low %v15883_v49, %v15860_v8  ;;  %v6423_v55 = vcombine.low %v15631_v48, %v15711_v47 }
 0x6d2   : > { %21342 = vst [vmem:[#allocation91_spill] sm:$0xff] %v15880_v58  ;;  %21343 = vst [vmem:[#allocation92_spill] sm:$0xff] %v15883_v49  ;;  %8707 = vrot.lane.b32.xlu0 %v15576_v46, %s13234_s15  ;;  %v21352_v1 = vrot.slane %v15300_v63, 2  ;;  %v7571_v48 = vcombine.low %v15841_v37, %v15869_v29  ;;  %v7707_v47 = vcombine.low %v15904_v27, %v15880_v58  ;;  %v21399_v58 = vld [vmem:[#allocation23_spill] sm:$0xff] }
 0x6d3   : > { %21345 = vst [vmem:[#allocation93_spill] sm:$0xff] %v15889_v61  ;;  %21346 = vst [vmem:[#allocation94_spill] sm:$0xff] %v15892_v52  ;;  %v15909_v44 = vpop.permute.xlu1 %5577  ;;  %v21356_v61 = vrot.slane %v15228_v60, 2  ;;  %v5979_v42 = vcombine.low %v15907_v57, %v15895_v59  ;;  %v15949_v60 = vrot.slane %v5947_v21, %v13303_v11  ;;  %v15967_v21 = vrot.slane %v6423_v55, %v13303_v11 }
 0x6d4   : > { %21347 = vst [vmem:[#allocation95_spill] sm:$0xff] %v15895_v59  ;;  %21348 = vst [vmem:[#allocation96_spill] sm:$0xff] %v15904_v27  ;;  %v15919_v14 = vpop.permute.xlu0 %6351  ;;  %v5963_v50 = vcombine.low %v15796_v15, %v15909_v44  ;;  %v15928_v49 = vsel %vm2635_vm8, %v21353_v26, %v21352_v1  ;;  %v15946_v26 = vrot.slane %v6439_v38, %v13303_v11 }
 0x6d5   : > { %21349 = vst [vmem:[#allocation97_spill] sm:$0xff] %v15907_v57  ;;  %21350 = vst [vmem:[#allocation98_spill] sm:$0xff] %v15909_v44  ;;  %v15935_v0 = vsel %vm2635_vm8, %v21356_v61, %v21355_v10  ;;  %5597 = vrot.lane.b32.xlu1 %v15715_v7, %s13226_s30  ;;  %v6455_v61 = vcombine.low %v15812_v34, %v15919_v14  ;;  %v15961_v15 = vrot.slane %v7603_v28, %v13326_v18 }
 0x6d6   : > { %21351 = vst [vmem:[#allocation99_spill] sm:$0xff] %v15919_v14  ;;  %21354 = vst [vmem:[#allocation100_spill] sm:$0xff] %v15928_v49  ;;  %v15952_v10 = vrot.slane %v5963_v50, %v13303_v11  ;;  %8711 = vrot.lane.b32.xlu0 %v15590_v53, %s13234_s15  ;;  %v15964_v38 = vrot.slane %v7739_v31, %v13326_v18  ;;  %v15978_v28 = vrot.slane %v7571_v48, %v13326_v18 }
 0x6d7   : > { %21357 = vst [vmem:[#allocation101_spill] sm:$0xff] %v15935_v0  ;;  %21358 = vst [vmem:[#allocation102_spill] sm:$0xff] %v15946_v26  ;;  %v15958_v1 = vpop.permute.xlu1 %6329  ;;  %v15981_v31 = vrot.slane %v7707_v47, %v13326_v18  ;;  %v15984_v55 = vrot.slane %v5979_v42, %v13326_v18  ;;  %v15994_v34 = vrot.slane %v6455_v61, %v13303_v11  ;;  %v21400_v49 = vrot.slane %v15713_v45, 1 }
 0x6d8   : > { %21359 = vst [vmem:[#allocation103_spill] sm:$0xff] %v15949_v60  ;;  %21360 = vst [vmem:[#allocation104_spill] sm:$0xff] %v15952_v10  ;;  %v6011_v50 = vcombine.low %v15949_v60, %v15952_v10  ;;  %v15971_v57 = vpop.permute.xlu0 %6355  ;;  %v6487_v60 = vcombine.low %v15967_v21, %v15946_v26  ;;  %v7524_v44 = vcombine.high %v15465_v35, %v15483_v41  ;;  %v21393_v41 = vld [vmem:[#allocation22_spill] sm:$0xff] }
 0x6d9   : > { %21361 = vst [vmem:[#allocation105_spill] sm:$0xff] %v15958_v1  ;;  %21362 = vst [vmem:[#allocation106_spill] sm:$0xff] %v15961_v15  ;;  %v6471_v59 = vcombine.low %v15873_v36, %v15971_v57  ;;  %5601 = vrot.lane.b32.xlu1 %v15690_v43, %s13226_s30  ;;  %v21387_v36 = vrot.slane %v15656_v22, 1  ;;  %v7251_v12 = vcombine.low %v15566_v40, %v15590_v53  ;;  %v7168_v52 = vrot.slane %v21393_v41, 1 }
 0x6da   : > { %21363 = vst [vmem:[#allocation107_spill] sm:$0xff] %v15964_v38  ;;  %21364 = vst [vmem:[#allocation108_spill] sm:$0xff] %v15967_v21  ;;  %v15989_v10 = vrot.slane %v6011_v50, %v13326_v18  ;;  %8715 = vrot.lane.b32.xlu0 %v15614_v2, %s13234_s15  ;;  %v16018_v42 = vrot.slane %v6487_v60, %v13326_v18  ;;  %v21390_v38 = vld [vmem:[#allocation30_spill] sm:$0xff]  ;;  %v5200_v39 = vcombine.high %v21462_v33, %v15745_v54  ;;  %v21466_v33 = vld [vmem:[#allocation81_spill] sm:$0xff] }
 0x6db   : > { %21365 = vst [vmem:[#allocation109_spill] sm:$0xff] %v15971_v57  ;;  %21366 = vst [vmem:[#allocation110_spill] sm:$0xff] %v15978_v28  ;;  %v15997_v48 = vrot.slane %v6471_v59, %v13303_v11  ;;  %v15999_v47 = vpop.permute.xlu1 %6333  ;;  %v9509_v59 = vrot.slane %v15248_v30, 2  ;;  %v9487_v28 = vrot.slane %v21390_v38, 2  ;;  %v16095_v0 = vsel %vm1456_vm0, %v7168_v52, %v21400_v49 }
 0x6dc   : > { %21367 = vst [vmem:[#allocation111_spill] sm:$0xff] %v15981_v31  ;;  %21368 = vst [vmem:[#allocation112_spill] sm:$0xff] %v15984_v55  ;;  %v16007_v26 = vpop.permute.xlu0 %5579  ;;  %v21378_v55 = vrot.slane %v15360_v19, 2  ;;  %v7252_v31 = vcombine.high %v15566_v40, %v15590_v53  ;;  %v21402_v53 = vld [vmem:[#allocation24_spill] sm:$0xff] }
 0x6dd   : > { %21369 = vst [vmem:[#allocation113_spill] sm:$0xff] %v15989_v10  ;;  %21370 = vst [vmem:[#allocation114_spill] sm:$0xff] %v15994_v34  ;;  %v6519_v61 = vcombine.low %v15994_v34, %v15997_v48  ;;  %5605 = vrot.lane.b32.xlu1 %v15692_v32, %s13226_s30  ;;  %v4983_v40 = vcombine.low %v21393_v41, %v21402_v53 }
 0x6de   : > { %21371 = vst [vmem:[#allocation115_spill] sm:$0xff] %v15997_v48  ;;  %21372 = vst [vmem:[#allocation116_spill] sm:$0xff] %v15999_v47  ;;  %8719 = vrot.lane.b32.xlu0 %v15638_v51, %s13234_s15  ;;  %v16030_v10 = vsel %vm2635_vm8, %v9509_v59, %v21378_v55  ;;  %v21382_v55 = vld [vmem:[#allocation7_spill] sm:$0xff] }
 0x6df   : > { %21373 = vst [vmem:[#allocation117_spill] sm:$0xff] %v16007_v26  ;;  %21374 = vst [vmem:[#allocation118_spill] sm:$0xff] %v16018_v42  ;;  %v16021_v50 = vrot.slane %v6519_v61, %v13326_v18  ;;  %v16023_v21 = vpop.permute.xlu1 %6337  ;;  %v21383_v61 = vld [vmem:[#allocation10_spill] sm:$0xff]  ;;  %v21385_v42 = vld [vmem:[#allocation17_spill] sm:$0xff] }
 0x6e0   : > { %21376 = vst [vmem:[#allocation120_spill] sm:$0xff] %v16023_v21  ;;  %v16025_v14 = vpop.permute.xlu0 %5583  ;;  %21379 = vst [vmem:[#allocation122_spill] sm:$0xff] %v16030_v10  ;;  %v4927_v59 = vcombine.low %v21383_v61, %v21382_v55  ;;  %v21389_v61 = vld [vmem:[#allocation5_spill] sm:$0xff]  ;;  %v4967_v8 = vcombine.low %v21385_v42, %v21399_v58 }
 0x6e1   : > { %21375 = vst [vmem:[#allocation119_spill] sm:$0xff] %v16021_v50  ;;  %21377 = vst [vmem:[#allocation121_spill] sm:$0xff] %v16025_v14  ;;  %5609 = vrot.lane.b32.xlu1 %v15660_v24, %s13226_s30  ;;  %v7163_v50 = vrot.slane %v21385_v42, 1  ;;  %v21405_v49 = vrot.slane %v21389_v61, 2 }
 0x6e2   : > { %8723 = vrot.lane.b32.xlu0 %v15668_v62, %s13234_s15  ;;  %v16065_v55 = vrot.slane %v4927_v59, %v13326_v18 }
 0x6e3   : > { %v16038_v30 = vpop.permute.xlu1 %6341  ;;  %v16056_v57 = vsel %vm1456_vm0, %v7163_v50, %v21387_v36  ;;  %v7508_v36 = vcombine.high %v15454_v6, %v15475_v5  ;;  %v21391_v50 = vld [vmem:[#allocation39_spill] sm:$0xff]  ;;  %v21395_v6 = vld [vmem:[#allocation18_spill] sm:$0xff]  ;;  %v21396_v5 = vld [vmem:[#allocation20_spill] sm:$0xff] }
 0x6e4   : > { %21380 = vst [vmem:[#allocation123_spill] sm:$0xff] %v16038_v30  ;;  %v16040_v60 = vpop.permute.xlu0 %5587  ;;  %21388 = vst [vmem:[#allocation17_spill] sm:$0xff] %v16065_v55  ;;  %v7235_v15 = vcombine.low %v21391_v50, %v15576_v46  ;;  %v7236_v59 = vcombine.high %v21391_v50, %v15576_v46  ;;  %v21397_v9 = vcombine.low %v21395_v6, %v21396_v5 }
 0x6e5   : > { %21381 = vst [vmem:[#allocation124_spill] sm:$0xff] %v16040_v60  ;;  %6361 = vrot.lane.b32.xlu1 %v15656_v22, %s13234_s15  ;;  %21401 = vst [vmem:[#allocation18_spill] sm:$0xff] %v16095_v0  ;;  %v16103_v6 = vrot.slane %v7524_v44, %v13303_v11  ;;  %v16114_v5 = vsel %vm2635_vm8, %v21405_v49, %v9487_v28  ;;  %v16117_v10 = vrot.slane %v7508_v36, %v13303_v11 }
 0x6e6   : > { %8727 = vrot.lane.b32.xlu0 %v15688_v23, %s13234_s15  ;;  %v16088_v27 = vrot.slane %v21397_v9, %v13326_v18  ;;  %v6711_v9 = vcombine.low %v15999_v47, %v16038_v30  ;;  %21406 = vst [vmem:[#allocation23_spill] sm:$0xff] %v16114_v5  ;;  %v16120_v44 = vrot.slane %v7235_v15, %v13303_v11  ;;  %v7173_v30 = vrot.slane %v21399_v58, 1 }
 0x6e7   : > { %v16048_v34 = vpop.permute.xlu1 %6345  ;;  %21404 = vst [vmem:[#allocation20_spill] sm:$0xff] %v16103_v6  ;;  %21407 = vst [vmem:[#allocation24_spill] sm:$0xff] %v16117_v10  ;;  %v16123_v50 = vrot.slane %v7251_v12, %v13303_v11  ;;  %v16129_v52 = vrot.slane %v7236_v59, %v13303_v11  ;;  %v16132_v46 = vrot.slane %v7252_v31, %v13303_v11  ;;  %v21412_v12 = vrot.slane %v15658_v4, 1  ;;  %v21426_v10 = vld [vmem:[#allocation31_spill] sm:$0xff] }
 0x6e8   : > { %21384 = vst [vmem:[#allocation7_spill] sm:$0xff] %v16048_v34  ;;  %v16051_v48 = vpop.permute.xlu0 %5591  ;;  %21398 = vst [vmem:[#allocation22_spill] sm:$0xff] %v16088_v27  ;;  %v6695_v28 = vcombine.low %v15958_v1, %v16023_v21  ;;  %v16139_v15 = vrot.slane %v4967_v8, %v13303_v11  ;;  %v7178_v59 = vrot.slane %v21402_v53, 1  ;;  %v16150_v31 = vrot.slane %v4983_v40, %v13303_v11 }
 0x6e9   : > { %21386 = vst [vmem:[#allocation10_spill] sm:$0xff] %v16051_v48  ;;  %6365 = vrot.lane.b32.xlu1 %v15713_v45, %s13234_s15  ;;  %21409 = vst [vmem:[#allocation126_spill] sm:$0xff] %v16129_v52  ;;  %v16144_v49 = vsel %vm1456_vm0, %v7173_v30, %v21412_v12  ;;  %v4968_v1 = vcombine.high %v21385_v42, %v21399_v58  ;;  %v16159_v30 = vrot.slane %v6711_v9, %v13303_v11 }
 0x6ea   : > { %7951 = vrot.lane.b32.xlu0 %v16056_v57, %s13226_s30  ;;  %21410 = vst [vmem:[#allocation127_spill] sm:$0xff] %v16132_v46  ;;  %v5795_v42 = vcombine.low %v16025_v14, %v16051_v48  ;;  %v4984_v9 = vcombine.high %v21393_v41, %v21402_v53  ;;  %v5779_v41 = vcombine.low %v16007_v26, %v16040_v60  ;;  %v21417_v53 = vrot.slane %v15672_v56, 1  ;;  %v21425_v60 = vld [vmem:[#allocation28_spill] sm:$0xff] }
 0x6eb   : > { %v16075_v35 = vpop.permute.xlu1 %6349  ;;  %21413 = vst [vmem:[#allocation129_spill] sm:$0xff] %v16159_v30  ;;  %v7188_v6 = vrot.slane %v21425_v60, 1  ;;  %v5032_v29 = vcombine.high %v16139_v15, %v16150_v31  ;;  %v21437_v52 = vrot.slane %v15690_v43, 1 }
 0x6ec   : > { %21392 = vst [vmem:[#allocation30_spill] sm:$0xff] %v16075_v35  ;;  %v16082_v38 = vpop.permute.xlu0 %5595  ;;  %v16193_v21 = vsel %vm1456_vm0, %v7178_v59, %v21417_v53  ;;  %v21421_v59 = vld [vmem:[#allocation25_spill] sm:$0xff] }
 0x6ed   : > { %21394 = vst [vmem:[#allocation39_spill] sm:$0xff] %v16082_v38  ;;  %6369 = vrot.lane.b32.xlu1 %v15658_v4, %s13234_s15  ;;  %21418 = vst [vmem:[#allocation133_spill] sm:$0xff] %v16193_v21  ;;  %v7183_v53 = vrot.slane %v21421_v59, 1 }
 0x6ee   : > { %7955 = vrot.lane.b32.xlu0 %v16095_v0, %s13226_s30 }
 0x6ef   : > { %v16125_v47 = vpop.permute.xlu1 %6353 }
 0x6f0   : > { %21408 = vst [vmem:[#allocation125_spill] sm:$0xff] %v16125_v47  ;;  %v16136_v36 = vpop.permute.xlu0 %5599  ;;  %v6727_v12 = vcombine.low %v16048_v34, %v16125_v47  ;;  %v16180_v47 = vrot.slane %v6695_v28, %v13303_v11  ;;  %v5031_v28 = vcombine.low %v16139_v15, %v16150_v31  ;;  %v21432_v31 = vld [vmem:[#allocation29_spill] sm:$0xff] }
 0x6f1   : > { %21411 = vst [vmem:[#allocation128_spill] sm:$0xff] %v16136_v36  ;;  %6373 = vrot.lane.b32.xlu1 %v15672_v56, %s13234_s15 }
 0x6f2   : > { %7959 = vrot.lane.b32.xlu0 %v16144_v49, %s13226_s30  ;;  %21415 = vst [vmem:[#allocation131_spill] sm:$0xff] %v16180_v47  ;;  %v6759_v34 = vcombine.low %v16180_v47, %v16159_v30  ;;  %v16202_v48 = vrot.slane %v6727_v12, %v13303_v11  ;;  %v4982_v47 = vrot.slane %v4968_v1, %v13303_v11 }
 0x6f3   : > { %v16171_v8 = vpop.permute.xlu1 %6357  ;;  %v4998_v12 = vrot.slane %v4984_v9, %v13303_v11  ;;  %v21428_v9 = vrot.slane %v15715_v7, 1 }
 0x6f4   : > { %21414 = vst [vmem:[#allocation130_spill] sm:$0xff] %v16171_v8  ;;  %v16182_v40 = vpop.permute.xlu0 %5603  ;;  %v6743_v58 = vcombine.low %v16075_v35, %v16171_v8  ;;  %21419 = vst [vmem:[#allocation134_spill] sm:$0xff] %v16202_v48  ;;  %v16211_v35 = vrot.slane %v5795_v42, %v13303_v11  ;;  %v5015_v42 = vcombine.low %v21425_v60, %v21426_v10 }
 0x6f5   : > { %21416 = vst [vmem:[#allocation132_spill] sm:$0xff] %v16182_v40  ;;  %6377 = vrot.lane.b32.xlu1 %v15715_v7, %s13234_s15  ;;  %v5811_v8 = vcombine.low %v16082_v38, %v16182_v40  ;;  %v16229_v38 = vrot.slane %v5779_v41, %v13303_v11  ;;  %v16244_v40 = vrot.slane %v6759_v34, %v13326_v18 }
 0x6f6   : > { %v16205_v14 = vrot.slane %v6743_v58, %v13303_v11  ;;  %7963 = vrot.lane.b32.xlu0 %v16193_v21, %s13226_s30  ;;  %21422 = vst [vmem:[#allocation25_spill] sm:$0xff] %v16211_v35  ;;  %v4999_v41 = vcombine.low %v21421_v59, %v21432_v31  ;;  %v5023_v46 = vrot.slane %v5015_v42, %v13303_v11  ;;  %v21440_v42 = vld [vmem:[#allocation33_spill] sm:$0xff] }
 0x6f7   : > { %v16215_v26 = vpop.permute.xlu1 %7921  ;;  %21427 = vst [vmem:[#allocation28_spill] sm:$0xff] %v16229_v38  ;;  %21430 = vst [vmem:[#allocation138_spill] sm:$0xff] %v16244_v40 }
 0x6f8   : > { %21420 = vst [vmem:[#allocation135_spill] sm:$0xff] %v16205_v14  ;;  %21423 = vst [vmem:[#allocation136_spill] sm:$0xff] %v16215_v26  ;;  %v6791_v58 = vcombine.low %v16202_v48, %v16205_v14  ;;  %v16221_v30 = vpop.permute.xlu0 %5607  ;;  %v16236_v48 = vsel %vm1456_vm0, %v7183_v53, %v21428_v9  ;;  %v16241_v14 = vrot.slane %v5031_v28, %v13326_v18 }
 0x6f9   : > { %21424 = vst [vmem:[#allocation137_spill] sm:$0xff] %v16221_v30  ;;  %v5827_v1 = vcombine.low %v16136_v36, %v16221_v30  ;;  %6381 = vrot.lane.b32.xlu1 %v15690_v43, %s13234_s15  ;;  %v5016_v53 = vcombine.high %v21425_v60, %v21426_v10  ;;  %v5843_v9 = vcombine.low %v16229_v38, %v16211_v35 }
 0x6fa   : > { %21429 = vst [vmem:[#allocation31_spill] sm:$0xff] %v16241_v14  ;;  %v16247_v15 = vrot.slane %v6791_v58, %v13326_v18  ;;  %7967 = vrot.lane.b32.xlu0 %v16236_v48, %s13226_s30  ;;  %v16258_v28 = vrot.slane %v5811_v8, %v13303_v11  ;;  %v5047_v36 = vcombine.low %v4982_v47, %v4998_v12 }
 0x6fb   : > { %v16261_v34 = vrot.slane %v5827_v1, %v13303_v11  ;;  %v16263_v58 = vpop.permute.xlu1 %7925  ;;  %v5000_v60 = vcombine.high %v21421_v59, %v21432_v31  ;;  %v5048_v38 = vcombine.high %v4982_v47, %v4998_v12  ;;  %v7540_v8 = vcombine.high %v15497_v17, %v15526_v20  ;;  %v21439_v12 = vld [vmem:[#allocation36_spill] sm:$0xff] }
 0x6fc   : > { %21431 = vst [vmem:[#allocation139_spill] sm:$0xff] %v16247_v15  ;;  %21433 = vst [vmem:[#allocation29_spill] sm:$0xff] %v16258_v28  ;;  %v16267_v37 = vpop.permute.xlu0 %6359  ;;  %v7267_v1 = vcombine.low %v15614_v2, %v15668_v62  ;;  %v16281_v30 = vsel %vm1456_vm0, %v7188_v6, %v21437_v52  ;;  %v7268_v47 = vcombine.high %v15614_v2, %v15668_v62  ;;  %v7193_v17 = vrot.slane %v21432_v31, 1 }
 0x6fd   : > { %21434 = vst [vmem:[#allocation140_spill] sm:$0xff] %v16261_v34  ;;  %21435 = vst [vmem:[#allocation141_spill] sm:$0xff] %v16263_v58  ;;  %v5875_v35 = vcombine.low %v16258_v28, %v16261_v34  ;;  %6385 = vrot.lane.b32.xlu1 %v15692_v32, %s13234_s15  ;;  %v5007_v20 = vrot.slane %v4999_v41, %v13303_v11  ;;  %v5030_v59 = vrot.slane %v5016_v53, %v13303_v11 }
 0x6fe   : > { %21436 = vst [vmem:[#allocation142_spill] sm:$0xff] %v16267_v37  ;;  %21438 = vst [vmem:[#allocation143_spill] sm:$0xff] %v16281_v30  ;;  %7971 = vrot.lane.b32.xlu0 %v16281_v30, %s13226_s30  ;;  %v7556_v40 = vcombine.high %v21440_v42, %v21439_v12  ;;  %v7283_v6 = vcombine.low %v15638_v51, %v15688_v23  ;;  %v16297_v52 = vrot.slane %v5843_v9, %v13326_v18 }
 0x6ff   : > { %v16300_v62 = vrot.slane %v5875_v35, %v13326_v18  ;;  %v16302_v2 = vpop.permute.xlu1 %7929  ;;  %v7284_v31 = vcombine.high %v15638_v51, %v15688_v23  ;;  %v5063_v53 = vcombine.low %v5007_v20, %v5023_v46  ;;  %v5064_v15 = vcombine.high %v5007_v20, %v5023_v46 }
 0x700   : > { %21441 = vst [vmem:[#allocation36_spill] sm:$0xff] %v16297_v52  ;;  %21443 = vst [vmem:[#allocation144_spill] sm:$0xff] %v16302_v2  ;;  %v16306_v41 = vpop.permute.xlu0 %6363  ;;  %v5014_v12 = vrot.slane %v5000_v60, %v13303_v11  ;;  %v21445_v9 = vrot.slane %v15692_v32, 1  ;;  %v16319_v35 = vrot.slane %v5032_v29, %v13326_v18  ;;  %v16322_v51 = vrot.slane %v5047_v36, %v13326_v18 }
 0x701   : > { %21442 = vst [vmem:[#allocation33_spill] sm:$0xff] %v16300_v62  ;;  %21444 = vst [vmem:[#allocation145_spill] sm:$0xff] %v16306_v41  ;;  %6389 = vrot.lane.b32.xlu1 %v15660_v24, %s13234_s15  ;;  %v16325_v23 = vrot.slane %v7540_v8, %v13303_v11  ;;  %v16330_v60 = vrot.slane %v5048_v38, %v13326_v18  ;;  %v16333_v20 = vrot.slane %v7556_v40, %v13303_v11 }
 0x702   : > { %v16314_v28 = vsel %vm1456_vm0, %v7193_v17, %v21445_v9  ;;  %21446 = vst [vmem:[#allocation146_spill] sm:$0xff] %v16319_v35  ;;  %21447 = vst [vmem:[#allocation147_spill] sm:$0xff] %v16322_v51  ;;  %v5079_v46 = vcombine.low %v5014_v12, %v5030_v59  ;;  %v5080_v17 = vcombine.high %v5014_v12, %v5030_v59  ;;  %v7198_v8 = vrot.slane %v21426_v10, 1 }
 0x703   : > { %21448 = vst [vmem:[#allocation148_spill] sm:$0xff] %v16325_v23  ;;  %7975 = vrot.lane.b32.xlu0 %v16314_v28, %s13226_s30  ;;  %21449 = vst [vmem:[#allocation149_spill] sm:$0xff] %v16330_v60  ;;  %v16336_v29 = vrot.slane %v7267_v1, %v13303_v11  ;;  %v16339_v36 = vrot.slane %v7283_v6, %v13303_v11  ;;  %v16341_v9 = vpop.permute.xlu1 %7933  ;;  %v16345_v42 = vrot.slane %v7268_v47, %v13303_v11 }
 0x704   : > { %21450 = vst [vmem:[#allocation150_spill] sm:$0xff] %v16333_v20  ;;  %21451 = vst [vmem:[#allocation151_spill] sm:$0xff] %v16341_v9  ;;  %v16348_v38 = vrot.slane %v7284_v31, %v13303_v11  ;;  %v16350_v59 = vpop.permute.xlu0 %6367  ;;  %v16353_v40 = vrot.slane %v5063_v53, %v13326_v18  ;;  %v16356_v1 = vrot.slane %v5064_v15, %v13326_v18  ;;  %v21457_v31 = vrot.slane %v15660_v24, 1 }
 0x705   : > { %21452 = vst [vmem:[#allocation152_spill] sm:$0xff] %v16345_v42  ;;  %21454 = vst [vmem:[#allocation154_spill] sm:$0xff] %v16350_v59  ;;  %v7387_v10 = vcombine.low %v16095_v0, %v16193_v21  ;;  %v7388_v47 = vcombine.high %v16095_v0, %v16193_v21  ;;  %7953 = vrot.lane.b32.xlu1 %v15829_v13, %s13226_s30  ;;  %v7371_v15 = vcombine.low %v16056_v57, %v16144_v49  ;;  %v21476_v42 = vld [vmem:[#allocation6_spill] sm:$0xff] }
 0x706   : > { %21453 = vst [vmem:[#allocation153_spill] sm:$0xff] %v16348_v38  ;;  %21455 = vst [vmem:[#allocation155_spill] sm:$0xff] %v16353_v40  ;;  %v16369_v53 = vsel %vm1456_vm0, %v7198_v8, %v21457_v31  ;;  %v7372_v12 = vcombine.high %v16056_v57, %v16144_v49  ;;  %v16378_v6 = vrot.slane %v5079_v46, %v13326_v18 }
 0x707   : > { %21456 = vst [vmem:[#allocation156_spill] sm:$0xff] %v16356_v1  ;;  %21458 = vst [vmem:[#allocation157_spill] sm:$0xff] %v16369_v53  ;;  %7979 = vrot.lane.b32.xlu0 %v16369_v53, %s13226_s30  ;;  %v16381_v52 = vrot.slane %v5080_v17, %v13326_v18  ;;  %v16387_v31 = vpop.permute.xlu1 %7937  ;;  %v7644_v34 = vcombine.high %v15829_v13, %v15779_v16  ;;  %v5096_v62 = vcombine.high %v16241_v14, %v16353_v40  ;;  %v21467_v17 = vld [vmem:[#allocation8_spill] sm:$0xff] }
 0x708   : > { %21459 = vst [vmem:[#allocation158_spill] sm:$0xff] %v16378_v6  ;;  %21461 = vst [vmem:[#allocation160_spill] sm:$0xff] %v16387_v31  ;;  %v16397_v21 = vpop.permute.xlu0 %6371  ;;  %v5098_v8 = vcombine.high %v16319_v35, %v16356_v1  ;;  %v16406_v20 = vrot.slane %v7387_v10, %v13303_v11  ;;  %v16409_v54 = vrot.slane %v7388_v47, %v13303_v11  ;;  %v21481_v35 = vld [vmem:[#allocation14_spill] sm:$0xff] }
 0x709   : > { %21460 = vst [vmem:[#allocation159_spill] sm:$0xff] %v16381_v52  ;;  %21463 = vst [vmem:[#allocation71_spill] sm:$0xff] %v16397_v21  ;;  %7957 = vrot.lane.b32.xlu1 %v21466_v33, %s13226_s30  ;;  %v21468_v46 = vcombine.high %v15363_v3, %v21467_v17  ;;  %v16420_v40 = vrot.slane %v7371_v15, %v13303_v11  ;;  %v16423_v23 = vrot.slane %v7372_v12, %v13303_v11  ;;  %v21475_v17 = vld [vmem:[#allocation15_spill] sm:$0xff] }
 0x70a   : > { %21464 = vst [vmem:[#allocation161_spill] sm:$0xff] %v16406_v20  ;;  %21465 = vst [vmem:[#allocation162_spill] sm:$0xff] %v16409_v54  ;;  %v5100_v10 = vcombine.high %v16322_v51, %v16378_v6  ;;  %v5102_v47 = vcombine.high %v16330_v60, %v16381_v52  ;;  %v16434_v3 = vrot.slane %v7644_v34, %v13303_v11  ;;  %v21478_v60 = vld [vmem:[#allocation74_spill] sm:$0xff] }
 0x70b   : > { %v16417_v14 = vrot.slane %v21468_v46, %v13326_v18  ;;  %21470 = vst [vmem:[#allocation163_spill] sm:$0xff] %v16420_v40  ;;  %21471 = vst [vmem:[#allocation164_spill] sm:$0xff] %v16423_v23  ;;  %8733 = vrot.lane.b32.xlu0 %v15829_v13, %s13234_s15  ;;  %v16431_v38 = vpop.permute.xlu1 %7941  ;;  %v16437_v15 = vrot.slane %v5200_v39, %v13326_v18  ;;  %v13196_v46 = vld [vmem:[#allocation2 + $0x68] sm:$0xff]  ;;  %v5152_v13 = vcombine.high %v21476_v42, %v21475_v17  ;;  %v21480_v39 = vld [vmem:[#allocation11_spill] sm:$0xff] }
 0x70c   : > { %21472 = vst [vmem:[#allocation165_spill] sm:$0xff] %v16431_v38  ;;  %21473 = vst [vmem:[#allocation166_spill] sm:$0xff] %v16434_v3  ;;  %v5136_v12 = vcombine.high %v13196_v46, %v15360_v19  ;;  %v7403_v51 = vcombine.low %v16236_v48, %v16314_v28  ;;  %v16444_v6 = vpop.permute.xlu0 %6375  ;;  %v21479_v34 = vcombine.high %v16088_v27, %v16065_v55  ;;  %v21488_v17 = vld [vmem:[#allocation13_spill] sm:$0xff]  ;;  %v21489_v27 = vld [vmem:[#allocation16_spill] sm:$0xff] }
 0x70d   : > { %21469 = vst [vmem:[#allocation8_spill] sm:$0xff] %v16417_v14  ;;  %21474 = vst [vmem:[#allocation167_spill] sm:$0xff] %v16437_v15  ;;  %v21482_v1 = vcombine.high %v21480_v39, %v21481_v35  ;;  %v7404_v52 = vcombine.high %v16236_v48, %v16314_v28  ;;  %7961 = vrot.lane.b32.xlu1 %v15779_v16, %s13226_s30  ;;  %v21490_v0 = vcombine.high %v21488_v17, %v21489_v27  ;;  %v21492_v23 = vld [vmem:[#allocation72_spill] sm:$0xff]  ;;  %v21493_v54 = vld [vmem:[#allocation78_spill] sm:$0xff] }
 0x70e   : > { %21477 = vst [vmem:[#allocation15_spill] sm:$0xff] %v16444_v6  ;;  %v16451_v3 = vpack.i.bf16 %v5096_v62, %v21479_v34  ;;  %v8303_v62 = vcombine.low %v16263_v58, %v16341_v9  ;;  %v5304_v35 = vcombine.high %v21493_v54, %v21492_v23  ;;  %v7419_v39 = vcombine.low %v16281_v30, %v16369_v53  ;;  %v21497_v27 = vld [vmem:[#allocation82_spill] sm:$0xff]  ;;  %v21500_v17 = vld [vmem:[#allocation76_spill] sm:$0xff] }
 0x70f   : > { %v16456_v46 = vpack.i.bf16 %v5098_v8, %v21482_v1  ;;  %8741 = vrot.lane.b32.xlu0 %v15779_v16, %s13234_s15  ;;  %v21484_v1 = vld [vmem:[#allocation4_spill] sm:$0xff]  ;;  %v21485_v8 = vld [vmem:[#allocation9_spill] sm:$0xff]  ;;  %v16480_v55 = vpack.i.bf16 %v5102_v47, %v21490_v0  ;;  %v16486_v58 = vpop.permute.xlu1 %7945  ;;  %v16491_v9 = vrot.slane %v5136_v12, %v13303_v11  ;;  %v8287_v0 = vcombine.low %v16215_v26, %v16302_v2 }
 0x710   : > { %v21486_v34 = vcombine.high %v21484_v1, %v21485_v8  ;;  %21494 = vst [vmem:[#allocation72_spill] sm:$0xff] %v16486_v58  ;;  %v16499_v47 = vrot.slane %v7403_v51, %v13303_v11  ;;  %v7420_v23 = vcombine.high %v16281_v30, %v16369_v53  ;;  %v16503_v54 = vpop.permute.xlu0 %6379  ;;  %v16508_v12 = vrot.slane %v7404_v52, %v13303_v11  ;;  %v21501_v2 = vld [vmem:[#allocation68_spill] sm:$0xff]  ;;  %v21502_v51 = vld [vmem:[#allocation73_spill] sm:$0xff]  ;;  %v21505_v30 = vld [vmem:[#allocation26_spill] sm:$0xff] }
 0x711   : > { %21483 = vst [vmem:[#allocation6_spill] sm:$0xff] %v16456_v46  ;;  %21491 = vst [vmem:[#allocation169_spill] sm:$0xff] %v16480_v55  ;;  %7965 = vrot.lane.b32.xlu1 %v21478_v60, %s13226_s30  ;;  %v5336_v8 = vcombine.high %v21502_v51, %v21501_v2  ;;  %v5256_v1 = vcombine.high %v15713_v45, %v15672_v56  ;;  %v16519_v53 = vrot.slane %v8303_v62, %v13303_v11  ;;  %v21506_v55 = vld [vmem:[#allocation27_spill] sm:$0xff] }
 0x712   : > { %v16475_v42 = vpack.i.bf16 %v5100_v10, %v21486_v34  ;;  %v16494_v10 = vrot.slane %v5152_v13, %v13303_v11  ;;  %21495 = vst [vmem:[#allocation78_spill] sm:$0xff] %v16503_v54  ;;  %v21496_v34 = vld [vmem:[#allocation75_spill] sm:$0xff]  ;;  %21498 = vst [vmem:[#allocation170_spill] sm:$0xff] %v16508_v12  ;;  %v21499_v13 = vld [vmem:[#allocation70_spill] sm:$0xff]  ;;  %v8319_v16 = vcombine.low %v16387_v31, %v16486_v58 }
 0x713   : > { %v7692_v26 = vcombine.high %v21500_v17, %v21499_v13  ;;  %21503 = vst [vmem:[#allocation70_spill] sm:$0xff] %v16519_v53  ;;  %8749 = vrot.lane.b32.xlu0 %v21497_v27, %s13234_s15  ;;  %v16526_v52 = vrot.slane %v5304_v35, %v13326_v18  ;;  %v21507_v61 = vcombine.low %v21505_v30, %v21506_v55 }
 0x714   : > { %21487 = vst [vmem:[#allocation168_spill] sm:$0xff] %v16475_v42  ;;  %v16535_v51 = vrot.slane %v7419_v39, %v13303_v11  ;;  %v6575_v62 = vcombine.low %v16306_v41, %v16397_v21  ;;  %v16539_v42 = vpop.permute.xlu1 %7949  ;;  %v5215_v31 = vcombine.low %v16491_v9, %v16494_v10  ;;  %v5240_v35 = vcombine.high %v15656_v22, %v15658_v4  ;;  %v16551_v46 = vpop.permute.xlu0 %6383 }
 0x715   : > { %21504 = vst [vmem:[#allocation76_spill] sm:$0xff] %v16526_v52  ;;  %v16532_v2 = vrot.slane %v21507_v61, %v13326_v18  ;;  %21509 = vst [vmem:[#allocation73_spill] sm:$0xff] %v16539_v42  ;;  %v16546_v58 = vrot.slane %v8287_v0, %v13303_v11  ;;  %v16549_v61 = vrot.slane %v7420_v23, %v13303_v11  ;;  %7969 = vrot.lane.b32.xlu1 %v21497_v27, %s13226_s30  ;;  %v21571_v27 = vld [vmem:[#allocation62_spill] sm:$0xff] }
 0x716   : > { %21512 = vst [vmem:[#allocation171_spill] sm:$0xff] %v16551_v46  ;;  %v8335_v39 = vcombine.low %v16431_v38, %v16539_v42  ;;  %v5288_v41 = vcombine.high %v15690_v43, %v15660_v24  ;;  %v6559_v21 = vcombine.low %v16267_v37, %v16350_v59  ;;  %v16562_v0 = vrot.slane %v7692_v26, %v13303_v11 }
 0x717   : > { %21508 = vst [vmem:[#allocation68_spill] sm:$0xff] %v16532_v2  ;;  %21510 = vst [vmem:[#allocation26_spill] sm:$0xff] %v16546_v58  ;;  %v16565_v23 = vrot.slane %v5336_v8, %v13326_v18  ;;  %v5270_v56 = vrot.slane %v5256_v1, %v13303_v11  ;;  %v8351_v38 = vcombine.low %v16546_v58, %v16519_v53  ;;  %8757 = vrot.lane.b32.xlu0 %v21496_v34, %s13234_s15 }
 0x718   : > { %21511 = vst [vmem:[#allocation27_spill] sm:$0xff] %v16549_v61  ;;  %21513 = vst [vmem:[#allocation172_spill] sm:$0xff] %v16562_v0  ;;  %v16571_v42 = vrot.slane %v8319_v16, %v13303_v11  ;;  %v16574_v43 = vrot.slane %v8335_v39, %v13303_v11  ;;  %v5272_v26 = vcombine.high %v15715_v7, %v15692_v32  ;;  %v16585_v37 = vpop.permute.xlu1 %8701  ;;  %v16597_v59 = vpop.permute.xlu0 %6387 }
 0x719   : > { %21514 = vst [vmem:[#allocation173_spill] sm:$0xff] %v16565_v23  ;;  %v16581_v8 = vrot.slane %v6575_v62, %v13303_v11  ;;  %v6591_v1 = vcombine.low %v16444_v6, %v16551_v46  ;;  %21518 = vst [vmem:[#allocation177_spill] sm:$0xff] %v16585_v37  ;;  %v16588_v16 = vrot.slane %v5215_v31, %v13326_v18  ;;  %7973 = vrot.lane.b32.xlu1 %v21500_v17, %s13226_s30 }
 0x71a   : > { %21515 = vst [vmem:[#allocation174_spill] sm:$0xff] %v16571_v42  ;;  %21516 = vst [vmem:[#allocation175_spill] sm:$0xff] %v16574_v43  ;;  %v5254_v39 = vrot.slane %v5240_v35, %v13303_v11  ;;  %v7467_v58 = vcombine.low %v16499_v47, %v16535_v51  ;;  %v8383_v62 = vcombine.low %v16571_v42, %v16574_v43 }
 0x71b   : > { %21517 = vst [vmem:[#allocation176_spill] sm:$0xff] %v16581_v8  ;;  %21519 = vst [vmem:[#allocation178_spill] sm:$0xff] %v16588_v16  ;;  %v16600_v6 = vrot.slane %v5288_v41, %v13303_v11  ;;  %v16603_v37 = vrot.slane %v6559_v21, %v13303_v11  ;;  %v6607_v31 = vcombine.low %v16503_v54, %v16597_v59  ;;  %8731 = vrot.lane.b32.xlu0 %v16056_v57, %s13234_s15 }
 0x71c   : > { %21520 = vst [vmem:[#allocation179_spill] sm:$0xff] %v16597_v59  ;;  %v5369_v35 = vcombine.low %v16526_v52, %v16565_v23  ;;  %v5216_v53 = vcombine.high %v16491_v9, %v16494_v10  ;;  %v16614_v42 = vrot.slane %v8351_v38, %v13326_v18  ;;  %v16617_v41 = vrot.slane %v8383_v62, %v13326_v18  ;;  %v16630_v38 = vpop.permute.xlu1 %8705  ;;  %v16638_v59 = vpop.permute.xlu0 %7919  ;;  %v21567_v23 = vld [vmem:[#allocation64_spill] sm:$0xff] }
 0x71d   : > { %21521 = vst [vmem:[#allocation180_spill] sm:$0xff] %v16603_v37  ;;  %v5286_v21 = vrot.slane %v5272_v26, %v13303_v11  ;;  %v5319_v43 = vcombine.low %v5254_v39, %v5270_v56  ;;  %v6623_v46 = vcombine.low %v16603_v37, %v16581_v8  ;;  %v16625_v54 = vrot.slane %v6591_v1, %v13303_v11 }
 0x71e   : > { %21522 = vst [vmem:[#allocation181_spill] sm:$0xff] %v16614_v42  ;;  %21523 = vst [vmem:[#allocation182_spill] sm:$0xff] %v16617_v41  ;;  %v16628_v9 = vrot.slane %v6607_v31, %v13303_v11  ;;  %v5320_v10 = vcombine.high %v5254_v39, %v5270_v56  ;;  %7977 = vrot.lane.b32.xlu1 %v21496_v34, %s13226_s30  ;;  %v21528_v56 = vcombine.low %v16417_v14, %v16437_v15  ;;  %v21549_v15 = vld [vmem:[#allocation65_spill] sm:$0xff] }
 0x71f   : > { %21524 = vst [vmem:[#allocation183_spill] sm:$0xff] %v16625_v54  ;;  %21526 = vst [vmem:[#allocation185_spill] sm:$0xff] %v16630_v38  ;;  %v5351_v1 = vcombine.low %v5286_v21, %v16600_v6  ;;  %v21529_v26 = vcombine.low %v16120_v44, %v16123_v50  ;;  %8739 = vrot.lane.b32.xlu0 %v16144_v49, %s13234_s15  ;;  %v21531_v42 = vcombine.high %v21505_v30, %v21506_v55 }
 0x720   : > { %21525 = vst [vmem:[#allocation184_spill] sm:$0xff] %v16628_v9  ;;  %21527 = vst [vmem:[#allocation186_spill] sm:$0xff] %v16638_v59  ;;  %v6655_v31 = vcombine.low %v16625_v54, %v16628_v9  ;;  %v16648_v39 = vpack.i.bf16 %v5369_v35, %v21528_v56  ;;  %v16667_v35 = vrot.slane %v5216_v53, %v13326_v18  ;;  %v16682_v55 = vpop.permute.xlu1 %8709  ;;  %v21542_v9 = vld [vmem:[#allocation61_spill] sm:$0xff]  ;;  %v13200_v54 = vld [vmem:[#allocation2 + $0x58] sm:$0x3]  ;;  %v9542_v52 = vrot.slane %v21549_v15, 2 }
 0x721   : > { %v16656_v62 = vrot.slane %v21529_v26, %v13326_v18  ;;  %v16664_v41 = vrot.slane %v21531_v42, %v13326_v18  ;;  %v21532_v56 = vcombine.low %v16336_v29, %v16339_v36  ;;  %v21534_v26 = vld [vmem:[#allocation32_spill] sm:$0xff]  ;;  %v16677_v37 = vrot.slane %v6623_v46, %v13326_v18  ;;  %21537 = vst [vmem:[#allocation190_spill] sm:$0xff] %v16682_v55  ;;  %v16690_v42 = vpop.permute.xlu0 %7923  ;;  %v16718_v55 = vld [vmem:[#allocation2 + $0x50] sm:$0xff] }
 0x722   : > { %v9512_v38 = vrot.slane %v21534_v26, 2  ;;  %v16680_v49 = vrot.slane %v6655_v31, %v13326_v18  ;;  %v16685_v30 = vrot.slane %v5319_v43, %v13326_v18  ;;  %v16688_v53 = vrot.slane %v5320_v10, %v13326_v18  ;;  %21539 = vst [vmem:[#allocation192_spill] sm:$0xff] %v16690_v42  ;;  %v13197_v31 = vld [vmem:[#allocation2 + $0x40] sm:$0x3]  ;;  %7981 = vrot.lane.b32.xlu1 %v21499_v13, %s13226_s30  ;;  %v13198_v43 = vld [vmem:[#allocation2 + $0x70] sm:$0x3] }
 0x723   : > { %21530 = vst [vmem:[#allocation187_spill] sm:$0xff] %v16656_v62  ;;  %v16673_v57 = vrot.slane %v21532_v56, %v13326_v18  ;;  %21535 = vst [vmem:[#allocation32_spill] sm:$0xff] %v16677_v37  ;;  %v16693_v56 = vrot.slane %v5351_v1, %v13326_v18  ;;  %v5352_v26 = vcombine.high %v5286_v21, %v16600_v6  ;;  %v9492_v8 = vrot.slane %v13197_v31, 2 }
 0x724   : > { %21536 = vst [vmem:[#allocation189_spill] sm:$0xff] %v16680_v49  ;;  %21538 = vst [vmem:[#allocation191_spill] sm:$0xff] %v16685_v30  ;;  %v16697_v46 = vrot.slane %v7467_v58, %v13326_v18  ;;  %v9502_v10 = vrot.slane %v13198_v43, 2  ;;  %v9552_v1 = vrot.slane %v21542_v9, 2  ;;  %8747 = vrot.lane.b32.xlu0 %v16236_v48, %s13234_s15  ;;  %v21543_v58 = vcombine.low %v16420_v40, %v16406_v20  ;;  %v16721_v37 = vpop.permute.xlu1 %8713  ;;  %v21548_v49 = vld [vmem:[#allocation56_spill] sm:$0xff] }
 0x725   : > { %21533 = vst [vmem:[#allocation188_spill] sm:$0xff] %v16673_v57  ;;  %21540 = vst [vmem:[#allocation193_spill] sm:$0xff] %v16693_v56  ;;  %v21545_v21 = vrot.slane %v15360_v19, 2  ;;  %v9497_v9 = vrot.slane %v13200_v54, 2  ;;  %v9532_v14 = vrot.slane %v21548_v49, 2  ;;  %v16727_v19 = vpop.permute.xlu0 %7927  ;;  %v5371_v15 = vcombine.low %v16685_v30, %v16693_v56  ;;  %v13211_v20 = vld [vmem:[#allocation2 + $0x48] sm:$0xff] }
 0x726   : > { %21541 = vst [vmem:[#allocation194_spill] sm:$0xff] %v16697_v46  ;;  %v16711_v6 = vrot.slane %v21543_v58, %v13326_v18  ;;  %21547 = vst [vmem:[#allocation196_spill] sm:$0xff] %v16721_v37  ;;  %8737 = vrot.lane.b32.xlu1 %v21466_v33, %s13234_s15  ;;  %v21551_v49 = vrot.slane %v15300_v63, 2  ;;  %v21555_v54 = vrot.slane %v15692_v32, 2  ;;  %v13201_v63 = vld [vmem:[#allocation2 + $0xb0] sm:$0xff]  ;;  %v9555_v56 = vrot.slane %v15660_v24, 2 }
 0x727   : > { %v16716_v31 = vsel %vm2635_vm8, %v21545_v21, %v9512_v38  ;;  %21550 = vst [vmem:[#allocation56_spill] sm:$0xff] %v16727_v19  ;;  %v16732_v21 = vrot.slane %v5352_v26, %v13326_v18  ;;  %v21553_v26 = vrot.slane %v15340_v25, 2  ;;  %v21558_v25 = vrot.slane %v16718_v55, 2  ;;  %v21569_v24 = vld [vmem:[#allocation59_spill] sm:$0xff] }
 0x728   : > { %21544 = vst [vmem:[#allocation61_spill] sm:$0xff] %v16711_v6  ;;  %21546 = vst [vmem:[#allocation195_spill] sm:$0xff] %v16716_v31  ;;  %v16745_v58 = vsel %vm2635_vm8, %v21551_v49, %v9492_v8  ;;  %v16755_v48 = vsel %vm2635_vm8, %v21555_v54, %v9552_v1  ;;  %8755 = vrot.lane.b32.xlu0 %v16314_v28, %s13234_s15  ;;  %v21557_v8 = vld [vmem:[#allocation66_spill] sm:$0xff]  ;;  %v21561_v1 = vrot.slane %v15658_v4, 2  ;;  %v21563_v28 = vrot.slane %v15715_v7, 2 }
 0x729   : > { %21552 = vst [vmem:[#allocation65_spill] sm:$0xff] %v16745_v58  ;;  %v16750_v38 = vsel %vm2635_vm8, %v21553_v26, %v9502_v10  ;;  %21556 = vst [vmem:[#allocation198_spill] sm:$0xff] %v16755_v48  ;;  %v9522_v49 = vrot.slane %v21557_v8, 2  ;;  %v16766_v10 = vsel %vm2635_vm8, %v21558_v25, %v9497_v9  ;;  %v16768_v26 = vpop.permute.xlu1 %8717  ;;  %v13202_v8 = vld [vmem:[#allocation2 + $0xb8] sm:$0x3]  ;;  %v16780_v30 = vpop.permute.xlu0 %7931  ;;  %v13203_v25 = vld [vmem:[#allocation2 + $0x80] sm:$0xff] }
 0x72a   : > { %21554 = vst [vmem:[#allocation197_spill] sm:$0xff] %v16750_v38  ;;  %v9895_v43 = vcombine.low %v16750_v38, %v16716_v31  ;;  %21559 = vst [vmem:[#allocation66_spill] sm:$0xff] %v16766_v10  ;;  %v16773_v54 = vsel %vm2635_vm8, %v21561_v1, %v9532_v14  ;;  %v16778_v37 = vsel %vm2635_vm8, %v21563_v28, %v9542_v52  ;;  %v9515_v31 = vrot.slane %v13201_v63, 2  ;;  %v21566_v14 = vld [vmem:[#allocation57_spill] sm:$0xff]  ;;  %v13204_v63 = vld [vmem:[#allocation2 + $0x88] sm:$0x3] }
 0x72b   : > { %21560 = vst [vmem:[#allocation199_spill] sm:$0xff] %v16768_v26  ;;  %21562 = vst [vmem:[#allocation200_spill] sm:$0xff] %v16773_v54  ;;  %v9517_v38 = vrot.slane %v13202_v8, 2  ;;  %v10031_v9 = vcombine.low %v16778_v37, %v16755_v48  ;;  %v9505_v26 = vrot.slane %v13203_v25, 2  ;;  %v9557_v1 = vrot.slane %v21566_v14, 2  ;;  %8745 = vrot.lane.b32.xlu1 %v21478_v60, %s13234_s15  ;;  %v21568_v25 = vld [vmem:[#allocation55_spill] sm:$0xff] }
 0x72c   : > { %21564 = vst [vmem:[#allocation201_spill] sm:$0xff] %v16778_v37  ;;  %21565 = vst [vmem:[#allocation202_spill] sm:$0xff] %v16780_v30  ;;  %v9879_v52 = vcombine.low %v16114_v5, %v16766_v10  ;;  %v9507_v28 = vrot.slane %v13204_v63, 2  ;;  %v9527_v0 = vrot.slane %v21567_v23, 2  ;;  %12483 = vrot.lane.b32.xlu0 %v16451_v3, %s13228_s9  ;;  %v9535_v48 = vrot.slane %v21568_v25, 2  ;;  %v21570_v14 = vld [vmem:[#allocation58_spill] sm:$0xff] }
 0x72d   : > { %v9537_v37 = vrot.slane %v21569_v24, 2  ;;  %v9545_v34 = vrot.slane %v21570_v14, 2  ;;  %v9547_v60 = vrot.slane %v21571_v27, 2  ;;  %v16798_v33 = vpop.permute.xlu1 %8721  ;;  %v21573_v63 = vcombine.low %v16532_v2, %v16588_v16  ;;  %v16815_v14 = vpop.permute.xlu0 %7935  ;;  %v21578_v27 = vld [vmem:[#allocation19_spill] sm:$0xff]  ;;  %v21584_v8 = vld [vmem:[#allocation6_spill] sm:$0xff]  ;;  %v13209_v16 = vld [vmem:[#allocation2 + $0xf0] sm:$0xff] }
 0x72e   : > { %21572 = vst [vmem:[#allocation57_spill] sm:$0xff] %v16798_v33  ;;  %v21574_v3 = vrot.slane %v15656_v22, 2  ;;  %v16813_v24 = vsel %vm2635_vm8, %v9515_v31, %v9517_v38  ;;  %21577 = vst [vmem:[#allocation59_spill] sm:$0xff] %v16815_v14  ;;  %v16820_v33 = vrot.slane %v9895_v43, %v13303_v11  ;;  %v16830_v38 = vrot.slane %v10031_v9, %v13303_v11  ;;  %v13205_v43 = vld [vmem:[#allocation2 + $0xa8] sm:$0xff] }
 0x72f   : > { %v16803_v10 = vpack.i.bf16 %v5371_v15, %v21573_v63  ;;  %21576 = vst [vmem:[#allocation55_spill] sm:$0xff] %v16813_v24  ;;  %v16825_v63 = vsel %vm2635_vm8, %v9555_v56, %v9557_v1  ;;  %8753 = vrot.lane.b32.xlu1 %v21500_v17, %s13234_s15  ;;  %v9514_v23 = vrot.slane %v13205_v43, 2  ;;  %v21585_v15 = vrot.slane %v15713_v45, 2 }
 0x730   : > { %v16810_v25 = vsel %vm2635_vm8, %v21574_v3, %v9522_v49  ;;  %21579 = vst [vmem:[#allocation58_spill] sm:$0xff] %v16820_v33  ;;  %21580 = vst [vmem:[#allocation62_spill] sm:$0xff] %v16825_v63  ;;  %v16833_v49 = vrot.slane %v9879_v52, %v13303_v11  ;;  %v16836_v3 = vsel %vm2635_vm8, %v9505_v26, %v9507_v28  ;;  %12493 = vrot.lane.b32.xlu0 %v21584_v8, %s13227_s8  ;;  %v13206_v8 = vld [vmem:[#allocation2 + $0x78] sm:$0xff] }
 0x731   : > { %21575 = vst [vmem:[#allocation64_spill] sm:$0xff] %v16810_v25  ;;  %21581 = vst [vmem:[#allocation203_spill] sm:$0xff] %v16830_v38  ;;  %v9911_v1 = vcombine.low %v16836_v3, %v16813_v24  ;;  %v16845_v17 = vsel %vm2635_vm8, %v21585_v15, %v9527_v0  ;;  %v16848_v9 = vsel %vm2635_vm8, %v9535_v48, %v9537_v37  ;;  %v16853_v28 = vpop.permute.xlu1 %8725  ;;  %v9504_v5 = vrot.slane %v13206_v8, 2  ;;  %v16860_v0 = vpop.permute.xlu0 %7939  ;;  %v13208_v15 = vld [vmem:[#allocation2 + $0xc0] sm:$0xff] }
 0x732   : > { %21582 = vst [vmem:[#allocation204_spill] sm:$0xff] %v16833_v49  ;;  %21583 = vst [vmem:[#allocation205_spill] sm:$0xff] %v16836_v3  ;;  %v16851_v52 = vsel %vm2635_vm8, %v9545_v34, %v9547_v60  ;;  %v16858_v24 = vsel %vm2635_vm8, %v9514_v23, %v9515_v31  ;;  %v13207_v3 = vld [vmem:[#allocation2 + $0x168] sm:$0xff]  ;;  %v9519_v37 = vrot.slane %v13208_v15, 2  ;;  %v9529_v61 = vrot.slane %v13209_v16, 2  ;;  %v13210_v60 = vld [vmem:[#allocation2 + $0x150] sm:$0xff] }
 0x733   : > { %21586 = vst [vmem:[#allocation6_spill] sm:$0xff] %v16845_v17  ;;  %21587 = vst [vmem:[#allocation206_spill] sm:$0xff] %v16848_v9  ;;  %v10047_v43 = vcombine.low %v16851_v52, %v16825_v63  ;;  %v9554_v2 = vrot.slane %v13207_v3, 2  ;;  %v9549_v12 = vrot.slane %v13210_v60, 2  ;;  %8761 = vrot.lane.b32.xlu1 %v21499_v13, %s13234_s15  ;;  %v16865_v8 = vsel %vm2635_vm8, %v9504_v5, %v9505_v26  ;;  %v13212_v31 = vld [vmem:[#allocation2 + $0x108] sm:$0xff]  ;;  %v13213_v63 = vld [vmem:[#allocation2 + $0x138] sm:$0xff] }
 0x734   : > { %21588 = vst [vmem:[#allocation207_spill] sm:$0xff] %v16851_v52  ;;  %21589 = vst [vmem:[#allocation208_spill] sm:$0xff] %v16853_v28  ;;  %v9494_v28 = vrot.slane %v13211_v20, 2  ;;  %v9534_v23 = vrot.slane %v13212_v31, 2  ;;  %v9544_v3 = vrot.slane %v13213_v63, 2  ;;  %v21594_v15 = vld [vmem:[#allocation168_spill] sm:$0xff]  ;;  %v9639_v26 = vcombine.low %v16865_v8, %v16858_v24 }
 0x735   : > { %21590 = vst [vmem:[#allocation209_spill] sm:$0xff] %v16858_v24  ;;  %21591 = vst [vmem:[#allocation210_spill] sm:$0xff] %v16860_v0  ;;  %v16868_v52 = vsel %vm2635_vm8, %v9554_v2, %v9555_v56  ;;  %12503 = vrot.lane.b32.xlu0 %v21594_v15, %s13231_s12  ;;  %v13214_v16 = vld [vmem:[#allocation2 + $0x120] sm:$0xff]  ;;  %v21595_v20 = vrot.slane %v15692_v32, 2  ;;  %v21597_v5 = vrot.slane %v16718_v55, 2  ;;  %v8031_v2 = vcombine.low %v16690_v42, %v16780_v30  ;;  %v16886_v56 = vpop.permute.xlu1 %8729  ;;  %v13215_v63 = vld [vmem:[#allocation2 + $0xd8] sm:$0xff]  ;;  %v16894_v55 = vpop.permute.xlu0 %7943 }
 0x736   : > { %21592 = vst [vmem:[#allocation211_spill] sm:$0xff] %v16865_v8  ;;  %21593 = vst [vmem:[#allocation212_spill] sm:$0xff] %v16868_v52  ;;  %v9539_v60 = vrot.slane %v13214_v16, 2  ;;  %v9524_v31 = vrot.slane %v13215_v63, 2  ;;  %v16889_v32 = vsel %vm2635_vm8, %v9534_v23, %v9535_v48  ;;  %v21604_v15 = vld [vmem:[#allocation101_spill] sm:$0xff]  ;;  %v21609_v42 = vld [vmem:[#allocation12_spill] sm:$0xff]  ;;  %v8015_v23 = vcombine.low %v16638_v59, %v16727_v19 }
 0x737   : > { %v16875_v40 = vsel %vm2635_vm8, %v9549_v12, %v21595_v20  ;;  %v16880_v13 = vsel %vm2635_vm8, %v9494_v28, %v21597_v5  ;;  %21599 = vst [vmem:[#allocation214_spill] sm:$0xff] %v16886_v56  ;;  %21600 = vst [vmem:[#allocation215_spill] sm:$0xff] %v16889_v32  ;;  %v16892_v12 = vsel %vm2635_vm8, %v9544_v3, %v9545_v34  ;;  %v21603_v28 = vld [vmem:[#allocation122_spill] sm:$0xff]  ;;  %v21605_v20 = vrot.slane %v15658_v4, 2  ;;  %v21607_v24 = vld [vmem:[#allocation5_spill] sm:$0xff] }
 0x738   : > { %21596 = vst [vmem:[#allocation168_spill] sm:$0xff] %v16875_v40  ;;  %21598 = vst [vmem:[#allocation213_spill] sm:$0xff] %v16880_v13  ;;  %v9623_v16 = vcombine.low %v21604_v15, %v21603_v28  ;;  %v21608_v8 = vrot.slane %v21607_v24, 2  ;;  %v21610_v63 = vrot.slane %v21609_v42, 2  ;;  %v9775_v34 = vcombine.low %v16892_v12, %v16868_v52  ;;  %v21612_v3 = vld [vmem:[#allocation18_spill] sm:$0xff]  ;;  %v21687_v15 = vld [vmem:[#allocation92_spill] sm:$0xff] }
 0x739   : > { %21601 = vst [vmem:[#allocation216_spill] sm:$0xff] %v16892_v12  ;;  %21602 = vst [vmem:[#allocation217_spill] sm:$0xff] %v16894_v55  ;;  %v16901_v5 = vsel %vm2635_vm8, %v9529_v61, %v21605_v20  ;;  %8735 = vrot.lane.b32.xlu1 %v21612_v3, %s13234_s15  ;;  %v21613_v4 = vrot.slane %v15715_v7, 2  ;;  %v21615_v24 = vrot.slane %v15713_v45, 2  ;;  %v21617_v20 = vld [vmem:[#allocation169_spill] sm:$0xff]  ;;  %v21618_v3 = vld [vmem:[#allocation100_spill] sm:$0xff]  ;;  %v16939_v45 = vrot.slane %v8031_v2, %v13303_v11 }
 0x73a   : > { %21606 = vst [vmem:[#allocation218_spill] sm:$0xff] %v16901_v5  ;;  %v16908_v48 = vsel %vm2635_vm8, %v21610_v63, %v21608_v8  ;;  %12513 = vrot.lane.b32.xlu0 %v21617_v20, %s13233_s14  ;;  %v10015_v63 = vcombine.low %v16845_v17, %v16848_v9  ;;  %v21619_v12 = vld [vmem:[#allocation21_spill] sm:$0xff]  ;;  %v21622_v20 = vrot.slane %v15656_v22, 2  ;;  %v16959_v2 = vrot.slane %v10047_v43, %v13303_v11  ;;  %v21735_v59 = vld [vmem:[#allocation20_spill] sm:$0xff]  ;;  %v21737_v30 = vld [vmem:[#allocation38_spill] sm:$0xff] }
 0x73b   : > { %21611 = vst [vmem:[#allocation5_spill] sm:$0xff] %v16908_v48  ;;  %v16919_v61 = vsel %vm2635_vm8, %v9539_v60, %v21613_v4  ;;  %v9607_v42 = vcombine.low %v16908_v48, %v16880_v13  ;;  %v16926_v8 = vsel %vm2635_vm8, %v9524_v31, %v21615_v24  ;;  %v9591_v7 = vcombine.low %v21619_v12, %v21618_v3  ;;  %v16943_v24 = vpop.permute.xlu1 %5581 }
 0x73c   : > { %21614 = vst [vmem:[#allocation12_spill] sm:$0xff] %v16919_v61  ;;  %21616 = vst [vmem:[#allocation18_spill] sm:$0xff] %v16926_v8  ;;  %v9759_v60 = vcombine.low %v16919_v61, %v16875_v40  ;;  %v9743_v4 = vcombine.low %v16926_v8, %v16889_v32  ;;  %v8047_v31 = vcombine.low %v16815_v14, %v16894_v55  ;;  %v16953_v40 = vpop.permute.xlu0 %7947  ;;  %v21716_v14 = vld [vmem:[#allocation84_spill] sm:$0xff]  ;;  %v21717_v55 = vld [vmem:[#allocation79_spill] sm:$0xff] }
 0x73d   : > { %21620 = vst [vmem:[#allocation169_spill] sm:$0xff] %v16939_v45  ;;  %21621 = vst [vmem:[#allocation219_spill] sm:$0xff] %v16943_v24  ;;  %v16948_v52 = vsel %vm2635_vm8, %v9519_v37, %v21622_v20  ;;  %v16951_v13 = vrot.slane %v9639_v26, %v13303_v11  ;;  %v16956_v8 = vrot.slane %v9911_v1, %v13303_v11  ;;  %v21630_v26 = vld [vmem:[#allocation133_spill] sm:$0xff] }
 0x73e   : > { %21623 = vst [vmem:[#allocation220_spill] sm:$0xff] %v16948_v52  ;;  %21625 = vst [vmem:[#allocation222_spill] sm:$0xff] %v16953_v40  ;;  %v9727_v32 = vcombine.low %v16948_v52, %v16901_v5  ;;  %v16964_v48 = vrot.slane %v9775_v34, %v13303_v11  ;;  %v16967_v22 = vrot.slane %v8015_v23, %v13303_v11  ;;  %8743 = vrot.lane.b32.xlu1 %v21630_v26, %s13234_s15 }
 0x73f   : > { %21624 = vst [vmem:[#allocation221_spill] sm:$0xff] %v16951_v13  ;;  %21626 = vst [vmem:[#allocation223_spill] sm:$0xff] %v16956_v8  ;;  %v8063_v37 = vcombine.low %v16860_v0, %v16953_v40  ;;  %v16974_v1 = vrot.slane %v9623_v16, %v13303_v11  ;;  %v16977_v43 = vrot.slane %v9607_v42, %v13303_v11  ;;  %12523 = vrot.lane.b32.xlu0 %v16648_v39, %s13229_s10  ;;  %v21732_v0 = vld [vmem:[#allocation191_spill] sm:$0xff] }
 0x740   : > { %21627 = vst [vmem:[#allocation224_spill] sm:$0xff] %v16959_v2  ;;  %21628 = vst [vmem:[#allocation225_spill] sm:$0xff] %v16964_v48  ;;  %v16982_v34 = vrot.slane %v10015_v63, %v13303_v11  ;;  %v16985_v23 = vrot.slane %v9591_v7, %v13303_v11  ;;  %v16988_v20 = vrot.slane %v9759_v60, %v13303_v11  ;;  %v17001_v63 = vpop.permute.xlu1 %5585  ;;  %v17005_v61 = vpop.permute.xlu0 %8699 }
 0x741   : > { %21629 = vst [vmem:[#allocation226_spill] sm:$0xff] %v16967_v22  ;;  %21631 = vst [vmem:[#allocation133_spill] sm:$0xff] %v16974_v1  ;;  %v16991_v26 = vrot.slane %v9743_v4, %v13303_v11  ;;  %v8079_v16 = vcombine.low %v16967_v22, %v16939_v45  ;;  %v16996_v42 = vrot.slane %v8047_v31, %v13303_v11 }
 0x742   : > { %21632 = vst [vmem:[#allocation227_spill] sm:$0xff] %v16977_v43  ;;  %21633 = vst [vmem:[#allocation228_spill] sm:$0xff] %v16982_v34  ;;  %v16999_v39 = vrot.slane %v8063_v37, %v13303_v11  ;;  %v9687_v7 = vcombine.low %v16974_v1, %v16951_v13  ;;  %v21640_v60 = vcombine.low %v21578_v27, %v16745_v58  ;;  %v21643_v13 = vld [vmem:[#allocation143_spill] sm:$0xff] }
 0x743   : > { %21634 = vst [vmem:[#allocation229_spill] sm:$0xff] %v16985_v23  ;;  %21635 = vst [vmem:[#allocation230_spill] sm:$0xff] %v16988_v20  ;;  %v9959_v31 = vcombine.low %v16820_v33, %v16956_v8  ;;  %v17016_v5 = vrot.slane %v9727_v32, %v13303_v11  ;;  %v9823_v37 = vcombine.low %v16988_v20, %v16964_v48  ;;  %8751 = vrot.lane.b32.xlu1 %v21643_v13, %s13234_s15  ;;  %v21646_v20 = vld [vmem:[#allocation156_spill] sm:$0xff]  ;;  %v21647_v48 = vld [vmem:[#allocation146_spill] sm:$0xff] }
 0x744   : > { %21636 = vst [vmem:[#allocation231_spill] sm:$0xff] %v16991_v26  ;;  %21637 = vst [vmem:[#allocation232_spill] sm:$0xff] %v16996_v42  ;;  %v17011_v4 = vrot.slane %v21640_v60, %v13303_v11  ;;  %v8111_v1 = vcombine.low %v16996_v42, %v16999_v39  ;;  %v21644_v60 = vcombine.low %v16810_v25, %v16773_v54  ;;  %12533 = vrot.lane.b32.xlu0 %v16803_v10, %s13230_s11 }
 0x745   : > { %21638 = vst [vmem:[#allocation233_spill] sm:$0xff] %v16999_v39  ;;  %21639 = vst [vmem:[#allocation234_spill] sm:$0xff] %v17005_v61  ;;  %v10095_v33 = vcombine.low %v16830_v38, %v16959_v2  ;;  %v9655_v32 = vcombine.low %v16985_v23, %v16977_v43  ;;  %v5097_v8 = vcombine.low %v21647_v48, %v21646_v20  ;;  %v17054_v43 = vpop.permute.xlu1 %5589  ;;  %v21670_v2 = vld [vmem:[#allocation11_spill] sm:$0xff] }
 0x746   : > { %21641 = vst [vmem:[#allocation235_spill] sm:$0xff] %v17011_v4  ;;  %21642 = vst [vmem:[#allocation236_spill] sm:$0xff] %v17016_v5  ;;  %v17028_v52 = vrot.slane %v21644_v60, %v13303_v11  ;;  %v21648_v13 = vcombine.high %v16120_v44, %v16123_v50  ;;  %v9927_v60 = vcombine.low %v17011_v4, %v16833_v49  ;;  %v17061_v44 = vpop.permute.xlu0 %8703 }
 0x747   : > { %v9791_v38 = vcombine.low %v17016_v5, %v16991_v26  ;;  %v17049_v23 = vrot.slane %v8079_v16, %v13326_v18  ;;  %v17052_v10 = vrot.slane %v8111_v1, %v13326_v18  ;;  %21651 = vst [vmem:[#allocation237_spill] sm:$0xff] %v17054_v43  ;;  %v17059_v50 = vrot.slane %v9687_v7, %v13326_v18 }
 0x748   : > { %21645 = vst [vmem:[#allocation143_spill] sm:$0xff] %v17028_v52  ;;  %v17042_v28 = vrot.slane %v21648_v13, %v13326_v18  ;;  %v10063_v48 = vcombine.low %v17028_v52, %v16982_v34  ;;  %21653 = vst [vmem:[#allocation239_spill] sm:$0xff] %v17061_v44  ;;  %v21654_v20 = vcombine.low %v16664_v41, %v16667_v35  ;;  %v21659_v52 = vld [vmem:[#allocation157_spill] sm:$0xff] }
 0x749   : > { %21649 = vst [vmem:[#allocation156_spill] sm:$0xff] %v17049_v23  ;;  %21650 = vst [vmem:[#allocation146_spill] sm:$0xff] %v17052_v10  ;;  %v21655_v16 = vcombine.low %v16688_v53, %v16732_v21  ;;  %v21656_v1 = vcombine.high %v16499_v47, %v16535_v51  ;;  %v17076_v26 = vrot.slane %v9823_v37, %v13326_v18  ;;  %8759 = vrot.lane.b32.xlu1 %v21659_v52, %s13234_s15  ;;  %v21701_v10 = vld [vmem:[#allocation149_spill] sm:$0xff] }
 0x74a   : > { %21652 = vst [vmem:[#allocation238_spill] sm:$0xff] %v17059_v50  ;;  %v17079_v7 = vrot.slane %v9959_v31, %v13326_v18  ;;  %v17092_v47 = vrot.slane %v9655_v32, %v13326_v18  ;;  %v17095_v51 = vrot.slane %v10095_v33, %v13326_v18  ;;  %v21663_v31 = vcombine.high %v16656_v62, %v16673_v57  ;;  %v21671_v62 = vld [vmem:[#allocation14_spill] sm:$0xff] }
 0x74b   : > { %v12542_v13 = vpack.i.bf16 %v21655_v16, %v21654_v20  ;;  %v17073_v5 = vrot.slane %v21656_v1, %v13326_v18  ;;  %21657 = vst [vmem:[#allocation240_spill] sm:$0xff] %v17076_v26  ;;  %v21660_v20 = vcombine.high %v16336_v29, %v16339_v36  ;;  %v21664_v52 = vcombine.high %v16711_v6, %v16697_v46  ;;  %v21665_v1 = vld [vmem:[#allocation163_spill] sm:$0xff]  ;;  %v21666_v29 = vld [vmem:[#allocation161_spill] sm:$0xff]  ;;  %v21673_v6 = vld [vmem:[#allocation158_spill] sm:$0xff] }
 0x74c   : > { %21658 = vst [vmem:[#allocation241_spill] sm:$0xff] %v17079_v7  ;;  %21661 = vst [vmem:[#allocation157_spill] sm:$0xff] %v17092_v47  ;;  %v21667_v36 = vcombine.high %v21665_v1, %v21666_v29  ;;  %v17111_v32 = vrot.slane %v9791_v38, %v13326_v18  ;;  %v17114_v33 = vrot.slane %v9927_v60, %v13326_v18  ;;  %v17128_v38 = vpop.permute.xlu0 %8707  ;;  %v21677_v29 = vld [vmem:[#allocation170_spill] sm:$0xff]  ;;  %v21684_v47 = vld [vmem:[#allocation75_spill] sm:$0xff] }
 0x74d   : > { %v17089_v16 = vrot.slane %v21660_v20, %v13326_v18  ;;  %21662 = vst [vmem:[#allocation242_spill] sm:$0xff] %v17095_v51  ;;  %12543 = vrot.lane.b32.xlu0 %v12542_v13, %s13232_s13  ;;  %v12552_v37 = vpack.i.bf16 %v21664_v52, %v21663_v31  ;;  %v17116_v13 = vpop.permute.xlu1 %5593  ;;  %v21672_v57 = vcombine.low %v21670_v2, %v21671_v62  ;;  %v21674_v31 = vld [vmem:[#allocation147_spill] sm:$0xff]  ;;  %21676 = vst [vmem:[#allocation14_spill] sm:$0xff] %v17128_v38  ;;  %v21681_v2 = vld [vmem:[#allocation74_spill] sm:$0xff] }
 0x74e   : > { %v17108_v20 = vrot.slane %v21667_v36, %v13326_v18  ;;  %21668 = vst [vmem:[#allocation163_spill] sm:$0xff] %v17111_v32  ;;  %21669 = vst [vmem:[#allocation161_spill] sm:$0xff] %v17114_v33  ;;  %v5099_v52 = vcombine.low %v21674_v31, %v21673_v6  ;;  %v17124_v46 = vrot.slane %v10063_v48, %v13326_v18  ;;  %v21678_v36 = vld [vmem:[#allocation27_spill] sm:$0xff]  ;;  %v21683_v1 = vld [vmem:[#allocation82_spill] sm:$0xff] }
 0x74f   : > { %v12487_v34 = vpack.i.bf16 %v5097_v8, %v21672_v57  ;;  %v21679_v4 = vcombine.low %v21677_v29, %v21678_v36  ;;  %v21680_v8 = vld [vmem:[#allocation81_spill] sm:$0xff]  ;;  %v21685_v50 = vcombine.high %v21683_v1, %v21684_v47  ;;  %v21688_v6 = vld [vmem:[#allocation162_spill] sm:$0xff]  ;;  %v21689_v33 = vld [vmem:[#allocation164_spill] sm:$0xff]  ;;  %v21718_v22 = vcombine.high %v21716_v14, %v21717_v55 }
 0x750   : > { %21675 = vst [vmem:[#allocation11_spill] sm:$0xff] %v17124_v46  ;;  %v7502_v60 = vcombine.high %v17108_v20, %v17073_v5  ;;  %v21682_v48 = vcombine.high %v21680_v8, %v21681_v2  ;;  %v7452_v7 = vcombine.high %v21689_v33, %v21688_v6  ;;  %v7366_v8 = vcombine.high %v17042_v28, %v17089_v16  ;;  %v21690_v47 = vld [vmem:[#allocation152_spill] sm:$0xff]  ;;  %v21698_v26 = vld [vmem:[#allocation9_spill] sm:$0xff]  ;;  %v17187_v38 = vpop.permute.xlu0 %8711  ;;  %v21721_v14 = vld [vmem:[#allocation87_spill] sm:$0xff] }
 0x751   : > { %v17136_v62 = vrot.slane %v21679_v4, %v13326_v18  ;;  %v17152_v49 = vrot.slane %v21685_v50, %v13303_v11  ;;  %v21686_v4 = vld [vmem:[#allocation86_spill] sm:$0xff]  ;;  %12488 = vrot.lane.b32.xlu1 %v12487_v34, %s13229_s10  ;;  %12553 = vrot.lane.b32.xlu0 %v12552_v37, %s13228_s9  ;;  %v21691_v50 = vld [vmem:[#allocation153_spill] sm:$0xff]  ;;  %v21696_v46 = vld [vmem:[#allocation172_spill] sm:$0xff]  ;;  %v17180_v51 = vpop.permute.xlu1 %5597  ;;  %21702 = vst [vmem:[#allocation158_spill] sm:$0xff] %v17187_v38 }
 0x752   : > { %v17146_v31 = vrot.slane %v21682_v48, %v13303_v11  ;;  %v7740_v3 = vcombine.high %v21687_v15, %v21686_v4  ;;  %v21692_v1 = vcombine.low %v21690_v47, %v21691_v50  ;;  %v21693_v15 = vcombine.low %v21689_v33, %v21688_v6  ;;  %v21694_v48 = vld [vmem:[#allocation91_spill] sm:$0xff]  ;;  %v21695_v4 = vld [vmem:[#allocation96_spill] sm:$0xff]  ;;  %v21703_v6 = vld [vmem:[#allocation126_spill] sm:$0xff] }
 0x753   : > { %v7708_v57 = vcombine.high %v21695_v4, %v21694_v48  ;;  %v7755_v37 = vcombine.low %v17152_v49, %v21696_v46  ;;  %v21697_v32 = vld [vmem:[#allocation4_spill] sm:$0xff]  ;;  %v12562_v33 = vpack.i.bf16 %v7502_v60, %v7366_v8  ;;  %v21709_v60 = vld [vmem:[#allocation166_spill] sm:$0xff]  ;;  %v7756_v38 = vcombine.high %v17152_v49, %v21696_v46  ;;  %v21722_v55 = vld [vmem:[#allocation93_spill] sm:$0xff] }
 0x754   : > { %v17168_v2 = vrot.slane %v21692_v1, %v13326_v18  ;;  %v17174_v34 = vrot.slane %v21693_v15, %v13326_v18  ;;  %v21699_v12 = vcombine.low %v21697_v32, %v21698_v26  ;;  %v21700_v1 = vld [vmem:[#allocation159_spill] sm:$0xff]  ;;  %v21706_v26 = vcombine.high %v21677_v29, %v21678_v36  ;;  %v21707_v32 = vld [vmem:[#allocation150_spill] sm:$0xff]  ;;  %v21714_v49 = vld [vmem:[#allocation88_spill] sm:$0xff] }
 0x755   : > { %v5101_v61 = vcombine.low %v21701_v10, %v21700_v1  ;;  %v21704_v15 = vld [vmem:[#allocation127_spill] sm:$0xff]  ;;  %v21708_v10 = vld [vmem:[#allocation148_spill] sm:$0xff]  ;;  %v7723_v8 = vcombine.low %v21709_v60, %v17146_v31  ;;  %v7724_v1 = vcombine.high %v21709_v60, %v17146_v31  ;;  %12563 = vrot.lane.b32.xlu0 %v12562_v33, %s13227_s8  ;;  %v21710_v36 = vcombine.high %v21690_v47, %v21691_v50  ;;  %v21715_v33 = vld [vmem:[#allocation94_spill] sm:$0xff] }
 0x756   : > { %v12497_v23 = vpack.i.bf16 %v5099_v52, %v21699_v12  ;;  %v21705_v44 = vcombine.low %v21703_v6, %v21704_v15  ;;  %v7504_v4 = vcombine.high %v17174_v34, %v17136_v62  ;;  %v17201_v12 = vrot.slane %v21706_v26, %v13326_v18  ;;  %v21712_v60 = vld [vmem:[#allocation16_spill] sm:$0xff] }
 0x757   : > { %v7620_v52 = vcombine.high %v21708_v10, %v21707_v32  ;;  %v17222_v26 = vrot.slane %v21710_v36, %v13326_v18  ;;  %v17225_v31 = vrot.slane %v7452_v7, %v13326_v18  ;;  %v5368_v39 = vcombine.high %v21715_v33, %v21714_v49  ;;  %v17243_v7 = vpop.permute.xlu0 %8715 }
 0x758   : > { %v17193_v48 = vrot.slane %v21705_v44, %v13326_v18  ;;  %12498 = vrot.lane.b32.xlu1 %v12497_v23, %s13230_s11  ;;  %v17211_v44 = vrot.slane %v7740_v3, %v13326_v18  ;;  %v17227_v23 = vpop.permute.xlu1 %5601  ;;  %v21711_v3 = vld [vmem:[#allocation13_spill] sm:$0xff]  ;;  %v17238_v45 = vrot.slane %v21718_v22, %v13326_v18  ;;  %v17241_v47 = vrot.slane %v7708_v57, %v13326_v18  ;;  %v21723_v57 = vld [vmem:[#allocation83_spill] sm:$0xff] }
 0x759   : > { %v21713_v42 = vcombine.low %v21711_v3, %v21712_v60  ;;  %21719 = vst [vmem:[#allocation147_spill] sm:$0xff] %v17243_v7  ;;  %v21720_v36 = vcombine.high %v21703_v6, %v21704_v15  ;;  %v17254_v3 = vrot.slane %v7755_v37, %v13326_v18  ;;  %v5232_v22 = vcombine.high %v21722_v55, %v21721_v14  ;;  %v21726_v15 = vld [vmem:[#allocation173_spill] sm:$0xff]  ;;  %v21729_v55 = vld [vmem:[#allocation167_spill] sm:$0xff] }
 0x75a   : > { %v7368_v29 = vcombine.high %v17193_v48, %v17168_v2  ;;  %v7773_v6 = vcombine.low %v17241_v47, %v17211_v44  ;;  %v6067_v37 = vcombine.low %v17001_v63, %v17116_v13  ;;  %v21731_v7 = vld [vmem:[#allocation193_spill] sm:$0xff] }
 0x75b   : > { %v12507_v46 = vpack.i.bf16 %v5101_v61, %v21713_v42  ;;  %v17249_v61 = vrot.slane %v21720_v36, %v13326_v18  ;;  %v7506_v42 = vcombine.high %v17225_v31, %v17201_v12  ;;  %v21727_v36 = vld [vmem:[#allocation76_spill] sm:$0xff]  ;;  %v5372_v40 = vcombine.high %v21732_v0, %v21731_v7 }
 0x75c   : > { %v12572_v50 = vpack.i.bf16 %v7504_v4, %v7368_v29  ;;  %v21724_v4 = vld [vmem:[#allocation89_spill] sm:$0xff]  ;;  %v5370_v49 = vcombine.high %v21727_v36, %v21726_v15  ;;  %v17283_v14 = vpop.permute.xlu1 %5605  ;;  %v12517_v15 = vpack.i.bf16 %v5368_v39, %v5232_v22 }
 0x75d   : > { %12508 = vrot.lane.b32.xlu1 %v12507_v46, %s13232_s13  ;;  %v21725_v29 = vcombine.high %v21723_v57, %v21724_v4  ;;  %v7370_v46 = vcombine.high %v17249_v61, %v17222_v26  ;;  %v21728_v57 = vcombine.low %v21708_v10, %v21707_v32  ;;  %v6051_v32 = vcombine.low %v16943_v24, %v17054_v43  ;;  %v17293_v10 = vpop.permute.xlu0 %8719  ;;  %v21739_v24 = vld [vmem:[#allocation178_spill] sm:$0xff]  ;;  %v21740_v43 = vld [vmem:[#allocation68_spill] sm:$0xff] }
 0x75e   : > { %12573 = vrot.lane.b32.xlu0 %v12572_v50, %s13231_s12  ;;  %v21730_v50 = vld [vmem:[#allocation8_spill] sm:$0xff]  ;;  %21733 = vst [vmem:[#allocation170_spill] sm:$0xff] %v17293_v10  ;;  %v5236_v10 = vcombine.high %v21740_v43, %v21739_v24 }
 0x75f   : > { %v17263_v60 = vrot.slane %v21725_v29, %v13326_v18  ;;  %v17278_v4 = vrot.slane %v21728_v57, %v13326_v18  ;;  %v17281_v29 = vrot.slane %v7723_v8, %v13326_v18  ;;  %v5234_v33 = vcombine.high %v21730_v50, %v21729_v55  ;;  %v21734_v8 = vld [vmem:[#allocation24_spill] sm:$0xff]  ;;  %v21738_v55 = vld [vmem:[#allocation35_spill] sm:$0xff] }
 0x760   : > { %v12582_v57 = vpack.i.bf16 %v7506_v42, %v7370_v46  ;;  %v21736_v19 = vcombine.low %v21734_v8, %v21735_v59  ;;  %v5660_v50 = vcombine.high %v21738_v55, %v21737_v30  ;;  %v17309_v42 = vrot.slane %v6067_v37, %v13303_v11 }
 0x761   : > { %v7637_v36 = vcombine.low %v17263_v60, %v17238_v45  ;;  %v7775_v22 = vcombine.low %v17281_v29, %v17254_v3  ;;  %12518 = vrot.lane.b32.xlu1 %v12517_v15, %s13228_s9  ;;  %v12527_v7 = vpack.i.bf16 %v5370_v49, %v5234_v33  ;;  %v17317_v30 = vrot.slane %v7756_v38, %v13326_v18  ;;  %v21741_v15 = vld [vmem:[#allocation37_spill] sm:$0xff]  ;;  %v17321_v33 = vpop.permute.xlu1 %5609  ;;  %v17335_v38 = vpop.permute.xlu0 %8723 }
 0x762   : > { %v17299_v39 = vrot.slane %v21736_v19, %v13326_v18  ;;  %v6083_v19 = vcombine.low %v17180_v51, %v17283_v14  ;;  %12583 = vrot.lane.b32.xlu0 %v12582_v57, %s13233_s14  ;;  %v12537_v24 = vpack.i.bf16 %v5372_v40, %v5236_v10  ;;  %v21743_v43 = vcombine.high %v21734_v8, %v21735_v59 }
 0x763   : > { %v12592_v0 = vpack.i.bf16 %v7773_v6, %v7637_v36  ;;  %v21742_v6 = vld [vmem:[#allocation34_spill] sm:$0xff]  ;;  %v17330_v36 = vrot.slane %v7620_v52, %v13326_v18  ;;  %v17333_v57 = vrot.slane %v6051_v32, %v13303_v11  ;;  %21744 = vst [vmem:[#allocation27_spill] sm:$0xff] %v17335_v38  ;;  %v6099_v55 = vcombine.low %v17227_v23, %v17321_v33 }
 0x764   : > { %v7639_v46 = vcombine.low %v17299_v39, %v17278_v4  ;;  %v5644_v49 = vcombine.high %v21742_v6, %v21741_v15  ;;  %v17327_v37 = vrot.slane %v21743_v43, %v13326_v18  ;;  %v17340_v40 = vrot.slane %v7724_v1, %v13326_v18 }
 0x765   : > { %v5674_v10 = vrot.slane %v5660_v50, %v13303_v11  ;;  %12528 = vrot.lane.b32.xlu1 %v12527_v7, %s13227_s8  ;;  %v5238_v59 = vcombine.high %v16664_v41, %v16667_v35  ;;  %v5374_v52 = vcombine.high %v16688_v53, %v16732_v21  ;;  %v7365_v32 = vcombine.low %v17042_v28, %v17089_v16  ;;  %v17362_v53 = vpop.permute.xlu1 %6361  ;;  %v21746_v50 = vld [vmem:[#allocation45_spill] sm:$0xff] }
 0x766   : > { %v12602_v15 = vpack.i.bf16 %v7775_v22, %v7639_v46  ;;  %v6115_v8 = vcombine.low %v17333_v57, %v17309_v42  ;;  %v17353_v22 = vrot.slane %v6083_v19, %v13303_v11  ;;  %v17356_v1 = vrot.slane %v6099_v55, %v13303_v11  ;;  %12593 = vrot.lane.b32.xlu0 %v12592_v0, %s13229_s10  ;;  %v21747_v7 = vld [vmem:[#allocation41_spill] sm:$0xff]  ;;  %v17374_v46 = vpop.permute.xlu0 %8727  ;;  %v21752_v55 = vld [vmem:[#allocation40_spill] sm:$0xff] }
 0x767   : > { %v7777_v41 = vcombine.low %v17340_v40, %v17317_v30  ;;  %v5658_v35 = vrot.slane %v5644_v49, %v13303_v11  ;;  %21745 = vst [vmem:[#allocation81_spill] sm:$0xff] %v17362_v53  ;;  %v7501_v21 = vcombine.low %v17108_v20, %v17073_v5  ;;  %v7503_v28 = vcombine.low %v17174_v34, %v17136_v62  ;;  %v21749_v20 = vld [vmem:[#allocation43_spill] sm:$0xff]  ;;  %v21750_v49 = vld [vmem:[#allocation46_spill] sm:$0xff] }
 0x768   : > { %v7505_v16 = vcombine.low %v17225_v31, %v17201_v12  ;;  %v5692_v19 = vcombine.high %v21747_v7, %v21746_v50  ;;  %v6147_v0 = vcombine.low %v17353_v22, %v17356_v1  ;;  %21748 = vst [vmem:[#allocation74_spill] sm:$0xff] %v17374_v46  ;;  %v7641_v6 = vcombine.low %v17327_v37, %v17330_v36  ;;  %v21751_v31 = vld [vmem:[#allocation42_spill] sm:$0xff] }
 0x769   : > { %v7367_v5 = vcombine.low %v17193_v48, %v17168_v2  ;;  %v5708_v62 = vcombine.high %v21750_v49, %v21749_v20  ;;  %v5723_v34 = vcombine.low %v5658_v35, %v5674_v10  ;;  %v5724_v43 = vcombine.high %v5658_v35, %v5674_v10  ;;  %12538 = vrot.lane.b32.xlu1 %v12537_v24, %s13231_s12  ;;  %v17394_v48 = vpop.permute.xlu1 %6365  ;;  %v21757_v49 = vld [vmem:[#allocation106_spill] sm:$0xff] }
 0x76a   : > { %v7369_v12 = vcombine.low %v17249_v61, %v17222_v26  ;;  %v5676_v50 = vcombine.high %v21752_v55, %v21751_v31  ;;  %v17388_v7 = vrot.slane %v6115_v8, %v13326_v18  ;;  %v17391_v38 = vrot.slane %v6147_v0, %v13326_v18  ;;  %12603 = vrot.lane.b32.xlu0 %v12602_v15, %s13230_s11  ;;  %v17401_v8 = vpop.permute.xlu0 %7951  ;;  %v21758_v0 = vld [vmem:[#allocation110_spill] sm:$0xff]  ;;  %v21759_v55 = vld [vmem:[#allocation107_spill] sm:$0xff]  ;;  %v21766_v61 = vld [vmem:[#allocation77_spill] sm:$0xff] }
 0x76b   : > { %v12547_v2 = vpack.i.bf16 %v5374_v52, %v5238_v59  ;;  %21755 = vst [vmem:[#allocation86_spill] sm:$0xff] %v17394_v48  ;;  %v12612_v10 = vpack.i.bf16 %v7777_v41, %v7641_v6  ;;  %v12557_v35 = vpack.i.bf16 %v7501_v21, %v7365_v32  ;;  %v12567_v24 = vpack.i.bf16 %v7503_v28, %v7367_v5  ;;  %v21760_v15 = vld [vmem:[#allocation111_spill] sm:$0xff]  ;;  %v21818_v46 = vld [vmem:[#allocation118_spill] sm:$0xff] }
 0x76c   : > { %21753 = vst [vmem:[#allocation82_spill] sm:$0xff] %v17388_v7  ;;  %21754 = vst [vmem:[#allocation75_spill] sm:$0xff] %v17391_v38  ;;  %v17396_v20 = vpack.i.bf16 %v7505_v16, %v7369_v12  ;;  %v5706_v26 = vrot.slane %v5692_v19, %v13303_v11  ;;  %v7636_v31 = vcombine.high %v21758_v0, %v21757_v49  ;;  %v21761_v16 = vld [vmem:[#allocation60_spill] sm:$0xff]  ;;  %v21762_v19 = vld [vmem:[#allocation49_spill] sm:$0xff] }
 0x76d   : > { %21756 = vst [vmem:[#allocation92_spill] sm:$0xff] %v17401_v8  ;;  %v7772_v59 = vcombine.high %v21760_v15, %v21759_v55  ;;  %v17408_v52 = vrot.slane %v5708_v62, %v13326_v18  ;;  %v17411_v32 = vrot.slane %v5723_v34, %v13326_v18  ;;  %v17414_v41 = vrot.slane %v5724_v43, %v13326_v18  ;;  %v21763_v34 = vld [vmem:[#allocation48_spill] sm:$0xff]  ;;  %v21764_v43 = vld [vmem:[#allocation47_spill] sm:$0xff]  ;;  %v21775_v55 = vld [vmem:[#allocation109_spill] sm:$0xff] }
 0x76e   : > { %12548 = vrot.lane.b32.xlu1 %v12547_v2, %s13233_s14  ;;  %v7638_v21 = vcombine.high %v17263_v60, %v17238_v45  ;;  %v5690_v28 = vrot.slane %v5676_v50, %v13303_v11  ;;  %v5932_v6 = vcombine.high %v21762_v19, %v21761_v16  ;;  %12613 = vrot.lane.b32.xlu0 %v12612_v10, %s13232_s13  ;;  %v21765_v2 = vld [vmem:[#allocation98_spill] sm:$0xff]  ;;  %v17431_v45 = vpop.permute.xlu1 %6369  ;;  %v21809_v38 = vld [vmem:[#allocation120_spill] sm:$0xff] }
 0x76f   : > { %v7774_v5 = vcombine.high %v17241_v47, %v17211_v44  ;;  %v7776_v62 = vcombine.high %v17281_v29, %v17254_v3  ;;  %v5740_v12 = vcombine.high %v21764_v43, %v21763_v34  ;;  %v5964_v49 = vcombine.high %v21766_v61, %v21765_v2  ;;  %21767 = vst [vmem:[#allocation162_spill] sm:$0xff] %v17431_v45  ;;  %v21768_v44 = vld [vmem:[#allocation53_spill] sm:$0xff]  ;;  %v21769_v47 = vld [vmem:[#allocation44_spill] sm:$0xff]  ;;  %v21771_v29 = vld [vmem:[#allocation54_spill] sm:$0xff]  ;;  %v17441_v34 = vpop.permute.xlu0 %7955 }
 0x770   : > { %v7640_v60 = vcombine.high %v17299_v39, %v17278_v4  ;;  %v7778_v50 = vcombine.high %v17340_v40, %v17317_v30  ;;  %v5755_v10 = vcombine.low %v5690_v28, %v5706_v26  ;;  %v5756_v16 = vcombine.high %v5690_v28, %v5706_v26  ;;  %v21770_v3 = vld [vmem:[#allocation69_spill] sm:$0xff]  ;;  %21772 = vst [vmem:[#allocation164_spill] sm:$0xff] %v17441_v34  ;;  %v21774_v61 = vld [vmem:[#allocation67_spill] sm:$0xff]  ;;  %v21776_v15 = vld [vmem:[#allocation90_spill] sm:$0xff] }
 0x771   : > { %v5916_v19 = vcombine.high %v21769_v47, %v21768_v44  ;;  %v6440_v0 = vcombine.high %v21771_v29, %v21770_v3  ;;  %v21773_v43 = vld [vmem:[#allocation85_spill] sm:$0xff]  ;;  %v6472_v7 = vcombine.high %v21776_v15, %v21775_v55  ;;  %v12587_v4 = vpack.i.bf16 %v7772_v59, %v7636_v31  ;;  %v21777_v30 = vld [vmem:[#allocation63_spill] sm:$0xff]  ;;  %v21778_v40 = vld [vmem:[#allocation50_spill] sm:$0xff] }
 0x772   : > { %v5948_v2 = vcombine.high %v21774_v61, %v21773_v43  ;;  %12558 = vrot.lane.b32.xlu1 %v12557_v35, %s13229_s10  ;;  %v7642_v39 = vcombine.high %v17327_v37, %v17330_v36  ;;  %v6424_v26 = vcombine.high %v21778_v40, %v21777_v30  ;;  %v5946_v28 = vrot.slane %v5932_v6, %v13303_v11  ;;  %v21779_v35 = vld [vmem:[#allocation99_spill] sm:$0xff]  ;;  %v21780_v31 = vld [vmem:[#allocation80_spill] sm:$0xff]  ;;  %v17465_v36 = vpop.permute.xlu1 %6373  ;;  %v21784_v3 = vld [vmem:[#allocation97_spill] sm:$0xff] }
 0x773   : > { %10277 = vrot.lane.b32.xlu0 %v21578_v27, %s13226_s30  ;;  %v17455_v44 = vpack.i.bf16 %v7774_v5, %v7638_v21  ;;  %v17457_v47 = vpack.i.bf16 %v7776_v62, %v7640_v60  ;;  %v17460_v55 = vrot.slane %v5740_v12, %v13326_v18  ;;  %v6456_v15 = vcombine.high %v21780_v31, %v21779_v35  ;;  %v17477_v12 = vpop.permute.xlu0 %7959  ;;  %v21783_v60 = vld [vmem:[#allocation95_spill] sm:$0xff]  ;;  %v21787_v30 = vld [vmem:[#allocation104_spill] sm:$0xff] }
 0x774   : > { %v5978_v37 = vrot.slane %v5964_v49, %v13303_v11  ;;  %21781 = vst [vmem:[#allocation152_spill] sm:$0xff] %v17465_v36  ;;  %v17467_v59 = vpack.i.bf16 %v7778_v50, %v7642_v39  ;;  %v17470_v6 = vrot.slane %v5755_v10, %v13326_v18  ;;  %v17473_v21 = vrot.slane %v5756_v16, %v13326_v18  ;;  %v21785_v10 = vld [vmem:[#allocation52_spill] sm:$0xff]  ;;  %v21786_v43 = vld [vmem:[#allocation51_spill] sm:$0xff] }
 0x775   : > { %v5930_v5 = vrot.slane %v5916_v19, %v13303_v11  ;;  %v6454_v62 = vrot.slane %v6440_v0, %v13303_v11  ;;  %21782 = vst [vmem:[#allocation153_spill] sm:$0xff] %v17477_v12  ;;  %v5980_v29 = vcombine.high %v21784_v3, %v21783_v60  ;;  %v5962_v49 = vrot.slane %v5948_v2, %v13303_v11  ;;  %v21788_v0 = vld [vmem:[#allocation103_spill] sm:$0xff]  ;;  %v21790_v60 = vld [vmem:[#allocation102_spill] sm:$0xff]  ;;  %v21791_v3 = vld [vmem:[#allocation108_spill] sm:$0xff] }
 0x776   : > { %v6486_v50 = vrot.slane %v6472_v7, %v13303_v11  ;;  %12568 = vrot.lane.b32.xlu1 %v12567_v24, %s13230_s11  ;;  %v6438_v16 = vrot.slane %v6424_v26, %v13303_v11  ;;  %v6012_v40 = vcombine.high %v21788_v0, %v21787_v30  ;;  %v6470_v35 = vrot.slane %v6456_v15, %v13303_v11  ;;  %v17492_v7 = vpop.permute.xlu1 %6377  ;;  %v21794_v15 = vld [vmem:[#allocation115_spill] sm:$0xff]  ;;  %v21799_v30 = vld [vmem:[#allocation197_spill] sm:$0xff] }
 0x777   : > { %v5995_v39 = vcombine.low %v5930_v5, %v5946_v28  ;;  %v5996_v19 = vcombine.high %v5930_v5, %v5946_v28  ;;  %10285 = vrot.lane.b32.xlu0 %v16745_v58, %s13226_s30  ;;  %v6027_v2 = vcombine.low %v5962_v49, %v5978_v37  ;;  %v6028_v31 = vcombine.high %v5962_v49, %v5978_v37  ;;  %v17498_v5 = vpop.permute.xlu0 %7963  ;;  %v21795_v37 = vld [vmem:[#allocation114_spill] sm:$0xff] }
 0x778   : > { %21789 = vst [vmem:[#allocation91_spill] sm:$0xff] %v17492_v7  ;;  %v6488_v26 = vcombine.high %v21791_v3, %v21790_v60  ;;  %v6503_v61 = vcombine.low %v6438_v16, %v6454_v62  ;;  %v6504_v28 = vcombine.high %v6438_v16, %v6454_v62  ;;  %21792 = vst [vmem:[#allocation96_spill] sm:$0xff] %v17498_v5 }
 0x779   : > { %v17503_v0 = vrot.slane %v5980_v29, %v13326_v18  ;;  %v6520_v49 = vcombine.high %v21795_v37, %v21794_v15  ;;  %v6535_v27 = vcombine.low %v6470_v35, %v6486_v50  ;;  %v17512_v62 = vrot.slane %v5995_v39, %v13326_v18 }
 0x77a   : > { %12578 = vrot.lane.b32.xlu1 %v17396_v20, %s13232_s13  ;;  %v17515_v16 = vrot.slane %v5996_v19, %v13326_v18  ;;  %v17518_v3 = vrot.slane %v6012_v40, %v13326_v18  ;;  %v6536_v29 = vcombine.high %v6470_v35, %v6486_v50  ;;  %v17523_v15 = vrot.slane %v6027_v2, %v13326_v18  ;;  %v17528_v37 = vpop.permute.xlu1 %6381  ;;  %v21819_v19 = vld [vmem:[#allocation123_spill] sm:$0xff] }
 0x77b   : > { %21793 = vst [vmem:[#allocation172_spill] sm:$0xff] %v17503_v0  ;;  %21796 = vst [vmem:[#allocation4_spill] sm:$0xff] %v17512_v62  ;;  %10293 = vrot.lane.b32.xlu0 %v21799_v30, %s13226_s30  ;;  %v17526_v20 = vrot.slane %v6028_v31, %v13326_v18  ;;  %v17535_v40 = vrot.slane %v6488_v26, %v13326_v18  ;;  %v17538_v50 = vrot.slane %v6503_v61, %v13326_v18  ;;  %v17543_v2 = vpop.permute.xlu0 %7967  ;;  %v21810_v26 = vld [vmem:[#allocation105_spill] sm:$0xff]  ;;  %v21820_v61 = vld [vmem:[#allocation116_spill] sm:$0xff] }
 0x77c   : > { %21797 = vst [vmem:[#allocation9_spill] sm:$0xff] %v17515_v16  ;;  %21798 = vst [vmem:[#allocation159_spill] sm:$0xff] %v17518_v3  ;;  %v17541_v35 = vrot.slane %v6504_v28, %v13326_v18  ;;  %v17548_v30 = vrot.slane %v6520_v49, %v13326_v18  ;;  %v17551_v24 = vrot.slane %v6535_v27, %v13326_v18  ;;  %v21812_v49 = vld [vmem:[#allocation195_spill] sm:$0xff]  ;;  %v21827_v62 = vld [vmem:[#allocation10_spill] sm:$0xff] }
 0x77d   : > { %21800 = vst [vmem:[#allocation149_spill] sm:$0xff] %v17523_v15  ;;  %21801 = vst [vmem:[#allocation126_spill] sm:$0xff] %v17526_v20  ;;  %v6696_v39 = vcombine.high %v21810_v26, %v21809_v38  ;;  %v17559_v28 = vrot.slane %v6536_v29, %v13326_v18  ;;  %v6847_v31 = vcombine.low %v17394_v48, %v17465_v36  ;;  %v21817_v38 = vld [vmem:[#allocation119_spill] sm:$0xff]  ;;  %v21824_v20 = vld [vmem:[#allocation130_spill] sm:$0xff] }
 0x77e   : > { %21802 = vst [vmem:[#allocation127_spill] sm:$0xff] %v17528_v37  ;;  %21807 = vst [vmem:[#allocation150_spill] sm:$0xff] %v17541_v35  ;;  %12588 = vrot.lane.b32.xlu1 %v12587_v4, %s13228_s9  ;;  %v17569_v26 = vpop.permute.xlu1 %6385  ;;  %v6831_v27 = vcombine.low %v17362_v53, %v17431_v45  ;;  %v21825_v48 = vld [vmem:[#allocation30_spill] sm:$0xff]  ;;  %v21828_v3 = vld [vmem:[#allocation121_spill] sm:$0xff] }
 0x77f   : > { %21808 = vst [vmem:[#allocation148_spill] sm:$0xff] %v17543_v2  ;;  %21811 = vst [vmem:[#allocation166_spill] sm:$0xff] %v17559_v28  ;;  %10301 = vrot.lane.b32.xlu0 %v21812_v49, %s13226_s30  ;;  %v17581_v58 = vpop.permute.xlu0 %7971  ;;  %v17590_v36 = vrot.slane %v6696_v39, %v13303_v11  ;;  %v6712_v49 = vcombine.high %v21820_v61, %v21819_v19  ;;  %v17601_v4 = vrot.slane %v6847_v31, %v13303_v11  ;;  %v21822_v19 = vld [vmem:[#allocation124_spill] sm:$0xff]  ;;  %v21823_v61 = vld [vmem:[#allocation117_spill] sm:$0xff] }
 0x780   : > { %21813 = vst [vmem:[#allocation13_spill] sm:$0xff] %v17569_v26  ;;  %21816 = vst [vmem:[#allocation16_spill] sm:$0xff] %v17581_v58  ;;  %v6863_v29 = vcombine.low %v17492_v7, %v17569_v26  ;;  %v5780_v60 = vcombine.high %v21823_v61, %v21822_v19  ;;  %v6744_v16 = vcombine.high %v21825_v48, %v21824_v20  ;;  %v21829_v0 = vld [vmem:[#allocation137_spill] sm:$0xff]  ;;  %v21830_v53 = vld [vmem:[#allocation128_spill] sm:$0xff] }
 0x781   : > { %21821 = vst [vmem:[#allocation84_spill] sm:$0xff] %v17601_v4  ;;  %v8167_v31 = vcombine.low %v17441_v34, %v17498_v5  ;;  %v5796_v39 = vcombine.high %v21828_v3, %v21827_v62  ;;  %v17626_v45 = vrot.slane %v6831_v27, %v13303_v11  ;;  %v17633_v20 = vrot.slane %v6712_v49, %v13303_v11  ;;  %v21833_v61 = vld [vmem:[#allocation125_spill] sm:$0xff]  ;;  %v21834_v34 = vld [vmem:[#allocation7_spill] sm:$0xff] }
 0x782   : > { %12598 = vrot.lane.b32.xlu1 %v17455_v44, %s13227_s8  ;;  %v17617_v15 = vpop.permute.xlu1 %6389  ;;  %v5828_v44 = vcombine.high %v21830_v53, %v21829_v0  ;;  %v8151_v62 = vcombine.low %v17401_v8, %v17477_v12  ;;  %v21835_v0 = vld [vmem:[#allocation132_spill] sm:$0xff]  ;;  %v21836_v3 = vld [vmem:[#allocation39_spill] sm:$0xff]  ;;  %v17648_v49 = vrot.slane %v6863_v29, %v13303_v11  ;;  %v21841_v12 = vld [vmem:[#allocation29_spill] sm:$0xff] }
 0x783   : > { %10309 = vrot.lane.b32.xlu0 %v16810_v25, %s13226_s30  ;;  %21826 = vst [vmem:[#allocation79_spill] sm:$0xff] %v17617_v15  ;;  %21831 = vst [vmem:[#allocation83_spill] sm:$0xff] %v17626_v45  ;;  %v17628_v19 = vpop.permute.xlu0 %7975  ;;  %v6879_v48 = vcombine.low %v17528_v37, %v17617_v15  ;;  %v6728_v25 = vcombine.high %v21834_v34, %v21833_v61  ;;  %v5812_v27 = vcombine.high %v21836_v3, %v21835_v0  ;;  %v21840_v8 = vld [vmem:[#allocation140_spill] sm:$0xff]  ;;  %v21858_v28 = vld [vmem:[#allocation23_spill] sm:$0xff] }
 0x784   : > { %21832 = vst [vmem:[#allocation89_spill] sm:$0xff] %v17628_v19  ;;  %v6895_v5 = vcombine.low %v17626_v45, %v17601_v4  ;;  %21837 = vst [vmem:[#allocation173_spill] sm:$0xff] %v17648_v49  ;;  %v6758_v61 = vrot.slane %v6744_v16, %v13303_v11  ;;  %v17658_v53 = vrot.slane %v8167_v31, %v13303_v11  ;;  %v21843_v16 = vld [vmem:[#allocation25_spill] sm:$0xff]  ;;  %v21844_v31 = vld [vmem:[#allocation28_spill] sm:$0xff] }
 0x785   : > { %v17651_v34 = vrot.slane %v6879_v48, %v13303_v11  ;;  %v8183_v0 = vcombine.low %v17543_v2, %v17628_v19  ;;  %v5810_v29 = vrot.slane %v5796_v39, %v13303_v11  ;;  %v5842_v48 = vrot.slane %v5828_v44, %v13303_v11  ;;  %v21847_v44 = vld [vmem:[#allocation134_spill] sm:$0xff]  ;;  %v21887_v37 = vld [vmem:[#allocation183_spill] sm:$0xff]  ;;  %v21896_v15 = vld [vmem:[#allocation165_spill] sm:$0xff] }
 0x786   : > { %12608 = vrot.lane.b32.xlu1 %v17457_v47, %s13231_s12  ;;  %v5794_v47 = vrot.slane %v5780_v60, %v13303_v11  ;;  %21839 = vst [vmem:[#allocation167_spill] sm:$0xff] %v17658_v53  ;;  %v17662_v3 = vpop.permute.xlu1 %7953  ;;  %v5876_v45 = vcombine.high %v21841_v12, %v21840_v8  ;;  %v5844_v4 = vcombine.high %v21844_v31, %v21843_v16  ;;  %v21846_v12 = vld [vmem:[#allocation135_spill] sm:$0xff] }
 0x787   : > { %21838 = vst [vmem:[#allocation76_spill] sm:$0xff] %v17651_v34  ;;  %10317 = vrot.lane.b32.xlu0 %v16773_v54, %s13226_s30  ;;  %v6927_v60 = vcombine.low %v17648_v49, %v17651_v34  ;;  %v17670_v54 = vpop.permute.xlu0 %7979  ;;  %v6742_v7 = vrot.slane %v6728_v25, %v13303_v11  ;;  %v17676_v2 = vrot.slane %v8151_v62, %v13303_v11  ;;  %v21850_v25 = vld [vmem:[#allocation201_spill] sm:$0xff] }
 0x788   : > { %21842 = vst [vmem:[#allocation8_spill] sm:$0xff] %v17670_v54  ;;  %v8199_v39 = vcombine.low %v17581_v58, %v17670_v54  ;;  %v5826_v8 = vrot.slane %v5812_v27, %v13303_v11  ;;  %v6792_v19 = vcombine.high %v21847_v44, %v21846_v12  ;;  %v17686_v49 = vrot.slane %v6895_v5, %v13326_v18  ;;  %v21854_v58 = vld [vmem:[#allocation33_spill] sm:$0xff]  ;;  %v21855_v54 = vld [vmem:[#allocation36_spill] sm:$0xff] }
 0x789   : > { %21845 = vst [vmem:[#allocation193_spill] sm:$0xff] %v17676_v2  ;;  %v17689_v16 = vrot.slane %v6927_v60, %v13326_v18  ;;  %v6807_v62 = vcombine.low %v6742_v7, %v6758_v61  ;;  %v8215_v31 = vcombine.low %v17676_v2, %v17658_v53  ;;  %v17704_v5 = vrot.slane %v5876_v45, %v13326_v18  ;;  %v21856_v53 = vld [vmem:[#allocation129_spill] sm:$0xff] }
 0x78a   : > { %12618 = vrot.lane.b32.xlu1 %v17467_v59, %s13233_s14  ;;  %21848 = vst [vmem:[#allocation191_spill] sm:$0xff] %v17686_v49  ;;  %v17696_v59 = vrot.slane %v8183_v0, %v13303_v11  ;;  %v17699_v27 = vrot.slane %v8199_v39, %v13303_v11  ;;  %v17701_v12 = vpop.permute.xlu1 %7957  ;;  %v5891_v60 = vcombine.low %v5826_v8, %v5842_v48  ;;  %v21857_v0 = vld [vmem:[#allocation131_spill] sm:$0xff] }
 0x78b   : > { %21849 = vst [vmem:[#allocation24_spill] sm:$0xff] %v17689_v16  ;;  %10325 = vrot.lane.b32.xlu0 %v21850_v25, %s13226_s30  ;;  %v17708_v25 = vpop.permute.xlu0 %8733  ;;  %v5908_v2 = vcombine.high %v21855_v54, %v21854_v58  ;;  %v6760_v34 = vcombine.high %v21857_v0, %v21856_v53  ;;  %v6775_v39 = vcombine.low %v17590_v36, %v17633_v20  ;;  %v21859_v53 = vld [vmem:[#allocation198_spill] sm:$0xff]  ;;  %v21875_v16 = vld [vmem:[#allocation179_spill] sm:$0xff] }
 0x78c   : > { %21851 = vst [vmem:[#allocation20_spill] sm:$0xff] %v17696_v59  ;;  %21852 = vst [vmem:[#allocation38_spill] sm:$0xff] %v17699_v27  ;;  %v6808_v26 = vcombine.high %v6742_v7, %v6758_v61  ;;  %v8247_v45 = vcombine.low %v17696_v59, %v17699_v27  ;;  %v6776_v44 = vcombine.high %v17590_v36, %v17633_v20  ;;  %v21882_v59 = vld [vmem:[#allocation15_spill] sm:$0xff]  ;;  %v21883_v27 = vld [vmem:[#allocation205_spill] sm:$0xff] }
 0x78d   : > { %21853 = vst [vmem:[#allocation35_spill] sm:$0xff] %v17708_v25  ;;  %v17723_v25 = vrot.slane %v5844_v4, %v13326_v18  ;;  %v5859_v58 = vcombine.low %v5794_v47, %v5810_v29  ;;  %v5892_v54 = vcombine.high %v5826_v8, %v5842_v48  ;;  %v5860_v0 = vcombine.high %v5794_v47, %v5810_v29 }
 0x78e   : > { %10281 = vrot.lane.b32.xlu1 %v21858_v28, %s13226_s30  ;;  %v17728_v7 = vrot.slane %v6792_v19, %v13326_v18  ;;  %v17731_v61 = vrot.slane %v8215_v31, %v13326_v18  ;;  %v17734_v28 = vrot.slane %v8247_v45, %v13326_v18  ;;  %v17736_v49 = vpop.permute.xlu1 %7961  ;;  %v17739_v36 = vrot.slane %v6807_v62, %v13326_v18  ;;  %v21867_v62 = vld [vmem:[#allocation151_spill] sm:$0xff]  ;;  %v21868_v31 = vld [vmem:[#allocation141_spill] sm:$0xff] }
 0x78f   : > { %10333 = vrot.lane.b32.xlu0 %v21859_v53, %s13226_s30  ;;  %v17742_v4 = vrot.slane %v5891_v60, %v13326_v18  ;;  %v17744_v20 = vpop.permute.xlu0 %8741  ;;  %v21865_v19 = vcombine.high %v21786_v43, %v21785_v10  ;;  %v5910_v29 = vcombine.high %v17723_v25, %v17704_v5  ;;  %v17752_v48 = vrot.slane %v6760_v34, %v13326_v18  ;;  %v21872_v10 = vld [vmem:[#allocation136_spill] sm:$0xff]  ;;  %v21873_v43 = vld [vmem:[#allocation71_spill] sm:$0xff]  ;;  %v21874_v53 = vld [vmem:[#allocation145_spill] sm:$0xff] }
 0x790   : > { %21860 = vst [vmem:[#allocation178_spill] sm:$0xff] %v17728_v7  ;;  %21861 = vst [vmem:[#allocation68_spill] sm:$0xff] %v17731_v61  ;;  %v17755_v8 = vrot.slane %v6808_v26, %v13326_v18  ;;  %v8304_v45 = vcombine.high %v21868_v31, %v21867_v62  ;;  %v5867_v34 = vrot.slane %v5859_v58, %v13326_v18  ;;  %v21871_v31 = vld [vmem:[#allocation144_spill] sm:$0xff] }
 0x791   : > { %21862 = vst [vmem:[#allocation37_spill] sm:$0xff] %v17734_v28  ;;  %21863 = vst [vmem:[#allocation34_spill] sm:$0xff] %v17739_v36  ;;  %v12622_v47 = vpack.i.bf16 %v5908_v2, %v21865_v19  ;;  %v17764_v2 = vrot.slane %v6775_v39, %v13326_v18  ;;  %v17767_v19 = vrot.slane %v6776_v44, %v13326_v18  ;;  %v21876_v39 = vld [vmem:[#allocation78_spill] sm:$0xff] }
 0x792   : > { %21864 = vst [vmem:[#allocation45_spill] sm:$0xff] %v17744_v20  ;;  %21866 = vst [vmem:[#allocation41_spill] sm:$0xff] %v17752_v48  ;;  %v21869_v20 = vld [vmem:[#allocation66_spill] sm:$0xff]  ;;  %v5906_v26 = vrot.slane %v5892_v54, %v13326_v18  ;;  %v5874_v62 = vrot.slane %v5860_v0, %v13326_v18  ;;  %v8288_v60 = vcombine.high %v21872_v10, %v21871_v31  ;;  %v17779_v28 = vpop.permute.xlu1 %7965  ;;  %v21895_v48 = vld [vmem:[#allocation73_spill] sm:$0xff] }
 0x793   : > { %10289 = vrot.lane.b32.xlu1 %v21869_v20, %s13226_s30  ;;  %21870 = vst [vmem:[#allocation43_spill] sm:$0xff] %v17764_v2  ;;  %12623 = vrot.lane.b32.xlu0 %v12622_v47, %s13228_s9  ;;  %v6576_v20 = vcombine.high %v21874_v53, %v21873_v43  ;;  %v6608_v61 = vcombine.high %v21876_v39, %v21875_v16  ;;  %v17781_v44 = vpop.permute.xlu0 %8749  ;;  %v21879_v43 = vld [vmem:[#allocation154_spill] sm:$0xff]  ;;  %v21881_v39 = vld [vmem:[#allocation171_spill] sm:$0xff] }
 0x794   : > { %21877 = vst [vmem:[#allocation46_spill] sm:$0xff] %v17781_v44  ;;  %v21878_v58 = vcombine.high %v17408_v52, %v17460_v55  ;;  %v5912_v47 = vcombine.high %v5867_v34, %v17742_v4  ;;  %v21880_v53 = vld [vmem:[#allocation142_spill] sm:$0xff]  ;;  %v8318_v16 = vrot.slane %v8304_v45, %v13303_v11  ;;  %v6592_v44 = vcombine.high %v21882_v59, %v21881_v39 }
 0x795   : > { %v6560_v31 = vcombine.high %v21880_v53, %v21879_v43  ;;  %v8302_v59 = vrot.slane %v8288_v60, %v13303_v11  ;;  %v6590_v53 = vrot.slane %v6576_v20, %v13303_v11  ;;  %v6622_v39 = vrot.slane %v6608_v61, %v13303_v11  ;;  %v21890_v61 = vld [vmem:[#allocation70_spill] sm:$0xff] }
 0x796   : > { %v12632_v54 = vpack.i.bf16 %v5910_v29, %v21878_v58  ;;  %v5914_v58 = vcombine.high %v5874_v62, %v5906_v26  ;;  %v21886_v29 = vld [vmem:[#allocation184_spill] sm:$0xff]  ;;  %v21889_v43 = vcombine.high %v17411_v32, %v17470_v6  ;;  %v5911_v60 = vcombine.low %v5867_v34, %v17742_v4  ;;  %v21891_v36 = vld [vmem:[#allocation26_spill] sm:$0xff] }
 0x797   : > { %10297 = vrot.lane.b32.xlu1 %v21883_v27, %s13226_s30  ;;  %v17810_v27 = vpop.permute.xlu1 %7969  ;;  %v6656_v10 = vcombine.high %v21887_v37, %v21886_v29  ;;  %v17816_v0 = vpop.permute.xlu0 %8757  ;;  %v5913_v35 = vcombine.low %v5874_v62, %v5906_v26  ;;  %v6574_v20 = vrot.slane %v6560_v31, %v13303_v11  ;;  %v8352_v2 = vcombine.high %v21891_v36, %v21890_v61  ;;  %v21893_v37 = vld [vmem:[#allocation176_spill] sm:$0xff] }
 0x798   : > { %12633 = vrot.lane.b32.xlu0 %v12632_v54, %s13227_s8  ;;  %v5909_v54 = vcombine.low %v17723_v25, %v17704_v5  ;;  %21888 = vst [vmem:[#allocation42_spill] sm:$0xff] %v17816_v0  ;;  %v12642_v45 = vpack.i.bf16 %v5912_v47, %v21889_v43  ;;  %v8367_v7 = vcombine.low %v8302_v59, %v8318_v16  ;;  %v21892_v5 = vld [vmem:[#allocation55_spill] sm:$0xff]  ;;  %v21894_v29 = vld [vmem:[#allocation180_spill] sm:$0xff] }
 0x799   : > { %v6606_v25 = vrot.slane %v6592_v44, %v13303_v11  ;;  %v6624_v0 = vcombine.high %v21894_v29, %v21893_v37  ;;  %v8336_v47 = vcombine.high %v21896_v15, %v21895_v48  ;;  %v21897_v4 = vcombine.high %v17414_v41, %v17473_v21  ;;  %v21899_v15 = vld [vmem:[#allocation72_spill] sm:$0xff]  ;;  %v21902_v29 = vld [vmem:[#allocation189_spill] sm:$0xff] }
 0x79a   : > { %v8368_v26 = vcombine.high %v8302_v59, %v8318_v16  ;;  %v6639_v62 = vcombine.low %v6574_v20, %v6590_v53  ;;  %v21898_v43 = vcombine.low %v17408_v52, %v17460_v55  ;;  %v21900_v48 = vld [vmem:[#allocation160_spill] sm:$0xff]  ;;  %v17848_v37 = vrot.slane %v6656_v10, %v13326_v18 }
 0x79b   : > { %10305 = vrot.lane.b32.xlu1 %v21892_v5, %s13226_s30  ;;  %v12652_v34 = vpack.i.bf16 %v5914_v58, %v21897_v4  ;;  %v6671_v44 = vcombine.low %v6606_v25, %v6622_v39  ;;  %v17838_v31 = vpop.permute.xlu1 %7973  ;;  %v17850_v58 = vpop.permute.xlu0 %8731  ;;  %v21903_v4 = vld [vmem:[#allocation32_spill] sm:$0xff]  ;;  %v21904_v59 = vcombine.low %v17411_v32, %v17470_v6  ;;  %v17860_v52 = vrot.slane %v8352_v2, %v13326_v18  ;;  %v21959_v5 = vld [vmem:[#allocation173_spill] sm:$0xff] }
 0x79c   : > { %12643 = vrot.lane.b32.xlu0 %v12642_v45, %s13231_s12  ;;  %v17843_v61 = vpack.i.bf16 %v5909_v54, %v21898_v43  ;;  %v8320_v45 = vcombine.high %v21900_v48, %v21899_v15  ;;  %21901 = vst [vmem:[#allocation40_spill] sm:$0xff] %v17850_v58  ;;  %v6688_v16 = vcombine.high %v21903_v4, %v21902_v29  ;;  %v21922_v29 = vld [vmem:[#allocation208_spill] sm:$0xff]  ;;  %v21923_v4 = vld [vmem:[#allocation199_spill] sm:$0xff] }
 0x79d   : > { %v17857_v36 = vpack.i.bf16 %v5911_v60, %v21904_v59  ;;  %21905 = vst [vmem:[#allocation60_spill] sm:$0xff] %v17860_v52  ;;  %v17863_v55 = vrot.slane %v8367_v7, %v13326_v18  ;;  %v6640_v54 = vcombine.high %v6574_v20, %v6590_v53  ;;  %v21907_v10 = vcombine.low %v17414_v41, %v17473_v21  ;;  %v21965_v52 = vld [vmem:[#allocation186_spill] sm:$0xff] }
 0x79e   : > { %v17873_v15 = vrot.slane %v6624_v0, %v13326_v18  ;;  %v17876_v32 = vrot.slane %v8336_v47, %v13303_v11  ;;  %v6672_v6 = vcombine.high %v6606_v25, %v6622_v39  ;;  %v8439_v7 = vcombine.low %v17701_v12, %v17779_v28 }
 0x79f   : > { %21906 = vst [vmem:[#allocation49_spill] sm:$0xff] %v17863_v55  ;;  %10313 = vrot.lane.b32.xlu1 %v16845_v17, %s13226_s30  ;;  %v17870_v43 = vpack.i.bf16 %v5913_v35, %v21907_v10  ;;  %v17882_v2 = vrot.slane %v8368_v26, %v13326_v18  ;;  %v17885_v53 = vrot.slane %v6639_v62, %v13326_v18  ;;  %v17892_v35 = vpop.permute.xlu1 %7977  ;;  %v17899_v60 = vpop.permute.xlu0 %8739 }
 0x7a0   : > { %12653 = vrot.lane.b32.xlu0 %v12652_v34, %s13233_s14  ;;  %v17888_v41 = vrot.slane %v6671_v44, %v13326_v18  ;;  %v6100_v21 = vcombine.high %v17227_v23, %v17321_v33  ;;  %v17895_v0 = vrot.slane %v8320_v45, %v13303_v11  ;;  %v8423_v39 = vcombine.low %v17662_v3, %v17736_v49  ;;  %v21911_v23 = vld [vmem:[#allocation175_spill] sm:$0xff]  ;;  %v21912_v33 = vld [vmem:[#allocation174_spill] sm:$0xff] }
 0x7a1   : > { %21908 = vst [vmem:[#allocation48_spill] sm:$0xff] %v17882_v2  ;;  %21909 = vst [vmem:[#allocation47_spill] sm:$0xff] %v17899_v60  ;;  %v21910_v20 = vcombine.high %v21818_v46, %v21817_v38  ;;  %v6690_v47 = vcombine.high %v17873_v15, %v17848_v37  ;;  %v17907_v34 = vrot.slane %v6640_v54, %v13326_v18  ;;  %v21921_v38 = vld [vmem:[#allocation185_spill] sm:$0xff] }
 0x7a2   : > { %v8384_v26 = vcombine.high %v21912_v33, %v21911_v23  ;;  %v6068_v62 = vcombine.high %v17001_v63, %v17116_v13  ;;  %v6084_v44 = vcombine.high %v17180_v51, %v17283_v14  ;;  %v8399_v48 = vcombine.low %v17895_v0, %v17876_v32  ;;  %v21914_v63 = vld [vmem:[#allocation57_spill] sm:$0xff]  ;;  %v21916_v14 = vld [vmem:[#allocation219_spill] sm:$0xff] }
 0x7a3   : > { %v12657_v25 = vpack.i.bf16 %v6688_v16, %v21910_v20  ;;  %10321 = vrot.lane.b32.xlu1 %v16848_v9, %s13226_s30  ;;  %v17920_v45 = vrot.slane %v6672_v6, %v13326_v18  ;;  %v17923_v16 = vrot.slane %v8439_v7, %v13303_v11  ;;  %v8455_v59 = vcombine.low %v17810_v27, %v17892_v35  ;;  %v21915_v13 = vld [vmem:[#allocation237_spill] sm:$0xff]  ;;  %v17933_v20 = vpop.permute.xlu1 %7981 }
 0x7a4   : > { %v9115_v51 = vcombine.low %v21914_v63, %v16886_v56  ;;  %v6052_v54 = vcombine.high %v21916_v14, %v21915_v13  ;;  %v6114_v10 = vrot.slane %v6100_v21, %v13303_v11  ;;  %v6692_v6 = vcombine.high %v17885_v53, %v17888_v41  ;;  %v21920_v14 = vld [vmem:[#allocation196_spill] sm:$0xff] }
 0x7a5   : > { %21913 = vst [vmem:[#allocation98_spill] sm:$0xff] %v17923_v16  ;;  %12658 = vrot.lane.b32.xlu0 %v12657_v25, %s13228_s9  ;;  %v6148_v7 = vcombine.high %v17353_v22, %v17356_v1  ;;  %v17940_v23 = vrot.slane %v8423_v39, %v13303_v11  ;;  %v17942_v25 = vpop.permute.xlu0 %8747  ;;  %v8471_v33 = vcombine.low %v17838_v31, %v17933_v20  ;;  %v21924_v39 = vld [vmem:[#allocation207_spill] sm:$0xff] }
 0x7a6   : > { %21918 = vst [vmem:[#allocation53_spill] sm:$0xff] %v17942_v25  ;;  %v21919_v13 = vcombine.high %v17535_v40, %v17548_v30  ;;  %v9083_v46 = vcombine.low %v21921_v38, %v21920_v14  ;;  %v9099_v58 = vcombine.low %v21923_v4, %v21922_v29  ;;  %v6082_v22 = vrot.slane %v6068_v62, %v13303_v11  ;;  %v21926_v62 = vld [vmem:[#allocation190_spill] sm:$0xff]  ;;  %v21927_v4 = vld [vmem:[#allocation177_spill] sm:$0xff]  ;;  %v21940_v14 = vld [vmem:[#allocation79_spill] sm:$0xff] }
 0x7a7   : > { %21917 = vst [vmem:[#allocation77_spill] sm:$0xff] %v17940_v23  ;;  %v6098_v1 = vrot.slane %v6084_v44, %v13303_v11  ;;  %10329 = vrot.lane.b32.xlu1 %v21924_v39, %s13226_s30  ;;  %v6116_v25 = vcombine.high %v17333_v57, %v17309_v42  ;;  %v8487_v60 = vcombine.low %v17940_v23, %v17923_v16  ;;  %v17974_v57 = vpop.permute.xlu1 %8737  ;;  %v21934_v38 = vld [vmem:[#allocation62_spill] sm:$0xff]  ;;  %v21978_v16 = vld [vmem:[#allocation217_spill] sm:$0xff] }
 0x7a8   : > { %v12667_v21 = vpack.i.bf16 %v6690_v47, %v21919_v13  ;;  %v17962_v47 = vrot.slane %v8455_v59, %v13303_v11  ;;  %v17965_v13 = vrot.slane %v8471_v33, %v13303_v11  ;;  %v9067_v44 = vcombine.low %v21927_v4, %v21926_v62  ;;  %21929 = vst [vmem:[#allocation54_spill] sm:$0xff] %v17974_v57 }
 0x7a9   : > { %v17971_v29 = vrot.slane %v9115_v51, %v13303_v11  ;;  %v6066_v63 = vrot.slane %v6052_v54, %v13303_v11  ;;  %v6163_v42 = vcombine.low %v6098_v1, %v6114_v10  ;;  %v17977_v56 = vrot.slane %v6148_v7, %v13326_v18  ;;  %v17981_v33 = vpop.permute.xlu0 %8755 }
 0x7aa   : > { %21925 = vst [vmem:[#allocation44_spill] sm:$0xff] %v17962_v47  ;;  %12668 = vrot.lane.b32.xlu0 %v12667_v21, %s13227_s8  ;;  %v8519_v59 = vcombine.low %v17962_v47, %v17965_v13  ;;  %21930 = vst [vmem:[#allocation85_spill] sm:$0xff] %v17981_v33  ;;  %v21931_v21 = vcombine.high %v17538_v50, %v17551_v24  ;;  %v6694_v51 = vcombine.high %v17907_v34, %v17920_v45  ;;  %v21979_v47 = vld [vmem:[#allocation59_spill] sm:$0xff] }
 0x7ab   : > { %21928 = vst [vmem:[#allocation69_spill] sm:$0xff] %v17971_v29  ;;  %v8400_v54 = vcombine.high %v17895_v0, %v17876_v32  ;;  %v17991_v57 = vrot.slane %v9083_v46, %v13303_v11  ;;  %v17994_v7 = vrot.slane %v9099_v58, %v13303_v11  ;;  %v6131_v62 = vcombine.low %v6066_v63, %v6082_v22 }
 0x7ac   : > { %v12677_v4 = vpack.i.bf16 %v6692_v6, %v21931_v21  ;;  %10337 = vrot.lane.b32.xlu1 %v21934_v38, %s13226_s30  ;;  %v17999_v33 = vrot.slane %v8384_v26, %v13326_v18  ;;  %v18002_v6 = vrot.slane %v6116_v25, %v13326_v18  ;;  %v18005_v21 = vrot.slane %v8487_v60, %v13326_v18  ;;  %v18019_v25 = vpop.permute.xlu1 %8745  ;;  %v21941_v60 = vld [vmem:[#allocation127_spill] sm:$0xff] }
 0x7ad   : > { %21932 = vst [vmem:[#allocation67_spill] sm:$0xff] %v17991_v57  ;;  %21933 = vst [vmem:[#allocation109_spill] sm:$0xff] %v17994_v7  ;;  %v18008_v32 = vrot.slane %v8519_v59, %v13326_v18  ;;  %v18012_v46 = vrot.slane %v9067_v44, %v13303_v11  ;;  %v9163_v58 = vcombine.low %v17994_v7, %v17971_v29  ;;  %v18025_v38 = vpop.permute.xlu0 %12483  ;;  %v21944_v44 = vld [vmem:[#allocation166_spill] sm:$0xff]  ;;  %v21950_v7 = vld [vmem:[#allocation13_spill] sm:$0xff] }
 0x7ae   : > { %21935 = vst [vmem:[#allocation90_spill] sm:$0xff] %v17999_v33  ;;  %21936 = vst [vmem:[#allocation63_spill] sm:$0xff] %v18005_v21  ;;  %12678 = vrot.lane.b32.xlu0 %v12677_v4, %s13231_s12  ;;  %v6164_v0 = vcombine.high %v6098_v1, %v6114_v10  ;;  %v18017_v26 = vrot.slane %v6163_v42, %v13326_v18  ;;  %v6880_v39 = vcombine.high %v21941_v60, %v21940_v14  ;;  %v21943_v4 = vld [vmem:[#allocation150_spill] sm:$0xff]  ;;  %v21951_v29 = vld [vmem:[#allocation91_spill] sm:$0xff] }
 0x7af   : > { %21937 = vst [vmem:[#allocation50_spill] sm:$0xff] %v18008_v32  ;;  %21938 = vst [vmem:[#allocation99_spill] sm:$0xff] %v18012_v46  ;;  %v21945_v17 = vcombine.high %v21943_v4, %v21944_v44  ;;  %v6181_v10 = vcombine.low %v18002_v6, %v17977_v56  ;;  %v18033_v1 = vrot.slane %v8399_v48, %v13326_v18  ;;  %v21964_v33 = vld [vmem:[#allocation56_spill] sm:$0xff] }
 0x7b0   : > { %21939 = vst [vmem:[#allocation80_spill] sm:$0xff] %v18019_v25  ;;  %21942 = vst [vmem:[#allocation95_spill] sm:$0xff] %v18025_v38  ;;  %v9131_v42 = vcombine.low %v18012_v46, %v17991_v57  ;;  %v6132_v25 = vcombine.high %v6066_v63, %v6082_v22  ;;  %v18038_v14 = vrot.slane %v6131_v62, %v13326_v18  ;;  %12628 = vrot.lane.b32.xlu1 %v17843_v61, %s13229_s10  ;;  %v21952_v22 = vld [vmem:[#allocation202_spill] sm:$0xff]  ;;  %v21953_v62 = vld [vmem:[#allocation192_spill] sm:$0xff] }
 0x7b1   : > { %v12687_v9 = vpack.i.bf16 %v6694_v51, %v21945_v17  ;;  %21946 = vst [vmem:[#allocation97_spill] sm:$0xff] %v18033_v1  ;;  %v18043_v60 = vrot.slane %v8400_v54, %v13326_v18  ;;  %v21948_v17 = vld [vmem:[#allocation152_spill] sm:$0xff]  ;;  %v21949_v51 = vld [vmem:[#allocation86_spill] sm:$0xff]  ;;  %v6864_v48 = vcombine.high %v21951_v29, %v21950_v7  ;;  %v8032_v46 = vcombine.high %v21953_v62, %v21952_v22  ;;  %v18060_v54 = vpop.permute.xlu1 %8753  ;;  %v21957_v7 = vld [vmem:[#allocation81_spill] sm:$0xff]  ;;  %v18069_v22 = vpop.permute.xlu0 %12493 }
 0x7b2   : > { %v6848_v59 = vcombine.high %v21949_v51, %v21948_v17  ;;  %v18055_v57 = vrot.slane %v9163_v58, %v13326_v18  ;;  %v18058_v61 = vrot.slane %v6164_v0, %v13326_v18  ;;  %21955 = vst [vmem:[#allocation102_spill] sm:$0xff] %v18060_v54  ;;  %v6183_v17 = vcombine.low %v18038_v14, %v18017_v26  ;;  %v21956_v29 = vld [vmem:[#allocation162_spill] sm:$0xff]  ;;  %v21958_v63 = vld [vmem:[#allocation76_spill] sm:$0xff]  ;;  %v21962_v62 = vld [vmem:[#allocation159_spill] sm:$0xff] }
 0x7b3   : > { %21947 = vst [vmem:[#allocation104_spill] sm:$0xff] %v18043_v60  ;;  %12688 = vrot.lane.b32.xlu0 %v12687_v9, %s13233_s14  ;;  %v6832_v9 = vcombine.high %v21957_v7, %v21956_v29  ;;  %v6894_v51 = vrot.slane %v6880_v39, %v13303_v11  ;;  %v6928_v21 = vcombine.high %v21959_v5, %v21958_v63  ;;  %21960 = vst [vmem:[#allocation108_spill] sm:$0xff] %v18069_v22  ;;  %v21961_v58 = vld [vmem:[#allocation172_spill] sm:$0xff]  ;;  %v22004_v60 = vld [vmem:[#allocation170_spill] sm:$0xff] }
 0x7b4   : > { %21954 = vst [vmem:[#allocation103_spill] sm:$0xff] %v18055_v57  ;;  %v21963_v32 = vcombine.low %v21961_v58, %v21962_v62  ;;  %v8016_v54 = vcombine.high %v21965_v52, %v21964_v33  ;;  %v18077_v38 = vrot.slane %v9131_v42, %v13326_v18  ;;  %v18080_v23 = vrot.slane %v6132_v25, %v13326_v18  ;;  %v21967_v63 = vld [vmem:[#allocation84_spill] sm:$0xff]  ;;  %v21969_v42 = vld [vmem:[#allocation222_spill] sm:$0xff] }
 0x7b5   : > { %12638 = vrot.lane.b32.xlu1 %v17857_v36, %s13230_s11  ;;  %v6689_v5 = vcombine.low %v17873_v15, %v17848_v37  ;;  %v18087_v39 = vrot.slane %v6848_v59, %v13303_v11  ;;  %v6878_v52 = vrot.slane %v6864_v48, %v13303_v11  ;;  %v6691_v33 = vcombine.low %v17885_v53, %v17888_v41  ;;  %v21970_v36 = vld [vmem:[#allocation210_spill] sm:$0xff]  ;;  %v18098_v7 = vpop.permute.xlu1 %8761  ;;  %v18108_v53 = vpop.permute.xlu0 %12503  ;;  %v21973_v41 = vld [vmem:[#allocation4_spill] sm:$0xff] }
 0x7b6   : > { %v12697_v0 = vpack.i.bf16 %v6181_v10, %v21963_v32  ;;  %21966 = vst [vmem:[#allocation115_spill] sm:$0xff] %v18077_v38  ;;  %v21968_v32 = vld [vmem:[#allocation83_spill] sm:$0xff]  ;;  %v8046_v25 = vrot.slane %v8032_v46, %v13303_v11  ;;  %v8064_v29 = vcombine.high %v21970_v36, %v21969_v42  ;;  %21971 = vst [vmem:[#allocation114_spill] sm:$0xff] %v18098_v7  ;;  %v21974_v46 = vld [vmem:[#allocation149_spill] sm:$0xff] }
 0x7b7   : > { %v6896_v10 = vcombine.high %v21968_v32, %v21967_v63  ;;  %v6185_v37 = vcombine.low %v18080_v23, %v18058_v61  ;;  %v6846_v59 = vrot.slane %v6832_v9, %v13303_v11  ;;  %v18106_v48 = vrot.slane %v6928_v21, %v13326_v18  ;;  %21972 = vst [vmem:[#allocation120_spill] sm:$0xff] %v18108_v53  ;;  %v21976_v36 = vld [vmem:[#allocation169_spill] sm:$0xff]  ;;  %v21977_v7 = vld [vmem:[#allocation226_spill] sm:$0xff] }
 0x7b8   : > { %12698 = vrot.lane.b32.xlu0 %v12697_v0, %s13229_s10  ;;  %v6943_v0 = vcombine.low %v6878_v52, %v6894_v51  ;;  %v21975_v63 = vcombine.low %v21973_v41, %v21974_v46  ;;  %v8030_v42 = vrot.slane %v8016_v54, %v13303_v11  ;;  %v8080_v22 = vcombine.high %v21977_v7, %v21976_v36  ;;  %v21983_v36 = vld [vmem:[#allocation9_spill] sm:$0xff]  ;;  %v21984_v54 = vld [vmem:[#allocation126_spill] sm:$0xff] }
 0x7b9   : > { %v8048_v15 = vcombine.high %v21979_v47, %v21978_v16  ;;  %12648 = vrot.lane.b32.xlu1 %v17870_v43, %s13232_s13  ;;  %v6693_v21 = vcombine.low %v17907_v34, %v17920_v45  ;;  %v18123_v9 = vrot.slane %v6896_v10, %v13326_v18  ;;  %v6911_v38 = vcombine.low %v6846_v59, %v18087_v39  ;;  %v18132_v7 = vpop.permute.xlu1 %8735  ;;  %v22007_v1 = vld [vmem:[#allocation14_spill] sm:$0xff] }
 0x7ba   : > { %v12707_v32 = vpack.i.bf16 %v6183_v17, %v21975_v63  ;;  %v8095_v16 = vcombine.low %v8030_v42, %v8046_v25  ;;  %v8096_v47 = vcombine.high %v8030_v42, %v8046_v25  ;;  %v8078_v43 = vrot.slane %v8064_v29, %v13303_v11  ;;  %21980 = vst [vmem:[#allocation105_spill] sm:$0xff] %v18132_v7 }
 0x7bb   : > { %v21981_v34 = vcombine.low %v17535_v40, %v17548_v30  ;;  %v6944_v10 = vcombine.high %v6878_v52, %v6894_v51  ;;  %v18138_v63 = vrot.slane %v6943_v0, %v13326_v18  ;;  %v21985_v57 = vcombine.low %v21983_v36, %v21984_v54  ;;  %v21988_v52 = vld [vmem:[#allocation233_spill] sm:$0xff] }
 0x7bc   : > { %12708 = vrot.lane.b32.xlu0 %v12707_v32, %s13230_s11  ;;  %v18140_v32 = vpop.permute.xlu0 %12513  ;;  %v6961_v25 = vcombine.low %v18123_v9, %v18106_v48  ;;  %v18148_v29 = vrot.slane %v8080_v22, %v13326_v18  ;;  %v8062_v42 = vrot.slane %v8048_v15, %v13303_v11  ;;  %v21986_v30 = vcombine.low %v17538_v50, %v17551_v24  ;;  %v21991_v15 = vld [vmem:[#allocation16_spill] sm:$0xff] }
 0x7bd   : > { %v12662_v45 = vpack.i.bf16 %v6689_v5, %v21981_v34  ;;  %21982 = vst [vmem:[#allocation123_spill] sm:$0xff] %v18140_v32  ;;  %v12717_v17 = vpack.i.bf16 %v6185_v37, %v21985_v57  ;;  %v21987_v51 = vcombine.low %v21943_v4, %v21944_v44  ;;  %v21989_v57 = vld [vmem:[#allocation232_spill] sm:$0xff]  ;;  %v6912_v0 = vcombine.high %v6846_v59, %v18087_v39  ;;  %v21995_v39 = vld [vmem:[#allocation89_spill] sm:$0xff] }
 0x7be   : > { %v12672_v40 = vpack.i.bf16 %v6691_v33, %v21986_v30  ;;  %v8112_v37 = vcombine.high %v21989_v57, %v21988_v52  ;;  %v18162_v22 = vrot.slane %v6911_v38, %v13326_v18  ;;  %v21990_v34 = vld [vmem:[#allocation8_spill] sm:$0xff]  ;;  %v18168_v24 = vrot.slane %v8095_v16, %v13326_v18  ;;  %v21999_v16 = vld [vmem:[#allocation178_spill] sm:$0xff] }
 0x7bf   : > { %12663 = vrot.lane.b32.xlu1 %v12662_v45, %s13229_s10  ;;  %v12682_v5 = vpack.i.bf16 %v6693_v21, %v21987_v51  ;;  %v8200_v7 = vcombine.high %v21991_v15, %v21990_v34  ;;  %v18171_v50 = vrot.slane %v8096_v47, %v13326_v18  ;;  %v8127_v4 = vcombine.low %v8062_v42, %v8078_v43  ;;  %v21992_v44 = vld [vmem:[#allocation96_spill] sm:$0xff]  ;;  %v18175_v45 = vpop.permute.xlu1 %8743  ;;  %v22001_v15 = vld [vmem:[#allocation158_spill] sm:$0xff] }
 0x7c0   : > { %12718 = vrot.lane.b32.xlu0 %v12717_v17, %s13232_s13  ;;  %v21993_v33 = vld [vmem:[#allocation164_spill] sm:$0xff]  ;;  %21994 = vst [vmem:[#allocation116_spill] sm:$0xff] %v18175_v45  ;;  %v18180_v30 = vrot.slane %v6944_v10, %v13326_v18  ;;  %v18182_v51 = vpop.permute.xlu0 %12523  ;;  %v21998_v17 = vld [vmem:[#allocation41_spill] sm:$0xff]  ;;  %v6963_v47 = vcombine.low %v18162_v22, %v18138_v63  ;;  %v8128_v34 = vcombine.high %v8062_v42, %v8078_v43  ;;  %v22003_v45 = vld [vmem:[#allocation74_spill] sm:$0xff] }
 0x7c1   : > { %v8168_v21 = vcombine.high %v21993_v33, %v21992_v44  ;;  %v21996_v38 = vld [vmem:[#allocation148_spill] sm:$0xff]  ;;  %21997 = vst [vmem:[#allocation124_spill] sm:$0xff] %v18182_v51  ;;  %v22000_v52 = vcombine.low %v21998_v17, %v21999_v16  ;;  %v22002_v44 = vld [vmem:[#allocation239_spill] sm:$0xff]  ;;  %v8843_v2 = vcombine.low %v22004_v60, %v22003_v45  ;;  %v18197_v32 = vrot.slane %v8112_v37, %v13326_v18 }
 0x7c2   : > { %v8184_v59 = vcombine.high %v21996_v38, %v21995_v39  ;;  %v8811_v33 = vcombine.low %v22002_v44, %v22001_v15  ;;  %v22005_v39 = vld [vmem:[#allocation153_spill] sm:$0xff]  ;;  %v22006_v38 = vld [vmem:[#allocation92_spill] sm:$0xff]  ;;  %v18202_v55 = vrot.slane %v6912_v0, %v13326_v18  ;;  %v8214_v43 = vrot.slane %v8200_v7, %v13303_v11  ;;  %v22010_v60 = vld [vmem:[#allocation27_spill] sm:$0xff] }
 0x7c3   : > { %v12732_v57 = vpack.i.bf16 %v6961_v25, %v22000_v52  ;;  %v8152_v10 = vcombine.high %v22006_v38, %v22005_v39  ;;  %12673 = vrot.lane.b32.xlu1 %v12672_v40, %s13230_s11  ;;  %v22008_v25 = vld [vmem:[#allocation234_spill] sm:$0xff]  ;;  %v18207_v42 = vrot.slane %v8127_v4, %v13326_v18  ;;  %v22011_v39 = vld [vmem:[#allocation147_spill] sm:$0xff]  ;;  %v8182_v40 = vrot.slane %v8168_v21, %v13303_v11  ;;  %v18212_v37 = vpop.permute.xlu1 %8751  ;;  %v22016_v15 = vld [vmem:[#allocation20_spill] sm:$0xff] }
 0x7c4   : > { %v8795_v52 = vcombine.low %v22008_v25, %v22007_v1  ;;  %22009 = vst [vmem:[#allocation117_spill] sm:$0xff] %v18202_v55  ;;  %v8827_v38 = vcombine.low %v22011_v39, %v22010_v60  ;;  %22012 = vst [vmem:[#allocation130_spill] sm:$0xff] %v18212_v37  ;;  %v22013_v45 = vld [vmem:[#allocation75_spill] sm:$0xff]  ;;  %v22014_v44 = vld [vmem:[#allocation82_spill] sm:$0xff]  ;;  %v8198_v0 = vrot.slane %v8184_v59, %v13303_v11  ;;  %v18219_v53 = vpop.permute.xlu0 %12533 }
 0x7c5   : > { %12733 = vrot.lane.b32.xlu0 %v12732_v57, %s13229_s10  ;;  %v6180_v25 = vcombine.high %v22014_v44, %v22013_v45  ;;  %v22015_v1 = vld [vmem:[#allocation38_spill] sm:$0xff]  ;;  %22017 = vst [vmem:[#allocation30_spill] sm:$0xff] %v18219_v53  ;;  %v22018_v57 = vld [vmem:[#allocation43_spill] sm:$0xff]  ;;  %v6965_v39 = vcombine.low %v18202_v55, %v18180_v30  ;;  %v18227_v21 = vrot.slane %v8128_v34, %v13326_v18  ;;  %v22024_v60 = vld [vmem:[#allocation156_spill] sm:$0xff] }
 0x7c6   : > { %v8248_v7 = vcombine.high %v22016_v15, %v22015_v1  ;;  %v22019_v4 = vld [vmem:[#allocation34_spill] sm:$0xff]  ;;  %v18230_v37 = vrot.slane %v8811_v33, %v13303_v11  ;;  %v18233_v59 = vrot.slane %v8843_v2, %v13303_v11  ;;  %v8166_v1 = vrot.slane %v8152_v10, %v13303_v11  ;;  %v22026_v10 = vld [vmem:[#allocation112_spill] sm:$0xff] }
 0x7c7   : > { %v22020_v51 = vcombine.low %v22018_v57, %v22019_v4  ;;  %12683 = vrot.lane.b32.xlu1 %v12682_v5, %s13232_s13  ;;  %v18238_v15 = vrot.slane %v8795_v52, %v13303_v11  ;;  %v8263_v44 = vcombine.low %v8198_v0, %v8214_v43  ;;  %v22023_v34 = vld [vmem:[#allocation146_spill] sm:$0xff]  ;;  %v18246_v53 = vrot.slane %v8827_v38, %v13303_v11  ;;  %v18248_v4 = vpop.permute.xlu1 %8759  ;;  %v22027_v5 = vld [vmem:[#allocation113_spill] sm:$0xff]  ;;  %v22031_v55 = vld [vmem:[#allocation68_spill] sm:$0xff] }
 0x7c8   : > { %v8144_v33 = vcombine.high %v22024_v60, %v22023_v34  ;;  %v8231_v2 = vcombine.low %v8166_v1, %v8182_v40  ;;  %22025 = vst [vmem:[#allocation10_spill] sm:$0xff] %v18248_v4  ;;  %v22028_v57 = vcombine.high %v22026_v10, %v22027_v5  ;;  %v6182_v17 = vcombine.high %v18002_v6, %v17977_v56  ;;  %v22030_v60 = vld [vmem:[#allocation37_spill] sm:$0xff] }
 0x7c9   : > { %v12742_v16 = vpack.i.bf16 %v6963_v47, %v22020_v51  ;;  %v22021_v51 = vld [vmem:[#allocation167_spill] sm:$0xff]  ;;  %v22022_v47 = vld [vmem:[#allocation193_spill] sm:$0xff]  ;;  %v22029_v38 = vcombine.low %v17767_v19, %v17755_v8  ;;  %v8280_v4 = vcombine.high %v22031_v55, %v22030_v60  ;;  %v8859_v5 = vcombine.low %v18238_v15, %v18230_v37 }
 0x7ca   : > { %v8216_v45 = vcombine.high %v22022_v47, %v22021_v51  ;;  %v12692_v52 = vpack.i.bf16 %v6180_v25, %v22028_v57  ;;  %v18256_v51 = vrot.slane %v8248_v7, %v13326_v18  ;;  %v18258_v47 = vpop.permute.xlu0 %12543  ;;  %v8891_v25 = vcombine.low %v18246_v53, %v18233_v59 }
 0x7cb   : > { %12743 = vrot.lane.b32.xlu0 %v12742_v16, %s13230_s11  ;;  %v8264_v16 = vcombine.high %v8198_v0, %v8214_v43  ;;  %v12752_v34 = vpack.i.bf16 %v6965_v39, %v22029_v38  ;;  %v8146_v56 = vcombine.high %v18148_v29, %v18197_v32  ;;  %v8148_v6 = vcombine.high %v18168_v24, %v18207_v42  ;;  %v18288_v38 = vpop.permute.xlu1 %12488 }
 0x7cc   : > { %12693 = vrot.lane.b32.xlu1 %v12692_v52, %s13228_s9  ;;  %v18275_v43 = vrot.slane %v8216_v45, %v13326_v18  ;;  %v8232_v39 = vcombine.high %v8166_v1, %v8182_v40  ;;  %v18278_v0 = vrot.slane %v8263_v44, %v13326_v18  ;;  %v8440_v7 = vcombine.high %v17701_v12, %v17779_v28 }
 0x7cd   : > { %v18284_v57 = vrot.slane %v8231_v2, %v13326_v18  ;;  %v8472_v52 = vcombine.high %v17838_v31, %v17933_v20  ;;  %v22032_v45 = vcombine.high %v21961_v58, %v21962_v62  ;;  %v6184_v44 = vcombine.high %v18038_v14, %v18017_v26  ;;  %v22034_v58 = vld [vmem:[#allocation24_spill] sm:$0xff]  ;;  %v22035_v62 = vld [vmem:[#allocation191_spill] sm:$0xff] }
 0x7ce   : > { %v18296_v1 = vrot.slane %v8264_v16, %v13326_v18  ;;  %v8424_v28 = vcombine.high %v17662_v3, %v17736_v49  ;;  %v18300_v12 = vpop.permute.xlu0 %12553  ;;  %v8282_v31 = vcombine.high %v18275_v43, %v18256_v51  ;;  %v8456_v20 = vcombine.high %v17810_v27, %v17892_v35 }
 0x7cf   : > { %12753 = vrot.lane.b32.xlu0 %v12752_v34, %s13232_s13  ;;  %v12702_v40 = vpack.i.bf16 %v6182_v17, %v22032_v45  ;;  %22033 = vst [vmem:[#allocation121_spill] sm:$0xff] %v18300_v12  ;;  %v12762_v34 = vpack.i.bf16 %v8280_v4, %v8144_v33  ;;  %v6186_v26 = vcombine.high %v18080_v23, %v18058_v61  ;;  %v22038_v61 = vld [vmem:[#allocation44_spill] sm:$0xff]  ;;  %v18329_v2 = vpop.permute.xlu1 %12498 }
 0x7d0   : > { %v8150_v14 = vcombine.high %v18171_v50, %v18227_v21  ;;  %v6960_v49 = vcombine.high %v22035_v62, %v22034_v58  ;;  %v18314_v3 = vrot.slane %v8859_v5, %v13326_v18  ;;  %v18317_v17 = vrot.slane %v8232_v39, %v13326_v18 }
 0x7d1   : > { %12703 = vrot.lane.b32.xlu1 %v12702_v40, %s13227_s8  ;;  %v8454_v4 = vrot.slane %v8440_v7, %v13303_v11  ;;  %v8284_v27 = vcombine.high %v18284_v57, %v18278_v0  ;;  %v18324_v35 = vrot.slane %v8891_v25, %v13326_v18  ;;  %v8486_v23 = vrot.slane %v8472_v52, %v13303_v11  ;;  %v22041_v40 = vld [vmem:[#allocation98_spill] sm:$0xff] }
 0x7d2   : > { %22036 = vst [vmem:[#allocation137_spill] sm:$0xff] %v18314_v3  ;;  %v8520_v33 = vcombine.high %v22038_v61, %v17965_v13  ;;  %v22039_v5 = vcombine.high %v21973_v41, %v21974_v46  ;;  %v8438_v39 = vrot.slane %v8424_v28, %v13303_v11  ;;  %v18335_v7 = vpop.permute.xlu0 %12563  ;;  %v12772_v45 = vpack.i.bf16 %v8282_v31, %v8146_v56  ;;  %v22045_v28 = vld [vmem:[#allocation139_spill] sm:$0xff]  ;;  %v22072_v3 = vld [vmem:[#allocation60_spill] sm:$0xff] }
 0x7d3   : > { %12763 = vrot.lane.b32.xlu0 %v12762_v34, %s13228_s9  ;;  %22037 = vst [vmem:[#allocation128_spill] sm:$0xff] %v18324_v35  ;;  %22040 = vst [vmem:[#allocation125_spill] sm:$0xff] %v18335_v7  ;;  %v8286_v25 = vcombine.high %v18317_v17, %v18296_v1  ;;  %v6962_v52 = vcombine.high %v18123_v9, %v18106_v48  ;;  %v22042_v34 = vld [vmem:[#allocation77_spill] sm:$0xff]  ;;  %v8470_v61 = vrot.slane %v8456_v20, %v13303_v11  ;;  %v22073_v35 = vld [vmem:[#allocation90_spill] sm:$0xff] }
 0x7d4   : > { %v12712_v16 = vpack.i.bf16 %v6184_v44, %v22039_v5  ;;  %v8488_v13 = vcombine.high %v22042_v34, %v22041_v40  ;;  %v22043_v41 = vcombine.high %v21983_v36, %v21984_v54  ;;  %v22044_v44 = vld [vmem:[#allocation138_spill] sm:$0xff]  ;;  %v8503_v5 = vcombine.low %v8438_v39, %v8454_v4  ;;  %v22047_v9 = vld [vmem:[#allocation117_spill] sm:$0xff]  ;;  %v22048_v34 = vld [vmem:[#allocation95_spill] sm:$0xff] }
 0x7d5   : > { %v22046_v56 = vcombine.high %v22044_v44, %v22045_v28  ;;  %v12782_v60 = vpack.i.bf16 %v8284_v27, %v8148_v6  ;;  %v6964_v48 = vcombine.high %v18162_v22, %v18138_v63  ;;  %v6966_v20 = vcombine.high %v22047_v9, %v18180_v30  ;;  %v22050_v27 = vld [vmem:[#allocation41_spill] sm:$0xff]  ;;  %v22051_v63 = vld [vmem:[#allocation178_spill] sm:$0xff] }
 0x7d6   : > { %12713 = vrot.lane.b32.xlu1 %v12712_v16, %s13231_s12  ;;  %v12722_v46 = vpack.i.bf16 %v6186_v26, %v22043_v41  ;;  %v8504_v40 = vcombine.high %v8438_v39, %v8454_v4  ;;  %v18357_v16 = vrot.slane %v8520_v33, %v13326_v18  ;;  %v8535_v54 = vcombine.low %v8470_v61, %v8486_v23  ;;  %v18359_v26 = vpop.permute.xlu1 %12508  ;;  %v22165_v44 = vld [vmem:[#allocation133_spill] sm:$0xff] }
 0x7d7   : > { %v12727_v31 = vpack.i.bf16 %v6960_v49, %v22046_v56  ;;  %12773 = vrot.lane.b32.xlu0 %v12772_v45, %s13227_s8  ;;  %v8536_v36 = vcombine.high %v8470_v61, %v8486_v23  ;;  %v12486_v49 = vunpack.i.h.bf16 %v22048_v34  ;;  %v12485_v41 = vunpack.i.l.bf16 %v22048_v34  ;;  %v18363_v45 = vpop.permute.xlu0 %12573 }
 0x7d8   : > { %22049 = vst [vmem:[#allocation7_spill] sm:$0xff] %v18363_v45  ;;  %v12792_v6 = vpack.i.bf16 %v8286_v25, %v8150_v14  ;;  %v22052_v22 = vcombine.high %v22050_v27, %v22051_v63  ;;  %v18369_v30 = vrot.slane %v8488_v13, %v13326_v18  ;;  %v12491_v4 = vunpack.i.h.bf16 %v18288_v38  ;;  %v22053_v14 = vld [vmem:[#allocation43_spill] sm:$0xff]  ;;  %v22054_v25 = vld [vmem:[#allocation34_spill] sm:$0xff] }
 0x7d9   : > { %v12490_v23 = vunpack.i.l.bf16 %v18288_v38  ;;  %v18377_v39 = vrot.slane %v8503_v5, %v13326_v18  ;;  %v22056_v13 = vcombine.high %v17767_v19, %v17755_v8  ;;  %v18394_v5 = vrot.slane %v8535_v54, %v13326_v18  ;;  %v22057_v27 = vld [vmem:[#allocation31_spill] sm:$0xff]  ;;  %v22060_v63 = vld [vmem:[#allocation22_spill] sm:$0xff] }
 0x7da   : > { %v12737_v56 = vpack.i.bf16 %v6962_v52, %v22052_v22  ;;  %12723 = vrot.lane.b32.xlu1 %v12722_v46, %s13233_s14  ;;  %v22055_v52 = vcombine.high %v22053_v14, %v22054_v25  ;;  %v18391_v46 = vrot.slane %v8504_v40, %v13326_v18  ;;  %v12519_v34 = vpop.permute.xlu1 %12518  ;;  %v22058_v8 = vld [vmem:[#allocation155_spill] sm:$0xff]  ;;  %v22061_v22 = vld [vmem:[#allocation17_spill] sm:$0xff]  ;;  %v12501_v38 = vunpack.i.h.bf16 %v18329_v2 }
 0x7db   : > { %12783 = vrot.lane.b32.xlu0 %v12782_v60, %s13231_s12  ;;  %v18386_v9 = vpack.i.bf16 %v6966_v20, %v22056_v13  ;;  %v18397_v60 = vrot.slane %v8536_v36, %v13326_v18  ;;  %v22059_v19 = vcombine.low %v22057_v27, %v22058_v8  ;;  %v22062_v14 = vcombine.low %v22060_v63, %v22061_v22  ;;  %v18409_v25 = vpop.permute.xlu0 %12583 }
 0x7dc   : > { %v12747_v61 = vpack.i.bf16 %v6964_v48, %v22055_v52  ;;  %v8553_v48 = vcombine.low %v18369_v30, %v18357_v16  ;;  %22063 = vst [vmem:[#allocation132_spill] sm:$0xff] %v18409_v25  ;;  %v12521_v54 = vunpack.i.h.bf16 %v12519_v34  ;;  %v12520_v52 = vunpack.i.l.bf16 %v12519_v34  ;;  %v22068_v34 = vld [vmem:[#allocation93_spill] sm:$0xff]  ;;  %v22080_v25 = vld [vmem:[#allocation123_spill] sm:$0xff] }
 0x7dd   : > { %v5488_v20 = vsel %vm631_vm1, %v22059_v19, %v12486_v49  ;;  %v5487_v40 = vsel %vm631_vm1, %v22062_v14, %v12485_v41  ;;  %v12500_v33 = vunpack.i.l.bf16 %v18329_v2  ;;  %v22064_v49 = vld [vmem:[#allocation108_spill] sm:$0xff]  ;;  %v22065_v19 = vld [vmem:[#allocation94_spill] sm:$0xff]  ;;  %v22069_v14 = vld [vmem:[#allocation87_spill] sm:$0xff] }
 0x7de   : > { %v5490_v36 = vsel %vm633_vm2, %v5488_v20, %v12491_v4  ;;  %v5489_v13 = vsel %vm633_vm2, %v5487_v40, %v12490_v23  ;;  %12728 = vrot.lane.b32.xlu1 %v12727_v31, %s13228_s9  ;;  %v12496_v27 = vunpack.i.h.bf16 %v22064_v49  ;;  %v12495_v8 = vunpack.i.l.bf16 %v22064_v49  ;;  %v22066_v41 = vld [vmem:[#allocation88_spill] sm:$0xff]  ;;  %v12529_v40 = vpop.permute.xlu1 %12528 }
 0x7df   : > { %v22067_v63 = vcombine.low %v22065_v19, %v22066_v41  ;;  %v22070_v4 = vcombine.low %v22068_v34, %v22069_v14  ;;  %12793 = vrot.lane.b32.xlu0 %v12792_v6, %s13233_s14  ;;  %v22071_v20 = vld [vmem:[#allocation124_spill] sm:$0xff]  ;;  %v22074_v49 = vcombine.low %v22072_v3, %v22073_v35  ;;  %v8555_v19 = vcombine.low %v18377_v39, %v18394_v5 }
 0x7e0   : > { %v12526_v2 = vunpack.i.h.bf16 %v22071_v20  ;;  %v12525_v31 = vunpack.i.l.bf16 %v22071_v20  ;;  %v5492_v41 = vsel %vm635_vm3, %v5490_v36, %v12496_v27  ;;  %v12530_v6 = vunpack.i.l.bf16 %v12529_v40 }
 0x7e1   : > { %v5502_v22 = vsel %vm631_vm1, %v22067_v63, %v12521_v54  ;;  %v5501_v23 = vsel %vm631_vm1, %v22070_v4, %v12520_v52  ;;  %v12802_v55 = vpack.i.bf16 %v8553_v48, %v22074_v49  ;;  %v5491_v54 = vsel %vm635_vm3, %v5489_v13, %v12495_v8  ;;  %v18436_v63 = vpop.permute.xlu0 %12593  ;;  %v22075_v8 = vld [vmem:[#allocation120_spill] sm:$0xff] }
 0x7e2   : > { %v12531_v52 = vunpack.i.h.bf16 %v12529_v40  ;;  %v5493_v34 = vsel %vm637_vm4, %v5491_v54, %v12500_v33  ;;  %v5494_v14 = vsel %vm637_vm4, %v5492_v41, %v12501_v38  ;;  %v5503_v4 = vsel %vm633_vm2, %v5501_v23, %v12525_v31  ;;  %12738 = vrot.lane.b32.xlu1 %v12737_v56, %s13227_s8  ;;  %v22076_v40 = vld [vmem:[#allocation30_spill] sm:$0xff]  ;;  %v22078_v54 = vld [vmem:[#allocation97_spill] sm:$0xff] }
 0x7e3   : > { %v5504_v20 = vsel %vm633_vm2, %v5502_v22, %v12526_v2  ;;  %v12511_v48 = vunpack.i.h.bf16 %v18359_v26  ;;  %v12510_v13 = vunpack.i.l.bf16 %v18359_v26  ;;  %v5505_v36 = vsel %vm635_vm3, %v5503_v4, %v12530_v6  ;;  %12803 = vrot.lane.b32.xlu0 %v12802_v55, %s13229_s10  ;;  %v12539_v2 = vpop.permute.xlu1 %12538  ;;  %v22077_v26 = vld [vmem:[#allocation49_spill] sm:$0xff] }
 0x7e4   : > { %v5506_v27 = vsel %vm635_vm3, %v5504_v20, %v12531_v52  ;;  %v12506_v33 = vunpack.i.h.bf16 %v22075_v8  ;;  %v12505_v38 = vunpack.i.l.bf16 %v22075_v8  ;;  %v12536_v23 = vunpack.i.h.bf16 %v22076_v40 }
 0x7e5   : > { %v12535_v22 = vunpack.i.l.bf16 %v22076_v40  ;;  %v18452_v56 = vpop.permute.xlu0 %12603  ;;  %v12541_v31 = vunpack.i.h.bf16 %v12539_v2  ;;  %v12540_v49 = vunpack.i.l.bf16 %v12539_v2  ;;  %v22079_v41 = vcombine.low %v22077_v26, %v22078_v54 }
 0x7e6   : > { %v8557_v55 = vcombine.low %v18391_v46, %v18397_v60  ;;  %12748 = vrot.lane.b32.xlu1 %v12747_v61, %s13231_s12  ;;  %v5508_v4 = vsel %vm637_vm4, %v5506_v27, %v12536_v23  ;;  %v5495_v20 = vsel %vm639_vm5, %v5493_v34, %v12505_v38  ;;  %v5496_v8 = vsel %vm639_vm5, %v5494_v14, %v12506_v33 }
 0x7e7   : > { %v12812_v6 = vpack.i.bf16 %v8555_v19, %v22079_v41  ;;  %v5507_v52 = vsel %vm637_vm4, %v5505_v36, %v12535_v22  ;;  %v5510_v2 = vsel %vm639_vm5, %v5508_v4, %v12541_v31  ;;  %v5497_v19 = vsel %vm641_vm6, %v5495_v20, %v12510_v13  ;;  %v12549_v38 = vpop.permute.xlu1 %12548  ;;  %v22081_v22 = vld [vmem:[#allocation48_spill] sm:$0xff] }
 0x7e8   : > { %v5509_v40 = vsel %vm639_vm5, %v5507_v52, %v12540_v49  ;;  %v5498_v41 = vsel %vm641_vm6, %v5496_v8, %v12511_v48  ;;  %v12516_v61 = vunpack.i.h.bf16 %v22080_v25  ;;  %v12515_v36 = vunpack.i.l.bf16 %v22080_v25  ;;  %v22082_v49 = vld [vmem:[#allocation104_spill] sm:$0xff] }
 0x7e9   : > { %12813 = vrot.lane.b32.xlu0 %v12812_v6, %s13230_s11  ;;  %v12546_v27 = vunpack.i.h.bf16 %v18258_v47  ;;  %v12545_v34 = vunpack.i.l.bf16 %v18258_v47  ;;  %v18473_v14 = vpop.permute.xlu0 %12613  ;;  %v12551_v33 = vunpack.i.h.bf16 %v12549_v38  ;;  %v12550_v23 = vunpack.i.l.bf16 %v12549_v38 }
 0x7ea   : > { %v22083_v31 = vcombine.low %v22081_v22, %v22082_v49  ;;  %v8145_v48 = vcombine.low %v18148_v29, %v18197_v32  ;;  %12758 = vrot.lane.b32.xlu1 %v18386_v9, %s13233_s14  ;;  %v5499_v47 = vsel %vm643_vm7, %v5497_v19, %v12515_v36  ;;  %v5500_v52 = vsel %vm643_vm7, %v5498_v41, %v12516_v61  ;;  %v22087_v41 = vld [vmem:[#allocation21_spill] sm:$0xff]  ;;  %v22090_v36 = vld [vmem:[#allocation100_spill] sm:$0xff] }
 0x7eb   : > { %v5511_v25 = vsel %vm641_vm6, %v5509_v40, %v12545_v34  ;;  %v5512_v13 = vsel %vm641_vm6, %v5510_v2, %v12546_v27  ;;  %v18489_v20 = vpop.permute.xlu1 %12558  ;;  %v22085_v32 = vcombine.low %v18275_v43, %v18256_v51  ;;  %v8283_v8 = vcombine.low %v18284_v57, %v18278_v0  ;;  %v22092_v27 = vld [vmem:[#allocation50_spill] sm:$0xff]  ;;  %v22093_v34 = vld [vmem:[#allocation63_spill] sm:$0xff] }
 0x7ec   : > { %v12822_v6 = vpack.i.bf16 %v8557_v55, %v22083_v31  ;;  %v5513_v4 = vsel %vm643_vm7, %v5511_v25, %v12550_v23  ;;  %v5514_v55 = vsel %vm643_vm7, %v5512_v13, %v12551_v33  ;;  %22084 = vst [vmem:[#allocation39_spill] sm:$0xff] %v18489_v20  ;;  %v12166_v2 = vpack.c.bf16 %v5500_v52, %v5499_v47  ;;  %v22097_v31 = vld [vmem:[#allocation101_spill] sm:$0xff]  ;;  %v22099_v52 = vld [vmem:[#allocation111_spill] sm:$0xff] }
 0x7ed   : > { %v12767_v29 = vpack.i.bf16 %v22085_v32, %v8145_v48  ;;  %v12164_v9 = vpack.c.bf16 %v5514_v55, %v5513_v4  ;;  %v18496_v40 = vpop.permute.xlu0 %10277  ;;  %v8147_v19 = vcombine.low %v18168_v24, %v18207_v42  ;;  %v8285_v43 = vcombine.low %v18317_v17, %v18296_v1  ;;  %v22095_v1 = vld [vmem:[#allocation182_spill] sm:$0xff]  ;;  %v22096_v17 = vld [vmem:[#allocation181_spill] sm:$0xff]  ;;  %v22100_v4 = vld [vmem:[#allocation107_spill] sm:$0xff] }
 0x7ee   : > { %12823 = vrot.lane.b32.xlu0 %v12822_v6, %s13232_s13  ;;  %22086 = vst [vmem:[#allocation140_spill] sm:$0xff] %v18496_v40  ;;  %v8149_v57 = vcombine.low %v18171_v50, %v18227_v21  ;;  %v8552_v38 = vcombine.high %v22093_v34, %v22092_v27  ;;  %v8416_v23 = vcombine.high %v22096_v17, %v22095_v1  ;;  %v22133_v40 = vld [vmem:[#allocation213_spill] sm:$0xff]  ;;  %v22151_v27 = vld [vmem:[#allocation215_spill] sm:$0xff]  ;;  %v22152_v1 = vld [vmem:[#allocation18_spill] sm:$0xff] }
 0x7ef   : > { %12768 = vrot.lane.b32.xlu1 %v12767_v29, %s13229_s10  ;;  %12165 = vmatprep.subr.bf16.mxu1 %v12164_v9  ;;  %v18503_v61 = vpop.permute.xlu1 %12568  ;;  %v12777_v51 = vpack.i.bf16 %v8283_v8, %v8147_v19  ;;  %v8554_v6 = vcombine.high %v18369_v30, %v18357_v16  ;;  %v8418_v47 = vcombine.high %v22072_v3, %v22073_v35  ;;  %v22102_v29 = vld [vmem:[#allocation110_spill] sm:$0xff]  ;;  %v12596_v30 = vunpack.i.h.bf16 %v18436_v63 }
 0x7f0   : > { %12167 = vmatpush1.bf16.msra.mxu1 %v12166_v2  ;;  %22088 = vst [vmem:[#allocation29_spill] sm:$0xff] %v18503_v61  ;;  %v12787_v42 = vpack.i.bf16 %v8285_v43, %v8149_v57  ;;  %v12797_v21 = vpack.i.bf16 %v8552_v38, %v8416_v23  ;;  %v22101_v55 = vcombine.low %v22099_v52, %v22100_v4  ;;  %v22103_v9 = vld [vmem:[#allocation106_spill] sm:$0xff]  ;;  %v12595_v19 = vunpack.i.l.bf16 %v18436_v63  ;;  %v22175_v61 = vld [vmem:[#allocation212_spill] sm:$0xff] }
 0x7f1   : > { %v18507_v0 = vpop.permute.xlu0 %10285  ;;  %v22104_v8 = vcombine.low %v22102_v29, %v22103_v9  ;;  %v22105_v16 = vld [vmem:[#allocation122_spill] sm:$0xff]  ;;  %v12807_v43 = vpack.i.bf16 %v8554_v6, %v8418_v47  ;;  %v8556_v3 = vcombine.high %v18377_v39, %v18394_v5  ;;  %v22107_v6 = vld [vmem:[#allocation220_spill] sm:$0xff]  ;;  %v12606_v39 = vunpack.i.h.bf16 %v18452_v56 }
 0x7f2   : > { %10275 = vrot.lane.b32.xlu0 %v22087_v41, %s13226_s30  ;;  %22089 = vst [vmem:[#allocation25_spill] sm:$0xff] %v18507_v0  ;;  %v12605_v5 = vunpack.i.l.bf16 %v18452_v56  ;;  %v8558_v47 = vcombine.high %v18391_v46, %v18397_v60  ;;  %v22109_v9 = vld [vmem:[#allocation218_spill] sm:$0xff]  ;;  %v12616_v46 = vunpack.i.h.bf16 %v18473_v14  ;;  %v12615_v60 = vunpack.i.l.bf16 %v18473_v14 }
 0x7f3   : > { %12778 = vrot.lane.b32.xlu1 %v12777_v51, %s13230_s11  ;;  %v18514_v24 = vpop.permute.xlu1 %12578 }
 0x7f4   : > { %22091 = vst [vmem:[#allocation28_spill] sm:$0xff] %v18514_v24  ;;  %v9744_v24 = vcombine.high %v22152_v1, %v22151_v27 }
 0x7f5   : > { %v18518_v33 = vpop.permute.xlu0 %10293 }
 0x7f6   : > { %10283 = vrot.lane.b32.xlu0 %v22090_v36, %s13226_s30  ;;  %22094 = vst [vmem:[#allocation135_spill] sm:$0xff] %v18518_v33  ;;  %v22139_v33 = vld [vmem:[#allocation207_spill] sm:$0xff] }
 0x7f7   : > { %12788 = vrot.lane.b32.xlu1 %v12787_v42, %s13232_s13  ;;  %v12589_v50 = vpop.permute.xlu1 %12588 }
 0x7f8   : > { %v12591_v25 = vunpack.i.h.bf16 %v12589_v50  ;;  %v12590_v13 = vunpack.i.l.bf16 %v12589_v50  ;;  %v8420_v50 = vcombine.high %v22077_v26, %v22078_v54 }
 0x7f9   : > { %v18527_v48 = vpop.permute.xlu0 %10301 }
 0x7fa   : > { %10291 = vrot.lane.b32.xlu0 %v22097_v31, %s13226_s30  ;;  %22098 = vst [vmem:[#allocation134_spill] sm:$0xff] %v18527_v48  ;;  %v7906_v32 = vsel %vm631_vm1, %v22101_v55, %v12591_v25  ;;  %v7905_v2 = vsel %vm631_vm1, %v22104_v8, %v12590_v13  ;;  %v12817_v13 = vpack.i.bf16 %v8556_v3, %v8420_v50  ;;  %v22117_v50 = vld [vmem:[#allocation66_spill] sm:$0xff] }
 0x7fb   : > { %12798 = vrot.lane.b32.xlu1 %v12797_v21, %s13228_s9  ;;  %v12599_v51 = vpop.permute.xlu1 %12598  ;;  %v7907_v38 = vsel %vm633_vm2, %v7905_v2, %v12595_v19  ;;  %v7908_v23 = vsel %vm633_vm2, %v7906_v32, %v12596_v30  ;;  %v8422_v32 = vcombine.high %v22081_v22, %v22082_v49 }
 0x7fc   : > { %v12601_v57 = vunpack.i.h.bf16 %v12599_v51  ;;  %v12600_v42 = vunpack.i.l.bf16 %v12599_v51 }
 0x7fd   : > { %v18546_v35 = vpop.permute.xlu0 %10309  ;;  %v12827_v2 = vpack.i.bf16 %v8558_v47, %v8422_v32  ;;  %v22125_v32 = vld [vmem:[#allocation195_spill] sm:$0xff] }
 0x7fe   : > { %10299 = vrot.lane.b32.xlu0 %v22105_v16, %s13226_s30  ;;  %22106 = vst [vmem:[#allocation129_spill] sm:$0xff] %v18546_v35  ;;  %v7909_v63 = vsel %vm635_vm3, %v7907_v38, %v12600_v42  ;;  %v7910_v21 = vsel %vm635_vm3, %v7908_v23, %v12601_v57  ;;  %v22116_v23 = vld [vmem:[#allocation5_spill] sm:$0xff] }
 0x7ff   : > { %12808 = vrot.lane.b32.xlu1 %v12807_v43, %s13227_s8  ;;  %v12609_v25 = vpop.permute.xlu1 %12608  ;;  %v7911_v54 = vsel %vm637_vm4, %v7909_v63, %v12605_v5  ;;  %v7912_v55 = vsel %vm637_vm4, %v7910_v21, %v12606_v39  ;;  %v22111_v43 = vld [vmem:[#allocation12_spill] sm:$0xff]  ;;  %v22118_v63 = vld [vmem:[#allocation23_spill] sm:$0xff] }
 0x800   : > { %v12611_v4 = vunpack.i.h.bf16 %v12609_v25  ;;  %v12610_v26 = vunpack.i.l.bf16 %v12609_v25  ;;  %v9880_v21 = vcombine.high %v22118_v63, %v22117_v50  ;;  %v22119_v39 = vld [vmem:[#allocation168_spill] sm:$0xff]  ;;  %v22120_v5 = vld [vmem:[#allocation55_spill] sm:$0xff]  ;;  %v22121_v25 = vld [vmem:[#allocation205_spill] sm:$0xff] }
 0x801   : > { %v18561_v52 = vpop.permute.xlu0 %10317  ;;  %v9760_v58 = vcombine.high %v22111_v43, %v22119_v39 }
 0x802   : > { %10307 = vrot.lane.b32.xlu0 %v22107_v6, %s13226_s30  ;;  %22108 = vst [vmem:[#allocation131_spill] sm:$0xff] %v18561_v52  ;;  %v7913_v56 = vsel %vm639_vm5, %v7911_v54, %v12610_v26  ;;  %v7914_v29 = vsel %vm639_vm5, %v7912_v55, %v12611_v4  ;;  %v22123_v4 = vld [vmem:[#allocation65_spill] sm:$0xff]  ;;  %v22124_v26 = vld [vmem:[#allocation19_spill] sm:$0xff]  ;;  %v18618_v0 = vrot.slane %v9880_v21, %v13303_v11  ;;  %v22138_v52 = vld [vmem:[#allocation62_spill] sm:$0xff] }
 0x803   : > { %12818 = vrot.lane.b32.xlu1 %v12817_v13, %s13231_s12  ;;  %v12619_v8 = vpop.permute.xlu1 %12618  ;;  %v7915_v22 = vsel %vm641_vm6, %v7913_v56, %v12615_v60  ;;  %v7916_v49 = vsel %vm641_vm6, %v7914_v29, %v12616_v46  ;;  %v9912_v13 = vcombine.high %v22121_v25, %v22120_v5  ;;  %v9864_v54 = vcombine.high %v22124_v26, %v22123_v4  ;;  %v22126_v56 = vld [vmem:[#allocation197_spill] sm:$0xff]  ;;  %v22127_v46 = vld [vmem:[#allocation200_spill] sm:$0xff] }
 0x804   : > { %v12621_v19 = vunpack.i.h.bf16 %v12619_v8  ;;  %v12620_v51 = vunpack.i.l.bf16 %v12619_v8  ;;  %v9896_v29 = vcombine.high %v22126_v56, %v22125_v32  ;;  %v22128_v60 = vld [vmem:[#allocation64_spill] sm:$0xff]  ;;  %22134 = vst [vmem:[#allocation179_spill] sm:$0xff] %v18618_v0  ;;  %v10048_v48 = vcombine.high %v22139_v33, %v22138_v52 }
 0x805   : > { %v18574_v30 = vpop.permute.xlu0 %10325  ;;  %v10000_v8 = vcombine.high %v22128_v60, %v22127_v46  ;;  %v18628_v35 = vrot.slane %v9864_v54, %v13303_v11  ;;  %v22144_v54 = vld [vmem:[#allocation211_spill] sm:$0xff]  ;;  %v18736_v20 = vrot.slane %v9760_v58, %v13303_v11  ;;  %v22191_v58 = vld [vmem:[#allocation190_spill] sm:$0xff] }
 0x806   : > { %10315 = vrot.lane.b32.xlu0 %v22109_v9, %s13226_s30  ;;  %22110 = vst [vmem:[#allocation151_spill] sm:$0xff] %v18574_v30  ;;  %v18582_v3 = vsel %vm643_vm7, %v7915_v22, %v12620_v51  ;;  %v18585_v14 = vsel %vm643_vm7, %v7916_v49, %v12621_v19  ;;  %v22130_v19 = vld [vmem:[#allocation201_spill] sm:$0xff]  ;;  %v22131_v22 = vld [vmem:[#allocation206_spill] sm:$0xff]  ;;  %v18671_v45 = vrot.slane %v10048_v48, %v13303_v11 }
 0x807   : > { %12828 = vrot.lane.b32.xlu1 %v12827_v2, %s13233_s14  ;;  %22112 = vst [vmem:[#allocation141_spill] sm:$0xff] %v18582_v3  ;;  %22113 = vst [vmem:[#allocation144_spill] sm:$0xff] %v18585_v14  ;;  %v18587_v57 = vpop.permute.xlu1 %10281  ;;  %v22129_v2 = vld [vmem:[#allocation198_spill] sm:$0xff]  ;;  %v18638_v21 = vrot.slane %v10000_v8, %v13303_v11  ;;  %v22147_v8 = vld [vmem:[#allocation209_spill] sm:$0xff]  ;;  %v9624_v14 = vcombine.high %v22097_v31, %v22105_v16  ;;  %v9728_v48 = vcombine.high %v22107_v6, %v22109_v9 }
 0x808   : > { %22114 = vst [vmem:[#allocation136_spill] sm:$0xff] %v18587_v57  ;;  %v10032_v51 = vcombine.high %v22130_v19, %v22129_v2  ;;  %v22132_v49 = vld [vmem:[#allocation6_spill] sm:$0xff]  ;;  %v18623_v57 = vrot.slane %v9912_v13, %v13303_v11  ;;  %22137 = vst [vmem:[#allocation142_spill] sm:$0xff] %v18628_v35  ;;  %v22170_v3 = vld [vmem:[#allocation227_spill] sm:$0xff] }
 0x809   : > { %v18591_v38 = vpop.permute.xlu0 %10333  ;;  %v10016_v42 = vcombine.high %v22132_v49, %v22131_v22  ;;  %22141 = vst [vmem:[#allocation15_spill] sm:$0xff] %v18638_v21  ;;  %22153 = vst [vmem:[#allocation26_spill] sm:$0xff] %v18671_v45 }
 0x80a   : > { %10323 = vrot.lane.b32.xlu0 %v22111_v43, %s13226_s30  ;;  %22115 = vst [vmem:[#allocation71_spill] sm:$0xff] %v18591_v38  ;;  %22135 = vst [vmem:[#allocation78_spill] sm:$0xff] %v18623_v57  ;;  %v18635_v38 = vrot.slane %v9896_v29, %v13303_v11  ;;  %v9608_v29 = vcombine.high %v22116_v23, %v22133_v40 }
 0x80b   : > { %10279 = vrot.lane.b32.xlu1 %v22116_v23, %s13226_s30  ;;  %v18601_v47 = vpop.permute.xlu1 %10289  ;;  %v18644_v13 = vrot.slane %v10016_v42, %v13303_v11  ;;  %v9592_v42 = vcombine.high %v22087_v41, %v22090_v36  ;;  %22177 = vst [vmem:[#allocation174_spill] sm:$0xff] %v18736_v20 }
 0x80c   : > { %22122 = vst [vmem:[#allocation145_spill] sm:$0xff] %v18601_v47  ;;  %22140 = vst [vmem:[#allocation171_spill] sm:$0xff] %v18635_v38  ;;  %v9975_v17 = vcombine.low %v18635_v38, %v18623_v57  ;;  %v18718_v38 = vrot.slane %v9624_v14, %v13303_v11  ;;  %v22176_v14 = vld [vmem:[#allocation216_spill] sm:$0xff] }
 0x80d   : > { %v18605_v55 = vpop.permute.xlu0 %12623  ;;  %22143 = vst [vmem:[#allocation183_spill] sm:$0xff] %v18644_v13  ;;  %v10079_v28 = vcombine.low %v18638_v21, %v18644_v13  ;;  %v22171_v13 = vld [vmem:[#allocation229_spill] sm:$0xff] }
 0x80e   : > { %10331 = vrot.lane.b32.xlu0 %v22119_v39, %s13226_s30  ;;  %22169 = vst [vmem:[#allocation160_spill] sm:$0xff] %v18718_v38  ;;  %v9656_v62 = vcombine.high %v22171_v13, %v22170_v3  ;;  %v22184_v13 = vld [vmem:[#allocation214_spill] sm:$0xff]  ;;  %v22187_v38 = vld [vmem:[#allocation239_spill] sm:$0xff] }
 0x80f   : > { %10287 = vrot.lane.b32.xlu1 %v22133_v40, %s13226_s30  ;;  %v18625_v47 = vpop.permute.xlu1 %10297 }
 0x810   : > { %22136 = vst [vmem:[#allocation154_spill] sm:$0xff] %v18625_v47  ;;  %v18766_v12 = vrot.slane %v9656_v62, %v13326_v18  ;;  %v22198_v62 = vld [vmem:[#allocation14_spill] sm:$0xff] }
 0x811   : > { %v18632_v30 = vpop.permute.xlu0 %12633 }
 0x812   : > { %11057 = vrot.lane.b32.xlu0 %v22124_v26, %s13234_s15  ;;  %v18641_v26 = vrot.slane %v10032_v51, %v13303_v11  ;;  %v9640_v51 = vcombine.high %v22144_v54, %v22147_v8  ;;  %22190 = vst [vmem:[#allocation79_spill] sm:$0xff] %v18766_v12 }
 0x813   : > { %10295 = vrot.lane.b32.xlu1 %v22144_v54, %s13226_s30  ;;  %v18664_v47 = vpop.permute.xlu1 %10305  ;;  %v22164_v54 = vld [vmem:[#allocation221_spill] sm:$0xff] }
 0x814   : > { %22142 = vst [vmem:[#allocation184_spill] sm:$0xff] %v18641_v26  ;;  %22150 = vst [vmem:[#allocation70_spill] sm:$0xff] %v18664_v47  ;;  %v18694_v47 = vrot.slane %v9608_v29, %v13303_v11  ;;  %v9688_v7 = vcombine.high %v22165_v44, %v22164_v54  ;;  %v18710_v29 = vrot.slane %v9744_v24, %v13303_v11  ;;  %v22173_v54 = vld [vmem:[#allocation231_spill] sm:$0xff]  ;;  %v22178_v44 = vld [vmem:[#allocation196_spill] sm:$0xff] }
 0x815   : > { %v18677_v34 = vpop.permute.xlu0 %12643  ;;  %v18727_v24 = vrot.slane %v9728_v48, %v13303_v11 }
 0x816   : > { %11065 = vrot.lane.b32.xlu0 %v22123_v4, %s13234_s15  ;;  %22158 = vst [vmem:[#allocation176_spill] sm:$0xff] %v18694_v47  ;;  %v18699_v4 = vrot.slane %v9640_v51, %v13303_v11  ;;  %22167 = vst [vmem:[#allocation165_spill] sm:$0xff] %v18710_v29  ;;  %v18715_v51 = vrot.slane %v9592_v42, %v13303_v11  ;;  %v22174_v42 = vld [vmem:[#allocation236_spill] sm:$0xff]  ;;  %v18755_v40 = vrot.slane %v9688_v7, %v13326_v18  ;;  %v22185_v47 = vld [vmem:[#allocation57_spill] sm:$0xff] }
 0x817   : > { %10303 = vrot.lane.b32.xlu1 %v22147_v8, %s13226_s30  ;;  %v18707_v57 = vpop.permute.xlu1 %10313  ;;  %22172 = vst [vmem:[#allocation175_spill] sm:$0xff] %v18727_v24  ;;  %v9776_v8 = vcombine.high %v22176_v14, %v22175_v61  ;;  %v9116_v48 = vcombine.high %v22185_v47, %v22184_v13  ;;  %v22192_v29 = vld [vmem:[#allocation177_spill] sm:$0xff]  ;;  %v22200_v24 = vld [vmem:[#allocation74_spill] sm:$0xff] }
 0x818   : > { %22159 = vst [vmem:[#allocation180_spill] sm:$0xff] %v18699_v4  ;;  %22166 = vst [vmem:[#allocation73_spill] sm:$0xff] %v18707_v57  ;;  %v9792_v57 = vcombine.high %v22174_v42, %v22173_v54  ;;  %v22179_v54 = vld [vmem:[#allocation185_spill] sm:$0xff]  ;;  %v22186_v4 = vld [vmem:[#allocation158_spill] sm:$0xff] }
 0x819   : > { %22168 = vst [vmem:[#allocation72_spill] sm:$0xff] %v18715_v51  ;;  %v18722_v21 = vpop.permute.xlu0 %12653  ;;  %v9084_v42 = vcombine.high %v22179_v54, %v22178_v44  ;;  %22183 = vst [vmem:[#allocation219_spill] sm:$0xff] %v18755_v40  ;;  %v22188_v44 = vld [vmem:[#allocation238_spill] sm:$0xff]  ;;  %v22189_v54 = vld [vmem:[#allocation157_spill] sm:$0xff]  ;;  %v18773_v7 = vrot.slane %v9776_v8, %v13303_v11 }
 0x81a   : > { %11073 = vrot.lane.b32.xlu0 %v22126_v56, %s13234_s15  ;;  %v10111_v56 = vcombine.low %v18641_v26, %v18671_v45  ;;  %v22181_v26 = vld [vmem:[#allocation225_spill] sm:$0xff]  ;;  %v18776_v47 = vrot.slane %v9792_v57, %v13326_v18 }
 0x81b   : > { %10311 = vrot.lane.b32.xlu1 %v22152_v1, %s13226_s30  ;;  %v18748_v45 = vpop.permute.xlu1 %10321  ;;  %v22182_v1 = vld [vmem:[#allocation230_spill] sm:$0xff]  ;;  %22193 = vst [vmem:[#allocation127_spill] sm:$0xff] %v18773_v7  ;;  %v18793_v57 = vrot.slane %v9084_v42, %v13303_v11  ;;  %v22209_v42 = vld [vmem:[#allocation27_spill] sm:$0xff] }
 0x81c   : > { %22180 = vst [vmem:[#allocation237_spill] sm:$0xff] %v18748_v45  ;;  %v9824_v3 = vcombine.high %v22182_v1, %v22181_v26  ;;  %v9720_v45 = vcombine.high %v22189_v54, %v22188_v44  ;;  %v9068_v1 = vcombine.high %v22192_v29, %v22191_v58  ;;  %22194 = vst [vmem:[#allocation150_spill] sm:$0xff] %v18776_v47  ;;  %v22196_v26 = vld [vmem:[#allocation208_spill] sm:$0xff]  ;;  %v22199_v44 = vld [vmem:[#allocation234_spill] sm:$0xff] }
 0x81d   : > { %v18761_v51 = vpop.permute.xlu0 %12658  ;;  %v8796_v54 = vcombine.high %v22199_v44, %v22198_v62  ;;  %v22201_v29 = vld [vmem:[#allocation170_spill] sm:$0xff]  ;;  %v18790_v8 = vrot.slane %v10111_v56, %v13326_v18  ;;  %22203 = vst [vmem:[#allocation86_spill] sm:$0xff] %v18793_v57  ;;  %v22210_v62 = vld [vmem:[#allocation147_spill] sm:$0xff] }
 0x81e   : > { %11081 = vrot.lane.b32.xlu0 %v22125_v32, %s13234_s15  ;;  %v8812_v32 = vcombine.high %v22187_v38, %v22186_v4  ;;  %v18779_v38 = vrot.slane %v9975_v17, %v13326_v18  ;;  %v22197_v4 = vld [vmem:[#allocation199_spill] sm:$0xff]  ;;  %v8844_v58 = vcombine.high %v22201_v29, %v22200_v24  ;;  %v22206_v24 = vcombine.low %v18628_v35, %v18618_v0 }
 0x81f   : > { %10319 = vrot.lane.b32.xlu1 %v22151_v27, %s13226_s30  ;;  %v9100_v13 = vcombine.high %v22197_v4, %v22196_v26  ;;  %22202 = vst [vmem:[#allocation152_spill] sm:$0xff] %v18790_v8  ;;  %v18795_v17 = vpop.permute.xlu1 %10329  ;;  %v9721_v26 = vcombine.low %v18766_v12, %v18755_v40  ;;  %v18800_v4 = vrot.slane %v9824_v3, %v13326_v18  ;;  %v22214_v0 = vld [vmem:[#allocation163_spill] sm:$0xff] }
 0x820   : > { %22195 = vst [vmem:[#allocation166_spill] sm:$0xff] %v18779_v38  ;;  %22204 = vst [vmem:[#allocation13_spill] sm:$0xff] %v18795_v17  ;;  %v18806_v44 = vrot.slane %v22206_v24, %v13326_v18  ;;  %v8826_v56 = vrot.slane %v8812_v32, %v13303_v11  ;;  %v8828_v29 = vcombine.high %v22210_v62, %v22209_v42  ;;  %v22213_v24 = vld [vmem:[#allocation240_spill] sm:$0xff]  ;;  %v22217_v40 = vld [vmem:[#allocation99_spill] sm:$0xff] }
 0x821   : > { %22205 = vst [vmem:[#allocation91_spill] sm:$0xff] %v18800_v4  ;;  %v18814_v17 = vpop.permute.xlu0 %12668  ;;  %v18817_v12 = vrot.slane %v10079_v28, %v13326_v18  ;;  %v18820_v3 = vrot.slane %v9068_v1, %v13303_v11  ;;  %v9856_v32 = vcombine.high %v22214_v0, %v22213_v24  ;;  %v18831_v62 = vrot.slane %v9100_v13, %v13303_v11  ;;  %v22218_v42 = vld [vmem:[#allocation69_spill] sm:$0xff]  ;;  %v22245_v38 = vld [vmem:[#allocation119_spill] sm:$0xff] }
 0x822   : > { %11089 = vrot.lane.b32.xlu0 %v22128_v60, %s13234_s15  ;;  %22207 = vst [vmem:[#allocation202_spill] sm:$0xff] %v18806_v44  ;;  %v18809_v60 = vrot.slane %v9116_v48, %v13303_v11  ;;  %v8810_v28 = vrot.slane %v8796_v54, %v13303_v11  ;;  %v8858_v1 = vrot.slane %v8844_v58, %v13303_v11  ;;  %v22216_v48 = vld [vmem:[#allocation67_spill] sm:$0xff]  ;;  %v22219_v0 = vld [vmem:[#allocation109_spill] sm:$0xff] }
 0x823   : > { %22211 = vst [vmem:[#allocation162_spill] sm:$0xff] %v18817_v12  ;;  %22212 = vst [vmem:[#allocation81_spill] sm:$0xff] %v18820_v3  ;;  %10327 = vrot.lane.b32.xlu1 %v22176_v14, %s13226_s30  ;;  %v9132_v7 = vcombine.high %v22217_v40, %v22216_v48  ;;  %v9147_v24 = vcombine.low %v18820_v3, %v18793_v57  ;;  %v9164_v13 = vcombine.high %v22219_v0, %v22218_v42  ;;  %v18845_v20 = vpop.permute.xlu1 %10337  ;;  %v22244_v12 = vld [vmem:[#allocation118_spill] sm:$0xff] }
 0x824   : > { %22208 = vst [vmem:[#allocation192_spill] sm:$0xff] %v18809_v60  ;;  %22215 = vst [vmem:[#allocation76_spill] sm:$0xff] %v18831_v62  ;;  %v9857_v54 = vcombine.low %v18776_v47, %v18800_v4  ;;  %v8860_v58 = vcombine.high %v18238_v15, %v18230_v37  ;;  %v8875_v35 = vcombine.low %v8810_v28, %v8826_v56  ;;  %v12626_v37 = vunpack.i.h.bf16 %v18605_v55 }
 0x825   : > { %22220 = vst [vmem:[#allocation173_spill] sm:$0xff] %v18845_v20  ;;  %v8842_v40 = vrot.slane %v8828_v29, %v13303_v11  ;;  %v18854_v48 = vpop.permute.xlu0 %12678  ;;  %v8876_v3 = vcombine.high %v8810_v28, %v8826_v56  ;;  %v8892_v0 = vcombine.high %v18246_v53, %v18233_v59  ;;  %v18860_v42 = vpack.i.bf16 %v9856_v32, %v9720_v45  ;;  %v22227_v29 = vld [vmem:[#allocation51_spill] sm:$0xff]  ;;  %v22228_v20 = vld [vmem:[#allocation52_spill] sm:$0xff] }
 0x826   : > { %11097 = vrot.lane.b32.xlu0 %v22127_v46, %s13234_s15  ;;  %v9179_v46 = vcombine.low %v18831_v62, %v18809_v60  ;;  %v12625_v15 = vunpack.i.l.bf16 %v18605_v55  ;;  %v18869_v56 = vrot.slane %v9132_v7, %v13326_v18  ;;  %v18872_v53 = vrot.slane %v9147_v24, %v13326_v18 }
 0x827   : > { %10335 = vrot.lane.b32.xlu1 %v22175_v61, %s13226_s30  ;;  %v8907_v47 = vcombine.low %v8842_v40, %v8858_v1  ;;  %v8908_v4 = vcombine.high %v8842_v40, %v8858_v1  ;;  %v12629_v59 = vpop.permute.xlu1 %12628  ;;  %v18874_v45 = vpack.i.bf16 %v9857_v54, %v9721_v26  ;;  %v18879_v32 = vrot.slane %v9164_v13, %v13326_v18 }
 0x828   : > { %v18882_v55 = vrot.slane %v9179_v46, %v13326_v18  ;;  %v18888_v7 = vrot.slane %v8875_v35, %v13326_v18  ;;  %v18893_v26 = vrot.slane %v8876_v3, %v13326_v18  ;;  %v18896_v28 = vrot.slane %v8892_v0, %v13326_v18  ;;  %v22224_v35 = vld [vmem:[#allocation36_spill] sm:$0xff] }
 0x829   : > { %22221 = vst [vmem:[#allocation172_spill] sm:$0xff] %v18874_v45  ;;  %v18890_v24 = vpop.permute.xlu0 %12688  ;;  %v12631_v1 = vunpack.i.h.bf16 %v12629_v59  ;;  %v12630_v13 = vunpack.i.l.bf16 %v12629_v59  ;;  %v18901_v54 = vrot.slane %v8907_v47, %v13326_v18  ;;  %v18904_v46 = vrot.slane %v8908_v4, %v13326_v18 }
 0x82a   : > { %11105 = vrot.lane.b32.xlu0 %v22130_v19, %s13234_s15  ;;  %v18885_v19 = vrot.slane %v8860_v58, %v13326_v18  ;;  %22223 = vst [vmem:[#allocation56_spill] sm:$0xff] %v18896_v28  ;;  %v22225_v58 = vld [vmem:[#allocation33_spill] sm:$0xff]  ;;  %v22229_v0 = vcombine.low %v22227_v29, %v22228_v20  ;;  %v12635_v47 = vunpack.i.l.bf16 %v18632_v30  ;;  %v22231_v20 = vld [vmem:[#allocation115_spill] sm:$0xff]  ;;  %v22246_v44 = vcombine.low %v22244_v12, %v22245_v38  ;;  %v22249_v38 = vld [vmem:[#allocation114_spill] sm:$0xff] }
 0x82b   : > { %11061 = vrot.lane.b32.xlu1 %v22118_v63, %s13234_s15  ;;  %v22226_v40 = vcombine.low %v22224_v35, %v22225_v58  ;;  %v12636_v63 = vunpack.i.h.bf16 %v18632_v30  ;;  %v12639_v60 = vpop.permute.xlu1 %12638  ;;  %v12645_v30 = vunpack.i.l.bf16 %v18677_v34 }
 0x82c   : > { %22222 = vst [vmem:[#allocation159_spill] sm:$0xff] %v18885_v19  ;;  %v6299_v62 = vsel %vm631_vm1, %v22229_v0, %v12625_v15  ;;  %v12640_v58 = vunpack.i.l.bf16 %v12639_v60 }
 0x82d   : > { %v6300_v3 = vsel %vm631_vm1, %v22226_v40, %v12626_v37  ;;  %v6301_v59 = vsel %vm633_vm2, %v6299_v62, %v12630_v13  ;;  %v18920_v35 = vpop.permute.xlu0 %12698  ;;  %v12641_v37 = vunpack.i.h.bf16 %v12639_v60  ;;  %v22230_v40 = vld [vmem:[#allocation103_spill] sm:$0xff]  ;;  %v22232_v60 = vld [vmem:[#allocation45_spill] sm:$0xff]  ;;  %v12646_v62 = vunpack.i.h.bf16 %v18677_v34 }
 0x82e   : > { %11113 = vrot.lane.b32.xlu0 %v22129_v2, %s13234_s15  ;;  %v6302_v4 = vsel %vm633_vm2, %v6300_v3, %v12631_v1  ;;  %v6303_v2 = vsel %vm635_vm3, %v6301_v59, %v12635_v47  ;;  %v22233_v1 = vld [vmem:[#allocation35_spill] sm:$0xff]  ;;  %v22234_v47 = vld [vmem:[#allocation42_spill] sm:$0xff] }
 0x82f   : > { %v6304_v0 = vsel %vm635_vm3, %v6302_v4, %v12636_v63  ;;  %11069 = vrot.lane.b32.xlu1 %v22117_v50, %s13234_s15  ;;  %v9203_v13 = vcombine.low %v22233_v1, %v22232_v60  ;;  %v6305_v3 = vsel %vm637_vm4, %v6303_v2, %v12640_v58  ;;  %v9204_v50 = vcombine.high %v22233_v1, %v22232_v60  ;;  %v22235_v4 = vld [vmem:[#allocation46_spill] sm:$0xff]  ;;  %v12649_v29 = vpop.permute.xlu1 %12648 }
 0x830   : > { %v6306_v15 = vsel %vm637_vm4, %v6304_v0, %v12641_v37  ;;  %v9235_v59 = vcombine.low %v22235_v4, %v22234_v47  ;;  %v12656_v58 = vunpack.i.h.bf16 %v18722_v21  ;;  %v12655_v37 = vunpack.i.l.bf16 %v18722_v21 }
 0x831   : > { %v18950_v2 = vpop.permute.xlu0 %12708  ;;  %v12650_v0 = vunpack.i.l.bf16 %v12649_v29  ;;  %v12661_v63 = vunpack.i.h.bf16 %v18761_v51  ;;  %v12660_v60 = vunpack.i.l.bf16 %v18761_v51  ;;  %v6307_v1 = vsel %vm639_vm5, %v6305_v3, %v12645_v30  ;;  %v22238_v30 = vld [vmem:[#allocation40_spill] sm:$0xff] }
 0x832   : > { %11055 = vrot.lane.b32.xlu0 %v22087_v41, %s13234_s15  ;;  %v12651_v41 = vunpack.i.h.bf16 %v12649_v29  ;;  %v6308_v34 = vsel %vm639_vm5, %v6306_v15, %v12646_v62  ;;  %v18959_v45 = vrot.slane %v9203_v13, %v13303_v11  ;;  %v9236_v21 = vcombine.high %v22235_v4, %v22234_v47  ;;  %v22239_v47 = vld [vmem:[#allocation80_spill] sm:$0xff]  ;;  %v22240_v4 = vld [vmem:[#allocation54_spill] sm:$0xff] }
 0x833   : > { %11077 = vrot.lane.b32.xlu1 %v22121_v25, %s13234_s15  ;;  %v6309_v29 = vsel %vm641_vm6, %v6307_v1, %v12650_v0  ;;  %v18968_v57 = vrot.slane %v9204_v50, %v13303_v11  ;;  %v22237_v25 = vld [vmem:[#allocation47_spill] sm:$0xff]  ;;  %v12664_v15 = vpop.permute.xlu1 %12663  ;;  %v18985_v1 = vrot.slane %v9235_v59, %v13303_v11  ;;  %v7079_v19 = vsel %vm631_vm1, %v22246_v44, %v12660_v60  ;;  %v22247_v59 = vld [vmem:[#allocation85_spill] sm:$0xff]  ;;  %v22250_v44 = vld [vmem:[#allocation102_spill] sm:$0xff] }
 0x834   : > { %v6310_v51 = vsel %vm641_vm6, %v6308_v34, %v12651_v41  ;;  %v8931_v3 = vcombine.low %v22238_v30, %v22237_v25  ;;  %v18973_v62 = vsel %vm643_vm7, %v6309_v29, %v12655_v37  ;;  %v12666_v0 = vunpack.i.h.bf16 %v12664_v15  ;;  %v22241_v34 = vld [vmem:[#allocation32_spill] sm:$0xff]  ;;  %v22242_v29 = vld [vmem:[#allocation189_spill] sm:$0xff] }
 0x835   : > { %22236 = vst [vmem:[#allocation186_spill] sm:$0xff] %v18968_v57  ;;  %v18976_v13 = vsel %vm643_vm7, %v6310_v51, %v12656_v58  ;;  %v18980_v8 = vpop.permute.xlu0 %12718  ;;  %v12665_v41 = vunpack.i.l.bf16 %v12664_v15  ;;  %v8932_v37 = vcombine.high %v22238_v30, %v22237_v25  ;;  %v22243_v58 = vcombine.low %v22241_v34, %v22242_v29  ;;  %v22248_v50 = vld [vmem:[#allocation53_spill] sm:$0xff] }
 0x836   : > { %11063 = vrot.lane.b32.xlu0 %v22090_v36, %s13234_s15  ;;  %v9219_v36 = vcombine.low %v22240_v4, %v22239_v47  ;;  %v19000_v15 = vrot.slane %v9236_v21, %v13303_v11  ;;  %v8963_v28 = vcombine.low %v22248_v50, %v22247_v59  ;;  %v9220_v12 = vcombine.high %v22240_v4, %v22239_v47 }
 0x837   : > { %v7080_v51 = vsel %vm631_vm1, %v22243_v58, %v12661_v63  ;;  %11085 = vrot.lane.b32.xlu1 %v22120_v5, %s13234_s15  ;;  %v7081_v30 = vsel %vm633_vm2, %v7079_v19, %v12665_v41  ;;  %v9251_v63 = vcombine.low %v22250_v44, %v22249_v38  ;;  %v12671_v5 = vunpack.i.h.bf16 %v18814_v17  ;;  %v12674_v21 = vpop.permute.xlu1 %12673 }
 0x838   : > { %v7082_v25 = vsel %vm633_vm2, %v7080_v51, %v12666_v0  ;;  %v12670_v60 = vunpack.i.l.bf16 %v18814_v17  ;;  %v19015_v34 = vrot.slane %v8931_v3, %v13303_v11  ;;  %v9227_v0 = vrot.slane %v9219_v36, %v13303_v11 }
 0x839   : > { %v19018_v19 = vpop.permute.xlu0 %12733  ;;  %v12676_v41 = vunpack.i.h.bf16 %v12674_v21  ;;  %v19021_v29 = vrot.slane %v8932_v37, %v13303_v11  ;;  %v7084_v4 = vsel %vm635_vm3, %v7082_v25, %v12671_v5  ;;  %v8964_v3 = vcombine.high %v22248_v50, %v22247_v59 }
 0x83a   : > { %11071 = vrot.lane.b32.xlu0 %v22097_v31, %s13234_s15  ;;  %v12675_v31 = vunpack.i.l.bf16 %v12674_v21  ;;  %v7083_v47 = vsel %vm635_vm3, %v7081_v30, %v12670_v60  ;;  %v19032_v36 = vrot.slane %v8963_v28, %v13303_v11  ;;  %v19039_v51 = vrot.slane %v9220_v12, %v13303_v11 }
 0x83b   : > { %11093 = vrot.lane.b32.xlu1 %v22132_v49, %s13234_s15  ;;  %v7086_v37 = vsel %vm637_vm4, %v7084_v4, %v12676_v41  ;;  %v9259_v49 = vrot.slane %v9251_v63, %v13303_v11  ;;  %v12681_v25 = vunpack.i.h.bf16 %v18854_v48  ;;  %v12680_v30 = vunpack.i.l.bf16 %v18854_v48  ;;  %v12684_v50 = vpop.permute.xlu1 %12683 }
 0x83c   : > { %v7085_v58 = vsel %vm637_vm4, %v7083_v47, %v12675_v31  ;;  %v9267_v28 = vcombine.low %v18959_v45, %v9227_v0  ;;  %v9252_v59 = vcombine.high %v22250_v44, %v22249_v38  ;;  %v12686_v60 = vunpack.i.h.bf16 %v12684_v50  ;;  %v22251_v31 = vld [vmem:[#allocation116_spill] sm:$0xff]  ;;  %v22252_v47 = vld [vmem:[#allocation105_spill] sm:$0xff] }
 0x83d   : > { %v19047_v5 = vpop.permute.xlu0 %12743  ;;  %v12685_v21 = vunpack.i.l.bf16 %v12684_v50  ;;  %v12690_v12 = vunpack.i.l.bf16 %v18890_v24  ;;  %v7087_v63 = vsel %vm639_vm5, %v7085_v58, %v12680_v30  ;;  %v7088_v48 = vsel %vm639_vm5, %v7086_v37, %v12681_v25 }
 0x83e   : > { %11079 = vrot.lane.b32.xlu0 %v22105_v16, %s13234_s15  ;;  %v12691_v16 = vunpack.i.h.bf16 %v18890_v24  ;;  %v9268_v41 = vcombine.high %v18959_v45, %v9227_v0  ;;  %v8947_v38 = vcombine.low %v22252_v47, %v22251_v31  ;;  %v7090_v4 = vsel %vm641_vm6, %v7088_v48, %v12686_v60  ;;  %v22254_v48 = vld [vmem:[#allocation82_spill] sm:$0xff] }
 0x83f   : > { %11101 = vrot.lane.b32.xlu1 %v22131_v22, %s13234_s15  ;;  %v7089_v44 = vsel %vm641_vm6, %v7087_v63, %v12685_v21  ;;  %v9299_v24 = vcombine.low %v18985_v1, %v9259_v49  ;;  %v8948_v22 = vcombine.high %v22252_v47, %v22251_v31  ;;  %v12694_v58 = vpop.permute.xlu1 %12693  ;;  %v19072_v0 = vrot.slane %v9252_v59, %v13303_v11  ;;  %v22257_v47 = vld [vmem:[#allocation113_spill] sm:$0xff] }
 0x840   : > { %v19066_v37 = vsel %vm643_vm7, %v7089_v44, %v12690_v12  ;;  %v19069_v45 = vsel %vm643_vm7, %v7090_v4, %v12691_v16  ;;  %v12696_v25 = vunpack.i.h.bf16 %v12694_v58  ;;  %v12695_v30 = vunpack.i.l.bf16 %v12694_v58 }
 0x841   : > { %v19079_v60 = vrot.slane %v8964_v3, %v13303_v11  ;;  %v19082_v21 = vrot.slane %v9267_v28, %v13326_v18  ;;  %v9283_v16 = vcombine.low %v18968_v57, %v19039_v51  ;;  %v9300_v12 = vcombine.high %v18985_v1, %v9259_v49  ;;  %v22255_v3 = vld [vmem:[#allocation75_spill] sm:$0xff] }
 0x842   : > { %11087 = vrot.lane.b32.xlu0 %v22107_v6, %s13234_s15  ;;  %v19074_v6 = vpop.permute.xlu0 %12753  ;;  %v19090_v59 = vrot.slane %v9268_v41, %v13326_v18  ;;  %v19093_v63 = vrot.slane %v8947_v38, %v13303_v11  ;;  %v22256_v31 = vcombine.low %v22254_v48, %v22255_v3  ;;  %v22258_v44 = vcombine.low %v22026_v10, %v22257_v47  ;;  %v22260_v10 = vld [vmem:[#allocation10_spill] sm:$0xff] }
 0x843   : > { %22253 = vst [vmem:[#allocation84_spill] sm:$0xff] %v19082_v21  ;;  %11109 = vrot.lane.b32.xlu1 %v22139_v33, %s13234_s15  ;;  %v19106_v33 = vrot.slane %v9299_v24, %v13326_v18  ;;  %v19109_v1 = vrot.slane %v8948_v22, %v13303_v11  ;;  %v12701_v49 = vunpack.i.h.bf16 %v18920_v35  ;;  %v12700_v41 = vunpack.i.l.bf16 %v18920_v35  ;;  %v12704_v38 = vpop.permute.xlu1 %12703 }
 0x844   : > { %v6314_v28 = vsel %vm631_vm1, %v22256_v31, %v12696_v25  ;;  %v6313_v4 = vsel %vm631_vm1, %v22258_v44, %v12695_v30  ;;  %v9315_v58 = vcombine.low %v19000_v15, %v19072_v0  ;;  %v22261_v25 = vld [vmem:[#allocation130_spill] sm:$0xff]  ;;  %v12705_v3 = vunpack.i.l.bf16 %v12704_v38 }
 0x845   : > { %22259 = vst [vmem:[#allocation83_spill] sm:$0xff] %v19106_v33  ;;  %v8980_v30 = vcombine.high %v22261_v25, %v22260_v10  ;;  %v19120_v24 = vrot.slane %v9283_v16, %v13326_v18  ;;  %v19123_v22 = vrot.slane %v9300_v12, %v13326_v18  ;;  %v6315_v31 = vsel %vm633_vm2, %v6313_v4, %v12700_v41 }
 0x846   : > { %11095 = vrot.lane.b32.xlu0 %v22109_v9, %s13234_s15  ;;  %v19117_v48 = vpop.permute.xlu0 %12763  ;;  %v12706_v9 = vunpack.i.h.bf16 %v12704_v38  ;;  %v6316_v35 = vsel %vm633_vm2, %v6314_v28, %v12701_v49  ;;  %v8995_v47 = vcombine.low %v19015_v34, %v19093_v63  ;;  %v8979_v44 = vcombine.low %v22261_v25, %v22260_v10 }
 0x847   : > { %11117 = vrot.lane.b32.xlu1 %v22138_v52, %s13234_s15  ;;  %v6317_v38 = vsel %vm635_vm3, %v6315_v31, %v12705_v3  ;;  %v9011_v12 = vcombine.low %v19021_v29, %v19109_v1  ;;  %v12711_v28 = vunpack.i.h.bf16 %v18950_v2  ;;  %v12710_v52 = vunpack.i.l.bf16 %v18950_v2 }
 0x848   : > { %v6318_v16 = vsel %vm635_vm3, %v6316_v35, %v12706_v9  ;;  %v12714_v4 = vpop.permute.xlu1 %12713  ;;  %v9332_v49 = vcombine.high %v19082_v21, %v19106_v33  ;;  %v19144_v41 = vrot.slane %v9315_v58, %v13326_v18  ;;  %v19147_v10 = vrot.slane %v8980_v30, %v13303_v11  ;;  %v22274_v33 = vld [vmem:[#allocation125_spill] sm:$0xff] }
 0x849   : > { %v12715_v9 = vunpack.i.l.bf16 %v12714_v4  ;;  %v6319_v31 = vsel %vm637_vm4, %v6317_v38, %v12710_v52  ;;  %v6320_v35 = vsel %vm637_vm4, %v6318_v16, %v12711_v28  ;;  %v19160_v58 = vrot.slane %v8995_v47, %v13326_v18 }
 0x84a   : > { %11103 = vrot.lane.b32.xlu0 %v22111_v43, %s13234_s15  ;;  %v19149_v25 = vpop.permute.xlu0 %12773  ;;  %v12716_v43 = vunpack.i.h.bf16 %v12714_v4  ;;  %v19163_v30 = vrot.slane %v8979_v44, %v13303_v11  ;;  %v19170_v38 = vrot.slane %v9011_v12, %v13326_v18  ;;  %v12721_v16 = vunpack.i.h.bf16 %v18980_v8  ;;  %v22264_v12 = vld [vmem:[#allocation121_spill] sm:$0xff] }
 0x84b   : > { %11059 = vrot.lane.b32.xlu1 %v22116_v23, %s13234_s15  ;;  %22262 = vst [vmem:[#allocation222_spill] sm:$0xff] %v19160_v58  ;;  %v6321_v4 = vsel %vm639_vm5, %v6319_v31, %v12715_v9  ;;  %v12720_v23 = vunpack.i.l.bf16 %v18980_v8  ;;  %v22263_v47 = vcombine.high %v22231_v20, %v22230_v40  ;;  %v9043_v52 = vcombine.low %v19079_v60, %v19147_v10  ;;  %v22265_v8 = vld [vmem:[#allocation213_spill] sm:$0xff] }
 0x84c   : > { %v6322_v3 = vsel %vm639_vm5, %v6320_v35, %v12716_v43  ;;  %v12724_v28 = vpop.permute.xlu1 %12723  ;;  %v12556_v35 = vunpack.i.h.bf16 %v22264_v12  ;;  %v12555_v50 = vunpack.i.l.bf16 %v22264_v12  ;;  %v22269_v12 = vld [vmem:[#allocation194_spill] sm:$0xff]  ;;  %v12566_v11 = vunpack.i.h.bf16 %v22274_v33 }
 0x84d   : > { %v12832_v44 = vpack.i.bf16 %v9332_v49, %v22263_v47  ;;  %v12726_v43 = vunpack.i.h.bf16 %v12724_v28  ;;  %v12725_v31 = vunpack.i.l.bf16 %v12724_v28  ;;  %v6323_v2 = vsel %vm641_vm6, %v6321_v4, %v12720_v23 }
 0x84e   : > { %11111 = vrot.lane.b32.xlu0 %v22119_v39, %s13234_s15  ;;  %v19179_v9 = vpop.permute.xlu0 %12783  ;;  %v9333_v39 = vcombine.low %v19090_v59, %v19123_v22  ;;  %v6324_v49 = vsel %vm641_vm6, %v6322_v3, %v12721_v16  ;;  %v9334_v3 = vcombine.high %v19090_v59, %v19123_v22  ;;  %v22272_v59 = vld [vmem:[#allocation188_spill] sm:$0xff] }
 0x84f   : > { %11067 = vrot.lane.b32.xlu1 %v22265_v8, %s13234_s15  ;;  %v6325_v17 = vsel %vm643_vm7, %v6323_v2, %v12725_v31  ;;  %v6326_v40 = vsel %vm643_vm7, %v6324_v49, %v12726_v43  ;;  %v22266_v8 = vld [vmem:[#allocation39_spill] sm:$0xff]  ;;  %v22267_v2 = vcombine.low %v18869_v56, %v18879_v32  ;;  %v19208_v31 = vrot.slane %v9043_v52, %v13326_v18  ;;  %v22268_v49 = vld [vmem:[#allocation61_spill] sm:$0xff] }
 0x850   : > { %v12561_v20 = vunpack.i.h.bf16 %v22266_v8  ;;  %v12729_v4 = vpop.permute.xlu1 %12728  ;;  %v12168_v23 = vpack.c.bf16 %v6326_v40, %v6325_v17  ;;  %v12560_v16 = vunpack.i.l.bf16 %v22266_v8  ;;  %v22270_v21 = vcombine.low %v22268_v49, %v22269_v12  ;;  %v22271_v17 = vld [vmem:[#allocation187_spill] sm:$0xff]  ;;  %v22279_v49 = vld [vmem:[#allocation138_spill] sm:$0xff] }
 0x851   : > { %v12731_v28 = vunpack.i.h.bf16 %v12729_v4  ;;  %v12842_v43 = vpack.i.bf16 %v9333_v39, %v22267_v2  ;;  %v22273_v22 = vcombine.low %v22271_v17, %v22272_v59  ;;  %v12565_v39 = vunpack.i.l.bf16 %v22274_v33  ;;  %v22276_v52 = vld [vmem:[#allocation191_spill] sm:$0xff]  ;;  %v22277_v2 = vld [vmem:[#allocation24_spill] sm:$0xff] }
 0x852   : > { %12833 = vrot.lane.b32.xlu0 %v12832_v44, %s13228_s9  ;;  %v19202_v47 = vpop.permute.xlu0 %12793  ;;  %v12730_v44 = vunpack.i.l.bf16 %v12729_v4  ;;  %v7892_v40 = vsel %vm631_vm1, %v22270_v21, %v12556_v35  ;;  %v22275_v4 = vld [vmem:[#allocation211_spill] sm:$0xff]  ;;  %12169 = vmatprep.subr.bf16.mxu1 %v12168_v23  ;;  %v22278_v57 = vcombine.low %v22276_v52, %v22277_v2  ;;  %v9335_v23 = vcombine.low %v19120_v24, %v19144_v41 }
 0x853   : > { %v7891_v8 = vsel %vm631_vm1, %v22273_v22, %v12555_v50  ;;  %11075 = vrot.lane.b32.xlu1 %v22275_v4, %s13234_s15  ;;  %v22280_v21 = vld [vmem:[#allocation139_spill] sm:$0xff]  ;;  %v22282_v50 = vpack.c.bf16 %v18976_v13, %v18973_v62  ;;  %v7894_v33 = vsel %vm633_vm2, %v7892_v40, %v12561_v20  ;;  %v12736_v59 = vunpack.i.h.bf16 %v19018_v19  ;;  %v22284_v4 = vld [vmem:[#allocation29_spill] sm:$0xff] }
 0x854   : > { %v7094_v12 = vsel %vm631_vm1, %v22278_v57, %v12731_v28  ;;  %v22281_v35 = vcombine.low %v22279_v49, %v22280_v21  ;;  %v12735_v57 = vunpack.i.l.bf16 %v19018_v19  ;;  %v12739_v28 = vpop.permute.xlu1 %12738  ;;  %v22283_v22 = vcombine.high %v18869_v56, %v18879_v32  ;;  %v22285_v49 = vld [vmem:[#allocation7_spill] sm:$0xff] }
 0x855   : > { %12171 = vmatpush1.bf16.msra.mxu1 %v22282_v50  ;;  %v12570_v52 = vunpack.i.l.bf16 %v22284_v4  ;;  %v12741_v13 = vunpack.i.h.bf16 %v12739_v28  ;;  %v12740_v2 = vunpack.i.l.bf16 %v12739_v28  ;;  %v12576_v21 = vunpack.i.h.bf16 %v22285_v49 }
 0x856   : > { %v7093_v17 = vsel %vm631_vm1, %v22281_v35, %v12730_v44  ;;  %12843 = vrot.lane.b32.xlu0 %v12842_v43, %s13229_s10  ;;  %v12852_v44 = vpack.i.bf16 %v9334_v3, %v22283_v22  ;;  %v7893_v43 = vsel %vm633_vm2, %v7891_v8, %v12560_v16  ;;  %v19244_v62 = vpop.permute.xlu0 %12803  ;;  %v12571_v20 = vunpack.i.h.bf16 %v22284_v4  ;;  %v22286_v35 = vld [vmem:[#allocation209_spill] sm:$0xff]  ;;  %v22288_v22 = vld [vmem:[#allocation28_spill] sm:$0xff] }
 0x857   : > { %v7095_v40 = vsel %vm633_vm2, %v7093_v17, %v12735_v57  ;;  %v7096_v19 = vsel %vm633_vm2, %v7094_v12, %v12736_v59  ;;  %11083 = vrot.lane.b32.xlu1 %v22286_v35, %s13234_s15  ;;  %v22287_v3 = vcombine.low %v18872_v53, %v18882_v55  ;;  %v9336_v8 = vcombine.high %v19120_v24, %v19144_v41 }
 0x858   : > { %v7097_v56 = vsel %vm635_vm3, %v7095_v40, %v12740_v2  ;;  %v7098_v32 = vsel %vm635_vm3, %v7096_v19, %v12741_v13  ;;  %v7895_v17 = vsel %vm635_vm3, %v7893_v43, %v12565_v39  ;;  %v7896_v12 = vsel %vm635_vm3, %v7894_v33, %v12566_v11  ;;  %v12749_v57 = vpop.permute.xlu1 %12748  ;;  %v22289_v39 = vld [vmem:[#allocation18_spill] sm:$0xff] }
 0x859   : > { %v12862_v16 = vpack.i.bf16 %v9335_v23, %v22287_v3  ;;  %v12746_v50 = vunpack.i.h.bf16 %v19047_v5  ;;  %v12745_v59 = vunpack.i.l.bf16 %v19047_v5  ;;  %v7897_v28 = vsel %vm637_vm4, %v7895_v17, %v12570_v52 }
 0x85a   : > { %12853 = vrot.lane.b32.xlu0 %v12852_v44, %s13227_s8  ;;  %v12580_v44 = vunpack.i.l.bf16 %v22288_v22  ;;  %v12751_v13 = vunpack.i.h.bf16 %v12749_v57  ;;  %v12750_v23 = vunpack.i.l.bf16 %v12749_v57  ;;  %v12575_v2 = vunpack.i.l.bf16 %v22285_v49 }
 0x85b   : > { %v19266_v4 = vpop.permute.xlu0 %12813  ;;  %v7898_v24 = vsel %vm637_vm4, %v7896_v12, %v12571_v20  ;;  %v7099_v41 = vsel %vm637_vm4, %v7097_v56, %v12745_v59  ;;  %v7100_v11 = vsel %vm637_vm4, %v7098_v32, %v12746_v50  ;;  %11091 = vrot.lane.b32.xlu1 %v22289_v39, %s13234_s15  ;;  %v12581_v5 = vunpack.i.h.bf16 %v22288_v22  ;;  %v22291_v50 = vld [vmem:[#allocation132_spill] sm:$0xff] }
 0x85c   : > { %v7101_v33 = vsel %vm639_vm5, %v7099_v41, %v12750_v23  ;;  %v7102_v43 = vsel %vm639_vm5, %v7100_v11, %v12751_v13  ;;  %v22290_v52 = vcombine.high %v18872_v53, %v18882_v55  ;;  %v12756_v20 = vunpack.i.h.bf16 %v19074_v6  ;;  %v12759_v19 = vpop.permute.xlu1 %12758 }
 0x85d   : > { %v12755_v40 = vunpack.i.l.bf16 %v19074_v6  ;;  %v9064_v35 = vcombine.high %v19170_v38, %v19208_v31  ;;  %v7899_v56 = vsel %vm639_vm5, %v7897_v28, %v12575_v2  ;;  %v12761_v3 = vunpack.i.h.bf16 %v12759_v19 }
 0x85e   : > { %12863 = vrot.lane.b32.xlu0 %v12862_v16, %s13230_s11  ;;  %v12872_v49 = vpack.i.bf16 %v9336_v8, %v22290_v52  ;;  %v12760_v17 = vunpack.i.l.bf16 %v12759_v19  ;;  %v7900_v16 = vsel %vm639_vm5, %v7898_v24, %v12576_v21  ;;  %v7901_v12 = vsel %vm641_vm6, %v7899_v56, %v12580_v44  ;;  %v22297_v52 = vld [vmem:[#allocation37_spill] sm:$0xff] }
 0x85f   : > { %v12766_v53 = vunpack.i.h.bf16 %v19117_v48  ;;  %v12765_v55 = vunpack.i.l.bf16 %v19117_v48  ;;  %11099 = vrot.lane.b32.xlu1 %v22151_v27, %s13234_s15  ;;  %v7103_v6 = vsel %vm641_vm6, %v7101_v33, %v12755_v40  ;;  %v7104_v8 = vsel %vm641_vm6, %v7102_v43, %v12756_v20  ;;  %v22296_v43 = vld [vmem:[#allocation68_spill] sm:$0xff]  ;;  %v22300_v20 = vld [vmem:[#allocation146_spill] sm:$0xff] }
 0x860   : > { %v19286_v32 = vpop.permute.xlu0 %12823  ;;  %v12585_v59 = vunpack.i.l.bf16 %v22291_v50  ;;  %v7105_v57 = vsel %vm643_vm7, %v7103_v6, %v12760_v17  ;;  %v7106_v21 = vsel %vm643_vm7, %v7104_v8, %v12761_v3  ;;  %v7902_v28 = vsel %vm641_vm6, %v7900_v16, %v12581_v5  ;;  %v22305_v6 = vld [vmem:[#allocation144_spill] sm:$0xff]  ;;  %v22306_v8 = vld [vmem:[#allocation141_spill] sm:$0xff] }
 0x861   : > { %v22292_v48 = vcombine.low %v19032_v36, %v19163_v30  ;;  %v22294_v27 = vcombine.high %v19079_v60, %v19147_v10  ;;  %v12586_v13 = vunpack.i.h.bf16 %v22291_v50  ;;  %v12769_v23 = vpop.permute.xlu1 %12768  ;;  %v12172_v2 = vpack.c.bf16 %v7106_v21, %v7105_v57  ;;  %v22299_v10 = vld [vmem:[#allocation156_spill] sm:$0xff] }
 0x862   : > { %12873 = vrot.lane.b32.xlu0 %v12872_v49, %s13231_s12  ;;  %v12771_v41 = vunpack.i.h.bf16 %v12769_v23  ;;  %v12770_v11 = vunpack.i.l.bf16 %v12769_v23  ;;  %v22295_v39 = vcombine.high %v18888_v7, %v18901_v54  ;;  %v7903_v33 = vsel %vm643_vm7, %v7901_v12, %v12585_v59 }
 0x863   : > { %v19305_v22 = vrot.slane %v22292_v48, %v13326_v18  ;;  %v19311_v44 = vrot.slane %v22294_v27, %v13326_v18  ;;  %v22298_v49 = vcombine.low %v22296_v43, %v22297_v52  ;;  %v22301_v40 = vcombine.low %v22299_v10, %v22300_v20  ;;  %11107 = vrot.lane.b32.xlu1 %v22176_v14, %s13234_s15  ;;  %v22309_v27 = vld [vmem:[#allocation128_spill] sm:$0xff]  ;;  %v22312_v10 = vld [vmem:[#allocation159_spill] sm:$0xff] }
 0x864   : > { %v19314_v24 = vpop.permute.xlu0 %10275  ;;  %v12882_v5 = vpack.i.bf16 %v9064_v35, %v22295_v39  ;;  %12173 = vmatprep.subr.bf16.mxu1 %v12172_v2  ;;  %v7904_v56 = vsel %vm643_vm7, %v7902_v28, %v12586_v13  ;;  %v22302_v35 = vcombine.high %v19021_v29, %v19109_v1  ;;  %v22303_v12 = vpack.c.bf16 %v19069_v45, %v19066_v37  ;;  %v22310_v13 = vld [vmem:[#allocation137_spill] sm:$0xff] }
 0x865   : > { %22293 = vst [vmem:[#allocation210_spill] sm:$0xff] %v19305_v22  ;;  %v8672_v60 = vsel %vm631_vm1, %v22298_v49, %v12766_v53  ;;  %v8671_v19 = vsel %vm631_vm1, %v22301_v40, %v12765_v55  ;;  %v22304_v14 = vcombine.high %v19032_v36, %v19163_v30  ;;  %v12776_v29 = vunpack.i.h.bf16 %v19149_v25  ;;  %v12779_v55 = vpop.permute.xlu1 %12778 }
 0x866   : > { %v19335_v3 = vrot.slane %v22302_v35, %v13326_v18  ;;  %v8674_v17 = vsel %vm633_vm2, %v8672_v60, %v12771_v41  ;;  %v8673_v16 = vsel %vm633_vm2, %v8671_v19, %v12770_v11  ;;  %12883 = vrot.lane.b32.xlu0 %v12882_v5, %s13231_s12  ;;  %12175 = vmatpush1.bf16.msra.mxu1 %v22303_v12  ;;  %v12775_v1 = vunpack.i.l.bf16 %v19149_v25  ;;  %v22311_v60 = vld [vmem:[#allocation56_spill] sm:$0xff]  ;;  %v22314_v35 = vld [vmem:[#allocation166_spill] sm:$0xff] }
 0x867   : > { %v19347_v53 = vrot.slane %v22304_v14, %v13326_v18  ;;  %v22307_v50 = vpack.c.bf16 %v22305_v6, %v22306_v8  ;;  %v9060_v59 = vcombine.high %v19160_v58, %v19305_v22  ;;  %v12781_v45 = vunpack.i.h.bf16 %v12779_v55  ;;  %11115 = vrot.lane.b32.xlu1 %v22175_v61, %s13234_s15  ;;  %v22317_v12 = vld [vmem:[#allocation152_spill] sm:$0xff] }
 0x868   : > { %v19356_v37 = vpop.permute.xlu0 %10283  ;;  %v12780_v57 = vunpack.i.l.bf16 %v12779_v55  ;;  %v12178_v21 = vpack.c.bf16 %v7904_v56, %v7903_v33  ;;  %v9065_v36 = vcombine.low %v19335_v3, %v19311_v44  ;;  %v22308_v25 = vcombine.high %v19015_v34, %v19093_v63  ;;  %v22313_v56 = vld [vmem:[#allocation202_spill] sm:$0xff]  ;;  %v22395_v22 = vld [vmem:[#allocation140_spill] sm:$0xff] }
 0x869   : > { %12177 = vmatprep.subr.bf16.mxu1 %v22307_v50  ;;  %v8675_v28 = vsel %vm635_vm3, %v8673_v16, %v12775_v1  ;;  %v8676_v48 = vsel %vm635_vm3, %v8674_v17, %v12776_v29  ;;  %v8924_v23 = vcombine.high %v22310_v13, %v22309_v27  ;;  %v8929_v34 = vcombine.low %v18893_v26, %v18904_v46  ;;  %v12789_v39 = vpop.permute.xlu1 %12788  ;;  %v22316_v16 = vld [vmem:[#allocation162_spill] sm:$0xff] }
 0x86a   : > { %v9010_v30 = vrot.slane %v22308_v25, %v13326_v18  ;;  %v8677_v2 = vsel %vm637_vm4, %v8675_v28, %v12780_v57  ;;  %v8678_v41 = vsel %vm637_vm4, %v8676_v48, %v12781_v45  ;;  %12893 = vrot.lane.b32.xlu0 %v18860_v42, %s13228_s9  ;;  %12179 = vmatpush1.bf16.msra.mxu1 %v12178_v21  ;;  %v12786_v63 = vunpack.i.h.bf16 %v19179_v9 }
 0x86b   : > { %v12785_v11 = vunpack.i.l.bf16 %v19179_v9  ;;  %v12837_v61 = vpack.i.bf16 %v9060_v59, %v8924_v23  ;;  %v12791_v43 = vunpack.i.h.bf16 %v12789_v39  ;;  %v12790_v52 = vunpack.i.l.bf16 %v12789_v39  ;;  %v22325_v39 = vld [vmem:[#allocation242_spill] sm:$0xff] }
 0x86c   : > { %v9061_v5 = vcombine.low %v9010_v30, %v19347_v53  ;;  %v19379_v33 = vpop.permute.xlu0 %10291  ;;  %v12902_v49 = vpack.i.bf16 %v9065_v36, %v8929_v34  ;;  %v8925_v42 = vcombine.low %v22312_v10, %v22311_v60  ;;  %v12796_v20 = vunpack.i.h.bf16 %v19202_v47 }
 0x86d   : > { %v12795_v40 = vunpack.i.l.bf16 %v19202_v47  ;;  %12838 = vrot.lane.b32.xlu1 %v12837_v61, %s13228_s9  ;;  %v8679_v9 = vsel %vm639_vm5, %v8677_v2, %v12785_v11  ;;  %v8680_v19 = vsel %vm639_vm5, %v8678_v41, %v12786_v63  ;;  %v22315_v17 = vcombine.low %v22313_v56, %v22314_v35  ;;  %v12799_v50 = vpop.permute.xlu1 %12798  ;;  %v22321_v2 = vld [vmem:[#allocation86_spill] sm:$0xff]  ;;  %v22322_v41 = vld [vmem:[#allocation81_spill] sm:$0xff]  ;;  %v22326_v61 = vld [vmem:[#allocation11_spill] sm:$0xff] }
 0x86e   : > { %12903 = vrot.lane.b32.xlu0 %v12902_v49, %s13232_s13  ;;  %v22318_v14 = vcombine.low %v22316_v16, %v22317_v12  ;;  %v22319_v1 = vcombine.high %v22313_v56, %v22314_v35  ;;  %v22320_v47 = vcombine.high %v22316_v16, %v22317_v12  ;;  %v8681_v6 = vsel %vm641_vm6, %v8679_v9, %v12790_v52  ;;  %v22324_v63 = vld [vmem:[#allocation161_spill] sm:$0xff]  ;;  %v22335_v16 = vld [vmem:[#allocation76_spill] sm:$0xff] }
 0x86f   : > { %v8682_v8 = vsel %vm641_vm6, %v8680_v19, %v12791_v43  ;;  %v12847_v59 = vpack.i.bf16 %v9061_v5, %v8925_v42  ;;  %v9062_v45 = vcombine.high %v9010_v30, %v19347_v53  ;;  %v19407_v57 = vsel %vm643_vm7, %v8681_v6, %v12795_v40  ;;  %v22323_v30 = vld [vmem:[#allocation241_spill] sm:$0xff]  ;;  %v22328_v43 = vld [vmem:[#allocation50_spill] sm:$0xff] }
 0x870   : > { %v12932_v29 = vpack.i.bf16 %v22318_v14, %v22315_v17  ;;  %v19401_v55 = vpack.i.bf16 %v22320_v47, %v22319_v1  ;;  %v19410_v21 = vsel %vm643_vm7, %v8682_v8, %v12796_v20  ;;  %v19412_v36 = vpop.permute.xlu0 %10299  ;;  %v12801_v25 = vunpack.i.h.bf16 %v12799_v50  ;;  %v22330_v42 = vld [vmem:[#allocation181_spill] sm:$0xff]  ;;  %v22331_v20 = vld [vmem:[#allocation182_spill] sm:$0xff]  ;;  %v22334_v17 = vld [vmem:[#allocation192_spill] sm:$0xff] }
 0x871   : > { %v12800_v28 = vunpack.i.l.bf16 %v12799_v50  ;;  %v9066_v48 = vcombine.high %v19335_v3, %v19311_v44  ;;  %v12182_v23 = vpack.c.bf16 %v19410_v21, %v19407_v57  ;;  %v9148_v34 = vcombine.high %v22322_v41, %v22321_v2  ;;  %12848 = vrot.lane.b32.xlu1 %v12847_v59, %s13229_s10  ;;  %v22327_v3 = vld [vmem:[#allocation63_spill] sm:$0xff]  ;;  %v22336_v8 = vld [vmem:[#allocation186_spill] sm:$0xff] }
 0x872   : > { %v8926_v53 = vcombine.high %v22312_v10, %v22311_v60  ;;  %v9992_v11 = vcombine.high %v22324_v63, %v22323_v30  ;;  %v10128_v5 = vcombine.high %v22326_v61, %v22325_v39  ;;  %v9316_v44 = vcombine.high %v19000_v15, %v19072_v0  ;;  %v22333_v60 = vld [vmem:[#allocation172_spill] sm:$0xff]  ;;  %v12809_v0 = vpop.permute.xlu1 %12808  ;;  %v22391_v30 = vld [vmem:[#allocation145_spill] sm:$0xff]  ;;  %v22393_v61 = vld [vmem:[#allocation3_spill] sm:$0xff] }
 0x873   : > { %v22329_v52 = vcombine.low %v22327_v3, %v22328_v43  ;;  %v22332_v40 = vcombine.low %v22330_v42, %v22331_v20  ;;  %12913 = vrot.lane.b32.xlu0 %v22333_v60, %s13229_s10  ;;  %v8930_v10 = vcombine.high %v18893_v26, %v18904_v46  ;;  %v12806_v19 = vunpack.i.h.bf16 %v19244_v62  ;;  %v22343_v60 = vld [vmem:[#allocation160_spill] sm:$0xff] }
 0x874   : > { %v12805_v15 = vunpack.i.l.bf16 %v19244_v62  ;;  %v12857_v56 = vpack.i.bf16 %v9062_v45, %v8926_v53  ;;  %v9063_v35 = vcombine.low %v19170_v38, %v19208_v31  ;;  %v9180_v12 = vcombine.high %v22335_v16, %v22334_v17  ;;  %v19447_v14 = vpop.permute.xlu0 %10307  ;;  %v22338_v45 = vld [vmem:[#allocation176_spill] sm:$0xff] }
 0x875   : > { %v8686_v49 = vsel %vm631_vm1, %v22329_v52, %v12801_v25  ;;  %v8685_v9 = vsel %vm631_vm1, %v22332_v40, %v12800_v28  ;;  %v12811_v1 = vunpack.i.h.bf16 %v12809_v0  ;;  %v12810_v47 = vunpack.i.l.bf16 %v12809_v0  ;;  %v22340_v52 = vld [vmem:[#allocation174_spill] sm:$0xff]  ;;  %v22346_v0 = vld [vmem:[#allocation175_spill] sm:$0xff]  ;;  %v22392_v63 = vld [vmem:[#allocation136_spill] sm:$0xff] }
 0x876   : > { %v12922_v6 = vpack.i.bf16 %v9066_v48, %v8930_v10  ;;  %v9284_v26 = vcombine.high %v22336_v8, %v19039_v51  ;;  %v8687_v46 = vsel %vm633_vm2, %v8685_v9, %v12805_v15  ;;  %v8688_v62 = vsel %vm633_vm2, %v8686_v49, %v12806_v19  ;;  %12858 = vrot.lane.b32.xlu1 %v12857_v56, %s13227_s8  ;;  %v22337_v51 = vld [vmem:[#allocation72_spill] sm:$0xff]  ;;  %v12819_v2 = vpop.permute.xlu1 %12818  ;;  %v22341_v49 = vld [vmem:[#allocation127_spill] sm:$0xff]  ;;  %v22347_v56 = vld [vmem:[#allocation165_spill] sm:$0xff] }
 0x877   : > { %v8927_v38 = vcombine.low %v18888_v7, %v18901_v54  ;;  %v19457_v31 = vrot.slane %v9148_v34, %v13326_v18  ;;  %v8689_v50 = vsel %vm635_vm3, %v8687_v46, %v12810_v47  ;;  %v8690_v59 = vsel %vm635_vm3, %v8688_v62, %v12811_v1  ;;  %v22344_v10 = vld [vmem:[#allocation180_spill] sm:$0xff]  ;;  %v22349_v47 = vld [vmem:[#allocation203_spill] sm:$0xff] }
 0x878   : > { %12923 = vrot.lane.b32.xlu0 %v12922_v6, %s13233_s14  ;;  %v22339_v25 = vcombine.low %v22337_v51, %v22338_v45  ;;  %v19469_v48 = vrot.slane %v9316_v44, %v13326_v18  ;;  %v12816_v7 = vunpack.i.h.bf16 %v19266_v4  ;;  %v12815_v54 = vunpack.i.l.bf16 %v19266_v4  ;;  %v19473_v34 = vpop.permute.xlu0 %10315  ;;  %v22350_v6 = vld [vmem:[#allocation224_spill] sm:$0xff] }
 0x879   : > { %v12867_v41 = vpack.i.bf16 %v9063_v35, %v8927_v38  ;;  %v12821_v53 = vunpack.i.h.bf16 %v12819_v2  ;;  %v12820_v3 = vunpack.i.l.bf16 %v12819_v2  ;;  %v12877_v43 = vpack.i.bf16 %v10128_v5, %v9992_v11 }
 0x87a   : > { %v19466_v28 = vrot.slane %v22339_v25, %v13326_v18  ;;  %v22342_v42 = vcombine.low %v22340_v52, %v22341_v49  ;;  %v19482_v44 = vrot.slane %v9180_v12, %v13326_v18  ;;  %v19485_v40 = vrot.slane %v9284_v26, %v13326_v18  ;;  %v12829_v1 = vpop.permute.xlu1 %12828  ;;  %v22354_v25 = vld [vmem:[#allocation223_spill] sm:$0xff] }
 0x87b   : > { %v8691_v4 = vsel %vm637_vm4, %v8689_v50, %v12815_v54  ;;  %v8692_v9 = vsel %vm637_vm4, %v8690_v59, %v12816_v7  ;;  %12868 = vrot.lane.b32.xlu1 %v12867_v41, %s13230_s11  ;;  %v22345_v19 = vcombine.low %v22343_v60, %v22344_v10  ;;  %v22348_v35 = vcombine.low %v22346_v0, %v22347_v56  ;;  %v22353_v59 = vld [vmem:[#allocation58_spill] sm:$0xff] }
 0x87c   : > { %v19479_v20 = vrot.slane %v22342_v42, %v13326_v18  ;;  %v8693_v11 = vsel %vm639_vm5, %v8691_v4, %v12820_v3  ;;  %v8694_v5 = vsel %vm639_vm5, %v8692_v9, %v12821_v53  ;;  %12933 = vrot.lane.b32.xlu0 %v12932_v29, %s13230_s11  ;;  %v12826_v16 = vunpack.i.h.bf16 %v19286_v32  ;;  %v19513_v46 = vpop.permute.xlu0 %10323  ;;  %v22356_v53 = vld [vmem:[#allocation143_spill] sm:$0xff]  ;;  %v22357_v3 = vld [vmem:[#allocation228_spill] sm:$0xff] }
 0x87d   : > { %v19497_v15 = vrot.slane %v22345_v19, %v13326_v18  ;;  %v19503_v17 = vrot.slane %v22348_v35, %v13326_v18  ;;  %v12825_v12 = vunpack.i.l.bf16 %v19286_v32  ;;  %v9337_v29 = vcombine.low %v19485_v40, %v19469_v48  ;;  %22352 = vst [vmem:[#allocation4_spill] sm:$0xff] %v19513_v46 }
 0x87e   : > { %v22351_v8 = vcombine.high %v22349_v47, %v22350_v6  ;;  %v12831_v62 = vunpack.i.h.bf16 %v12829_v1  ;;  %v12830_v38 = vunpack.i.l.bf16 %v12829_v1  ;;  %v22355_v32 = vcombine.high %v22353_v59, %v22354_v25  ;;  %v19538_v35 = vpop.permute.xlu1 %10279  ;;  %v22360_v1 = vld [vmem:[#allocation204_spill] sm:$0xff] }
 0x87f   : > { %v9860_v50 = vcombine.high %v19503_v17, %v19479_v20  ;;  %12878 = vrot.lane.b32.xlu1 %v12877_v43, %s13228_s9  ;;  %v9201_v54 = vcombine.low %v19457_v31, %v19482_v44  ;;  %v8695_v2 = vsel %vm641_vm6, %v8693_v11, %v12825_v12  ;;  %v8696_v41 = vsel %vm641_vm6, %v8694_v5, %v12826_v16  ;;  %v22359_v12 = vld [vmem:[#allocation235_spill] sm:$0xff] }
 0x880   : > { %v10110_v26 = vrot.slane %v22351_v8, %v13326_v18  ;;  %v9974_v7 = vrot.slane %v22355_v32, %v13326_v18  ;;  %v22358_v42 = vcombine.high %v22356_v53, %v22357_v3  ;;  %12943 = vrot.lane.b32.xlu0 %v19401_v55, %s13231_s12  ;;  %v9724_v43 = vcombine.high %v19466_v28, %v19497_v15  ;;  %v19548_v25 = vpop.permute.xlu0 %10331  ;;  %v22364_v32 = vld [vmem:[#allocation26_spill] sm:$0xff]  ;;  %v22366_v53 = vld [vmem:[#allocation219_spill] sm:$0xff] }
 0x881   : > { %v8697_v19 = vsel %vm643_vm7, %v8695_v2, %v12830_v38  ;;  %v8698_v11 = vsel %vm643_vm7, %v8696_v41, %v12831_v62  ;;  %v12887_v5 = vpack.i.bf16 %v9337_v29, %v9201_v54  ;;  %v22361_v47 = vcombine.high %v22359_v12, %v22360_v1  ;;  %22362 = vst [vmem:[#allocation149_spill] sm:$0xff] %v19548_v25  ;;  %v22363_v62 = vld [vmem:[#allocation184_spill] sm:$0xff]  ;;  %v22367_v3 = vld [vmem:[#allocation79_spill] sm:$0xff]  ;;  %v22376_v12 = vld [vmem:[#allocation173_spill] sm:$0xff] }
 0x882   : > { %v10078_v4 = vrot.slane %v22358_v42, %v13326_v18  ;;  %v12180_v16 = vpack.c.bf16 %v8698_v11, %v8697_v19  ;;  %v9808_v55 = vcombine.high %v22346_v0, %v22347_v56  ;;  %v9840_v59 = vcombine.high %v22340_v52, %v22341_v49  ;;  %v22368_v52 = vld [vmem:[#allocation91_spill] sm:$0xff]  ;;  %v22369_v49 = vld [vmem:[#allocation150_spill] sm:$0xff]  ;;  %v22377_v1 = vld [vmem:[#allocation13_spill] sm:$0xff] }
 0x883   : > { %v9942_v6 = vrot.slane %v22361_v47, %v13326_v18  ;;  %v12952_v38 = vpack.i.bf16 %v9860_v50, %v9724_v43  ;;  %v22365_v29 = vcombine.high %v22363_v62, %v22364_v32  ;;  %12888 = vrot.lane.b32.xlu1 %v12887_v5, %s13232_s13  ;;  %v9722_v0 = vcombine.high %v22367_v3, %v22366_v53  ;;  %v22370_v50 = vld [vmem:[#allocation171_spill] sm:$0xff]  ;;  %v22371_v42 = vld [vmem:[#allocation78_spill] sm:$0xff] }
 0x884   : > { %v10129_v8 = vcombine.low %v10078_v4, %v10110_v26  ;;  %12181 = vmatprep.subr.bf16.mxu1 %v12180_v16  ;;  %v9858_v56 = vcombine.high %v22369_v49, %v22368_v52  ;;  %v22372_v43 = vcombine.high %v22370_v50, %v22371_v42  ;;  %v22373_v11 = vld [vmem:[#allocation15_spill] sm:$0xff]  ;;  %v10827_v47 = vcombine.low %v22377_v1, %v22376_v12  ;;  %v22379_v62 = vld [vmem:[#allocation154_spill] sm:$0xff] }
 0x885   : > { %v19554_v54 = vrot.slane %v22365_v29, %v13326_v18  ;;  %v9993_v2 = vcombine.low %v9942_v6, %v9974_v7  ;;  %v9994_v41 = vcombine.high %v9942_v6, %v9974_v7  ;;  %12953 = vrot.lane.b32.xlu0 %v12952_v38, %s13231_s12  ;;  %12183 = vmatpush1.bf16.msra.mxu1 %v12182_v23  ;;  %v22374_v7 = vld [vmem:[#allocation183_spill] sm:$0xff]  ;;  %v19575_v6 = vpop.permute.xlu1 %10287  ;;  %v22378_v38 = vld [vmem:[#allocation70_spill] sm:$0xff]  ;;  %v19581_v29 = vpop.permute.xlu0 %11057 }
 0x886   : > { %v9990_v19 = vrot.slane %v22372_v43, %v13326_v18  ;;  %v22375_v5 = vcombine.high %v22373_v11, %v22374_v7  ;;  %v9338_v21 = vcombine.high %v19485_v40, %v19469_v48  ;;  %v10130_v23 = vcombine.high %v10078_v4, %v10110_v26  ;;  %v22380_v3 = vld [vmem:[#allocation142_spill] sm:$0xff]  ;;  %v22381_v52 = vld [vmem:[#allocation179_spill] sm:$0xff]  ;;  %v22385_v48 = vld [vmem:[#allocation237_spill] sm:$0xff] }
 0x887   : > { %v12897_v57 = vpack.i.bf16 %v10129_v8, %v9993_v2  ;;  %v10691_v32 = vcombine.low %v22379_v62, %v22378_v38  ;;  %v9859_v53 = vcombine.low %v19503_v17, %v19479_v20  ;;  %v22382_v49 = vcombine.high %v22380_v3, %v22381_v52  ;;  %v22383_v8 = vld [vmem:[#allocation71_spill] sm:$0xff]  ;;  %v22386_v40 = vld [vmem:[#allocation73_spill] sm:$0xff]  ;;  %v22387_v17 = vld [vmem:[#allocation134_spill] sm:$0xff] }
 0x888   : > { %v10094_v16 = vrot.slane %v22375_v5, %v13326_v18  ;;  %v22384_v2 = vld [vmem:[#allocation151_spill] sm:$0xff]  ;;  %v10795_v26 = vcombine.low %v22386_v40, %v22385_v48  ;;  %v9202_v4 = vcombine.high %v19457_v31, %v19482_v44  ;;  %v9723_v20 = vcombine.low %v19466_v28, %v19497_v15  ;;  %v22390_v3 = vld [vmem:[#allocation129_spill] sm:$0xff] }
 0x889   : > { %v9958_v50 = vrot.slane %v22382_v49, %v13326_v18  ;;  %v10811_v43 = vcombine.low %v22384_v2, %v22383_v8  ;;  %12898 = vrot.lane.b32.xlu1 %v12897_v57, %s13229_s10  ;;  %v22388_v11 = vld [vmem:[#allocation135_spill] sm:$0xff]  ;;  %v12927_v49 = vpack.i.bf16 %v9858_v56, %v9722_v0  ;;  %v10659_v39 = vcombine.low %v22392_v63, %v22391_v30  ;;  %v19608_v57 = vpop.permute.xlu1 %10295  ;;  %v19613_v15 = vpop.permute.xlu0 %11065  ;;  %v22394_v56 = vld [vmem:[#allocation25_spill] sm:$0xff] }
 0x88a   : > { %v10133_v42 = vcombine.low %v10094_v16, %v19554_v54  ;;  %v10675_v7 = vcombine.low %v22388_v11, %v22387_v17  ;;  %v22389_v5 = vld [vmem:[#allocation131_spill] sm:$0xff]  ;;  %v19606_v27 = vrot.slane %v10827_v47, %v22393_v61  ;;  %v12907_v31 = vpack.i.bf16 %v9338_v21, %v9202_v4 }
 0x88b   : > { %v10779_v52 = vcombine.low %v22390_v3, %v22389_v5  ;;  %v9997_v9 = vcombine.low %v9958_v50, %v9990_v19  ;;  %v12917_v44 = vpack.i.bf16 %v10130_v23, %v9994_v41  ;;  %v19611_v28 = vrot.slane %v10691_v32, %v22393_v61 }
 0x88c   : > { %v19615_v13 = vpack.i.bf16 %v9859_v53, %v9723_v20  ;;  %v9998_v0 = vcombine.high %v9958_v50, %v9990_v19  ;;  %v10643_v46 = vcombine.low %v22395_v22, %v22394_v56  ;;  %v19622_v47 = vrot.slane %v10811_v43, %v22393_v61 }
 0x88d   : > { %v19617_v58 = vpack.i.bf16 %v10133_v42, %v9997_v9  ;;  %v19625_v25 = vrot.slane %v10795_v26, %v22393_v61  ;;  %12908 = vrot.lane.b32.xlu1 %v12907_v31, %s13233_s14  ;;  %v10683_v21 = vrot.slane %v10675_v7, %v22393_v61  ;;  %v19632_v9 = vrot.slane %v10779_v52, %v22393_v61  ;;  %v19647_v43 = vpop.permute.xlu1 %10303 }
 0x88e   : > { %v10134_v19 = vcombine.high %v10094_v16, %v19554_v54  ;;  %v19636_v23 = vrot.slane %v9840_v59, %v13326_v18  ;;  %v19639_v32 = vrot.slane %v10659_v39, %v22393_v61  ;;  %v10875_v53 = vcombine.low %v19622_v47, %v19606_v27  ;;  %v19650_v54 = vpop.permute.xlu0 %11073 }
 0x88f   : > { %v10403_v50 = vcombine.low %v19379_v33, %v19412_v36  ;;  %v10387_v42 = vcombine.low %v19538_v35, %v19575_v6  ;;  %v10739_v26 = vcombine.low %v10683_v21, %v19611_v28  ;;  %v10419_v59 = vcombine.low %v19608_v57, %v19647_v43 }
 0x890   : > { %22396 = vst [vmem:[#allocation169_spill] sm:$0xff] %v19636_v23  ;;  %v22397_v39 = vcombine.high %v22343_v60, %v22344_v10  ;;  %v19661_v4 = vrot.slane %v9808_v55, %v13326_v18  ;;  %v10651_v20 = vrot.slane %v10643_v46, %v22393_v61  ;;  %v10843_v7 = vcombine.low %v19632_v9, %v19625_v25 }
 0x891   : > { %v10371_v52 = vcombine.low %v19314_v24, %v19356_v37  ;;  %12918 = vrot.lane.b32.xlu1 %v12917_v44, %s13227_s8  ;;  %v22398_v31 = vcombine.high %v22337_v51, %v22338_v45  ;;  %v10644_v10 = vcombine.high %v22395_v22, %v22394_v56  ;;  %v19678_v55 = vrot.slane %v10419_v59, %v22393_v61  ;;  %v19694_v22 = vpop.permute.xlu1 %10311 }
 0x892   : > { %v19658_v16 = vrot.slane %v22397_v39, %v13326_v18  ;;  %v19680_v46 = vpack.i.bf16 %v10134_v19, %v9998_v0  ;;  %v9861_v39 = vcombine.low %v19661_v4, %v19636_v23  ;;  %v10707_v41 = vcombine.low %v10651_v20, %v19639_v32  ;;  %v19701_v19 = vpop.permute.xlu0 %11081 }
 0x893   : > { %v19673_v60 = vrot.slane %v22398_v31, %v13326_v18  ;;  %v19686_v44 = vrot.slane %v10875_v53, %v13326_v18  ;;  %v19689_v51 = vrot.slane %v10403_v50, %v22393_v61  ;;  %v19692_v45 = vrot.slane %v10387_v42, %v22393_v61 }
 0x894   : > { %v10676_v0 = vcombine.high %v22388_v11, %v22387_v17  ;;  %v19699_v56 = vrot.slane %v10739_v26, %v13326_v18  ;;  %v19708_v59 = vrot.slane %v10843_v7, %v13326_v18  ;;  %v19711_v42 = vrot.slane %v10371_v52, %v22393_v61 }
 0x895   : > { %22399 = vst [vmem:[#allocation226_spill] sm:$0xff] %v19686_v44  ;;  %v9725_v53 = vcombine.low %v19673_v60, %v19658_v16  ;;  %v10467_v17 = vcombine.low %v19689_v51, %v19678_v55  ;;  %12928 = vrot.lane.b32.xlu1 %v12927_v49, %s13227_s8  ;;  %v19719_v26 = vrot.slane %v10644_v10, %v22393_v61  ;;  %v19733_v49 = vpop.permute.xlu1 %10319 }
 0x896   : > { %22400 = vst [vmem:[#allocation217_spill] sm:$0xff] %v19699_v56  ;;  %22401 = vst [vmem:[#allocation59_spill] sm:$0xff] %v19708_v59  ;;  %v10780_v31 = vcombine.high %v22390_v3, %v22389_v5  ;;  %v10740_v7 = vcombine.high %v10683_v21, %v19611_v28  ;;  %v19727_v52 = vrot.slane %v10707_v41, %v13326_v18 }
 0x897   : > { %v19724_v50 = vpack.i.bf16 %v9861_v39, %v9725_v53  ;;  %v10876_v23 = vcombine.high %v19622_v47, %v19606_v27  ;;  %v10435_v11 = vcombine.low %v19711_v42, %v19692_v45  ;;  %v10908_v10 = vcombine.high %v19708_v59, %v19686_v44  ;;  %v19745_v27 = vpop.permute.xlu0 %11089 }
 0x898   : > { %22402 = vst [vmem:[#allocation9_spill] sm:$0xff] %v19727_v52  ;;  %v19738_v5 = vrot.slane %v10676_v0, %v22393_v61  ;;  %v10812_v3 = vcombine.high %v22384_v2, %v22383_v8  ;;  %v10660_v28 = vcombine.high %v22392_v63, %v22391_v30  ;;  %v10708_v41 = vcombine.high %v10651_v20, %v19639_v32 }
 0x899   : > { %v10692_v47 = vcombine.high %v22379_v62, %v22378_v38  ;;  %v10844_v21 = vcombine.high %v19632_v9, %v19625_v25  ;;  %v19752_v39 = vrot.slane %v10467_v17, %v13326_v18  ;;  %12938 = vrot.lane.b32.xlu1 %v19615_v13, %s13230_s11  ;;  %v10772_v8 = vcombine.high %v19727_v52, %v19699_v56  ;;  %v10328_v9 = vpop.permute.xlu1 %10327 }
 0x89a   : > { %v19759_v30 = vrot.slane %v10780_v31, %v22393_v61  ;;  %v10754_v63 = vrot.slane %v10740_v7, %v13326_v18  ;;  %v10796_v38 = vcombine.high %v22386_v40, %v22385_v48  ;;  %v10523_v25 = vcombine.low %v19694_v22, %v19733_v49  ;;  %v22403_v31 = vld [vmem:[#allocation149_spill] sm:$0xff]  ;;  %v22404_v7 = vld [vmem:[#allocation4_spill] sm:$0xff] }
 0x89b   : > { %v10828_v62 = vcombine.high %v22377_v1, %v22376_v12  ;;  %v10890_v2 = vrot.slane %v10876_v23, %v13326_v18  ;;  %v19770_v13 = vrot.slane %v10435_v11, %v13326_v18  ;;  %v12947_v32 = vpack.i.bf16 %v10908_v10, %v10772_v8  ;;  %v19781_v53 = vpop.permute.xlu0 %11097 }
 0x89c   : > { %v19773_v20 = vrot.slane %v10812_v3, %v22393_v61  ;;  %v19776_v0 = vrot.slane %v10660_v28, %v22393_v61  ;;  %v10722_v48 = vrot.slane %v10708_v41, %v13326_v18  ;;  %v10507_v40 = vcombine.low %v19447_v14, %v19473_v34 }
 0x89d   : > { %v19784_v12 = vrot.slane %v10692_v47, %v22393_v61  ;;  %v10858_v1 = vrot.slane %v10844_v21, %v13326_v18  ;;  %12948 = vrot.lane.b32.xlu1 %v12947_v32, %s13228_s9  ;;  %v19793_v11 = vrot.slane %v10796_v38, %v22393_v61  ;;  %v10539_v10 = vcombine.low %v22404_v7, %v22403_v31  ;;  %v10336_v21 = vpop.permute.xlu1 %10335 }
 0x89e   : > { %v10531_v3 = vrot.slane %v10523_v25, %v22393_v61  ;;  %v10773_v28 = vcombine.low %v10722_v48, %v10754_v63  ;;  %v19799_v41 = vrot.slane %v10828_v62, %v22393_v61  ;;  %v10372_v47 = vcombine.high %v19314_v24, %v19356_v37 }
 0x89f   : > { %v10909_v8 = vcombine.low %v10858_v1, %v10890_v2  ;;  %v10910_v32 = vcombine.high %v10858_v1, %v10890_v2  ;;  %v10515_v17 = vrot.slane %v10507_v40, %v22393_v61  ;;  %v10540_v38 = vcombine.high %v22404_v7, %v22403_v31  ;;  %v19806_v23 = vpop.permute.xlu0 %11105 }
 0x8a0   : > { %v10555_v59 = vcombine.low %v10328_v9, %v10336_v21  ;;  %v10556_v44 = vcombine.high %v10328_v9, %v10336_v21  ;;  %v10404_v25 = vcombine.high %v19379_v33, %v19412_v36  ;;  %v10420_v62 = vcombine.high %v19608_v57, %v19647_v43 }
 0x8a1   : > { %v10524_v24 = vcombine.high %v19694_v22, %v19733_v49  ;;  %12958 = vrot.lane.b32.xlu1 %v19617_v58, %s13232_s13  ;;  %v10774_v37 = vcombine.high %v10722_v48, %v10754_v63  ;;  %v10508_v2 = vcombine.high %v19447_v14, %v19473_v34  ;;  %v10547_v40 = vrot.slane %v10539_v10, %v22393_v61  ;;  %v11062_v57 = vpop.permute.xlu1 %11061 }
 0x8a2   : > { %v10571_v1 = vcombine.low %v10515_v17, %v10531_v3  ;;  %v10563_v9 = vrot.slane %v10555_v59, %v22393_v61  ;;  %v10388_v33 = vcombine.high %v19538_v35, %v19575_v6  ;;  %v19823_v36 = vrot.slane %v10556_v44, %v22393_v61 }
 0x8a3   : > { %v12967_v43 = vpack.i.bf16 %v10909_v8, %v10773_v28  ;;  %v12987_v22 = vpack.i.bf16 %v10910_v32, %v10774_v37  ;;  %v19826_v58 = vrot.slane %v10372_v47, %v22393_v61  ;;  %v19829_v49 = vrot.slane %v10540_v38, %v22393_v61  ;;  %v19831_v63 = vpop.permute.xlu0 %11113 }
 0x8a4   : > { %v10603_v14 = vcombine.low %v10547_v40, %v10563_v9  ;;  %v10604_v34 = vcombine.high %v10547_v40, %v10563_v9  ;;  %v19834_v59 = vrot.slane %v10420_v62, %v22393_v61  ;;  %v10468_v35 = vcombine.high %v19689_v51, %v19678_v55 }
 0x8a5   : > { %v19839_v6 = vrot.slane %v10524_v24, %v22393_v61  ;;  %v10572_v44 = vcombine.high %v10515_v17, %v10531_v3  ;;  %12968 = vrot.lane.b32.xlu1 %v12967_v43, %s13229_s10  ;;  %v19843_v48 = vrot.slane %v10404_v25, %v22393_v61  ;;  %v19846_v31 = vrot.slane %v10508_v2, %v22393_v61  ;;  %v11070_v28 = vpop.permute.xlu1 %11069 }
 0x8a6   : > { %v19849_v7 = vrot.slane %v10571_v1, %v13326_v18  ;;  %v19852_v10 = vrot.slane %v10603_v14, %v13326_v18  ;;  %v19855_v55 = vrot.slane %v10388_v33, %v22393_v61  ;;  %v10436_v51 = vcombine.high %v19711_v42, %v19692_v45 }
 0x8a7   : > { %v10618_v17 = vrot.slane %v10604_v34, %v13326_v18  ;;  %v10619_v3 = vcombine.low %v19829_v49, %v19823_v36  ;;  %v19864_v21 = vpop.permute.xlu0 %11055  ;;  %v11440_v8 = vcombine.high %v11062_v57, %v11070_v28  ;;  %v10500_v32 = vcombine.high %v19770_v13, %v19752_v39 }
 0x8a8   : > { %22405 = vst [vmem:[#allocation126_spill] sm:$0xff] %v19852_v10  ;;  %v10636_v38 = vcombine.high %v19849_v7, %v19852_v10  ;;  %v10482_v45 = vrot.slane %v10468_v35, %v13326_v18  ;;  %v10483_v42 = vcombine.low %v19843_v48, %v19834_v59  ;;  %v10586_v25 = vrot.slane %v10572_v44, %v13326_v18 }
 0x8a9   : > { %v10587_v62 = vcombine.low %v19846_v31, %v19839_v6  ;;  %12978 = vrot.lane.b32.xlu1 %v19680_v46, %s13233_s14  ;;  %v22406_v24 = vcombine.high %v19581_v29, %v19613_v15  ;;  %v11439_v2 = vcombine.low %v11062_v57, %v11070_v28  ;;  %v19885_v40 = vrot.slane %v11440_v8, %v22393_v61  ;;  %v11078_v46 = vpop.permute.xlu1 %11077 }
 0x8aa   : > { %v12962_v1 = vpack.i.bf16 %v10636_v38, %v10500_v32  ;;  %v10450_v9 = vrot.slane %v10436_v51, %v13326_v18  ;;  %v10451_v33 = vcombine.low %v19826_v58, %v19855_v55  ;;  %v19891_v43 = vrot.slane %v10619_v3, %v13326_v18 }
 0x8ab   : > { %v19882_v37 = vrot.slane %v22406_v24, %v22393_v61  ;;  %v10638_v14 = vcombine.high %v10586_v25, %v10618_v17  ;;  %v10891_v34 = vcombine.low %v19773_v20, %v19799_v41  ;;  %v11423_v57 = vcombine.low %v19581_v29, %v19613_v15  ;;  %v19901_v51 = vpop.permute.xlu0 %11063 }
 0x8ac   : > { %12963 = vrot.lane.b32.xlu0 %v12962_v1, %s13228_s9  ;;  %v19905_v3 = vrot.slane %v10483_v42, %v13326_v18  ;;  %v11455_v28 = vcombine.low %v19650_v54, %v19701_v19  ;;  %v19910_v8 = vrot.slane %v10587_v62, %v13326_v18  ;;  %v10502_v29 = vcombine.high %v10450_v9, %v10482_v45 }
 0x8ad   : > { %v11503_v35 = vcombine.low %v19882_v37, %v19885_v40  ;;  %v11504_v44 = vcombine.high %v19882_v37, %v19885_v40  ;;  %12988 = vrot.lane.b32.xlu1 %v12987_v22, %s13227_s8  ;;  %v10723_v15 = vcombine.low %v19719_v26, %v19776_v0  ;;  %v10755_v32 = vcombine.low %v19738_v5, %v19784_v12  ;;  %v11086_v62 = vpop.permute.xlu1 %11085 }
 0x8ae   : > { %v19918_v38 = vrot.slane %v11439_v2, %v22393_v61  ;;  %v10637_v42 = vcombine.low %v10586_v25, %v10618_v17  ;;  %v10859_v24 = vcombine.low %v19759_v30, %v19793_v11  ;;  %v19923_v37 = vrot.slane %v10451_v33, %v13326_v18 }
 0x8af   : > { %v12997_v40 = vpack.i.bf16 %v10638_v14, %v10502_v29  ;;  %v10639_v22 = vcombine.low %v19910_v8, %v19891_v43  ;;  %v19928_v1 = vrot.slane %v11423_v57, %v22393_v61  ;;  %v19930_v47 = vpop.permute.xlu0 %11071  ;;  %v11471_v52 = vcombine.low %v11078_v46, %v11086_v62 }
 0x8b0   : > { %v11472_v2 = vcombine.high %v11078_v46, %v11086_v62  ;;  %12973 = vrot.lane.b32.xlu0 %v19724_v50, %s13232_s13  ;;  %v10501_v17 = vcombine.low %v10450_v9, %v10482_v45  ;;  %v10899_v25 = vrot.slane %v10891_v34, %v13326_v18  ;;  %v19936_v33 = vrot.slane %v11455_v28, %v22393_v61 }
 0x8b1   : > { %v22407_v14 = vcombine.high %v19650_v54, %v19701_v19  ;;  %12998 = vrot.lane.b32.xlu1 %v12997_v40, %s13227_s8  ;;  %v10503_v57 = vcombine.low %v19923_v37, %v19905_v3  ;;  %v11487_v46 = vcombine.low %v19928_v1, %v19918_v38  ;;  %v19948_v50 = vrot.slane %v11471_v52, %v22393_v61  ;;  %v11094_v54 = vpop.permute.xlu1 %11093 }
 0x8b2   : > { %v11486_v45 = vrot.slane %v11472_v2, %v22393_v61  ;;  %v12982_v9 = vpack.i.bf16 %v10637_v42, %v10501_v17  ;;  %v10763_v34 = vrot.slane %v10755_v32, %v13326_v18  ;;  %v10867_v28 = vrot.slane %v10859_v24, %v13326_v18  ;;  %v22408_v32 = vld [vmem:[#allocation169_spill] sm:$0xff] }
 0x8b3   : > { %v11470_v29 = vrot.slane %v22407_v14, %v22393_v61  ;;  %v13007_v19 = vpack.i.bf16 %v10639_v22, %v10503_v57  ;;  %v9726_v62 = vcombine.high %v19673_v60, %v19658_v16  ;;  %v11519_v40 = vcombine.low %v19936_v33, %v19948_v50  ;;  %v19957_v10 = vpop.permute.xlu0 %11079 }
 0x8b4   : > { %12983 = vrot.lane.b32.xlu0 %v12982_v9, %s13229_s10  ;;  %v10731_v52 = vrot.slane %v10723_v15, %v13326_v18  ;;  %v22409_v42 = vcombine.high %v19661_v4, %v22408_v32  ;;  %v10911_v22 = vcombine.low %v10867_v28, %v10899_v25  ;;  %v19966_v16 = vrot.slane %v11487_v46, %v13326_v18 }
 0x8b5   : > { %v11535_v14 = vcombine.low %v11470_v29, %v11486_v45  ;;  %v11536_v56 = vcombine.high %v11470_v29, %v11486_v45  ;;  %13008 = vrot.lane.b32.xlu1 %v13007_v19, %s13230_s11  ;;  %v19969_v60 = vrot.slane %v11519_v40, %v13326_v18  ;;  %v19978_v15 = vrot.slane %v11503_v35, %v13326_v18  ;;  %v11102_v29 = vpop.permute.xlu1 %11101 }
 0x8b6   : > { %v12992_v24 = vpack.i.bf16 %v22409_v42, %v9726_v62  ;;  %v10775_v57 = vcombine.low %v10731_v52, %v10763_v34  ;;  %v19981_v4 = vrot.slane %v11504_v44, %v13326_v18  ;;  %v11575_v19 = vcombine.low %v11094_v54, %v11102_v29 }
 0x8b7   : > { %v19972_v2 = vrot.slane %v11535_v14, %v13326_v18  ;;  %v19975_v17 = vrot.slane %v11536_v56, %v13326_v18  ;;  %v19985_v45 = vpop.permute.xlu0 %11087  ;;  %v10912_v62 = vcombine.high %v10867_v28, %v10899_v25  ;;  %v11559_v32 = vcombine.low %v19745_v27, %v19781_v53 }
 0x8b8   : > { %12993 = vrot.lane.b32.xlu0 %v12992_v24, %s13233_s14  ;;  %v13002_v9 = vpack.i.bf16 %v10911_v22, %v10775_v57  ;;  %v11576_v42 = vcombine.high %v11094_v54, %v11102_v29  ;;  %v10776_v22 = vcombine.high %v10731_v52, %v10763_v34  ;;  %v11591_v57 = vcombine.low %v19806_v23, %v19831_v63 }
 0x8b9   : > { %v11555_v56 = vcombine.low %v19978_v15, %v19972_v2  ;;  %v11556_v35 = vcombine.high %v19978_v15, %v19972_v2  ;;  %v11110_v14 = vpop.permute.xlu1 %11109  ;;  %v11592_v25 = vcombine.high %v19806_v23, %v19831_v63  ;;  %v11583_v28 = vrot.slane %v11575_v19, %v22393_v61 }
 0x8ba   : > { %v13012_v46 = vpack.i.bf16 %v10912_v62, %v10776_v22  ;;  %v10640_v40 = vcombine.high %v19910_v8, %v19891_v43  ;;  %v10756_v54 = vcombine.high %v19738_v5, %v19784_v12  ;;  %v11567_v34 = vrot.slane %v11559_v32, %v22393_v61 }
 0x8bb   : > { %v19998_v24 = vpop.permute.xlu0 %11095  ;;  %v11590_v52 = vrot.slane %v11576_v42, %v22393_v61  ;;  %v10892_v43 = vcombine.high %v19773_v20, %v19799_v41  ;;  %v22410_v5 = vcombine.high %v19745_v27, %v19781_v53  ;;  %v11606_v8 = vrot.slane %v11592_v25, %v22393_v61 }
 0x8bc   : > { %13003 = vrot.lane.b32.xlu0 %v13002_v9, %s13230_s11  ;;  %v10504_v9 = vcombine.high %v19923_v37, %v19905_v3  ;;  %v11599_v3 = vrot.slane %v11591_v57, %v22393_v61  ;;  %v11623_v37 = vcombine.low %v11567_v34, %v11583_v28  ;;  %v10724_v53 = vcombine.high %v19719_v26, %v19776_v0 }
 0x8bd   : > { %v11118_v29 = vpop.permute.xlu1 %11117  ;;  %v11574_v12 = vrot.slane %v22410_v5, %v22393_v61  ;;  %v20037_v22 = vrot.slane %v10756_v54, %v13326_v18  ;;  %v11552_v54 = vcombine.high %v19966_v16, %v19969_v60 }
 0x8be   : > { %v11607_v23 = vcombine.low %v11110_v14, %v11118_v29  ;;  %v11608_v63 = vcombine.high %v11110_v14, %v11118_v29  ;;  %v13022_v14 = vpack.i.bf16 %v10640_v40, %v10504_v9  ;;  %v10906_v40 = vrot.slane %v10892_v43, %v13326_v18 }
 0x8bf   : > { %v20014_v44 = vpop.permute.xlu0 %11103  ;;  %v11639_v20 = vcombine.low %v11574_v12, %v11590_v52  ;;  %v20041_v57 = vrot.slane %v11623_v37, %v13326_v18  ;;  %v11520_v9 = vcombine.high %v19936_v33, %v19948_v50  ;;  %v10738_v37 = vrot.slane %v10724_v53, %v13326_v18 }
 0x8c0   : > { %13013 = vrot.lane.b32.xlu0 %v13012_v46, %s13231_s12  ;;  %v11615_v19 = vrot.slane %v11607_v23, %v22393_v61  ;;  %v11622_v62 = vrot.slane %v11608_v63, %v22393_v61  ;;  %v10860_v46 = vcombine.high %v19759_v30, %v19793_v11  ;;  %v11624_v23 = vcombine.high %v11567_v34, %v11583_v28 }
 0x8c1   : > { %v20029_v32 = vpop.permute.xlu1 %11059  ;;  %v11647_v63 = vrot.slane %v11639_v20, %v13326_v18  ;;  %v11488_v33 = vcombine.high %v19928_v1, %v19918_v38  ;;  %v11640_v50 = vcombine.high %v11574_v12, %v11590_v52  ;;  %v11151_v20 = vcombine.low %v19864_v21, %v19901_v51 }
 0x8c2   : > { %v11655_v41 = vcombine.low %v11599_v3, %v11615_v19  ;;  %v11671_v42 = vcombine.low %v11606_v8, %v11622_v62  ;;  %v11656_v30 = vcombine.high %v11599_v3, %v11615_v19  ;;  %v10874_v29 = vrot.slane %v10860_v46, %v13326_v18 }
 0x8c3   : > { %v20031_v27 = vpop.permute.xlu0 %11111  ;;  %v11672_v26 = vcombine.high %v11606_v8, %v11622_v62  ;;  %v11638_v38 = vrot.slane %v11624_v23, %v13326_v18  ;;  %v10777_v52 = vcombine.low %v10738_v37, %v20037_v22  ;;  %v11183_v12 = vcombine.low %v19930_v47, %v19957_v10 }
 0x8c4   : > { %13023 = vrot.lane.b32.xlu0 %v13022_v14, %s13231_s12  ;;  %v20044_v11 = vrot.slane %v11655_v41, %v13326_v18  ;;  %v11679_v25 = vrot.slane %v11671_v42, %v13326_v18  ;;  %v10913_v8 = vcombine.low %v10874_v29, %v10906_v40  ;;  %v11670_v19 = vrot.slane %v11656_v30, %v13326_v18 }
 0x8c5   : > { %v20050_v0 = vpop.permute.xlu1 %11067  ;;  %v11686_v14 = vrot.slane %v11672_v26, %v13326_v18  ;;  %v11534_v41 = vrot.slane %v11520_v9, %v13326_v18  ;;  %v11654_v42 = vrot.slane %v11640_v50, %v13326_v18  ;;  %v11502_v9 = vrot.slane %v11488_v33, %v13326_v18 }
 0x8c6   : > { %v11688_v3 = vcombine.high %v20041_v57, %v20044_v11  ;;  %v11167_v28 = vcombine.low %v20029_v32, %v20050_v0  ;;  %v11691_v62 = vcombine.low %v11647_v63, %v11679_v25  ;;  %v11692_v30 = vcombine.high %v11647_v63, %v11679_v25 }
 0x8c7   : > { %v20057_v5 = vpop.permute.xlu0 %12833  ;;  %v11689_v23 = vcombine.low %v11638_v38, %v11670_v19  ;;  %v11693_v50 = vcombine.low %v11654_v42, %v11686_v14  ;;  %v20096_v43 = vrot.slane %v11151_v20, %v22393_v61  ;;  %v11553_v25 = vcombine.low %v11502_v9, %v11534_v41 }
 0x8c8   : > { %v13017_v34 = vpack.i.bf16 %v11688_v3, %v11552_v54  ;;  %v20084_v53 = vpack.i.bf16 %v11691_v62, %v11555_v56  ;;  %v20088_v26 = vrot.slane %v11167_v28, %v22393_v61  ;;  %v13027_v54 = vpack.i.bf16 %v10913_v8, %v10777_v52 }
 0x8c9   : > { %v20068_v46 = vpop.permute.xlu1 %11075  ;;  %v11694_v63 = vcombine.high %v11654_v42, %v11686_v14  ;;  %v11191_v33 = vrot.slane %v11183_v12, %v22393_v61  ;;  %v10914_v8 = vcombine.high %v10874_v29, %v10906_v40  ;;  %v22411_v28 = vcombine.low %v19981_v4, %v19975_v17 }
 0x8ca   : > { %13018 = vrot.lane.b32.xlu1 %v13017_v34, %s13228_s9  ;;  %v20093_v34 = vpack.i.bf16 %v11692_v30, %v11556_v35  ;;  %v11215_v2 = vcombine.low %v20096_v43, %v20088_v26  ;;  %v13037_v20 = vpack.i.bf16 %v11689_v23, %v11553_v25  ;;  %v22412_v52 = vcombine.high %v19981_v4, %v19975_v17 }
 0x8cb   : > { %v20074_v1 = vpop.permute.xlu0 %12843  ;;  %v20104_v62 = vpack.i.bf16 %v11693_v50, %v22411_v28  ;;  %v10778_v29 = vcombine.high %v10738_v37, %v20037_v22  ;;  %v11690_v50 = vcombine.high %v11638_v38, %v11670_v19  ;;  %v11184_v22 = vcombine.high %v19930_v47, %v19957_v10 }
 0x8cc   : > { %v20114_v14 = vpack.i.bf16 %v11694_v63, %v22412_v52  ;;  %v20119_v42 = vrot.slane %v11215_v2, %v13326_v18  ;;  %v11287_v37 = vcombine.low %v19985_v45, %v19998_v24  ;;  %v11288_v38 = vcombine.high %v19985_v45, %v19998_v24 }
 0x8cd   : > { %v11084_v3 = vpop.permute.xlu1 %11083  ;;  %v10484_v47 = vcombine.high %v19843_v48, %v19834_v59  ;;  %v11320_v45 = vcombine.high %v20014_v44, %v20031_v27  ;;  %v11216_v52 = vcombine.high %v20096_v43, %v20088_v26 }
 0x8ce   : > { %v11199_v56 = vcombine.low %v20068_v46, %v11084_v3  ;;  %13028 = vrot.lane.b32.xlu1 %v13027_v54, %s13232_s13  ;;  %v13047_v54 = vpack.i.bf16 %v10914_v8, %v10778_v29  ;;  %v11200_v8 = vcombine.high %v20068_v46, %v11084_v3  ;;  %v11152_v46 = vcombine.high %v19864_v21, %v19901_v51 }
 0x8cf   : > { %v20108_v15 = vpop.permute.xlu0 %12853  ;;  %v20151_v3 = vrot.slane %v11184_v22, %v22393_v61  ;;  %v11295_v2 = vrot.slane %v11287_v37, %v22393_v61  ;;  %v20158_v59 = vrot.slane %v11288_v38, %v22393_v61 }
 0x8d0   : > { %v11207_v35 = vrot.slane %v11199_v56, %v22393_v61  ;;  %v11554_v56 = vcombine.high %v11502_v9, %v11534_v41  ;;  %v11319_v41 = vcombine.low %v20014_v44, %v20031_v27  ;;  %v11168_v9 = vcombine.high %v20029_v32, %v20050_v0 }
 0x8d1   : > { %v11092_v12 = vpop.permute.xlu1 %11091  ;;  %v20155_v32 = vrot.slane %v11200_v8, %v22393_v61 }
 0x8d2   : > { %v11247_v40 = vcombine.low %v11191_v33, %v11207_v35  ;;  %13038 = vrot.lane.b32.xlu1 %v13037_v20, %s13229_s10  ;;  %v13057_v63 = vpack.i.bf16 %v11690_v50, %v11554_v56  ;;  %v11248_v0 = vcombine.high %v11191_v33, %v11207_v35  ;;  %v11327_v44 = vrot.slane %v11319_v41, %v22393_v61 }
 0x8d3   : > { %v20126_v4 = vpop.permute.xlu0 %12863  ;;  %v20165_v27 = vrot.slane %v11168_v9, %v22393_v61  ;;  %v11334_v33 = vrot.slane %v11320_v45, %v22393_v61  ;;  %v11166_v50 = vrot.slane %v11152_v46, %v22393_v61  ;;  %v11263_v56 = vcombine.low %v20151_v3, %v20155_v32 }
 0x8d4   : > { %v20122_v30 = vrot.slane %v11247_v40, %v13326_v18  ;;  %v10452_v9 = vcombine.high %v19826_v58, %v19855_v55 }
 0x8d5   : > { %v11100_v23 = vpop.permute.xlu1 %11099 }
 0x8d6   : > { %v11279_v17 = vcombine.low %v20119_v42, %v20122_v30  ;;  %13048 = vrot.lane.b32.xlu1 %v13047_v54, %s13233_s14  ;;  %v11303_v25 = vcombine.low %v11092_v12, %v11100_v23  ;;  %v11304_v28 = vcombine.high %v11092_v12, %v11100_v23  ;;  %v10620_v54 = vcombine.high %v19829_v49, %v19823_v36 }
 0x8d7   : > { %v20148_v24 = vpop.permute.xlu0 %12873  ;;  %v20176_v23 = vrot.slane %v11248_v0, %v13326_v18  ;;  %v10588_v36 = vcombine.high %v19846_v31, %v19839_v6  ;;  %v11231_v49 = vcombine.low %v11166_v50, %v20165_v27  ;;  %v11271_v31 = vrot.slane %v11263_v56, %v13326_v18 }
 0x8d8   : > { %v11311_v10 = vrot.slane %v11303_v25, %v22393_v61  ;;  %v20161_v48 = vrot.slane %v11304_v28, %v22393_v61  ;;  %v20202_v6 = vrot.slane %v10620_v54, %v13326_v18  ;;  %v11280_v55 = vcombine.high %v20119_v42, %v20122_v30 }
 0x8d9   : > { %v11108_v19 = vpop.permute.xlu1 %11107  ;;  %v20215_v58 = vrot.slane %v10588_v36, %v13326_v18 }
 0x8da   : > { %13058 = vrot.lane.b32.xlu1 %v13057_v63, %s13227_s8  ;;  %v11351_v12 = vcombine.low %v11295_v2, %v11311_v10  ;;  %v11352_v35 = vcombine.high %v11295_v2, %v11311_v10  ;;  %v11367_v26 = vcombine.low %v20158_v59, %v20161_v48 }
 0x8db   : > { %v20184_v25 = vpop.permute.xlu0 %12883  ;;  %v10641_v56 = vcombine.low %v20215_v58, %v20202_v6 }
 0x8dc   : > { %v20191_v8 = vrot.slane %v11351_v12, %v13326_v18  ;;  %v11375_v46 = vrot.slane %v11367_v26, %v13326_v18  ;;  %v11264_v26 = vcombine.high %v20151_v3, %v20155_v32 }
 0x8dd   : > { %v11116_v20 = vpop.permute.xlu1 %11115 }
 0x8de   : > { %v11335_v21 = vcombine.low %v11108_v19, %v11116_v20  ;;  %v11336_v51 = vcombine.high %v11108_v19, %v11116_v20  ;;  %v11366_v19 = vrot.slane %v11352_v35, %v13326_v18  ;;  %v20212_v20 = vrot.slane %v10484_v47, %v13326_v18 }
 0x8df   : > { %v11278_v3 = vrot.slane %v11264_v26, %v13326_v18 }
 0x8e0   : > { %v11343_v40 = vrot.slane %v11335_v21, %v22393_v61  ;;  %v11350_v29 = vrot.slane %v11336_v51, %v22393_v61  ;;  %v11230_v61 = vrot.slane %v11216_v52, %v13326_v18  ;;  %v11239_v51 = vrot.slane %v11231_v49, %v13326_v18 }
 0x8e1   : > { %v20180_v43 = vpop.permute.xlu1 %12838 }
 0x8e2   : > { %v11383_v63 = vcombine.low %v11327_v44, %v11343_v40  ;;  %v11384_v22 = vcombine.high %v11327_v44, %v11343_v40  ;;  %v11399_v37 = vcombine.low %v11334_v33, %v11350_v29  ;;  %v11282_v2 = vcombine.high %v11230_v61, %v20176_v23  ;;  %v20222_v44 = vpop.permute.xlu0 %12893 }
 0x8e3   : > { %v11400_v52 = vcombine.high %v11334_v33, %v11350_v29  ;;  %v10466_v40 = vrot.slane %v10452_v9, %v13326_v18  ;;  %v11232_v33 = vcombine.high %v11166_v50, %v20165_v27  ;;  %v11284_v50 = vcombine.high %v11239_v51, %v11271_v31 }
 0x8e4   : > { %v20195_v38 = vrot.slane %v11383_v63, %v13326_v18  ;;  %v11398_v28 = vrot.slane %v11384_v22, %v13326_v18  ;;  %v11407_v41 = vrot.slane %v11399_v37, %v13326_v18  ;;  %v11368_v63 = vcombine.high %v20158_v59, %v20161_v48  ;;  %v22413_v48 = vld [vmem:[#allocation210_spill] sm:$0xff] }
 0x8e5   : > { %v20205_v10 = vpop.permute.xlu1 %12848  ;;  %v11283_v22 = vcombine.low %v11239_v51, %v11271_v31  ;;  %v10505_v29 = vcombine.low %v10466_v40, %v20212_v20  ;;  %v11414_v37 = vrot.slane %v11400_v52, %v13326_v18  ;;  %v12841_v52 = vunpack.i.h.bf16 %v20180_v43 }
 0x8e6   : > { %v11415_v45 = vcombine.low %v20191_v8, %v20195_v38  ;;  %v11418_v0 = vcombine.high %v11366_v19, %v11398_v28  ;;  %v11416_v21 = vcombine.high %v20191_v8, %v20195_v38  ;;  %v11419_v35 = vcombine.low %v11375_v46, %v11407_v41  ;;  %v20238_v59 = vpop.permute.xlu0 %12903 }
 0x8e7   : > { %v11420_v49 = vcombine.high %v11375_v46, %v11407_v41  ;;  %v11382_v32 = vrot.slane %v11368_v63, %v13326_v18  ;;  %v12840_v41 = vunpack.i.l.bf16 %v20180_v43  ;;  %v12850_v46 = vunpack.i.l.bf16 %v20205_v10 }
 0x8e8   : > { %v13067_v12 = vpack.i.bf16 %v11418_v0, %v11282_v2  ;;  %v13032_v54 = vpack.i.bf16 %v11416_v21, %v11280_v55  ;;  %v13077_v36 = vpack.i.bf16 %v11419_v35, %v11283_v22  ;;  %v13042_v2 = vpack.i.bf16 %v10641_v56, %v10505_v29  ;;  %v22414_v55 = vld [vmem:[#allocation222_spill] sm:$0xff]  ;;  %v22415_v22 = vld [vmem:[#allocation137_spill] sm:$0xff] }
 0x8e9   : > { %v12859_v47 = vpop.permute.xlu1 %12858  ;;  %v11417_v0 = vcombine.low %v11366_v19, %v11398_v28  ;;  %v9059_v27 = vcombine.low %v22414_v55, %v22413_v48  ;;  %v11246_v21 = vrot.slane %v11232_v33, %v13326_v18  ;;  %v11281_v19 = vcombine.low %v11230_v61, %v20176_v23  ;;  %v22416_v33 = vld [vmem:[#allocation128_spill] sm:$0xff] }
 0x8ea   : > { %13068 = vrot.lane.b32.xlu1 %v13067_v12, %s13227_s8  ;;  %13033 = vrot.lane.b32.xlu0 %v13032_v54, %s13228_s9  ;;  %v12851_v28 = vunpack.i.h.bf16 %v20205_v10  ;;  %v13087_v12 = vpack.i.bf16 %v11420_v49, %v11284_v50  ;;  %v11421_v35 = vcombine.low %v11382_v32, %v11414_v37  ;;  %v12861_v54 = vunpack.i.h.bf16 %v12859_v47 }
 0x8eb   : > { %v12860_v56 = vunpack.i.l.bf16 %v12859_v47  ;;  %v13052_v31 = vpack.i.bf16 %v11417_v0, %v11281_v19  ;;  %v10642_v18 = vcombine.high %v20215_v58, %v20202_v6  ;;  %v12835_v43 = vunpack.i.l.bf16 %v20057_v5  ;;  %v20264_v58 = vpop.permute.xlu0 %12913  ;;  %v22419_v0 = vld [vmem:[#allocation84_spill] sm:$0xff]  ;;  %v22421_v19 = vld [vmem:[#allocation103_spill] sm:$0xff] }
 0x8ec   : > { %v11285_v23 = vcombine.low %v11246_v21, %v11278_v3  ;;  %v12836_v61 = vunpack.i.h.bf16 %v20057_v5  ;;  %v9452_v10 = vsel %vm631_vm1, %v9059_v27, %v12841_v52  ;;  %v22417_v47 = vcombine.low %v22415_v22, %v22416_v33  ;;  %v22418_v5 = vld [vmem:[#allocation83_spill] sm:$0xff] }
 0x8ed   : > { %v12869_v9 = vpop.permute.xlu1 %12868  ;;  %v10506_v6 = vcombine.high %v10466_v40, %v20212_v20  ;;  %v9454_v49 = vsel %vm633_vm2, %v9452_v10, %v12851_v28  ;;  %v9331_v48 = vcombine.low %v22419_v0, %v22418_v5  ;;  %v12905_v10 = vunpack.i.l.bf16 %v20238_v59 }
 0x8ee   : > { %13078 = vrot.lane.b32.xlu1 %v13077_v36, %s13230_s11  ;;  %13043 = vrot.lane.b32.xlu0 %v13042_v2, %s13232_s13  ;;  %v12871_v51 = vunpack.i.h.bf16 %v12869_v9  ;;  %v12870_v63 = vunpack.i.l.bf16 %v12869_v9  ;;  %v9451_v29 = vsel %vm631_vm1, %v22417_v47, %v12840_v41  ;;  %v13097_v9 = vpack.i.bf16 %v11421_v35, %v11285_v23  ;;  %v22420_v41 = vld [vmem:[#allocation115_spill] sm:$0xff] }
 0x8ef   : > { %v9453_v36 = vsel %vm633_vm2, %v9451_v29, %v12850_v46  ;;  %v11422_v2 = vcombine.high %v11382_v32, %v11414_v37  ;;  %v9456_v27 = vsel %vm635_vm3, %v9454_v49, %v12861_v54  ;;  %v13062_v52 = vpack.i.bf16 %v10642_v18, %v10506_v6 }
 0x8f0   : > { %v9455_v55 = vsel %vm635_vm3, %v9453_v36, %v12860_v56  ;;  %v22422_v20 = vcombine.low %v22420_v41, %v22421_v19  ;;  %v9458_v28 = vsel %vm637_vm4, %v9456_v27, %v12871_v51  ;;  %v11286_v37 = vcombine.high %v11246_v21, %v11278_v3  ;;  %v11937_v41 = vld [vmem:[%s20528_s6 + $0x8] sm:$0xff] }
 0x8f1   : > { %v20250_v26 = vpop.permute.xlu1 %12878  ;;  %v9457_v46 = vsel %vm637_vm4, %v9455_v55, %v12870_v63  ;;  %v12846_v32 = vunpack.i.h.bf16 %v20074_v1  ;;  %v12886_v35 = vunpack.i.h.bf16 %v20184_v25  ;;  %v12885_v54 = vunpack.i.l.bf16 %v20184_v25 }
 0x8f2   : > { %13088 = vrot.lane.b32.xlu1 %v13087_v12, %s13231_s12  ;;  %13053 = vrot.lane.b32.xlu0 %v13052_v31, %s13229_s10  ;;  %v9465_v40 = vsel %vm631_vm1, %v22422_v20, %v12835_v43  ;;  %v12845_v12 = vunpack.i.l.bf16 %v20074_v1  ;;  %v9466_v56 = vsel %vm631_vm1, %v9331_v48, %v12836_v61  ;;  %v12856_v31 = vunpack.i.h.bf16 %v20108_v15 }
 0x8f3   : > { %v12855_v18 = vunpack.i.l.bf16 %v20108_v15  ;;  %v13107_v43 = vpack.i.bf16 %v11422_v2, %v11286_v37  ;;  %v12866_v51 = vunpack.i.h.bf16 %v20126_v4  ;;  %v12865_v3 = vunpack.i.l.bf16 %v20126_v4  ;;  %v12924_v15 = vpop.permute.xlu0 %12923 }
 0x8f4   : > { %v9459_v21 = vsel %vm639_vm5, %v9457_v46, %v12885_v54  ;;  %v9460_v1 = vsel %vm639_vm5, %v9458_v28, %v12886_v35  ;;  %v12876_v25 = vunpack.i.h.bf16 %v20148_v24  ;;  %v12875_v23 = vunpack.i.l.bf16 %v20148_v24  ;;  %v11840_v24 = vld [vmem:[%s20526_s4 + $0x8] sm:$0xff] }
 0x8f5   : > { %v12889_v50 = vpop.permute.xlu1 %12888  ;;  %v12906_v61 = vunpack.i.h.bf16 %v20238_v59  ;;  %v9467_v22 = vsel %vm633_vm2, %v9465_v40, %v12845_v12  ;;  %v9468_v4 = vsel %vm633_vm2, %v9466_v56, %v12846_v32  ;;  %v9461_v6 = vsel %vm641_vm6, %v9459_v21, %v12905_v10  ;;  %v11836_v28 = vld [vmem:[%s20525_s3 + $0x8] sm:$0xff]  ;;  %v11934_v12 = vld [vmem:[%s20527_s5] sm:$0xff] }
 0x8f6   : > { %13098 = vrot.lane.b32.xlu1 %v13097_v9, %s13232_s13  ;;  %13063 = vrot.lane.b32.xlu0 %v13062_v52, %s13233_s14  ;;  %v12891_v33 = vunpack.i.h.bf16 %v12889_v50  ;;  %v12890_v47 = vunpack.i.l.bf16 %v12889_v50  ;;  %v9469_v29 = vsel %vm635_vm3, %v9467_v22, %v12855_v18  ;;  %v9470_v59 = vsel %vm635_vm3, %v9468_v4, %v12856_v31  ;;  %v11935_v56 = vld [vmem:[%s20527_s5 + $0x8] sm:$0xff]  ;;  %v22425_v22 = vld [vmem:[#allocation242_spill] sm:$0xff] }
 0x8f7   : > { %v9462_v36 = vsel %vm641_vm6, %v9460_v1, %v12906_v61  ;;  %v9471_v49 = vsel %vm637_vm4, %v9469_v29, %v12865_v3  ;;  %v9472_v9 = vsel %vm637_vm4, %v9470_v59, %v12866_v51  ;;  %v12926_v2 = vunpack.i.h.bf16 %v12924_v15  ;;  %12137 = vmatprep.mubr.msk.f32.mxu1 %vm631_vm1, %v11836_v28  ;;  %12139 = vmatmul.mubr.msk.f32.vlgmr.msra.gmra.mrb[4].mxu0 %vm11948_vm13, %v11934_v12  ;;  %v12934_v18 = vpop.permute.xlu0 %12933 }
 0x8f8   : > { %v12925_v5 = vunpack.i.l.bf16 %v12924_v15  ;;  %v9474_v48 = vsel %vm639_vm5, %v9472_v9, %v12876_v25  ;;  %v22423_v54 = vmov 0.0   ;;  %v12880_v3 = vunpack.i.l.bf16 %v20250_v26  ;;  %v22424_v15 = vld [vmem:[#allocation11_spill] sm:$0xff] }
 0x8f9   : > { %v9476_v50 = vsel %vm641_vm6, %v9474_v48, %v12891_v33  ;;  %v9464_v20 = vsel %vm643_vm7, %v9462_v36, %v12926_v2  ;;  %12025 = vmatprep.mubr.f32.mxu0 %v22423_v54  ;;  %v22426_v4 = vcombine.low %v22424_v15, %v22425_v22  ;;  %v12935_v9 = vunpack.i.l.bf16 %v12934_v18  ;;  %v22434_v22 = vld [vmem:[#allocation240_spill] sm:$0xff] }
 0x8fa   : > { %13108 = vrot.lane.b32.xlu1 %v13107_v43, %s13233_s14  ;;  %13073 = vrot.lane.b32.xlu0 %v20084_v53, %s13230_s11  ;;  %v9473_v53 = vsel %vm639_vm5, %v9471_v49, %v12875_v23  ;;  %v9463_v19 = vsel %vm643_vm7, %v9461_v6, %v12925_v5  ;;  %v11936_v43 = vld [vmem:[%s20528_s6] sm:$0xff]  ;;  %v12936_v49 = vunpack.i.h.bf16 %v12934_v18  ;;  %v12895_v18 = vunpack.i.l.bf16 %v20222_v44 }
 0x8fb   : > { %v20291_v63 = vpop.permute.xlu1 %12898  ;;  %v9475_v52 = vsel %vm641_vm6, %v9473_v53, %v12890_v47  ;;  %12140 = vmatmul.mubr.msk.f32.gmra.mrb[6].mxu0 %vm11948_vm13, %v11935_v56  ;;  %v12944_v10 = vpop.permute.xlu0 %12943  ;;  %v22427_v47 = vld [vmem:[#allocation161_spill] sm:$0xff] }
 0x8fc   : > { %v12901_v21 = vunpack.i.h.bf16 %v20291_v63  ;;  %v12900_v1 = vunpack.i.l.bf16 %v20291_v63 }
 0x8fe   : > { %11848 = vperm.xlu1 %12480, %v11840_v24   ;;  %13083 = vrot.lane.b32.xlu0 %v20093_v34, %s13231_s12  ;;  %v12186_v34 = vpack.c.bf16 %v9464_v20, %v9463_v19  ;;  %v22428_v24 = vld [vmem:[#allocation241_spill] sm:$0xff] }
 0x8ff   : > { %v12909_v0 = vpop.permute.xlu1 %12908  ;;  %v22429_v29 = vcombine.low %v22427_v47, %v22428_v24  ;;  %v22437_v47 = vld [vmem:[#allocation238_spill] sm:$0xff] }
 0x900   : > { %v12911_v55 = vunpack.i.h.bf16 %v12909_v0  ;;  %v12910_v27 = vunpack.i.l.bf16 %v12909_v0 }
 0x901   : > { %v10261_v59 = vsel %vm631_vm1, %v22429_v29, %v12880_v3  ;;  %v22431_v3 = vld [vmem:[#allocation126_spill] sm:$0xff] }
 0x902   : > { %v9477_v40 = vsel %vm643_vm7, %v9475_v52, %v12910_v27  ;;  %v9478_v46 = vsel %vm643_vm7, %v9476_v50, %v12911_v55  ;;  %11945 = vperm.xlu1 %12480, %v11937_v41   ;;  %13093 = vrot.lane.b32.xlu0 %v20104_v62, %s13232_s13  ;;  %v11839_v62 = vld [vmem:[%s20526_s4] sm:$0xff]  ;;  %v12946_v55 = vunpack.i.h.bf16 %v12944_v10  ;;  %v12945_v27 = vunpack.i.l.bf16 %v12944_v10  ;;  %v12954_v50 = vpop.permute.xlu0 %12953 }
 0x903   : > { %v12919_v37 = vpop.permute.xlu1 %12918  ;;  %v12184_v32 = vpack.c.bf16 %v9478_v46, %v9477_v40 }
 0x904   : > { %v12921_v25 = vunpack.i.h.bf16 %v12919_v37  ;;  %v12920_v23 = vunpack.i.l.bf16 %v12919_v37 }
 0x905   : > { %12185 = vmatprep.subr.bf16.mxu1 %v12184_v32 }
 0x906   : > { %12187 = vmatpush1.bf16.msra.mxu1 %v12186_v34  ;;  %13103 = vrot.lane.b32.xlu0 %v20114_v14, %s13233_s14  ;;  %v12881_v14 = vunpack.i.h.bf16 %v20250_v26  ;;  %v10263_v26 = vsel %vm633_vm2, %v10261_v59, %v12900_v1 }
 0x907   : > { %v20333_v35 = vpop.permute.xlu1 %12928  ;;  %v10265_v63 = vsel %vm635_vm3, %v10263_v26, %v12920_v23  ;;  %v12915_v23 = vunpack.i.l.bf16 %v20264_v58 }
 0x908   : > { %v10262_v33 = vsel %vm631_vm1, %v22426_v4, %v12881_v14  ;;  %v10267_v5 = vsel %vm637_vm4, %v10265_v63, %v12935_v9  ;;  %v12931_v10 = vunpack.i.h.bf16 %v20333_v35 }
 0x909   : > { %v10264_v6 = vsel %vm633_vm2, %v10262_v33, %v12901_v21  ;;  %v10269_v41 = vsel %vm639_vm5, %v10267_v5, %v12945_v27  ;;  %v22432_v21 = vcombine.low %v19849_v7, %v22431_v3  ;;  %v22436_v33 = vld [vmem:[#allocation157_spill] sm:$0xff] }
 0x90a   : > { %11843 = vperm.xlu0 %12481, %v11839_v62   ;;  %v10266_v36 = vsel %vm635_vm3, %v10264_v6, %v12921_v25  ;;  %v12896_v62 = vunpack.i.h.bf16 %v20222_v44  ;;  %v12916_v25 = vunpack.i.h.bf16 %v20264_v58  ;;  %v12930_v44 = vunpack.i.l.bf16 %v20333_v35 }
 0x90b   : > { %v20344_v31 = vpop.permute.xlu1 %12938  ;;  %v10268_v0 = vsel %vm637_vm4, %v10266_v36, %v12936_v49  ;;  %v22438_v24 = vcombine.low %v22436_v33, %v22437_v47 }
 0x90c   : > { %v10270_v19 = vsel %vm639_vm5, %v10268_v0, %v12946_v55  ;;  %v12941_v15 = vunpack.i.h.bf16 %v20344_v31  ;;  %v12956_v0 = vunpack.i.h.bf16 %v12954_v50 }
 0x90d   : > { %v10247_v29 = vsel %vm631_vm1, %v22438_v24, %v12895_v18 }
 0x90e   : > { %11940 = vperm.xlu0 %12481, %v11936_v43   ;;  %v22430_v43 = vcombine.low %v19770_v13, %v19752_v39  ;;  %v12940_v39 = vunpack.i.l.bf16 %v20344_v31  ;;  %v22433_v13 = vld [vmem:[#allocation163_spill] sm:$0xff]  ;;  %v10249_v58 = vsel %vm633_vm2, %v10247_v29, %v12915_v23 }
 0x90f   : > { %v20349_v51 = vpop.permute.xlu1 %12948  ;;  %v22435_v4 = vcombine.low %v22433_v13, %v22434_v22  ;;  %v10251_v6 = vsel %vm635_vm3, %v10249_v58, %v12930_v44 }
 0x910   : > { %v10253_v36 = vsel %vm637_vm4, %v10251_v6, %v12940_v39  ;;  %v12951_v18 = vunpack.i.h.bf16 %v20349_v51 }
 0x911   : > { %v10248_v7 = vsel %vm631_vm1, %v22435_v4, %v12896_v62 }
 0x912   : > { %v10250_v59 = vsel %vm633_vm2, %v10248_v7, %v12916_v25  ;;  %v22440_v25 = vld [vmem:[#allocation9_spill] sm:$0xff] }
 0x913   : > { %v12959_v61 = vpop.permute.xlu1 %12958  ;;  %v10252_v35 = vsel %vm635_vm3, %v10250_v59, %v12931_v10  ;;  %v22442_v10 = vld [vmem:[#allocation59_spill] sm:$0xff] }
 0x914   : > { %v12961_v53 = vunpack.i.h.bf16 %v12959_v61  ;;  %v12960_v48 = vunpack.i.l.bf16 %v12959_v61  ;;  %v10254_v49 = vsel %vm637_vm4, %v10252_v35, %v12941_v15 }
 0x916   : > { %v10271_v46 = vsel %vm641_vm6, %v10269_v41, %v12960_v48  ;;  %v10272_v28 = vsel %vm641_vm6, %v10270_v19, %v12961_v53  ;;  %v12955_v53 = vunpack.i.l.bf16 %v12954_v50  ;;  %v10256_v41 = vsel %vm639_vm5, %v10254_v49, %v12956_v0 }
 0x917   : > { %v20367_v2 = vpop.permute.xlu1 %12968 }
 0x918   : > { %v12970_v3 = vunpack.i.l.bf16 %v20367_v2 }
 0x91b   : > { %v12979_v52 = vpop.permute.xlu1 %12978 }
 0x91c   : > { %v12981_v20 = vunpack.i.h.bf16 %v12979_v52  ;;  %v12980_v40 = vunpack.i.l.bf16 %v12979_v52  ;;  %v10255_v52 = vsel %vm639_vm5, %v10253_v36, %v12955_v53 }
 0x91e   : > { %v12964_v37 = vpop.permute.xlu0 %12963  ;;  %v10273_v32 = vsel %vm643_vm7, %v10271_v46, %v12980_v40  ;;  %v10274_v34 = vsel %vm643_vm7, %v10272_v28, %v12981_v20 }
 0x91f   : > { %v12966_v12 = vunpack.i.h.bf16 %v12964_v37  ;;  %v12965_v54 = vunpack.i.l.bf16 %v12964_v37  ;;  %v12188_v56 = vpack.c.bf16 %v10274_v34, %v10273_v32  ;;  %v12989_v37 = vpop.permute.xlu1 %12988 }
 0x920   : > { %v12991_v15 = vunpack.i.h.bf16 %v12989_v37  ;;  %v12990_v39 = vunpack.i.l.bf16 %v12989_v37 }
 0x921   : > { %v11027_v14 = vsel %vm631_vm1, %v22430_v43, %v12965_v54  ;;  %v11028_v1 = vsel %vm631_vm1, %v22432_v21, %v12966_v12  ;;  %12189 = vmatprep.subr.bf16.mxu1 %v12188_v56  ;;  %v12950_v43 = vunpack.i.l.bf16 %v20349_v51 }
 0x922   : > { %v12974_v61 = vpop.permute.xlu0 %12973 }
 0x923   : > { %v12976_v9 = vunpack.i.h.bf16 %v12974_v61  ;;  %v12975_v5 = vunpack.i.l.bf16 %v12974_v61  ;;  %v12999_v34 = vpop.permute.xlu1 %12998  ;;  %v22441_v61 = vld [vmem:[#allocation226_spill] sm:$0xff] }
 0x924   : > { %v10907_v44 = vcombine.low %v22442_v10, %v22441_v61 }
 0x925   : > { %v10257_v40 = vsel %vm641_vm6, %v10255_v52, %v12975_v5  ;;  %v10258_v46 = vsel %vm641_vm6, %v10256_v41, %v12976_v9 }
 0x926   : > { %v12984_v26 = vpop.permute.xlu0 %12983  ;;  %v11042_v7 = vsel %vm631_vm1, %v10907_v44, %v12951_v18 }
 0x927   : > { %v12986_v31 = vunpack.i.h.bf16 %v12984_v26  ;;  %v12985_v63 = vunpack.i.l.bf16 %v12984_v26  ;;  %v13009_v12 = vpop.permute.xlu1 %13008 }
 0x928   : > { %v13010_v37 = vunpack.i.l.bf16 %v13009_v12 }
 0x929   : > { %v20408_v48 = vsel %vm633_vm2, %v11027_v14, %v12985_v63  ;;  %v20411_v55 = vsel %vm633_vm2, %v11028_v1, %v12986_v31  ;;  %v12971_v14 = vunpack.i.h.bf16 %v20367_v2  ;;  %v22439_v1 = vld [vmem:[#allocation217_spill] sm:$0xff] }
 0x92a   : > { %v12994_v27 = vpop.permute.xlu0 %12993  ;;  %v10771_v23 = vcombine.low %v22440_v25, %v22439_v1 }
 0x92b   : > { %v12996_v19 = vunpack.i.h.bf16 %v12994_v27  ;;  %v12995_v20 = vunpack.i.l.bf16 %v12994_v27  ;;  %v11044_v24 = vsel %vm633_vm2, %v11042_v7, %v12971_v14 }
 0x92c   : > { %v11041_v51 = vsel %vm631_vm1, %v10771_v23, %v12950_v43  ;;  %v11046_v26 = vsel %vm635_vm3, %v11044_v24, %v12991_v15 }
 0x92d   : > { %v10259_v28 = vsel %vm643_vm7, %v10257_v40, %v12995_v20  ;;  %v10260_v50 = vsel %vm643_vm7, %v10258_v46, %v12996_v19  ;;  %v11043_v2 = vsel %vm633_vm2, %v11041_v51, %v12970_v3  ;;  %v13001_v46 = vunpack.i.h.bf16 %v12999_v34 }
 0x92e   : > { %v12190_v32 = vpack.c.bf16 %v10260_v50, %v10259_v28  ;;  %v13004_v54 = vpop.permute.xlu0 %13003  ;;  %v11045_v59 = vsel %vm635_vm3, %v11043_v2, %v12990_v39  ;;  %v13000_v28 = vunpack.i.l.bf16 %v12999_v34  ;;  %v13011_v50 = vunpack.i.h.bf16 %v13009_v12 }
 0x92f   : > { %v13006_v13 = vunpack.i.h.bf16 %v13004_v54  ;;  %v13005_v22 = vunpack.i.l.bf16 %v13004_v54 }
 0x930   : > { %12191 = vmatpush1.bf16.msra.mxu1 %v12190_v32  ;;  %v11031_v54 = vsel %vm635_vm3, %v20408_v48, %v13000_v28 }
 0x931   : > { %v11047_v35 = vsel %vm637_vm4, %v11045_v59, %v13005_v22  ;;  %v11048_v6 = vsel %vm637_vm4, %v11046_v26, %v13006_v13  ;;  %v11033_v1 = vsel %vm637_vm4, %v11031_v54, %v13010_v37 }
 0x932   : > { %v13014_v21 = vpop.permute.xlu0 %13013 }
 0x933   : > { %v13016_v33 = vunpack.i.h.bf16 %v13014_v21  ;;  %v13015_v47 = vunpack.i.l.bf16 %v13014_v21 }
 0x935   : > { %v11049_v63 = vsel %vm639_vm5, %v11047_v35, %v13015_v47  ;;  %v11050_v36 = vsel %vm639_vm5, %v11048_v6, %v13016_v33 }
 0x936   : > { %v13024_v19 = vpop.permute.xlu0 %13023 }
 0x937   : > { %v13026_v18 = vunpack.i.h.bf16 %v13024_v19  ;;  %v13025_v43 = vunpack.i.l.bf16 %v13024_v19 }
 0x939   : > { %v11035_v34 = vsel %vm639_vm5, %v11033_v1, %v13025_v43 }
 0x93c   : > { %v20419_v56 = vpop.permute.xlu1 %13018 }
 0x93d   : > { %v13020_v37 = vunpack.i.l.bf16 %v20419_v56 }
 0x940   : > { %v13029_v62 = vpop.permute.xlu1 %13028 }
 0x941   : > { %v13031_v29 = vunpack.i.h.bf16 %v13029_v62  ;;  %v13030_v58 = vunpack.i.l.bf16 %v13029_v62  ;;  %v11032_v62 = vsel %vm635_vm3, %v20411_v55, %v13001_v46 }
 0x942   : > { %v11034_v25 = vsel %vm637_vm4, %v11032_v62, %v13011_v50  ;;  %v13021_v50 = vunpack.i.h.bf16 %v20419_v56 }
 0x943   : > { %v11051_v5 = vsel %vm641_vm6, %v11049_v63, %v13030_v58  ;;  %v11052_v0 = vsel %vm641_vm6, %v11050_v36, %v13031_v29  ;;  %v11036_v12 = vsel %vm639_vm5, %v11034_v25, %v13026_v18  ;;  %v22444_v25 = vcombine.low %v19966_v16, %v19969_v60 }
 0x944   : > { %v20429_v4 = vpop.permute.xlu1 %13038 }
 0x945   : > { %v13040_v54 = vunpack.i.l.bf16 %v20429_v4  ;;  %v11821_v56 = vsel %vm631_vm1, %v22444_v25, %v13020_v37 }
 0x948   : > { %v13049_v31 = vpop.permute.xlu1 %13048 }
 0x949   : > { %v13051_v49 = vunpack.i.h.bf16 %v13049_v31  ;;  %v13050_v9 = vunpack.i.l.bf16 %v13049_v31 }
 0x94b   : > { %v11053_v53 = vsel %vm643_vm7, %v11051_v5, %v13050_v9  ;;  %v11054_v27 = vsel %vm643_vm7, %v11052_v0, %v13051_v49 }
 0x94c   : > { %v12192_v52 = vpack.c.bf16 %v11054_v27, %v11053_v53  ;;  %v20445_v41 = vpop.permute.xlu1 %13058 }
 0x94d   : > { %v13061_v62 = vunpack.i.h.bf16 %v20445_v41  ;;  %v13060_v18 = vunpack.i.l.bf16 %v20445_v41 }
 0x94e   : > { %12193 = vmatprep.subr.bf16.mxu1 %v12192_v52 }
 0x95c   : > { %v13069_v20 = vpop.permute.xlu1 %13068  ;;  %v13034_v40 = vpop.permute.xlu0 %13033 }
 0x95d   : > { %v13036_v3 = vunpack.i.h.bf16 %v13034_v40  ;;  %v13035_v21 = vunpack.i.l.bf16 %v13034_v40  ;;  %v13071_v61 = vunpack.i.h.bf16 %v13069_v20  ;;  %v13070_v10 = vunpack.i.l.bf16 %v13069_v20 }
 0x95f   : > { %v11807_v55 = vsel %vm631_vm1, %v11279_v17, %v13035_v21  ;;  %v11808_v44 = vsel %vm631_vm1, %v11415_v45, %v13036_v3  ;;  %v22443_v21 = vcombine.low %v20041_v57, %v20044_v11 }
 0x960   : > { %v13079_v32 = vpop.permute.xlu1 %13078  ;;  %v13044_v14 = vpop.permute.xlu0 %13043 }
 0x961   : > { %v13046_v13 = vunpack.i.h.bf16 %v13044_v14  ;;  %v13045_v22 = vunpack.i.l.bf16 %v13044_v14  ;;  %v13081_v7 = vunpack.i.h.bf16 %v13079_v32  ;;  %v13080_v51 = vunpack.i.l.bf16 %v13079_v32 }
 0x962   : > { %v13041_v32 = vunpack.i.h.bf16 %v20429_v4  ;;  %v11822_v1 = vsel %vm631_vm1, %v22443_v21, %v13021_v50  ;;  %v11823_v4 = vsel %vm633_vm2, %v11821_v56, %v13040_v54 }
 0x963   : > { %v11037_v35 = vsel %vm641_vm6, %v11035_v34, %v13045_v22  ;;  %v11038_v6 = vsel %vm641_vm6, %v11036_v12, %v13046_v13 }
 0x964   : > { %v13089_v23 = vpop.permute.xlu1 %13088  ;;  %v13054_v48 = vpop.permute.xlu0 %13053  ;;  %v11824_v12 = vsel %vm633_vm2, %v11822_v1, %v13041_v32 }
 0x965   : > { %v13056_v15 = vunpack.i.h.bf16 %v13054_v48  ;;  %v13055_v39 = vunpack.i.l.bf16 %v13054_v48  ;;  %v13091_v2 = vunpack.i.h.bf16 %v13089_v23  ;;  %v13090_v24 = vunpack.i.l.bf16 %v13089_v23 }
 0x966   : > { %v11826_v48 = vsel %vm635_vm3, %v11824_v12, %v13061_v62 }
 0x967   : > { %v11809_v33 = vsel %vm633_vm2, %v11807_v55, %v13055_v39  ;;  %v11810_v47 = vsel %vm633_vm2, %v11808_v44, %v13056_v15 }
 0x968   : > { %v13099_v42 = vpop.permute.xlu1 %13098  ;;  %v11811_v30 = vsel %vm635_vm3, %v11809_v33, %v13070_v10  ;;  %v11812_v17 = vsel %vm635_vm3, %v11810_v47, %v13071_v61  ;;  %v13064_v8 = vpop.permute.xlu0 %13063  ;;  %v11825_v10 = vsel %vm635_vm3, %v11823_v4, %v13060_v18  ;;  %v11835_v33 = vld [vmem:[%s20525_s3] sm:$0xff]  ;;  %v11838_v47 = vld [vmem:[%s20525_s3 + $0x18] sm:$0xff] }
 0x969   : > { %v13101_v38 = vunpack.i.h.bf16 %v13099_v42  ;;  %v13100_v45 = vunpack.i.l.bf16 %v13099_v42  ;;  %v11813_v29 = vsel %vm637_vm4, %v11811_v30, %v13080_v51  ;;  %v11814_v58 = vsel %vm637_vm4, %v11812_v17, %v13081_v7 }
 0x96a   : > { %v13066_v59 = vunpack.i.h.bf16 %v13064_v8  ;;  %v13065_v26 = vunpack.i.l.bf16 %v13064_v8  ;;  %v11815_v31 = vsel %vm639_vm5, %v11813_v29, %v13090_v24  ;;  %v11816_v63 = vsel %vm639_vm5, %v11814_v58, %v13091_v2  ;;  %v11837_v2 = vld [vmem:[%s20525_s3 + $0x10] sm:$0xff] }
 0x96b   : > { %v11817_v52 = vsel %vm641_vm6, %v11815_v31, %v13100_v45  ;;  %v11818_v19 = vsel %vm641_vm6, %v11816_v63, %v13101_v38 }
 0x96c   : > { %v13109_v36 = vpop.permute.xlu1 %13108  ;;  %v11039_v49 = vsel %vm643_vm7, %v11037_v35, %v13065_v26  ;;  %v11040_v9 = vsel %vm643_vm7, %v11038_v6, %v13066_v59  ;;  %v13074_v5 = vpop.permute.xlu0 %13073 }
 0x96d   : > { %v13111_v0 = vunpack.i.h.bf16 %v13109_v36  ;;  %v13110_v53 = vunpack.i.l.bf16 %v13109_v36  ;;  %v12194_v27 = vpack.c.bf16 %v11040_v9, %v11039_v49  ;;  %v13076_v43 = vunpack.i.h.bf16 %v13074_v5 }
 0x96e   : > { %v13075_v14 = vunpack.i.l.bf16 %v13074_v5 }
 0x96f   : > { %12195 = vmatpush1.bf16.msra.mxu1 %v12194_v27  ;;  %v11819_v20 = vsel %vm643_vm7, %v11817_v52, %v13110_v53  ;;  %v11820_v40 = vsel %vm643_vm7, %v11818_v19, %v13111_v0  ;;  %v11828_v11 = vsel %vm637_vm4, %v11826_v48, %v13076_v43 }
 0x970   : > { %v12198_v46 = vpack.c.bf16 %v11820_v40, %v11819_v20  ;;  %v13084_v28 = vpop.permute.xlu0 %13083  ;;  %v11827_v57 = vsel %vm637_vm4, %v11825_v10, %v13075_v14 }
 0x971   : > { %v13086_v23 = vunpack.i.h.bf16 %v13084_v28  ;;  %v13085_v34 = vunpack.i.l.bf16 %v13084_v28 }
 0x973   : > { %v11829_v16 = vsel %vm639_vm5, %v11827_v57, %v13085_v34  ;;  %v11830_v60 = vsel %vm639_vm5, %v11828_v11, %v13086_v23 }
 0x974   : > { %v13094_v3 = vpop.permute.xlu0 %13093 }
 0x975   : > { %v13096_v41 = vunpack.i.h.bf16 %v13094_v3  ;;  %v13095_v61 = vunpack.i.l.bf16 %v13094_v3 }
 0x977   : > { %v11831_v39 = vsel %vm641_vm6, %v11829_v16, %v13095_v61  ;;  %v11832_v13 = vsel %vm641_vm6, %v11830_v60, %v13096_v41 }
 0x978   : > { %v13104_v55 = vpop.permute.xlu0 %13103 }
 0x979   : > { %v13106_v44 = vunpack.i.h.bf16 %v13104_v55  ;;  %v13105_v15 = vunpack.i.l.bf16 %v13104_v55 }
 0x97b   : > { %v11833_v22 = vsel %vm643_vm7, %v11831_v39, %v13105_v15  ;;  %v11834_v7 = vsel %vm643_vm7, %v11832_v13, %v13106_v44 }
 0x97c   : > { %v12196_v51 = vpack.c.bf16 %v11834_v7, %v11833_v22 }
 0x97d   : > { %v11849_v38 = vpop.permute.xlu1 %11848 }
 0x97e   : > { %12197 = vmatprep.subr.bf16.mxu1 %v12196_v51 }
 0x97f   : > { %12199 = vmatpush1.bf16.msra.mxu1 %v12198_v46 }
 0x981   : > { %v11946_v9 = vpop.permute.xlu1 %11945 }
 0x982   : > { %11922 = vmatmul.mubr.f32.vlgmr.msra.gmra.mrb[0].mxu1 %v11835_v33 }
 0x983   : > { %12138 = vmatprep.mubr.msk.f32.mxu1 %vm631_vm1, %v11838_v47 }
 0x986   : > { %11928 = vmatmul.mubr.f32.gmra.mrb[2].mxu1 %v11837_v2 }
 0x989   : > { %v11844_v8 = vpop.permute.xlu0 %11843 }
 0x98d   : > { %v11941_v59 = vpop.permute.xlu0 %11940 }
 0x9ca   : > { %v12021_v24 = vpop.f32.mrb[4].mxu0 }
 0x9cb   : > { %v12023_v42 = vpop.f32.mrb[5].mxu0 }
 0x9ce   : > { %v12027_v30 = vpop.f32.mrb[6].mxu0 }
 0x9cf   : > { %v12029_v17 = vpop.f32.mrb[7].mxu0 }
 0xa55   : > { %v11923_v45 = vpop.f32.mrb[0].mxu1 }
 0xa56   : > { %v11924_v29 = vadd.f32 %v11923_v45, %v11844_v8  ;;  %v11925_v58 = vpop.f32.mrb[1].mxu1 }
 0xa57   : > { %v11926_v26 = vadd.f32 %v11925_v58, %v11844_v8 }
 0xa58   : > { %v12201_v35 = vadd.f32 %v11941_v59, %v11924_v29 }
 0xa59   : > { %v11929_v6 = vpop.f32.mrb[2].mxu1  ;;  %v12204_v31 = vadd.f32 %v11941_v59, %v11926_v26 }
 0xa5a   : > { %v12202_v63 = vadd.f32 %v12201_v35, %v12021_v24  ;;  %v11930_v36 = vadd.f32 %v11929_v6, %v11849_v38  ;;  %v11931_v49 = vpop.f32.mrb[3].mxu1 }
 0xa5b   : > { %v12205_v5 = vadd.f32 %v12204_v31, %v12023_v42  ;;  %v11932_v0 = vadd.f32 %v11931_v49, %v11849_v38 }
 0xa5c   : > { %v12141_v53 = vmul.f32 -1.442695, %v12202_v63  ;;  %v12207_v27 = vadd.f32 %v11946_v9, %v11930_v36 }
 0xa5d   : > { %v12142_v52 = vmul.f32 -1.442695, %v12205_v5  ;;  %v12210_v19 = vadd.f32 %v11946_v9, %v11932_v0 }
 0xa5e   : > { %13156 = vpow2.f32 %v12141_v53  ;;  %v12208_v20 = vadd.f32 %v12207_v27, %v12027_v30 }
 0xa5f   : > { %13158 = vpow2.f32 %v12142_v52  ;;  %v12211_v40 = vadd.f32 %v12210_v19, %v12029_v17 }
 0xa60   : > { %v12143_v46 = vmul.f32 -1.442695, %v12208_v20 }
 0xa61   : > { %v12144_v28 = vmul.f32 -1.442695, %v12211_v40 }
 0xa62   : > { %13160 = vpow2.f32 %v12143_v46 }
 0xa63   : > { %13162 = vpow2.f32 %v12144_v28 }
 0xa68   : > { %v13157_v50 = vpop.eup %13156 }
 0xa69   : > { %v13159_v37 = vpop.eup %13158  ;;  %v12048_v32 = vadd.f32 1.0, %v13157_v50 }
 0xa6a   : > { %v12049_v54 = vadd.f32 1.0, %v13159_v37 }
 0xa6b   : > { %13164 = vrcp.f32 %v12048_v32 }
 0xa6c   : > { %v13161_v62 = vpop.eup %13160  ;;  %13166 = vrcp.f32 %v12049_v54 }
 0xa6d   : > { %v13163_v18 = vpop.eup %13162  ;;  %v12050_v43 = vadd.f32 1.0, %v13161_v62 }
 0xa6e   : > { %v12051_v14 = vadd.f32 1.0, %v13163_v18 }
 0xa6f   : > { %13168 = vrcp.f32 %v12050_v43 }
 0xa70   : > { %13170 = vrcp.f32 %v12051_v14 }
 0xa75   : > { %v13165_v3 = vpop.eup %13164 }
 0xa76   : > { %v13167_v21 = vpop.eup %13166  ;;  %v12060_v1 = vmul.f32 %v13165_v3, %v12202_v63 }
 0xa77   : > { %v12061_v25 = vmul.f32 %v13167_v21, %v12205_v5 }
 0xa78   : > { %12064 = vst [vmem:[%s278_s29] sm:$0xff] %v12060_v1 }
 0xa79   : > { %v13169_v56 = vpop.eup %13168  ;;  %12065 = vst [vmem:[%s278_s29 + $0x8] sm:$0xff] %v12061_v25 }
 0xa7a   : > { %v13171_v23 = vpop.eup %13170  ;;  %v12062_v34 = vmul.f32 %v13169_v56, %v12208_v20 }
 0xa7b   : > { %v12063_v4 = vmul.f32 %v13171_v23, %v12211_v40 }
 0xa7c   : > { %12066 = vst [vmem:[%s278_s29 + $0x10] sm:$0xff] %v12062_v34 }
 0xa7d   : > { %12067 = vst [vmem:[%s278_s29 + $0x18] sm:$0xff] %v12063_v4 }
 0xa7e PF: > { %s17_s24 = sadd.s32 1, %s13222_s24  }
 0xa7f   : > { %p14_p4 = scmp.ge.s32.totalorder %s17_s24, 4  }
 0xa81   :  { %16 = sbr.rel (!%p14_p4) target bundleno = 1 (0x1), region = 78 }

</bundles_post_ra>
